<compile_context>
chip_gen: v6e
topology: v6e:2x2x1
jax: 0.10.0
libtpu: 0.0.40
codegen_flags: <defaults>
</compile_context>

<pallas_src>
import jax
import jax.numpy as jnp
from jax.experimental import pallas as pl
from jax.experimental.pallas import tpu as pltpu

X_DIM = 784    # MNIST input dim from the script
N_HID = 1000   # N = 1000 in the script
Z_DIM = 8      # z_dim (argparse in original); small deterministic choice

X_PAD = 896    # 784 -> 7*128: lane-dense x / W1-K tiles
H_PAD = 1024   # hidden padded to a multiple of 128
Z_PAD = 128    # output padded to one full lane tile (unmasked stores)


def q_net_kernel(x_ref, w1_ref, b1_ref, w2_ref, b2_ref, w3_ref, b3_ref, o_ref):
    # lin1 -> dropout (eval-mode identity) -> relu.  x arrives pre-cast to bf16.
    # TODO(synk): training-mode dropout (p=0.2) not implemented; this matches
    #             model.eval() semantics (would need pltpu.prng_seed/prng_random_bits).
    h = jnp.dot(x_ref[...], w1_ref[...], preferred_element_type=jnp.float32) + b1_ref[...]
    h = jnp.maximum(h, 0.0)

    # lin2 -> dropout (eval-mode identity) -> relu
    h = jnp.dot(h.astype(jnp.bfloat16), w2_ref[...],
                preferred_element_type=jnp.float32) + b2_ref[...]
    h = jnp.maximum(h, 0.0)

    # lin3gauss
    out = jnp.dot(h.astype(jnp.bfloat16), w3_ref[...],
                  preferred_element_type=jnp.float32) + b3_ref[...]
    o_ref[...] = out.astype(o_ref.dtype)


def pad_params(params):
    """One-time prep: zero-pad to (8,128)-friendly shapes; weights -> bf16, biases f32.

    Call ONCE at init and reuse the result — do not redo this per forward call.
    """
    w1, b1, w2, b2, w3, b3 = params  # w: [in, out], b: [1, out], all f32
    w1p = jnp.zeros((X_PAD, H_PAD), jnp.bfloat16).at[:X_DIM, :N_HID].set(w1.astype(jnp.bfloat16))
    b1p = jnp.zeros((1, H_PAD), jnp.float32).at[:, :N_HID].set(b1)
    w2p = jnp.zeros((H_PAD, H_PAD), jnp.bfloat16).at[:N_HID, :N_HID].set(w2.astype(jnp.bfloat16))
    b2p = jnp.zeros((1, H_PAD), jnp.float32).at[:, :N_HID].set(b2)
    w3p = jnp.zeros((H_PAD, Z_PAD), jnp.bfloat16).at[:N_HID, :Z_DIM].set(w3.astype(jnp.bfloat16))
    b3p = jnp.zeros((1, Z_PAD), jnp.float32).at[:, :Z_DIM].set(b3)
    return w1p, b1p, w2p, b2p, w3p, b3p


@jax.jit
def q_net_forward(x, padded_params):
    """x: [B, X_DIM] float32. padded_params: output of pad_params()."""
    w1p, b1p, w2p, b2p, w3p, b3p = padded_params
    B = x.shape[0]

    # 256-row tiles amortize the 256-wide MXU (v6e/v7x) once the grid stays >= 2;
    # otherwise 128 keeps >= 2 parallel grid steps for v7x's two TensorCores.
    tile_b = 256 if B >= 512 else 128
    b_pad = pl.cdiv(B, tile_b) * tile_b

    # bf16 cast + batch/lane zero-padding fuse under jit around the kernel call.
    xp = jnp.pad(x.astype(jnp.bfloat16), ((0, b_pad - B), (0, X_PAD - X_DIM)))
    grid = (b_pad // tile_b,)

    flops = 2 * b_pad * (X_PAD * H_PAD + H_PAD * H_PAD + H_PAD * Z_PAD)
    bytes_accessed = (
        xp.size * xp.dtype.itemsize
        + sum(a.size * a.dtype.itemsize for a in (w1p, b1p, w2p, b2p, w3p, b3p))
        + b_pad * Z_PAD * 4
    )

    resident = pl.Buffered(1)  # constant index_map -> no point double-buffering weights

    out = pl.pallas_call(
        q_net_kernel,
        out_shape=jax.ShapeDtypeStruct((b_pad, Z_PAD), jnp.float32),
        grid=grid,
        in_specs=[
            pl.BlockSpec((tile_b, X_PAD), lambda i: (i, 0)),   # x: tiled over batch, bf16
            pl.BlockSpec((X_PAD, H_PAD), lambda i: (0, 0), pipeline_mode=resident),
            pl.BlockSpec((1, H_PAD), lambda i: (0, 0), pipeline_mode=resident),
            pl.BlockSpec((H_PAD, H_PAD), lambda i: (0, 0), pipeline_mode=resident),
            pl.BlockSpec((1, H_PAD), lambda i: (0, 0), pipeline_mode=resident),
            pl.BlockSpec((H_PAD, Z_PAD), lambda i: (0, 0), pipeline_mode=resident),
            pl.BlockSpec((1, Z_PAD), lambda i: (0, 0), pipeline_mode=resident),
        ],
        out_specs=pl.BlockSpec((tile_b, Z_PAD), lambda i: (i, 0)),  # lane-dense output
        compiler_params=pltpu.CompilerParams(
            dimension_semantics=("parallel",),
            vmem_limit_bytes=32 * 1024 * 1024,   # ~6 MiB working set; safe on v5e/v6e/v7x
        ),
        cost_estimate=pl.CostEstimate(
            flops=flops, transcendentals=0, bytes_accessed=bytes_accessed),
    )(xp, w1p, b1p, w2p, b2p, w3p, b3p)

    return out[:B, :Z_DIM]


def init_params(key):
    """Deterministic init mimicking nn.Linear's U(-1/sqrt(fan_in), 1/sqrt(fan_in)).
    Weights are returned pre-transposed as [in, out]."""
    def linear(key, fan_in, fan_out):
        kw, kb = jax.random.split(key)
        bound = 1.0 / jnp.sqrt(jnp.float32(fan_in))
        w = jax.random.uniform(kw, (fan_in, fan_out), jnp.float32, -bound, bound)
        b = jax.random.uniform(kb, (1, fan_out), jnp.float32, -bound, bound)
        return w, b

    k1, k2, k3 = jax.random.split(key, 3)
    w1, b1 = linear(k1, X_DIM, N_HID)
    w2, b2 = linear(k2, N_HID, N_HID)
    w3, b3 = linear(k3, N_HID, Z_DIM)
    return (w1, b1, w2, b2, w3, b3)


def q_net_reference(x, params):
    """Pure-JAX reference using the same bf16-inputs / f32-accumulate math."""
    w1, b1, w2, b2, w3, b3 = params

    def dot_bf16(a, w):
        return jnp.dot(a.astype(jnp.bfloat16), w.astype(jnp.bfloat16),
                       preferred_element_type=jnp.float32)

    h = jnp.maximum(dot_bf16(x, w1) + b1, 0.0)
    h = jnp.maximum(dot_bf16(h, w2) + b2, 0.0)
    return dot_bf16(h, w3) + b3


if __name__ == "__main__":
    key = jax.random.PRNGKey(0)
    kx, kp = jax.random.split(key)

    # Two 128-row batch tiles -> grid=(2,) parallel steps (feeds both v7x TCs).
    B = 256
    x = jax.random.normal(kx, (B, X_DIM), jnp.float32)
    params = init_params(kp)

    # One-time weight prep (padded bf16 weights stay resident across calls).
    padded_params = jax.tree_util.tree_map(jax.block_until_ready, pad_params(params))

    out = jax.block_until_ready(q_net_forward(x, padded_params))
    ref = q_net_reference(x, params)

    assert out.shape == (B, Z_DIM)
    assert jnp.allclose(out, ref, atol=1e-2, rtol=1e-2), "mismatch vs pure-JAX reference"

    print("KERNEL_OK")
</pallas_src>

<mosaic_0001>
module attributes {stable_mosaic.version = 11 : i64} {
  func.func @q_net_kernel(%arg0: i32, %arg1: memref<128x896xbf16, #tpu.memory_space<vmem>>, %arg2: memref<896x1024xbf16, #tpu.memory_space<vmem>>, %arg3: memref<1x1024xf32, #tpu.memory_space<vmem>>, %arg4: memref<1024x1024xbf16, #tpu.memory_space<vmem>>, %arg5: memref<1x1024xf32, #tpu.memory_space<vmem>>, %arg6: memref<1024x128xbf16, #tpu.memory_space<vmem>>, %arg7: memref<1x128xf32, #tpu.memory_space<vmem>>, %arg8: memref<128x128xf32, #tpu.memory_space<vmem>>) attributes {dimension_semantics = [#tpu.dimension_semantics<parallel>], iteration_bounds = array<i64: 2>, scalar_prefetch = 0 : i64, scratch_operands = 0 : i64, tpu.core_type = #tpu.core_type<tc>, window_params = [{transform_indices = @transform_0, window_bounds = array<i64: 128, 896>}, {pipeline_mode = #tpu.pipeline_mode<synchronous>, transform_indices = @transform_1, window_bounds = array<i64: 896, 1024>}, {pipeline_mode = #tpu.pipeline_mode<synchronous>, transform_indices = @transform_2, window_bounds = array<i64: 1, 1024>}, {pipeline_mode = #tpu.pipeline_mode<synchronous>, transform_indices = @transform_3, window_bounds = array<i64: 1024, 1024>}, {pipeline_mode = #tpu.pipeline_mode<synchronous>, transform_indices = @transform_4, window_bounds = array<i64: 1, 1024>}, {pipeline_mode = #tpu.pipeline_mode<synchronous>, transform_indices = @transform_5, window_bounds = array<i64: 1024, 128>}, {pipeline_mode = #tpu.pipeline_mode<synchronous>, transform_indices = @transform_6, window_bounds = array<i64: 1, 128>}, {transform_indices = @transform_7, window_bounds = array<i64: 128, 128>}]} {
    %c0 = arith.constant 0 : index
    %c0_0 = arith.constant 0 : index
    %0 = vector.load %arg1[%c0, %c0_0] : memref<128x896xbf16, #tpu.memory_space<vmem>>, vector<128x896xbf16>
    %c0_1 = arith.constant 0 : index
    %c0_2 = arith.constant 0 : index
    %1 = vector.load %arg2[%c0_1, %c0_2] : memref<896x1024xbf16, #tpu.memory_space<vmem>>, vector<896x1024xbf16>
    %cst = arith.constant dense<0.000000e+00> : vector<128x1024xf32>
    %2 = tpu.matmul %0, %1, %cst {dimension_numbers = #tpu.dot_dimension_numbers<[1], [0], [0], [1], [0, 0, 1, 1], [], []>} : vector<128x896xbf16>, vector<896x1024xbf16>, vector<128x1024xf32> -> vector<128x1024xf32>
    %c0_3 = arith.constant 0 : index
    %c0_4 = arith.constant 0 : index
    %3 = vector.load %arg3[%c0_3, %c0_4] : memref<1x1024xf32, #tpu.memory_space<vmem>>, vector<1x1024xf32>
    %4 = vector.broadcast %3 : vector<1x1024xf32> to vector<128x1024xf32>
    %5 = arith.addf %2, %4 : vector<128x1024xf32>
    %cst_5 = arith.constant 0.000000e+00 : f32
    %6 = vector.broadcast %cst_5 : f32 to vector<128x1024xf32>
    %7 = arith.maximumf %5, %6 : vector<128x1024xf32>
    %8 = arith.truncf %7 : vector<128x1024xf32> to vector<128x1024xbf16>
    %c0_6 = arith.constant 0 : index
    %c0_7 = arith.constant 0 : index
    %9 = vector.load %arg4[%c0_6, %c0_7] : memref<1024x1024xbf16, #tpu.memory_space<vmem>>, vector<1024x1024xbf16>
    %cst_8 = arith.constant dense<0.000000e+00> : vector<128x1024xf32>
    %10 = tpu.matmul %8, %9, %cst_8 {dimension_numbers = #tpu.dot_dimension_numbers<[1], [0], [0], [1], [0, 0, 1, 1], [], []>} : vector<128x1024xbf16>, vector<1024x1024xbf16>, vector<128x1024xf32> -> vector<128x1024xf32>
    %c0_9 = arith.constant 0 : index
    %c0_10 = arith.constant 0 : index
    %11 = vector.load %arg5[%c0_9, %c0_10] : memref<1x1024xf32, #tpu.memory_space<vmem>>, vector<1x1024xf32>
    %12 = vector.broadcast %11 : vector<1x1024xf32> to vector<128x1024xf32>
    %13 = arith.addf %10, %12 : vector<128x1024xf32>
    %cst_11 = arith.constant 0.000000e+00 : f32
    %14 = vector.broadcast %cst_11 : f32 to vector<128x1024xf32>
    %15 = arith.maximumf %13, %14 : vector<128x1024xf32>
    %16 = arith.truncf %15 : vector<128x1024xf32> to vector<128x1024xbf16>
    %c0_12 = arith.constant 0 : index
    %c0_13 = arith.constant 0 : index
    %17 = vector.load %arg6[%c0_12, %c0_13] : memref<1024x128xbf16, #tpu.memory_space<vmem>>, vector<1024x128xbf16>
    %cst_14 = arith.constant dense<0.000000e+00> : vector<128x128xf32>
    %18 = tpu.matmul %16, %17, %cst_14 {dimension_numbers = #tpu.dot_dimension_numbers<[1], [0], [0], [1], [0, 0, 1, 1], [], []>} : vector<128x1024xbf16>, vector<1024x128xbf16>, vector<128x128xf32> -> vector<128x128xf32>
    %c0_15 = arith.constant 0 : index
    %c0_16 = arith.constant 0 : index
    %19 = vector.load %arg7[%c0_15, %c0_16] : memref<1x128xf32, #tpu.memory_space<vmem>>, vector<1x128xf32>
    %20 = vector.broadcast %19 : vector<1x128xf32> to vector<128x128xf32>
    %21 = arith.addf %18, %20 : vector<128x128xf32>
    %c0_17 = arith.constant 0 : index
    %c0_18 = arith.constant 0 : index
    %22 = vector.load %arg8[%c0_17, %c0_18] : memref<128x128xf32, #tpu.memory_space<vmem>>, vector<128x128xf32>
    tpu.vector_store %arg8[%c0_17, %c0_18], %21 {strides = array<i32>} : memref<128x128xf32, #tpu.memory_space<vmem>>, vector<128x128xf32>,
    return
  }
  func.func @transform_0(%arg0: i32) -> (i32, i32) {
    %c0_i32 = arith.constant 0 : i32
    %c0_i32_0 = arith.constant 0 : i32
    return %arg0, %c0_i32 : i32, i32
  }
  func.func @transform_1(%arg0: i32) -> (i32, i32) {
    %c0_i32 = arith.constant 0 : i32
    %c0_i32_0 = arith.constant 0 : i32
    %c0_i32_1 = arith.constant 0 : i32
    return %c0_i32, %c0_i32_0 : i32, i32
  }
  func.func @transform_2(%arg0: i32) -> (i32, i32) {
    %c0_i32 = arith.constant 0 : i32
    %c0_i32_0 = arith.constant 0 : i32
    %c0_i32_1 = arith.constant 0 : i32
    return %c0_i32, %c0_i32_0 : i32, i32
  }
  func.func @transform_3(%arg0: i32) -> (i32, i32) {
    %c0_i32 = arith.constant 0 : i32
    %c0_i32_0 = arith.constant 0 : i32
    %c0_i32_1 = arith.constant 0 : i32
    return %c0_i32, %c0_i32_0 : i32, i32
  }
  func.func @transform_4(%arg0: i32) -> (i32, i32) {
    %c0_i32 = arith.constant 0 : i32
    %c0_i32_0 = arith.constant 0 : i32
    %c0_i32_1 = arith.constant 0 : i32
    return %c0_i32, %c0_i32_0 : i32, i32
  }
  func.func @transform_5(%arg0: i32) -> (i32, i32) {
    %c0_i32 = arith.constant 0 : i32
    %c0_i32_0 = arith.constant 0 : i32
    %c0_i32_1 = arith.constant 0 : i32
    return %c0_i32, %c0_i32_0 : i32, i32
  }
  func.func @transform_6(%arg0: i32) -> (i32, i32) {
    %c0_i32 = arith.constant 0 : i32
    %c0_i32_0 = arith.constant 0 : i32
    %c0_i32_1 = arith.constant 0 : i32
    return %c0_i32, %c0_i32_0 : i32, i32
  }
  func.func @transform_7(%arg0: i32) -> (i32, i32) {
    %c0_i32 = arith.constant 0 : i32
    %c0_i32_0 = arith.constant 0 : i32
    return %arg0, %c0_i32 : i32, i32
  }
}

</mosaic_0001>

<bundles_post_ra>
// kernel: q_net_forward.1
= control target key start
LH: loop header
LB: loop body
LE: loop exit
PB: predicated region body
PF: predicated region fallthrough
CT: control target
= control target key end

     0   :  { %12 = vsyncpa [#allocation3], 0  ;;  %s13260_s24 = smov 0   ;;  %s18542_s0 = inlined_call_operand.vmem [shape: bf16[256,896], index: 0, kind: input, shape index: {}]   ;;  %s18543_s1 = inlined_call_operand.hbm [shape: bf16[896,1024], index: 1, kind: input, shape index: {}]   ;;  %s18544_s2 = inlined_call_operand.vmem [shape: f32[1,1024], index: 2, kind: input, shape index: {}]   ;;  %s18545_s3 = inlined_call_operand.vmem [shape: bf16[1024,1024], index: 3, kind: input, shape index: {}]   ;;  %s18546_s4 = inlined_call_operand.vmem [shape: f32[1,1024], index: 4, kind: input, shape index: {}]   ;;  %s18547_s5 = inlined_call_operand.vmem [shape: bf16[1024,128], index: 5, kind: input, shape index: {}]   ;;  %s18548_s6 = inlined_call_operand.vmem [shape: f32[1,128], index: 6, kind: input, shape index: {}]   ;;  %s18549_s7 = inlined_call_operand.vmem [shape: f32[256,128], index: 7, kind: output, shape index: {}]  }
   0x1 LB: > { %s11488_s25 = sadd.s32 4294967295, %s13214_s24   ;;  %p11490_p0 = scmp.ge.s32.totalorder %s13214_s24, 1  ;;  %s13214_s24 = sphi %s13260_s24, %s18_s24  }
   0x2   : > { %p201_p1 = scmp.lt.s32.totalorder %s13214_s24, 3  ;;  %s13216_s26 = smov [#allocation2]  }
   0x3   : > { %s213_s27 = sshll.u32 %s13216_s26, 4  ;;  %p13274_p3 = scmp.eq.s32.totalorder %s11488_s25, 0  ;;  %s214_s27 = int_to_ptr.vmem [resolvable:$true] %s213_s27 }
   0x4   : > { %p13268_p2 = pnand %p11490_p0, %p201_p1  ;;  %s13189_s30 = scalar_lea.vmem %s214_s27, 57344 }
   0x5   : > { %p13190_p7 = scmp.ne.s32.totalorder %s214_s27, %s13189_s30  ;;  %p13197_p10 = scmp.lt.s32.totalorder %s214_s27, %s214_s27 }
   0x6   : > { %p12843_p4 = pneg %p13268_p2  ;;  %p13198_p11 = scmp.lt.s32.totalorder %s13189_s30, %s13189_s30 }
   0x8   : > { %p12844_p5 = pnand %p13274_p3, %p12843_p4  ;;  %p13199_p12 = por %p13198_p11, %p13197_p10 }
   0xa   : > { %p13180_p6 = pneg %p12844_p5 }
   0xc   : > { %p13192_p8 = pnand %p13190_p7, %p13180_p6 }
   0xe   : > { %p13193_p9 = pneg %p13192_p8 }
  0x10   : > { %p13200_p13 = pnand %p13199_p12, %p13193_p9 }
  0x12   : > { %13203 = shalt.err (!%p13200_p13)
}
  0x13   : > { %s13217_s8 = smov 512   ;;  %s13218_s9 = smov 32  }
  0x14   : > { %12846 = dma.hbm_to_vmem [thread:$0]  (!%p12844_p5), %s18543_s1, 57344, %s214_s27, [#allocation3], %s13217_s8, %s13217_s8, %s13218_s9  }
  0x15   : > { %254 = sbr.rel (%p13268_p2) target bundleno = 1622 (0x656), region = 48 }
  0x1a   : > { %13209 = dma.done.wait (%p13274_p3), [#allocation3], 57344  }
  0x1b   : > { %13211 = vsyncadd (%p13274_p3), [#allocation3], 4294909952  ;;  %v421_v0 = vld [vmem:[#allocation2 + $0x1c0] sm:$0xff]  ;;  %s11495_s12 = sshll.u32 %s11488_s25, 4 }
  0x1c   : > { %v425_v1 = vld [vmem:[#allocation2 + $0x1e0] sm:$0xff]  ;;  %p288_p0 = scmp.lt.s32.totalorder %s11495_s12, 31 }
  0x1d   : > { %v549_v2 = vld [vmem:[#allocation2 + $0x5c0] sm:$0xff]  ;;  %v11612_v3 = vcombine.high %v421_v0, %v425_v1  ;;  %v11611_v5 = vcombine.low %v421_v0, %v425_v1 }
  0x1e   : > { %v553_v4 = vld [vmem:[#allocation2 + $0x5e0] sm:$0xff]  ;;  %s19290_s12 = smov (!%p288_p0, %s11495_s12), 31 }
  0x1f   : > { %v413_v6 = vld [vmem:[#allocation2 + $0x180] sm:$0xff]  ;;  %v11740_v8 = vcombine.high %v549_v2, %v553_v4  ;;  %v11739_v9 = vcombine.low %v549_v2, %v553_v4  ;;  %3383 = vmatprep.subr.bf16.mxu0 %v11612_v3  ;;  %s12838_s13 = smul.u32 28, %s19290_s12  ;;  %s11498_s15 = sshll.u32 %s19290_s12, 3 }
  0x20   : > { %v417_v7 = vld [vmem:[#allocation2 + $0x1a0] sm:$0xff]  ;;  %3384 = vmatpush1.bf16.msra.mxu0 %v11611_v5 }
  0x21   : > { %v11604_v10 = vcombine.high %v413_v6, %v417_v7  ;;  %v541_v11 = vld [vmem:[#allocation2 + $0x580] sm:$0xff]  ;;  %3496 = vmatprep.subr.bf16.mxu1 %v11740_v8  ;;  %v11603_v18 = vcombine.low %v413_v6, %v417_v7  ;;  %s13299_s16 = scalar_lea.vmem %s18542_s0, %s12838_s13 }
  0x22   : > { %v545_v12 = vld [vmem:[#allocation2 + $0x5a0] sm:$0xff]  ;;  %3497 = vmatpush1.bf16.msra.mxu1 %v11739_v9  ;;  %v12863_v59 = vld [vmem:[%s13299_s16 + $0xc] ss:$28 sps:$4 sm:$0xff]  }
  0x23   : > { %v405_v13 = vld [vmem:[#allocation2 + $0x140] sm:$0xff]  ;;  %v11732_v14 = vcombine.high %v541_v11, %v545_v12  ;;  %3385 = vmatprep.subr.bf16.mxu0 %v11604_v10  ;;  %v11731_v19 = vcombine.low %v541_v11, %v545_v12  ;;  %3528 = vmatprep.mubr.bf16.mxu1 %v12863_v59 }
  0x24   : > { %v409_v15 = vld [vmem:[#allocation2 + $0x160] sm:$0xff]  ;;  %3386 = vmatpush1.bf16.msra.mxu0 %v11603_v18 }
  0x25   : > { %v533_v16 = vld [vmem:[#allocation2 + $0x540] sm:$0xff]  ;;  %v11596_v20 = vcombine.high %v405_v13, %v409_v15  ;;  %3498 = vmatprep.subr.bf16.mxu1 %v11732_v14  ;;  %v11595_v26 = vcombine.low %v405_v13, %v409_v15 }
  0x26   : > { %v537_v17 = vld [vmem:[#allocation2 + $0x560] sm:$0xff]  ;;  %3499 = vmatpush1.bf16.msra.mxu1 %v11731_v19 }
  0x27   : > { %v11724_v21 = vcombine.high %v533_v16, %v537_v17  ;;  %v397_v22 = vld [vmem:[#allocation2 + $0x100] sm:$0xff]  ;;  %3387 = vmatprep.subr.bf16.mxu0 %v11596_v20  ;;  %v11723_v27 = vcombine.low %v533_v16, %v537_v17 }
  0x28   : > { %v401_v23 = vld [vmem:[#allocation2 + $0x120] sm:$0xff]  ;;  %3388 = vmatpush1.bf16.msra.mxu0 %v11595_v26 }
  0x29   : > { %v525_v24 = vld [vmem:[#allocation2 + $0x500] sm:$0xff]  ;;  %v11588_v28 = vcombine.high %v397_v22, %v401_v23  ;;  %3500 = vmatprep.subr.bf16.mxu1 %v11724_v21  ;;  %v11587_v34 = vcombine.low %v397_v22, %v401_v23 }
  0x2a   : > { %v529_v25 = vld [vmem:[#allocation2 + $0x520] sm:$0xff]  ;;  %3501 = vmatpush1.bf16.msra.mxu1 %v11723_v27 }
  0x2b   : > { %v11716_v29 = vcombine.high %v525_v24, %v529_v25  ;;  %v389_v30 = vld [vmem:[#allocation2 + $0xc0] sm:$0xff]  ;;  %3389 = vmatprep.subr.bf16.mxu0 %v11588_v28  ;;  %v11715_v35 = vcombine.low %v525_v24, %v529_v25 }
  0x2c   : > { %v393_v31 = vld [vmem:[#allocation2 + $0xe0] sm:$0xff]  ;;  %3390 = vmatpush1.bf16.msra.mxu0 %v11587_v34 }
  0x2d   : > { %v517_v32 = vld [vmem:[#allocation2 + $0x4c0] sm:$0xff]  ;;  %v11580_v36 = vcombine.high %v389_v30, %v393_v31  ;;  %3502 = vmatprep.subr.bf16.mxu1 %v11716_v29  ;;  %v11579_v42 = vcombine.low %v389_v30, %v393_v31 }
  0x2e   : > { %v521_v33 = vld [vmem:[#allocation2 + $0x4e0] sm:$0xff]  ;;  %3503 = vmatpush1.bf16.msra.mxu1 %v11715_v35 }
  0x2f   : > { %v11708_v37 = vcombine.high %v517_v32, %v521_v33  ;;  %v381_v38 = vld [vmem:[#allocation2 + $0x80] sm:$0xff]  ;;  %3391 = vmatprep.subr.bf16.mxu0 %v11580_v36  ;;  %v11707_v43 = vcombine.low %v517_v32, %v521_v33 }
  0x30   : > { %v385_v39 = vld [vmem:[#allocation2 + $0xa0] sm:$0xff]  ;;  %3392 = vmatpush1.bf16.msra.mxu0 %v11579_v42 }
  0x31   : > { %v509_v40 = vld [vmem:[#allocation2 + $0x480] sm:$0xff]  ;;  %v11572_v44 = vcombine.high %v381_v38, %v385_v39  ;;  %3504 = vmatprep.subr.bf16.mxu1 %v11708_v37  ;;  %v11571_v50 = vcombine.low %v381_v38, %v385_v39 }
  0x32   : > { %v513_v41 = vld [vmem:[#allocation2 + $0x4a0] sm:$0xff]  ;;  %3505 = vmatpush1.bf16.msra.mxu1 %v11707_v43 }
  0x33   : > { %v11700_v45 = vcombine.high %v509_v40, %v513_v41  ;;  %v373_v46 = vld [vmem:[#allocation2 + $0x40] sm:$0xff]  ;;  %3393 = vmatprep.subr.bf16.mxu0 %v11572_v44  ;;  %v11699_v52 = vcombine.low %v509_v40, %v513_v41 }
  0x34   : > { %v377_v47 = vld [vmem:[#allocation2 + $0x60] sm:$0xff]  ;;  %3394 = vmatpush1.bf16.msra.mxu0 %v11571_v50 }
  0x35   : > { %v501_v48 = vld [vmem:[#allocation2 + $0x440] sm:$0xff]  ;;  %v11564_v53 = vcombine.high %v373_v46, %v377_v47  ;;  %3506 = vmatprep.subr.bf16.mxu1 %v11700_v45  ;;  %v11563_v60 = vcombine.low %v373_v46, %v377_v47 }
  0x36   : > { %v505_v49 = vld [vmem:[#allocation2 + $0x460] sm:$0xff]  ;;  %3507 = vmatpush1.bf16.msra.mxu1 %v11699_v52 }
  0x37   : > { %v365_v51 = vld [vmem:[#allocation2] sm:$0xff]  ;;  %v11692_v55 = vcombine.high %v501_v48, %v505_v49  ;;  %3395 = vmatprep.subr.bf16.mxu0 %v11564_v53  ;;  %v11691_v61 = vcombine.low %v501_v48, %v505_v49 }
  0x38   : > { %v369_v54 = vld [vmem:[#allocation2 + $0x20] sm:$0xff]  ;;  %3396 = vmatpush1.bf16.msra.mxu0 %v11563_v60 }
  0x39   : > { %v12861_v56 = vld [vmem:[%s13299_s16 + $0x4] ss:$28 sps:$4 sm:$0xff]   ;;  %v11556_v62 = vcombine.high %v365_v51, %v369_v54  ;;  %3508 = vmatprep.subr.bf16.mxu1 %v11692_v55  ;;  %v11555_v4 = vcombine.low %v365_v51, %v369_v54 }
  0x3a   : > { %v493_v57 = vld [vmem:[#allocation2 + $0x400] sm:$0xff]  ;;  %3415 = vmatprep.mubr.bf16.mxu0 %v12861_v56  ;;  %3509 = vmatpush1.bf16.msra.mxu1 %v11691_v61 }
  0x3b   : > { %v497_v58 = vld [vmem:[#allocation2 + $0x420] sm:$0xff]  ;;  %3397 = vmatprep.subr.bf16.mxu0 %v11556_v62 }
  0x3c   : > { %v485_v63 = vld [vmem:[#allocation2 + $0x3c0] sm:$0xff]  ;;  %v11684_v1 = vcombine.high %v493_v57, %v497_v58  ;;  %v11683_v5 = vcombine.low %v493_v57, %v497_v58  ;;  %3398 = vmatpush1.bf16.msra.mxu0 %v11555_v4 }
  0x3d   : > { %v489_v0 = vld [vmem:[#allocation2 + $0x3e0] sm:$0xff] }
  0x3e   : > { %v613_v2 = vld [vmem:[#allocation2 + $0x7c0] sm:$0xff]  ;;  %v11676_v6 = vcombine.high %v485_v63, %v489_v0  ;;  %3510 = vmatprep.subr.bf16.mxu1 %v11684_v1  ;;  %v11675_v12 = vcombine.low %v485_v63, %v489_v0 }
  0x3f   : > { %v617_v3 = vld [vmem:[#allocation2 + $0x7e0] sm:$0xff]  ;;  %3511 = vmatpush1.bf16.msra.mxu1 %v11683_v5 }
  0x40   : > { %v477_v7 = vld [vmem:[#allocation2 + $0x380] sm:$0xff]  ;;  %v11804_v8 = vcombine.high %v613_v2, %v617_v3  ;;  %3399 = vmatprep.subr.bf16.mxu0 %v11676_v6  ;;  %v11803_v13 = vcombine.low %v613_v2, %v617_v3 }
  0x41   : > { %v481_v9 = vld [vmem:[#allocation2 + $0x3a0] sm:$0xff]  ;;  %3400 = vmatpush2.bf16.msra.mxu0 %v11675_v12 }
  0x42   : > { %v605_v10 = vld [vmem:[#allocation2 + $0x780] sm:$0xff]  ;;  %v11668_v14 = vcombine.high %v477_v7, %v481_v9  ;;  %3512 = vmatprep.subr.bf16.mxu1 %v11804_v8  ;;  %v11667_v20 = vcombine.low %v477_v7, %v481_v9 }
  0x43   : > { %v609_v11 = vld [vmem:[#allocation2 + $0x7a0] sm:$0xff]  ;;  %3513 = vmatpush2.bf16.msra.mxu1 %v11803_v13 }
  0x44   : > { %v11796_v15 = vcombine.high %v605_v10, %v609_v11  ;;  %v469_v16 = vld [vmem:[#allocation2 + $0x340] sm:$0xff]  ;;  %3401 = vmatprep.subr.bf16.mxu0 %v11668_v14  ;;  %v11795_v21 = vcombine.low %v605_v10, %v609_v11 }
  0x45   : > { %v473_v17 = vld [vmem:[#allocation2 + $0x360] sm:$0xff]  ;;  %3402 = vmatpush2.bf16.msra.mxu0 %v11667_v20 }
  0x46   : > { %v597_v18 = vld [vmem:[#allocation2 + $0x740] sm:$0xff]  ;;  %v11660_v22 = vcombine.high %v469_v16, %v473_v17  ;;  %3514 = vmatprep.subr.bf16.mxu1 %v11796_v15  ;;  %v11659_v28 = vcombine.low %v469_v16, %v473_v17  ;;  %v12867_v17 = vld [vmem:[%s13299_s16 + $0x3c] ss:$28 sps:$4 sm:$0xff]  }
  0x47   : > { %v601_v19 = vld [vmem:[#allocation2 + $0x760] sm:$0xff]  ;;  %3515 = vmatpush2.bf16.msra.mxu1 %v11795_v21 }
  0x48   : > { %v11788_v23 = vcombine.high %v597_v18, %v601_v19  ;;  %v461_v24 = vld [vmem:[#allocation2 + $0x300] sm:$0xff]  ;;  %3403 = vmatprep.subr.bf16.mxu0 %v11660_v22  ;;  %v11787_v29 = vcombine.low %v597_v18, %v601_v19 }
  0x49   : > { %v465_v25 = vld [vmem:[#allocation2 + $0x320] sm:$0xff]  ;;  %3404 = vmatpush2.bf16.msra.mxu0 %v11659_v28 }
  0x4a   : > { %v589_v26 = vld [vmem:[#allocation2 + $0x700] sm:$0xff]  ;;  %v11652_v30 = vcombine.high %v461_v24, %v465_v25  ;;  %3516 = vmatprep.subr.bf16.mxu1 %v11788_v23  ;;  %v11651_v36 = vcombine.low %v461_v24, %v465_v25 }
  0x4b   : > { %v593_v27 = vld [vmem:[#allocation2 + $0x720] sm:$0xff]  ;;  %3517 = vmatpush2.bf16.msra.mxu1 %v11787_v29 }
  0x4c   : > { %v11780_v31 = vcombine.high %v589_v26, %v593_v27  ;;  %v453_v32 = vld [vmem:[#allocation2 + $0x2c0] sm:$0xff]  ;;  %3405 = vmatprep.subr.bf16.mxu0 %v11652_v30  ;;  %v11779_v37 = vcombine.low %v589_v26, %v593_v27  ;;  %v12871_v30 = vld [vmem:[%s13299_s16 + $0x38] ss:$28 sps:$4 sm:$0xff]  }
  0x4d   : > { %v457_v33 = vld [vmem:[#allocation2 + $0x2e0] sm:$0xff]  ;;  %3406 = vmatpush2.bf16.msra.mxu0 %v11651_v36  ;;  %v12873_v36 = vld [vmem:[%s13299_s16 + $0x74] ss:$28 sps:$4 sm:$0xff]  }
  0x4e   : > { %v581_v34 = vld [vmem:[#allocation2 + $0x6c0] sm:$0xff]  ;;  %v11644_v38 = vcombine.high %v453_v32, %v457_v33  ;;  %3518 = vmatprep.subr.bf16.mxu1 %v11780_v31  ;;  %v11643_v44 = vcombine.low %v453_v32, %v457_v33 }
  0x4f   : > { %v585_v35 = vld [vmem:[#allocation2 + $0x6e0] sm:$0xff]  ;;  %3519 = vmatpush2.bf16.msra.mxu1 %v11779_v37  ;;  %v12875_v37 = vld [vmem:[%s13299_s16 + $0x7c] ss:$28 sps:$4 sm:$0xff]  }
  0x50   : > { %v11772_v39 = vcombine.high %v581_v34, %v585_v35  ;;  %v445_v40 = vld [vmem:[#allocation2 + $0x280] sm:$0xff]  ;;  %3407 = vmatprep.subr.bf16.mxu0 %v11644_v38  ;;  %v11771_v45 = vcombine.low %v581_v34, %v585_v35 }
  0x51   : > { %v449_v41 = vld [vmem:[#allocation2 + $0x2a0] sm:$0xff]  ;;  %3408 = vmatpush2.bf16.msra.mxu0 %v11643_v44 }
  0x52   : > { %v573_v42 = vld [vmem:[#allocation2 + $0x680] sm:$0xff]  ;;  %v11636_v46 = vcombine.high %v445_v40, %v449_v41  ;;  %3520 = vmatprep.subr.bf16.mxu1 %v11772_v39  ;;  %v11635_v52 = vcombine.low %v445_v40, %v449_v41 }
  0x53   : > { %v577_v43 = vld [vmem:[#allocation2 + $0x6a0] sm:$0xff]  ;;  %3521 = vmatpush2.bf16.msra.mxu1 %v11771_v45  ;;  %v12877_v45 = vld [vmem:[%s13299_s16 + $0x70] ss:$28 sps:$4 sm:$0xff]  }
  0x54   : > { %v437_v47 = vld [vmem:[#allocation2 + $0x240] sm:$0xff]  ;;  %v11764_v48 = vcombine.high %v573_v42, %v577_v43  ;;  %3409 = vmatprep.subr.bf16.mxu0 %v11636_v46  ;;  %v11763_v53 = vcombine.low %v573_v42, %v577_v43 }
  0x55   : > { %v441_v49 = vld [vmem:[#allocation2 + $0x260] sm:$0xff]  ;;  %3410 = vmatpush2.bf16.msra.mxu0 %v11635_v52 }
  0x56   : > { %v565_v50 = vld [vmem:[#allocation2 + $0x640] sm:$0xff]  ;;  %v11628_v54 = vcombine.high %v437_v47, %v441_v49  ;;  %3522 = vmatprep.subr.bf16.mxu1 %v11764_v48  ;;  %v11627_v60 = vcombine.low %v437_v47, %v441_v49 }
  0x57   : > { %v569_v51 = vld [vmem:[#allocation2 + $0x660] sm:$0xff]  ;;  %3523 = vmatpush2.bf16.msra.mxu1 %v11763_v53 }
  0x58   : > { %v429_v55 = vld [vmem:[#allocation2 + $0x200] sm:$0xff]  ;;  %v11756_v57 = vcombine.high %v565_v50, %v569_v51  ;;  %3411 = vmatprep.subr.bf16.mxu0 %v11628_v54  ;;  %v11755_v61 = vcombine.low %v565_v50, %v569_v51  ;;  %v12878_v50 = vld [vmem:[%s13299_s16 + $0x78] ss:$28 sps:$4 sm:$0xff]  }
  0x59   : > { %v433_v56 = vld [vmem:[#allocation2 + $0x220] sm:$0xff]  ;;  %3412 = vmatpush2.bf16.msra.mxu0 %v11627_v60 }
  0x5a   : > { %v557_v58 = vld [vmem:[#allocation2 + $0x600] sm:$0xff]  ;;  %v11620_v62 = vcombine.high %v429_v55, %v433_v56  ;;  %3524 = vmatprep.subr.bf16.mxu1 %v11756_v57  ;;  %v11619_v4 = vcombine.low %v429_v55, %v433_v56  ;;  %v12879_v56 = vld [vmem:[%s13299_s16 + $0xac] ss:$28 sps:$4 sm:$0xff]   ;;  %v12881_v57 = vld [vmem:[%s13299_s16 + $0xb4] ss:$28 sps:$4 sm:$0xff]  }
  0x5b   : > { %v561_v59 = vld [vmem:[#allocation2 + $0x620] sm:$0xff]  ;;  %3525 = vmatpush2.bf16.msra.mxu1 %v11755_v61 }
  0x5c   : > { %v11748_v63 = vcombine.high %v557_v58, %v561_v59  ;;  %v677_v0 = vld [vmem:[#allocation2 + $0x9c0] sm:$0xff]  ;;  %3413 = vmatprep.subr.bf16.mxu0 %v11620_v62  ;;  %v11747_v5 = vcombine.low %v557_v58, %v561_v59 }
  0x5d   : > { %v681_v1 = vld [vmem:[#allocation2 + $0x9e0] sm:$0xff]  ;;  %3414 = vmatpush2.bf16.msra.mxu0 %v11619_v4 }
  0x5e   : > { %v805_v2 = vld [vmem:[#allocation2 + $0xdc0] sm:$0xff]  ;;  %v11868_v6 = vcombine.high %v677_v0, %v681_v1  ;;  %3526 = vmatprep.subr.bf16.mxu1 %v11748_v63  ;;  %v11867_v12 = vcombine.low %v677_v0, %v681_v1 }
  0x5f   : > { %v809_v3 = vld [vmem:[#allocation2 + $0xde0] sm:$0xff]  ;;  %3527 = vmatpush2.bf16.msra.mxu1 %v11747_v5 }
  0x60   : > { %v11996_v7 = vcombine.high %v805_v2, %v809_v3  ;;  %v669_v8 = vld [vmem:[#allocation2 + $0x980] sm:$0xff]  ;;  %3609 = vmatprep.subr.bf16.mxu0 %v11868_v6  ;;  %v11995_v15 = vcombine.low %v805_v2, %v809_v3  ;;  %v12884_v6 = vld [vmem:[%s13299_s16 + $0xb0] ss:$28 sps:$4 sm:$0xff]  }
  0x61   : > { %v673_v9 = vld [vmem:[#allocation2 + $0x9a0] sm:$0xff] }
  0x62   : > { %v12865_v10 = vld [vmem:[%s13299_s16] ss:$28 sps:$4 sm:$0xff]   ;;  %v12866_v11 = vld [vmem:[%s13299_s16 + $0x8] ss:$28 sps:$4 sm:$0xff]   ;;  %v11860_v16 = vcombine.high %v669_v8, %v673_v9  ;;  %3722 = vmatprep.subr.bf16.mxu1 %v11996_v7  ;;  %v11859_v24 = vcombine.low %v669_v8, %v673_v9 }
  0x63   : > { %v797_v13 = vld [vmem:[#allocation2 + $0xd80] sm:$0xff]  ;;  %3416 = vmatmul.mubr.bf16.vlgmr.msra.gmra.mxu0 %v12865_v10  ;;  %3529 = vmatmul.mubr.bf16.vlgmr.msra.gmra.mxu1 %v12866_v11 }
  0x64   : > { %v801_v14 = vld [vmem:[#allocation2 + $0xda0] sm:$0xff]  ;;  %3610 = vmatpush1.bf16.msra.mxu0 %v11867_v12  ;;  %3723 = vmatpush1.bf16.msra.mxu1 %v11995_v15 }
  0x65   : > { %v12869_v18 = vld [vmem:[%s13299_s16 + $0x44] ss:$28 sps:$4 sm:$0xff]   ;;  %v11988_v21 = vcombine.high %v797_v13, %v801_v14  ;;  %3611 = vmatprep.subr.bf16.mxu0 %v11860_v16  ;;  %v11987_v26 = vcombine.low %v797_v13, %v801_v14  ;;  %3425 = vmatprep.mubr.bf16.mxu0 %v12867_v17  ;;  %v12887_v13 = vld [vmem:[%s13299_s16 + $0xec] ss:$28 sps:$4 sm:$0xff]  }
  0x66   : > { %v661_v19 = vld [vmem:[#allocation2 + $0x940] sm:$0xff]  ;;  %3538 = vmatprep.mubr.bf16.mxu1 %v12869_v18 }
  0x67   : > { %v665_v20 = vld [vmem:[#allocation2 + $0x960] sm:$0xff]  ;;  %3724 = vmatprep.subr.bf16.mxu1 %v11988_v21 }
  0x68   : > { %v789_v22 = vld [vmem:[#allocation2 + $0xd40] sm:$0xff]  ;;  %v11852_v25 = vcombine.high %v661_v19, %v665_v20  ;;  %3612 = vmatpush1.bf16.msra.mxu0 %v11859_v24  ;;  %v11851_v32 = vcombine.low %v661_v19, %v665_v20  ;;  %3725 = vmatpush1.bf16.msra.mxu1 %v11987_v26  ;;  %v13319_v19 = vld [vmem:[#allocation2 + $0x5c8] sm:$0xff] }
  0x69   : > { %v793_v23 = vld [vmem:[#allocation2 + $0xd60] sm:$0xff]  ;;  %v13321_v20 = vld [vmem:[#allocation2 + $0x5e8] sm:$0xff] }
  0x6a   : > { %v653_v27 = vld [vmem:[#allocation2 + $0x900] sm:$0xff]  ;;  %v11980_v29 = vcombine.high %v789_v22, %v793_v23  ;;  %3613 = vmatprep.subr.bf16.mxu0 %v11852_v25  ;;  %v11979_v40 = vcombine.low %v789_v22, %v793_v23  ;;  %v11742_v26 = vcombine.high %v13319_v19, %v13321_v20 }
  0x6b   : > { %v657_v28 = vld [vmem:[#allocation2 + $0x920] sm:$0xff]  ;;  %3426 = vmatmul.mubr.bf16.gmra.mxu0 %v12871_v30  ;;  %v12891_v30 = vld [vmem:[%s13299_s16 + $0x11c] ss:$28 sps:$4 sm:$0xff]  }
  0x6c   : > { %v12872_v31 = vld [vmem:[%s13299_s16 + $0x40] ss:$28 sps:$4 sm:$0xff]   ;;  %v11844_v35 = vcombine.high %v653_v27, %v657_v28  ;;  %3726 = vmatprep.subr.bf16.mxu1 %v11980_v29  ;;  %3614 = vmatpush1.bf16.msra.mxu0 %v11851_v32  ;;  %v11843_v42 = vcombine.low %v653_v27, %v657_v28  ;;  %v12883_v5 = vld [vmem:[%s13299_s16 + $0xa8] ss:$28 sps:$4 sm:$0xff]  }
  0x6d   : > { %v781_v33 = vld [vmem:[#allocation2 + $0xd00] sm:$0xff]  ;;  %3539 = vmatmul.mubr.bf16.gmra.mxu1 %v12872_v31  ;;  %3435 = vmatprep.mubr.bf16.mxu0 %v12873_v36 }
  0x6e   : > { %v785_v34 = vld [vmem:[#allocation2 + $0xd20] sm:$0xff]  ;;  %3615 = vmatprep.subr.bf16.mxu0 %v11844_v35  ;;  %3548 = vmatprep.mubr.bf16.mxu1 %v12875_v37 }
  0x6f   : > { %v645_v38 = vld [vmem:[#allocation2 + $0x8c0] sm:$0xff]  ;;  %v11972_v41 = vcombine.high %v781_v33, %v785_v34  ;;  %3727 = vmatpush1.bf16.msra.mxu1 %v11979_v40  ;;  %v11971_v49 = vcombine.low %v781_v33, %v785_v34 }
  0x70   : > { %v649_v39 = vld [vmem:[#allocation2 + $0x8e0] sm:$0xff]  ;;  %3616 = vmatpush1.bf16.msra.mxu0 %v11843_v42  ;;  %v12897_v42 = vld [vmem:[%s13299_s16 + $0x154] ss:$28 sps:$4 sm:$0xff]  }
  0x71   : > { %v773_v43 = vld [vmem:[#allocation2 + $0xcc0] sm:$0xff]  ;;  %v11836_v46 = vcombine.high %v645_v38, %v649_v39  ;;  %3728 = vmatprep.subr.bf16.mxu1 %v11972_v41  ;;  %v11835_v53 = vcombine.low %v645_v38, %v649_v39  ;;  %v12895_v38 = vld [vmem:[%s13299_s16 + $0x118] ss:$28 sps:$4 sm:$0xff]  }
  0x72   : > { %v777_v44 = vld [vmem:[#allocation2 + $0xce0] sm:$0xff] }
  0x73   : > { %v637_v47 = vld [vmem:[#allocation2 + $0x880] sm:$0xff]  ;;  %v11964_v51 = vcombine.high %v773_v43, %v777_v44  ;;  %3617 = vmatprep.subr.bf16.mxu0 %v11836_v46  ;;  %3729 = vmatpush1.bf16.msra.mxu1 %v11971_v49  ;;  %v11963_v60 = vcombine.low %v773_v43, %v777_v44  ;;  %v12899_v43 = vld [vmem:[%s13299_s16 + $0x15c] ss:$28 sps:$4 sm:$0xff]  }
  0x74   : > { %v641_v48 = vld [vmem:[#allocation2 + $0x8a0] sm:$0xff]  ;;  %3436 = vmatmul.mubr.bf16.gmra.mxu0 %v12877_v45  ;;  %v12902_v49 = vld [vmem:[%s13299_s16 + $0x158] ss:$28 sps:$4 sm:$0xff]  }
  0x75   : > { %v765_v52 = vld [vmem:[#allocation2 + $0xc80] sm:$0xff]  ;;  %v11828_v55 = vcombine.high %v637_v47, %v641_v48  ;;  %3730 = vmatprep.subr.bf16.mxu1 %v11964_v51  ;;  %3549 = vmatmul.mubr.bf16.gmra.mxu1 %v12878_v50  ;;  %v11827_v62 = vcombine.low %v637_v47, %v641_v48  ;;  %v12901_v47 = vld [vmem:[%s13299_s16 + $0x150] ss:$28 sps:$4 sm:$0xff]  }
  0x76   : > { %v769_v54 = vld [vmem:[#allocation2 + $0xca0] sm:$0xff]  ;;  %3618 = vmatpush1.bf16.msra.mxu0 %v11835_v53  ;;  %3445 = vmatprep.mubr.bf16.mxu0 %v12879_v56 }
  0x77   : > { %v629_v58 = vld [vmem:[#allocation2 + $0x840] sm:$0xff]  ;;  %v11956_v61 = vcombine.high %v765_v52, %v769_v54  ;;  %3619 = vmatprep.subr.bf16.mxu0 %v11828_v55  ;;  %3558 = vmatprep.mubr.bf16.mxu1 %v12881_v57  ;;  %v11955_v4 = vcombine.low %v765_v52, %v769_v54  ;;  %v12903_v52 = vld [vmem:[%s13299_s16 + $0x18c] ss:$28 sps:$4 sm:$0xff]   ;;  %v12905_v54 = vld [vmem:[%s13299_s16 + $0x194] ss:$28 sps:$4 sm:$0xff]  }
  0x78   : > { %v633_v59 = vld [vmem:[#allocation2 + $0x860] sm:$0xff]  ;;  %3731 = vmatpush1.bf16.msra.mxu1 %v11963_v60 }
  0x79   : > { %v757_v63 = vld [vmem:[#allocation2 + $0xc40] sm:$0xff]  ;;  %v11820_v1 = vcombine.high %v629_v58, %v633_v59  ;;  %3732 = vmatprep.subr.bf16.mxu1 %v11956_v61  ;;  %v11819_v9 = vcombine.low %v629_v58, %v633_v59 }
  0x7a   : > { %v761_v0 = vld [vmem:[#allocation2 + $0xc60] sm:$0xff]  ;;  %3620 = vmatpush1.bf16.msra.mxu0 %v11827_v62 }
  0x7b   : > { %v621_v2 = vld [vmem:[#allocation2 + $0x800] sm:$0xff]  ;;  %v11948_v8 = vcombine.high %v757_v63, %v761_v0  ;;  %3621 = vmatprep.subr.bf16.mxu0 %v11820_v1  ;;  %v11947_v16 = vcombine.low %v757_v63, %v761_v0  ;;  %v12908_v63 = vld [vmem:[%s13299_s16 + $0x190] ss:$28 sps:$4 sm:$0xff]  }
  0x7c   : > { %v625_v3 = vld [vmem:[#allocation2 + $0x820] sm:$0xff]  ;;  %3733 = vmatpush1.bf16.msra.mxu1 %v11955_v4  ;;  %3446 = vmatmul.mubr.bf16.gmra.mxu0 %v12883_v5  ;;  %v12911_v0 = vld [vmem:[%s13299_s16 + $0x14] ss:$28 sps:$4 sm:$0xff]   ;;  %v426_v4 = vld [vmem:[#allocation2 + $0x1e8] sm:$0xff] }
  0x7d   : > { %v12885_v7 = vld [vmem:[%s13299_s16 + $0xe4] ss:$28 sps:$4 sm:$0xff]   ;;  %v11812_v12 = vcombine.high %v621_v2, %v625_v3  ;;  %3734 = vmatprep.subr.bf16.mxu1 %v11948_v8  ;;  %3559 = vmatmul.mubr.bf16.gmra.mxu1 %v12884_v6  ;;  %v11811_v18 = vcombine.low %v621_v2, %v625_v3  ;;  %v422_v3 = vld [vmem:[#allocation2 + $0x1c8] sm:$0xff] }
  0x7e   : > { %v749_v10 = vld [vmem:[#allocation2 + $0xc00] sm:$0xff]  ;;  %3622 = vmatpush1.bf16.msra.mxu0 %v11819_v9  ;;  %3455 = vmatprep.mubr.bf16.mxu0 %v12885_v7  ;;  %v414_v6 = vld [vmem:[#allocation2 + $0x188] sm:$0xff]  ;;  %v11614_v9 = vcombine.high %v422_v3, %v426_v4 }
  0x7f   : > { %v753_v11 = vld [vmem:[#allocation2 + $0xc20] sm:$0xff]  ;;  %3623 = vmatprep.subr.bf16.mxu0 %v11812_v12  ;;  %3568 = vmatprep.mubr.bf16.mxu1 %v12887_v13  ;;  %v418_v7 = vld [vmem:[#allocation2 + $0x1a8] sm:$0xff]  ;;  %v12912_v12 = vld [vmem:[%s13299_s16 + $0x18] ss:$28 sps:$4 sm:$0xff]  }
  0x80   : > { %v741_v14 = vld [vmem:[#allocation2 + $0xbc0] sm:$0xff]  ;;  %v11940_v17 = vcombine.high %v749_v10, %v753_v11  ;;  %3735 = vmatpush1.bf16.msra.mxu1 %v11947_v16  ;;  %v11939_v24 = vcombine.low %v749_v10, %v753_v11  ;;  %v12909_v8 = vld [vmem:[%s13299_s16 + $0x10] ss:$28 sps:$4 sm:$0xff]   ;;  %v18554_v11 = vmov 0   ;;  %v11741_v16 = vcombine.low %v13319_v19, %v13321_v20 }
  0x81   : > { %v745_v15 = vld [vmem:[#allocation2 + $0xbe0] sm:$0xff]  ;;  %v542_v10 = vld [vmem:[#allocation2 + $0x588] sm:$0xff] }
  0x82   : > { %v11932_v21 = vcombine.high %v741_v14, %v745_v15  ;;  %v733_v22 = vld [vmem:[#allocation2 + $0xb80] sm:$0xff]  ;;  %3736 = vmatprep.subr.bf16.mxu1 %v11940_v17  ;;  %3624 = vmatpush1.bf16.msra.mxu0 %v11811_v18  ;;  %v11931_v28 = vcombine.low %v741_v14, %v745_v15  ;;  %v546_v13 = vld [vmem:[#allocation2 + $0x5a8] sm:$0xff]  ;;  %v11613_v14 = vcombine.low %v422_v3, %v426_v4 }
  0x83   : > { %v737_v23 = vld [vmem:[#allocation2 + $0xba0] sm:$0xff]  ;;  %v12913_v15 = vld [vmem:[%s13299_s16 + $0x4c] ss:$28 sps:$4 sm:$0xff]   ;;  %v11606_v17 = vcombine.high %v414_v6, %v418_v7 }
  0x84   : > { %v12889_v25 = vld [vmem:[%s13299_s16 + $0xe0] ss:$28 sps:$4 sm:$0xff]   ;;  %v12890_v27 = vld [vmem:[%s13299_s16 + $0xe8] ss:$28 sps:$4 sm:$0xff]   ;;  %3625 = vmatprep.subr.bf16.mxu0 %v11932_v21  ;;  %v11924_v29 = vcombine.high %v733_v22, %v737_v23  ;;  %3737 = vmatpush1.bf16.msra.mxu1 %v11939_v24  ;;  %v11923_v34 = vcombine.low %v733_v22, %v737_v23  ;;  %v11734_v23 = vcombine.high %v542_v10, %v546_v13  ;;  %v12916_v20 = vld [vmem:[%s13299_s16 + $0x50] ss:$28 sps:$4 sm:$0xff]  }
  0x85   : > { %v12893_v31 = vld [vmem:[%s13299_s16 + $0x124] ss:$28 sps:$4 sm:$0xff]   ;;  %3456 = vmatmul.mubr.bf16.gmra.mxu0 %v12889_v25  ;;  %3948 = vmatprep.subr.bf16.mxu1 %v11742_v26  ;;  %v406_v18 = vld [vmem:[#allocation2 + $0x148] sm:$0xff]  ;;  %v11605_v25 = vcombine.low %v414_v6, %v418_v7  ;;  %v11733_v26 = vcombine.low %v542_v10, %v546_v13 }
  0x86   : > { %v725_v32 = vld [vmem:[#allocation2 + $0xb40] sm:$0xff]  ;;  %3569 = vmatmul.mubr.bf16.gmra.mxu1 %v12890_v27  ;;  %3626 = vmatpush2.bf16.msra.mxu0 %v11931_v28  ;;  %v410_v21 = vld [vmem:[#allocation2 + $0x168] sm:$0xff] }
  0x87   : > { %v729_v33 = vld [vmem:[#allocation2 + $0xb60] sm:$0xff]  ;;  %3627 = vmatprep.subr.bf16.mxu0 %v11924_v29  ;;  %3465 = vmatprep.mubr.bf16.mxu0 %v12891_v30  ;;  %v534_v22 = vld [vmem:[#allocation2 + $0x548] sm:$0xff]  ;;  %v11598_v28 = vcombine.high %v406_v18, %v410_v21 }
  0x88   : > { %v11916_v35 = vcombine.high %v725_v32, %v729_v33  ;;  %3578 = vmatprep.mubr.bf16.mxu1 %v12893_v31  ;;  %v717_v36 = vld [vmem:[#allocation2 + $0xb00] sm:$0xff]  ;;  %v11915_v40 = vcombine.low %v725_v32, %v729_v33  ;;  %v538_v24 = vld [vmem:[#allocation2 + $0x568] sm:$0xff]  ;;  %v11597_v33 = vcombine.low %v406_v18, %v410_v21 }
  0x89   : > { %v721_v37 = vld [vmem:[#allocation2 + $0xb20] sm:$0xff]  ;;  %v398_v29 = vld [vmem:[#allocation2 + $0x108] sm:$0xff]  ;;  %v11726_v31 = vcombine.high %v534_v22, %v538_v24 }
  0x8a   : > { %3628 = vmatpush2.bf16.msra.mxu0 %v11923_v34  ;;  %v12896_v39 = vld [vmem:[%s13299_s16 + $0x120] ss:$28 sps:$4 sm:$0xff]   ;;  %v11908_v41 = vcombine.high %v717_v36, %v721_v37  ;;  %v11907_v46 = vcombine.low %v717_v36, %v721_v37  ;;  %v12907_v60 = vld [vmem:[%s13299_s16 + $0x188] ss:$28 sps:$4 sm:$0xff]   ;;  %v12927_v21 = vld [vmem:[%s13299_s16 + $0xf0] ss:$28 sps:$4 sm:$0xff]  }
  0x8b   : > { %3629 = vmatprep.subr.bf16.mxu0 %v11916_v35  ;;  %v709_v44 = vld [vmem:[#allocation2 + $0xac0] sm:$0xff]  ;;  %v402_v30 = vld [vmem:[#allocation2 + $0x128] sm:$0xff]  ;;  %v11725_v35 = vcombine.low %v534_v22, %v538_v24 }
  0x8c   : > { %v713_v45 = vld [vmem:[#allocation2 + $0xae0] sm:$0xff]  ;;  %v526_v19 = vld [vmem:[#allocation2 + $0x508] sm:$0xff]  ;;  %v11590_v36 = vcombine.high %v398_v29, %v402_v30 }
  0x8d   : > { %3466 = vmatmul.mubr.bf16.gmra.mxu0 %v12895_v38  ;;  %v11900_v48 = vcombine.high %v709_v44, %v713_v45  ;;  %v701_v50 = vld [vmem:[#allocation2 + $0xa80] sm:$0xff]  ;;  %v11899_v53 = vcombine.low %v709_v44, %v713_v45  ;;  %v530_v32 = vld [vmem:[#allocation2 + $0x528] sm:$0xff] }
  0x8e   : > { %3579 = vmatmul.mubr.bf16.gmra.mxu1 %v12896_v39  ;;  %3630 = vmatpush2.bf16.msra.mxu0 %v11915_v40  ;;  %v705_v51 = vld [vmem:[#allocation2 + $0xaa0] sm:$0xff]  ;;  %v390_v37 = vld [vmem:[#allocation2 + $0xc8] sm:$0xff]  ;;  %v11718_v40 = vcombine.high %v526_v19, %v530_v32 }
  0x8f   : > { %3631 = vmatprep.subr.bf16.mxu0 %v11908_v41  ;;  %3475 = vmatprep.mubr.bf16.mxu0 %v12897_v42  ;;  %v11892_v55 = vcombine.high %v701_v50, %v705_v51  ;;  %v693_v56 = vld [vmem:[#allocation2 + $0xa40] sm:$0xff]  ;;  %v11891_v58 = vcombine.low %v701_v50, %v705_v51  ;;  %v394_v38 = vld [vmem:[#allocation2 + $0xe8] sm:$0xff]  ;;  %v11589_v42 = vcombine.low %v398_v29, %v402_v30 }
  0x90   : > { %3588 = vmatprep.mubr.bf16.mxu1 %v12899_v43  ;;  %v697_v57 = vld [vmem:[#allocation2 + $0xa60] sm:$0xff]  ;;  %v518_v39 = vld [vmem:[#allocation2 + $0x4c8] sm:$0xff]  ;;  %v11717_v43 = vcombine.low %v526_v19, %v530_v32  ;;  %v11582_v45 = vcombine.high %v390_v37, %v394_v38 }
  0x91   : > { %v685_v59 = vld [vmem:[#allocation2 + $0xa00] sm:$0xff]  ;;  %v11884_v61 = vcombine.high %v693_v56, %v697_v57  ;;  %v11883_v1 = vcombine.low %v693_v56, %v697_v57  ;;  %v522_v41 = vld [vmem:[#allocation2 + $0x4e8] sm:$0xff] }
  0x92   : > { %3632 = vmatpush2.bf16.msra.mxu0 %v11907_v46  ;;  %v689_v62 = vld [vmem:[#allocation2 + $0xa20] sm:$0xff]  ;;  %v382_v46 = vld [vmem:[#allocation2 + $0x88] sm:$0xff]  ;;  %v11710_v50 = vcombine.high %v518_v39, %v522_v41 }
  0x93   : > { %3633 = vmatprep.subr.bf16.mxu0 %v11900_v48  ;;  %v11876_v2 = vcombine.high %v685_v59, %v689_v62  ;;  %v11875_v5 = vcombine.low %v685_v59, %v689_v62  ;;  %v12915_v27 = vld [vmem:[%s13299_s16 + $0x48] ss:$28 sps:$4 sm:$0xff]   ;;  %v12919_v44 = vld [vmem:[%s13299_s16 + $0x80] ss:$28 sps:$4 sm:$0xff]  }
  0x94   : > { %v12917_v34 = vld [vmem:[%s13299_s16 + $0x84] ss:$28 sps:$4 sm:$0xff]   ;;  %v510_v48 = vld [vmem:[#allocation2 + $0x488] sm:$0xff] }
  0x95   : > { %3476 = vmatmul.mubr.bf16.gmra.mxu0 %v12901_v47  ;;  %v386_v47 = vld [vmem:[#allocation2 + $0xa8] sm:$0xff]  ;;  %v12924_v4 = vld [vmem:[%s13299_s16 + $0xc0] ss:$28 sps:$4 sm:$0xff]  }
  0x96   : > { %3589 = vmatmul.mubr.bf16.gmra.mxu1 %v12902_v49  ;;  %3634 = vmatpush2.bf16.msra.mxu0 %v11899_v53  ;;  %v12920_v49 = vld [vmem:[%s13299_s16 + $0x88] ss:$28 sps:$4 sm:$0xff]   ;;  %v12921_v53 = vld [vmem:[%s13299_s16 + $0xbc] ss:$28 sps:$4 sm:$0xff]  }
  0x97   : > { %3635 = vmatprep.subr.bf16.mxu0 %v11892_v55  ;;  %3485 = vmatprep.mubr.bf16.mxu0 %v12903_v52  ;;  %v514_v51 = vld [vmem:[#allocation2 + $0x4a8] sm:$0xff]  ;;  %v11581_v52 = vcombine.low %v390_v37, %v394_v38  ;;  %v11574_v55 = vcombine.high %v382_v46, %v386_v47 }
  0x98   : > { %3598 = vmatprep.mubr.bf16.mxu1 %v12905_v54  ;;  %v11709_v54 = vcombine.low %v518_v39, %v522_v41  ;;  %v374_v56 = vld [vmem:[#allocation2 + $0x48] sm:$0xff]  ;;  %v11702_v59 = vcombine.high %v510_v48, %v514_v51  ;;  %v11701_v62 = vcombine.low %v510_v48, %v514_v51 }
  0x99   : > { %v378_v57 = vld [vmem:[#allocation2 + $0x68] sm:$0xff] }
  0x9a   : > { %3636 = vmatpush2.bf16.msra.mxu0 %v11891_v58  ;;  %v502_v58 = vld [vmem:[#allocation2 + $0x448] sm:$0xff]  ;;  %v11565_v7 = vcombine.low %v374_v56, %v378_v57 }
  0x9b   : > { %3637 = vmatprep.subr.bf16.mxu0 %v11884_v61  ;;  %v11573_v61 = vcombine.low %v382_v46, %v386_v47  ;;  %v494_v3 = vld [vmem:[#allocation2 + $0x408] sm:$0xff]  ;;  %v12933_v47 = vld [vmem:[%s13299_s16 + $0x164] ss:$28 sps:$4 sm:$0xff]  }
  0x9c   : > { %v498_v6 = vld [vmem:[#allocation2 + $0x428] sm:$0xff] }
  0x9d   : > { %3486 = vmatmul.mubr.bf16.gmra.mxu0 %v12907_v60  ;;  %v506_v60 = vld [vmem:[#allocation2 + $0x468] sm:$0xff]  ;;  %v11685_v18 = vcombine.low %v494_v3, %v498_v6 }
  0x9e   : > { %3599 = vmatmul.mubr.bf16.gmra.mxu1 %v12908_v63  ;;  %3638 = vmatpush2.bf16.msra.mxu0 %v11883_v1  ;;  %v12923_v63 = vld [vmem:[%s13299_s16 + $0xb8] ss:$28 sps:$4 sm:$0xff]   ;;  %v366_v1 = vld [vmem:[#allocation2 + $0x8] sm:$0xff] }
  0x9f   : > { %3639 = vmatprep.subr.bf16.mxu0 %v11876_v2  ;;  %3641 = vmatprep.mubr.bf16.mxu0 %v12911_v0  ;;  %v11566_v0 = vcombine.high %v374_v56, %v378_v57  ;;  %v370_v2 = vld [vmem:[#allocation2 + $0x28] sm:$0xff] }
  0xa0   : > { %3754 = vmatprep.mubr.bf16.mxu1 %v18554_v11  ;;  %v11558_v10 = vcombine.high %v366_v1, %v370_v2  ;;  %v490_v13 = vld [vmem:[#allocation2 + $0x3e8] sm:$0xff] }
  0xa1   : > { %v482_v24 = vld [vmem:[#allocation2 + $0x3a8] sm:$0xff] }
  0xa2   : > { %3640 = vmatpush2.bf16.msra.mxu0 %v11875_v5  ;;  %v11694_v5 = vcombine.high %v502_v58, %v506_v60  ;;  %v12929_v30 = vld [vmem:[%s13299_s16 + $0x12c] ss:$28 sps:$4 sm:$0xff]  }
  0xa3   : > { %3835 = vmatprep.subr.bf16.mxu0 %v11614_v9  ;;  %v11693_v9 = vcombine.low %v502_v58, %v506_v60  ;;  %v474_v32 = vld [vmem:[#allocation2 + $0x368] sm:$0xff] }
  0xa4   : > { %v12931_v38 = vld [vmem:[%s13299_s16 + $0x128] ss:$28 sps:$4 sm:$0xff]  }
  0xa5   : > { %3642 = vmatmul.mubr.bf16.vlgmr.msra.gmra.mxu0 %v12909_v8  ;;  %v12925_v8 = vld [vmem:[%s13299_s16 + $0xf4] ss:$28 sps:$4 sm:$0xff]   ;;  %v466_v41 = vld [vmem:[#allocation2 + $0x328] sm:$0xff] }
  0xa6   : > { %3755 = vmatmul.mubr.bf16.vlgmr.msra.gmra.mxu1 %v12912_v12  ;;  %3836 = vmatpush1.bf16.msra.mxu0 %v11613_v14  ;;  %v486_v12 = vld [vmem:[#allocation2 + $0x3c8] sm:$0xff] }
  0xa7   : > { %3949 = vmatpush1.bf16.msra.mxu1 %v11741_v16  ;;  %3837 = vmatprep.subr.bf16.mxu0 %v11606_v17  ;;  %v614_v14 = vld [vmem:[#allocation2 + $0x7c8] sm:$0xff]  ;;  %v11557_v17 = vcombine.low %v366_v1, %v370_v2  ;;  %v11678_v22 = vcombine.high %v486_v12, %v490_v13  ;;  %v11677_v29 = vcombine.low %v486_v12, %v490_v13 }
  0xa8   : > { %3950 = vmatprep.subr.bf16.mxu1 %v11734_v23  ;;  %3651 = vmatprep.mubr.bf16.mxu0 %v12913_v15  ;;  %v11686_v15 = vcombine.high %v494_v3, %v498_v6  ;;  %v618_v16 = vld [vmem:[#allocation2 + $0x7e8] sm:$0xff] }
  0xa9   : > { %3764 = vmatprep.mubr.bf16.mxu1 %v18554_v11  ;;  %v478_v23 = vld [vmem:[#allocation2 + $0x388] sm:$0xff]  ;;  %v11805_v19 = vcombine.low %v614_v14, %v618_v16 }
  0xaa   : > { %3838 = vmatpush1.bf16.msra.mxu0 %v11605_v25  ;;  %v606_v25 = vld [vmem:[#allocation2 + $0x788] sm:$0xff] }
  0xab   : > { %3951 = vmatpush1.bf16.msra.mxu1 %v11733_v26  ;;  %3839 = vmatprep.subr.bf16.mxu0 %v11598_v28  ;;  %v12928_v26 = vld [vmem:[%s13299_s16 + $0xf8] ss:$28 sps:$4 sm:$0xff]   ;;  %v610_v28 = vld [vmem:[#allocation2 + $0x7a8] sm:$0xff] }
  0xac   : > { %3952 = vmatprep.subr.bf16.mxu1 %v11726_v31  ;;  %v470_v31 = vld [vmem:[#allocation2 + $0x348] sm:$0xff]  ;;  %v11797_v37 = vcombine.low %v606_v25, %v610_v28 }
  0xad   : > { %3652 = vmatmul.mubr.bf16.gmra.mxu0 %v12915_v27  ;;  %v11806_v27 = vcombine.high %v614_v14, %v618_v16  ;;  %v11662_v39 = vcombine.high %v470_v31, %v474_v32  ;;  %v11661_v46 = vcombine.low %v470_v31, %v474_v32  ;;  %v458_v51 = vld [vmem:[#allocation2 + $0x2e8] sm:$0xff]  ;;  %v13005_v32 = vld [vmem:[%s13299_s16 + $0x4] ss:$28 sps:$4 sm:$0xff]  }
  0xae   : > { %3765 = vmatmul.mubr.bf16.gmra.mxu1 %v12916_v20  ;;  %3840 = vmatpush1.bf16.msra.mxu0 %v11597_v33  ;;  %v11670_v20 = vcombine.high %v478_v23, %v482_v24  ;;  %v598_v33 = vld [vmem:[#allocation2 + $0x748] sm:$0xff] }
  0xaf   : > { %3953 = vmatpush1.bf16.msra.mxu1 %v11725_v35  ;;  %3841 = vmatprep.subr.bf16.mxu0 %v11590_v36  ;;  %v602_v35 = vld [vmem:[#allocation2 + $0x768] sm:$0xff]  ;;  %v11669_v36 = vcombine.low %v478_v23, %v482_v24 }
  0xb0   : > { %3954 = vmatprep.subr.bf16.mxu1 %v11718_v40  ;;  %3661 = vmatprep.mubr.bf16.mxu0 %v12917_v34  ;;  %v11798_v34 = vcombine.high %v606_v25, %v610_v28  ;;  %v462_v40 = vld [vmem:[#allocation2 + $0x308] sm:$0xff]  ;;  %v11789_v48 = vcombine.low %v598_v33, %v602_v35 }
  0xb1   : > { %3774 = vmatprep.mubr.bf16.mxu1 %v18554_v11  ;;  %v450_v60 = vld [vmem:[#allocation2 + $0x2a8] sm:$0xff] }
  0xb2   : > { %3842 = vmatpush1.bf16.msra.mxu0 %v11589_v42  ;;  %v590_v42 = vld [vmem:[#allocation2 + $0x708] sm:$0xff] }
  0xb3   : > { %3955 = vmatpush1.bf16.msra.mxu1 %v11717_v43  ;;  %3843 = vmatprep.subr.bf16.mxu0 %v11582_v45  ;;  %v12932_v43 = vld [vmem:[%s13299_s16 + $0x130] ss:$28 sps:$4 sm:$0xff]  }
  0xb4   : > { %3956 = vmatprep.subr.bf16.mxu1 %v11710_v50  ;;  %v594_v45 = vld [vmem:[#allocation2 + $0x728] sm:$0xff] }
  0xb5   : > { %3662 = vmatmul.mubr.bf16.gmra.mxu0 %v12919_v44  ;;  %v11790_v44 = vcombine.high %v598_v33, %v602_v35  ;;  %v454_v50 = vld [vmem:[#allocation2 + $0x2c8] sm:$0xff]  ;;  %v11781_v56 = vcombine.low %v590_v42, %v594_v45 }
  0xb6   : > { %3775 = vmatmul.mubr.bf16.gmra.mxu1 %v12920_v49  ;;  %3844 = vmatpush1.bf16.msra.mxu0 %v11581_v52  ;;  %v11654_v49 = vcombine.high %v462_v40, %v466_v41  ;;  %v582_v52 = vld [vmem:[#allocation2 + $0x6c8] sm:$0xff]  ;;  %v11646_v57 = vcombine.high %v454_v50, %v458_v51  ;;  %v11645_v1 = vcombine.low %v454_v50, %v458_v51 }
  0xb7   : > { %3957 = vmatpush1.bf16.msra.mxu1 %v11709_v54  ;;  %3845 = vmatprep.subr.bf16.mxu0 %v11574_v55  ;;  %v586_v54 = vld [vmem:[#allocation2 + $0x6e8] sm:$0xff]  ;;  %v11653_v55 = vcombine.low %v462_v40, %v466_v41 }
  0xb8   : > { %3958 = vmatprep.subr.bf16.mxu1 %v11702_v59  ;;  %3671 = vmatprep.mubr.bf16.mxu0 %v12921_v53  ;;  %v11782_v53 = vcombine.high %v590_v42, %v594_v45  ;;  %v11774_v58 = vcombine.high %v582_v52, %v586_v54  ;;  %v446_v59 = vld [vmem:[#allocation2 + $0x288] sm:$0xff]  ;;  %v11773_v2 = vcombine.low %v582_v52, %v586_v54  ;;  %v13009_v52 = vld [vmem:[%s13299_s16 + $0x3c] ss:$28 sps:$4 sm:$0xff]  }
  0xb9   : > { %3784 = vmatprep.mubr.bf16.mxu1 %v18554_v11  ;;  %v11638_v3 = vcombine.high %v446_v59, %v450_v60  ;;  %v438_v6 = vld [vmem:[#allocation2 + $0x248] sm:$0xff] }
  0xba   : > { %3846 = vmatpush1.bf16.msra.mxu0 %v11573_v61  ;;  %v12935_v61 = vld [vmem:[%s13299_s16 + $0x160] ss:$28 sps:$4 sm:$0xff]   ;;  %v434_v16 = vld [vmem:[#allocation2 + $0x228] sm:$0xff] }
  0xbb   : > { %3959 = vmatpush1.bf16.msra.mxu1 %v11701_v62  ;;  %3847 = vmatprep.subr.bf16.mxu0 %v11566_v0  ;;  %v574_v62 = vld [vmem:[#allocation2 + $0x688] sm:$0xff] }
  0xbc   : > { %3960 = vmatprep.subr.bf16.mxu1 %v11694_v5  ;;  %v12936_v0 = vld [vmem:[%s13299_s16 + $0x168] ss:$28 sps:$4 sm:$0xff]   ;;  %v12937_v5 = vld [vmem:[%s13299_s16 + $0x19c] ss:$28 sps:$4 sm:$0xff]  }
  0xbd   : > { %3672 = vmatmul.mubr.bf16.gmra.mxu0 %v12923_v63  ;;  %v578_v63 = vld [vmem:[#allocation2 + $0x6a8] sm:$0xff] }
  0xbe   : > { %3785 = vmatmul.mubr.bf16.gmra.mxu1 %v12924_v4  ;;  %3848 = vmatpush1.bf16.msra.mxu0 %v11565_v7  ;;  %v11766_v4 = vcombine.high %v574_v62, %v578_v63  ;;  %v442_v7 = vld [vmem:[#allocation2 + $0x268] sm:$0xff]  ;;  %v11765_v12 = vcombine.low %v574_v62, %v578_v63 }
  0xbf   : > { %3961 = vmatpush1.bf16.msra.mxu1 %v11693_v9  ;;  %3849 = vmatprep.subr.bf16.mxu0 %v11558_v10  ;;  %v570_v9 = vld [vmem:[#allocation2 + $0x668] sm:$0xff]  ;;  %v11637_v10 = vcombine.low %v446_v59, %v450_v60  ;;  %v11630_v13 = vcombine.high %v438_v6, %v442_v7  ;;  %v11629_v23 = vcombine.low %v438_v6, %v442_v7  ;;  %v13013_v6 = vld [vmem:[%s13299_s16 + $0x74] ss:$28 sps:$4 sm:$0xff]  }
  0xc0   : > { %3962 = vmatprep.subr.bf16.mxu1 %v11686_v15  ;;  %3681 = vmatprep.mubr.bf16.mxu0 %v12925_v8  ;;  %v566_v8 = vld [vmem:[#allocation2 + $0x648] sm:$0xff] }
  0xc1   : > { %3794 = vmatprep.mubr.bf16.mxu1 %v18554_v11  ;;  %v11758_v14 = vcombine.high %v566_v8, %v570_v9  ;;  %v430_v15 = vld [vmem:[#allocation2 + $0x208] sm:$0xff]  ;;  %v11757_v24 = vcombine.low %v566_v8, %v570_v9  ;;  %v13014_v8 = vld [vmem:[%s13299_s16 + $0x7c] ss:$28 sps:$4 sm:$0xff]  }
  0xc2   : > { %3850 = vmatpush1.bf16.msra.mxu0 %v11557_v17  ;;  %v12939_v17 = vld [vmem:[%s13299_s16 + $0x198] ss:$28 sps:$4 sm:$0xff]   ;;  %v11622_v25 = vcombine.high %v430_v15, %v434_v16  ;;  %v682_v28 = vld [vmem:[#allocation2 + $0x9e8] sm:$0xff] }
  0xc3   : > { %3963 = vmatpush1.bf16.msra.mxu1 %v11685_v18  ;;  %3851 = vmatprep.subr.bf16.mxu0 %v11678_v22  ;;  %v558_v18 = vld [vmem:[#allocation2 + $0x608] sm:$0xff]  ;;  %v12940_v22 = vld [vmem:[%s13299_s16 + $0x1a0] ss:$28 sps:$4 sm:$0xff]  }
  0xc4   : > { %3964 = vmatprep.subr.bf16.mxu1 %v11806_v27  ;;  %v678_v27 = vld [vmem:[#allocation2 + $0x9c8] sm:$0xff] }
  0xc5   : > { %3682 = vmatmul.mubr.bf16.gmra.mxu0 %v12927_v21  ;;  %v562_v21 = vld [vmem:[#allocation2 + $0x628] sm:$0xff]  ;;  %v11870_v31 = vcombine.high %v678_v27, %v682_v28 }
  0xc6   : > { %3795 = vmatmul.mubr.bf16.gmra.mxu1 %v12928_v26  ;;  %3852 = vmatpush2.bf16.msra.mxu0 %v11677_v29  ;;  %v11750_v26 = vcombine.high %v558_v18, %v562_v21  ;;  %v806_v29 = vld [vmem:[#allocation2 + $0xdc8] sm:$0xff] }
  0xc7   : > { %3965 = vmatpush2.bf16.msra.mxu1 %v11805_v19  ;;  %3853 = vmatprep.subr.bf16.mxu0 %v11670_v20  ;;  %v11621_v19 = vcombine.low %v430_v15, %v434_v16  ;;  %v11749_v20 = vcombine.low %v558_v18, %v562_v21  ;;  %v674_v35 = vld [vmem:[#allocation2 + $0x9a8] sm:$0xff] }
  0xc8   : > { %3966 = vmatprep.subr.bf16.mxu1 %v11798_v34  ;;  %3691 = vmatprep.mubr.bf16.mxu0 %v12929_v30  ;;  %v810_v30 = vld [vmem:[#allocation2 + $0xde8] sm:$0xff] }
  0xc9   : > { %3804 = vmatprep.mubr.bf16.mxu1 %v18554_v11  ;;  %v11998_v33 = vcombine.high %v806_v29, %v810_v30  ;;  %v670_v34 = vld [vmem:[#allocation2 + $0x988] sm:$0xff]  ;;  %v11997_v40 = vcombine.low %v806_v29, %v810_v30 }
  0xca   : > { %3854 = vmatpush2.bf16.msra.mxu0 %v11669_v36  ;;  %v13006_v36 = vld [vmem:[%s13299_s16 + $0xc] ss:$28 sps:$4 sm:$0xff]   ;;  %v11862_v41 = vcombine.high %v670_v34, %v674_v35 }
  0xcb   : > { %3967 = vmatpush2.bf16.msra.mxu1 %v11797_v37  ;;  %3855 = vmatprep.subr.bf16.mxu0 %v11662_v39  ;;  %v11869_v37 = vcombine.low %v678_v27, %v682_v28  ;;  %v802_v39 = vld [vmem:[#allocation2 + $0xda8] sm:$0xff] }
  0xcc   : > { %3968 = vmatprep.subr.bf16.mxu1 %v11790_v44  ;;  %v662_v42 = vld [vmem:[#allocation2 + $0x948] sm:$0xff]  ;;  %v13007_v44 = vld [vmem:[%s13299_s16] ss:$28 sps:$4 sm:$0xff]  }
  0xcd   : > { %3692 = vmatmul.mubr.bf16.gmra.mxu0 %v12931_v38  ;;  %v798_v38 = vld [vmem:[#allocation2 + $0xd88] sm:$0xff] }
  0xce   : > { %3805 = vmatmul.mubr.bf16.gmra.mxu1 %v12932_v43  ;;  %3856 = vmatpush2.bf16.msra.mxu0 %v11661_v46  ;;  %v666_v43 = vld [vmem:[#allocation2 + $0x968] sm:$0xff]  ;;  %v11990_v45 = vcombine.high %v798_v38, %v802_v39  ;;  %v11989_v51 = vcombine.low %v798_v38, %v802_v39 }
  0xcf   : > { %3969 = vmatpush2.bf16.msra.mxu1 %v11789_v48  ;;  %3857 = vmatprep.subr.bf16.mxu0 %v11654_v49  ;;  %v790_v46 = vld [vmem:[#allocation2 + $0xd48] sm:$0xff]  ;;  %v11861_v49 = vcombine.low %v670_v34, %v674_v35  ;;  %v11854_v50 = vcombine.high %v662_v42, %v666_v43 }
  0xd0   : > { %3970 = vmatprep.subr.bf16.mxu1 %v11782_v53  ;;  %3701 = vmatprep.mubr.bf16.mxu0 %v12933_v47  ;;  %v794_v47 = vld [vmem:[#allocation2 + $0xd68] sm:$0xff]  ;;  %v13010_v53 = vld [vmem:[%s13299_s16 + $0x44] ss:$28 sps:$4 sm:$0xff]  }
  0xd1   : > { %3814 = vmatprep.mubr.bf16.mxu1 %v18554_v11  ;;  %v13008_v48 = vld [vmem:[%s13299_s16 + $0x8] ss:$28 sps:$4 sm:$0xff]   ;;  %v11981_v63 = vcombine.low %v790_v46, %v794_v47 }
  0xd2   : > { %3858 = vmatpush2.bf16.msra.mxu0 %v11653_v55  ;;  %v654_v54 = vld [vmem:[#allocation2 + $0x908] sm:$0xff] }
  0xd3   : > { %3971 = vmatpush2.bf16.msra.mxu1 %v11781_v56  ;;  %3859 = vmatprep.subr.bf16.mxu0 %v11646_v57  ;;  %v658_v55 = vld [vmem:[#allocation2 + $0x928] sm:$0xff]  ;;  %v11982_v56 = vcombine.high %v790_v46, %v794_v47  ;;  %v11853_v57 = vcombine.low %v662_v42, %v666_v43  ;;  %v13391_v46 = vld [vmem:[#allocation2 + $0x5f0] sm:$0xff]  ;;  %v13021_v47 = vld [vmem:[%s13299_s16 + $0xe4] ss:$28 sps:$4 sm:$0xff]  }
  0xd4   : > { %3972 = vmatprep.subr.bf16.mxu1 %v11774_v58  ;;  %v782_v58 = vld [vmem:[#allocation2 + $0xd08] sm:$0xff]  ;;  %v11846_v60 = vcombine.high %v654_v54, %v658_v55 }
  0xd5   : > { %3702 = vmatmul.mubr.bf16.gmra.mxu0 %v12935_v61  ;;  %v786_v59 = vld [vmem:[#allocation2 + $0xd28] sm:$0xff] }
  0xd6   : > { %3815 = vmatmul.mubr.bf16.gmra.mxu1 %v12936_v0  ;;  %3860 = vmatpush2.bf16.msra.mxu0 %v11645_v1  ;;  %v646_v61 = vld [vmem:[#allocation2 + $0x8c8] sm:$0xff]  ;;  %v13011_v0 = vld [vmem:[%s13299_s16 + $0x38] ss:$28 sps:$4 sm:$0xff]   ;;  %v11974_v1 = vcombine.high %v782_v58, %v786_v59 }
  0xd7   : > { %3973 = vmatpush2.bf16.msra.mxu1 %v11773_v2  ;;  %3861 = vmatprep.subr.bf16.mxu0 %v11638_v3  ;;  %v650_v62 = vld [vmem:[#allocation2 + $0x8e8] sm:$0xff]  ;;  %v13012_v2 = vld [vmem:[%s13299_s16 + $0x40] ss:$28 sps:$4 sm:$0xff]   ;;  %v11845_v3 = vcombine.low %v654_v54, %v658_v55 }
  0xd8   : > { %3974 = vmatprep.subr.bf16.mxu1 %v11766_v4  ;;  %3711 = vmatprep.mubr.bf16.mxu0 %v12937_v5  ;;  %v774_v4 = vld [vmem:[#allocation2 + $0xcc8] sm:$0xff]  ;;  %v11838_v7 = vcombine.high %v646_v61, %v650_v62 }
  0xd9   : > { %3824 = vmatprep.mubr.bf16.mxu1 %v18554_v11  ;;  %v778_v5 = vld [vmem:[#allocation2 + $0xce8] sm:$0xff] }
  0xda   : > { %3862 = vmatpush2.bf16.msra.mxu0 %v11637_v10  ;;  %v638_v9 = vld [vmem:[#allocation2 + $0x888] sm:$0xff] }
  0xdb   : > { %3975 = vmatpush2.bf16.msra.mxu1 %v11765_v12  ;;  %3863 = vmatprep.subr.bf16.mxu0 %v11630_v13  ;;  %v642_v10 = vld [vmem:[#allocation2 + $0x8a8] sm:$0xff]  ;;  %v11973_v12 = vcombine.low %v782_v58, %v786_v59  ;;  %v11966_v13 = vcombine.high %v774_v4, %v778_v5  ;;  %v13023_v58 = vld [vmem:[%s13299_s16 + $0xe0] ss:$28 sps:$4 sm:$0xff]  }
  0xdc   : > { %3976 = vmatprep.subr.bf16.mxu1 %v11758_v14  ;;  %v11837_v14 = vcombine.low %v646_v61, %v650_v62  ;;  %v766_v15 = vld [vmem:[#allocation2 + $0xc88] sm:$0xff]  ;;  %v13025_v61 = vld [vmem:[%s13299_s16 + $0x11c] ss:$28 sps:$4 sm:$0xff]  }
  0xdd   : > { %3712 = vmatmul.mubr.bf16.gmra.mxu0 %v12939_v17  ;;  %v770_v16 = vld [vmem:[#allocation2 + $0xca8] sm:$0xff]  ;;  %v11830_v17 = vcombine.high %v638_v9, %v642_v10 }
  0xde   : > { %3825 = vmatmul.mubr.bf16.gmra.mxu1 %v12940_v22  ;;  %3864 = vmatpush2.bf16.msra.mxu0 %v11629_v23  ;;  %v630_v18 = vld [vmem:[#allocation2 + $0x848] sm:$0xff]  ;;  %v11965_v22 = vcombine.low %v774_v4, %v778_v5 }
  0xdf   : > { %3977 = vmatpush2.bf16.msra.mxu1 %v11757_v24  ;;  %3865 = vmatprep.subr.bf16.mxu0 %v11622_v25  ;;  %v634_v21 = vld [vmem:[#allocation2 + $0x868] sm:$0xff]  ;;  %v11958_v24 = vcombine.high %v766_v15, %v770_v16  ;;  %v13016_v25 = vld [vmem:[%s13299_s16 + $0x78] ss:$28 sps:$4 sm:$0xff]  }
  0xe0   : > { %3978 = vmatprep.subr.bf16.mxu1 %v11750_v26  ;;  %3867 = vmatprep.mubr.bf16.mxu0 %v13005_v32  ;;  %v13015_v23 = vld [vmem:[%s13299_s16 + $0x70] ss:$28 sps:$4 sm:$0xff]   ;;  %v11829_v26 = vcombine.low %v638_v9, %v642_v10  ;;  %v11822_v30 = vcombine.high %v630_v18, %v634_v21  ;;  %v11957_v32 = vcombine.low %v766_v15, %v770_v16  ;;  %v13024_v59 = vld [vmem:[%s13299_s16 + $0xe8] ss:$28 sps:$4 sm:$0xff]  }
  0xe1   : > { %3980 = vmatprep.mubr.bf16.mxu1 %v13006_v36  ;;  %v758_v27 = vld [vmem:[#allocation2 + $0xc48] sm:$0xff]  ;;  %v11821_v34 = vcombine.low %v630_v18, %v634_v21  ;;  %v13029_v9 = vld [vmem:[%s13299_s16 + $0x154] ss:$28 sps:$4 sm:$0xff]  }
  0xe2   : > { %3866 = vmatpush2.bf16.msra.mxu0 %v11621_v19  ;;  %v762_v28 = vld [vmem:[#allocation2 + $0xc68] sm:$0xff]  ;;  %v13018_v19 = vld [vmem:[%s13299_s16 + $0xb4] ss:$28 sps:$4 sm:$0xff]  }
  0xe3   : > { %3979 = vmatpush2.bf16.msra.mxu1 %v11749_v20  ;;  %4061 = vmatprep.subr.bf16.mxu0 %v11870_v31  ;;  %v13017_v29 = vld [vmem:[%s13299_s16 + $0xac] ss:$28 sps:$4 sm:$0xff]  }
  0xe4   : > { %4174 = vmatprep.subr.bf16.mxu1 %v11998_v33  ;;  %v622_v20 = vld [vmem:[#allocation2 + $0x808] sm:$0xff]  ;;  %v11950_v33 = vcombine.high %v758_v27, %v762_v28 }
  0xe5   : > { %3868 = vmatmul.mubr.bf16.vlgmr.msra.gmra.mxu0 %v13007_v44  ;;  %v626_v31 = vld [vmem:[#allocation2 + $0x828] sm:$0xff] }
  0xe6   : > { %3981 = vmatmul.mubr.bf16.vlgmr.msra.gmra.mxu1 %v13008_v48  ;;  %4062 = vmatpush1.bf16.msra.mxu0 %v11869_v37  ;;  %v750_v35 = vld [vmem:[#allocation2 + $0xc08] sm:$0xff]  ;;  %v11814_v37 = vcombine.high %v622_v20, %v626_v31  ;;  %v11813_v44 = vcombine.low %v622_v20, %v626_v31  ;;  %v423_v31 = vld [vmem:[#allocation2 + $0x1d0] sm:$0xff] }
  0xe7   : > { %4175 = vmatpush1.bf16.msra.mxu1 %v11997_v40  ;;  %4063 = vmatprep.subr.bf16.mxu0 %v11862_v41  ;;  %v754_v36 = vld [vmem:[#allocation2 + $0xc28] sm:$0xff]  ;;  %v11949_v40 = vcombine.low %v758_v27, %v762_v28  ;;  %v13034_v27 = vld [vmem:[%s13299_s16 + $0x194] ss:$28 sps:$4 sm:$0xff]  }
  0xe8   : > { %3877 = vmatprep.mubr.bf16.mxu0 %v13009_v52  ;;  %3990 = vmatprep.mubr.bf16.mxu1 %v13010_v53  ;;  %v742_v38 = vld [vmem:[#allocation2 + $0xbc8] sm:$0xff]  ;;  %v11942_v42 = vcombine.high %v750_v35, %v754_v36  ;;  %v11941_v52 = vcombine.low %v750_v35, %v754_v36 }
  0xe9   : > { %4176 = vmatprep.subr.bf16.mxu1 %v11990_v45  ;;  %v746_v39 = vld [vmem:[#allocation2 + $0xbe8] sm:$0xff]  ;;  %v13389_v45 = vld [vmem:[#allocation2 + $0x5d0] sm:$0xff] }
  0xea   : > { %4064 = vmatpush1.bf16.msra.mxu0 %v11861_v49  ;;  %v13019_v41 = vld [vmem:[%s13299_s16 + $0xa8] ss:$28 sps:$4 sm:$0xff]   ;;  %v13020_v43 = vld [vmem:[%s13299_s16 + $0xb0] ss:$28 sps:$4 sm:$0xff]   ;;  %v11934_v48 = vcombine.high %v742_v38, %v746_v39  ;;  %v11744_v53 = vcombine.high %v13389_v45, %v13391_v46  ;;  %v11933_v54 = vcombine.low %v742_v38, %v746_v39 }
  0xeb   : > { %4065 = vmatprep.subr.bf16.mxu0 %v11854_v50  ;;  %4177 = vmatpush1.bf16.msra.mxu1 %v11989_v51  ;;  %v13022_v49 = vld [vmem:[%s13299_s16 + $0xec] ss:$28 sps:$4 sm:$0xff]   ;;  %v813_v38 = vld [vmem:[%s18544_s2] sm:$0xff] }
  0xec   : > { %4178 = vmatprep.subr.bf16.mxu1 %v11982_v56  ;;  %v734_v50 = vld [vmem:[#allocation2 + $0xb88] sm:$0xff] }
  0xed   : > { %3878 = vmatmul.mubr.bf16.gmra.mxu0 %v13011_v0  ;;  %v738_v51 = vld [vmem:[#allocation2 + $0xba8] sm:$0xff] }
  0xee   : > { %3991 = vmatmul.mubr.bf16.gmra.mxu1 %v13012_v2  ;;  %4066 = vmatpush1.bf16.msra.mxu0 %v11853_v57  ;;  %v11926_v55 = vcombine.high %v734_v50, %v738_v51  ;;  %v726_v56 = vld [vmem:[#allocation2 + $0xb48] sm:$0xff] }
  0xef   : > { %4067 = vmatprep.subr.bf16.mxu0 %v11846_v60  ;;  %3887 = vmatprep.mubr.bf16.mxu0 %v13013_v6  ;;  %v730_v57 = vld [vmem:[#allocation2 + $0xb68] sm:$0xff]  ;;  %v11925_v60 = vcombine.low %v734_v50, %v738_v51  ;;  %v13027_v6 = vld [vmem:[%s13299_s16 + $0x118] ss:$28 sps:$4 sm:$0xff]  }
  0xf0   : > { %4000 = vmatprep.mubr.bf16.mxu1 %v13014_v8  ;;  %4179 = vmatpush1.bf16.msra.mxu1 %v11981_v63  ;;  %v11918_v62 = vcombine.high %v726_v56, %v730_v57  ;;  %v13026_v63 = vld [vmem:[%s13299_s16 + $0x124] ss:$28 sps:$4 sm:$0xff]   ;;  %v718_v0 = vld [vmem:[#allocation2 + $0xb08] sm:$0xff]  ;;  %v11917_v2 = vcombine.low %v726_v56, %v730_v57  ;;  %v535_v57 = vld [vmem:[#allocation2 + $0x550] sm:$0xff] }
  0xf1   : > { %4180 = vmatprep.subr.bf16.mxu1 %v11974_v1  ;;  %v722_v1 = vld [vmem:[#allocation2 + $0xb28] sm:$0xff] }
  0xf2   : > { %4068 = vmatpush1.bf16.msra.mxu0 %v11845_v3  ;;  %v11910_v3 = vcombine.high %v718_v0, %v722_v1  ;;  %v710_v4 = vld [vmem:[#allocation2 + $0xac8] sm:$0xff]  ;;  %v11909_v8 = vcombine.low %v718_v0, %v722_v1 }
  0xf3   : > { %4069 = vmatprep.subr.bf16.mxu0 %v11838_v7  ;;  %v714_v5 = vld [vmem:[#allocation2 + $0xae8] sm:$0xff]  ;;  %v13028_v7 = vld [vmem:[%s13299_s16 + $0x120] ss:$28 sps:$4 sm:$0xff]  }
  0xf4   : > { %4181 = vmatpush1.bf16.msra.mxu1 %v11973_v12  ;;  %v11902_v10 = vcombine.high %v710_v4, %v714_v5  ;;  %v13030_v12 = vld [vmem:[%s13299_s16 + $0x15c] ss:$28 sps:$4 sm:$0xff]   ;;  %v11901_v15 = vcombine.low %v710_v4, %v714_v5  ;;  %v698_v18 = vld [vmem:[#allocation2 + $0xa68] sm:$0xff]  ;;  %v399_v5 = vld [vmem:[#allocation2 + $0x110] sm:$0xff] }
  0xf5   : > { %3888 = vmatmul.mubr.bf16.gmra.mxu0 %v13015_v23  ;;  %4182 = vmatprep.subr.bf16.mxu1 %v11966_v13  ;;  %v702_v13 = vld [vmem:[#allocation2 + $0xa88] sm:$0xff] }
  0xf6   : > { %4001 = vmatmul.mubr.bf16.gmra.mxu1 %v13016_v25  ;;  %4070 = vmatpush1.bf16.msra.mxu0 %v11837_v14  ;;  %v706_v14 = vld [vmem:[#allocation2 + $0xaa8] sm:$0xff] }
  0xf7   : > { %4071 = vmatprep.subr.bf16.mxu0 %v11830_v17  ;;  %3897 = vmatprep.mubr.bf16.mxu0 %v13017_v29  ;;  %v11894_v16 = vcombine.high %v702_v13, %v706_v14  ;;  %v694_v17 = vld [vmem:[#allocation2 + $0xa48] sm:$0xff]  ;;  %v11893_v23 = vcombine.low %v702_v13, %v706_v14 }
  0xf8   : > { %4010 = vmatprep.mubr.bf16.mxu1 %v13018_v19  ;;  %4183 = vmatpush1.bf16.msra.mxu1 %v11965_v22  ;;  %v13031_v21 = vld [vmem:[%s13299_s16 + $0x150] ss:$28 sps:$4 sm:$0xff]   ;;  %v13032_v22 = vld [vmem:[%s13299_s16 + $0x158] ss:$28 sps:$4 sm:$0xff]  }
  0xf9   : > { %4184 = vmatprep.subr.bf16.mxu1 %v11958_v24  ;;  %v815_v24 = vlaneseq  ;;  %v13033_v25 = vld [vmem:[%s13299_s16 + $0x18c] ss:$28 sps:$4 sm:$0xff]  }
  0xfa   : > { %4072 = vmatpush1.bf16.msra.mxu0 %v11829_v26  ;;  %v11886_v26 = vcombine.high %v694_v17, %v698_v18  ;;  %v686_v28 = vld [vmem:[#allocation2 + $0xa08] sm:$0xff] }
  0xfb   : > { %4073 = vmatprep.subr.bf16.mxu0 %v11822_v30  ;;  %v690_v29 = vld [vmem:[#allocation2 + $0xa28] sm:$0xff]  ;;  %v11885_v30 = vcombine.low %v694_v17, %v698_v18  ;;  %v13409_v19 = vshrl.u32 %v815_v24, 7  ;;  %v391_v24 = vld [vmem:[#allocation2 + $0xd0] sm:$0xff] }
  0xfc   : > { %4185 = vmatpush1.bf16.msra.mxu1 %v11957_v32  ;;  %v11878_v20 = vcombine.high %v686_v28, %v690_v29  ;;  %v427_v32 = vld [vmem:[#allocation2 + $0x1f0] sm:$0xff]  ;;  %v11877_v35 = vcombine.low %v686_v28, %v690_v29 }
  0xfd   : > { %3898 = vmatmul.mubr.bf16.gmra.mxu0 %v13019_v41  ;;  %4186 = vmatprep.subr.bf16.mxu1 %v11950_v33  ;;  %18684 = vst [vmem:[#allocation5_spill] sm:$0xff] %v13409_v19  ;;  %v13035_v33 = vld [vmem:[%s13299_s16 + $0x188] ss:$28 sps:$4 sm:$0xff]   ;;  %v18553_v36 = vsub.s32 0, %v13409_v19  ;;  %v11616_v39 = vcombine.high %v423_v31, %v427_v32  ;;  %v415_v41 = vld [vmem:[#allocation2 + $0x190] sm:$0xff] }
  0xfe   : > { %4011 = vmatmul.mubr.bf16.gmra.mxu1 %v13020_v43  ;;  %4074 = vmatpush1.bf16.msra.mxu0 %v11821_v34  ;;  %v13036_v34 = vld [vmem:[%s13299_s16 + $0x190] ss:$28 sps:$4 sm:$0xff]  }
  0xff   : > { %4075 = vmatprep.subr.bf16.mxu0 %v11814_v37  ;;  %3907 = vmatprep.mubr.bf16.mxu0 %v13021_v47  ;;  %v13037_v37 = vld [vmem:[%s13299_s16 + $0x14] ss:$28 sps:$4 sm:$0xff]   ;;  %v13422_v47 = vrot.slane %v813_v38, %v18553_v36  ;;  %v13110_v36 = vld [vmem:[%s13299_s16 + $0x128] ss:$28 sps:$4 sm:$0xff]  }
 0x100   : > { %4020 = vmatprep.mubr.bf16.mxu1 %v13022_v49  ;;  %4187 = vmatpush1.bf16.msra.mxu1 %v11949_v40  ;;  %v18552_v40 = vsub.s32 1, %v13409_v19  ;;  %v543_v43 = vld [vmem:[#allocation2 + $0x590] sm:$0xff]  ;;  %v11743_v49 = vcombine.low %v13389_v45, %v13391_v46 }
 0x101   : > { %4188 = vmatprep.subr.bf16.mxu1 %v11942_v42  ;;  %v419_v42 = vld [vmem:[#allocation2 + $0x1b0] sm:$0xff] }
 0x102   : > { %4076 = vmatpush1.bf16.msra.mxu0 %v11813_v44  ;;  %v547_v44 = vld [vmem:[#allocation2 + $0x5b0] sm:$0xff]  ;;  %v11608_v50 = vcombine.high %v415_v41, %v419_v42  ;;  %v13428_v51 = vrot.slane %v813_v38, %v18552_v40  ;;  %v11607_v45 = vcombine.low %v415_v41, %v419_v42  ;;  %v13043_v42 = vld [vmem:[%s13299_s16 + $0x84] ss:$28 sps:$4 sm:$0xff]  }
 0x103   : > { %4077 = vmatprep.subr.bf16.mxu0 %v11934_v48  ;;  %v11615_v48 = vcombine.low %v423_v31, %v427_v32  ;;  %v13038_v56 = vld [vmem:[%s13299_s16 + $0x10] ss:$28 sps:$4 sm:$0xff]  }
 0x104   : > { %4189 = vmatpush1.bf16.msra.mxu1 %v11941_v52  ;;  %v11736_v52 = vcombine.high %v543_v43, %v547_v44  ;;  %v519_v28 = vld [vmem:[#allocation2 + $0x4d0] sm:$0xff] }
 0x105   : > { %3908 = vmatmul.mubr.bf16.gmra.mxu0 %v13023_v58  ;;  %4400 = vmatprep.subr.bf16.mxu1 %v11744_v53  ;;  %v407_v53 = vld [vmem:[#allocation2 + $0x150] sm:$0xff] }
 0x106   : > { %4021 = vmatmul.mubr.bf16.gmra.mxu1 %v13024_v59  ;;  %4078 = vmatpush2.bf16.msra.mxu0 %v11933_v54  ;;  %v411_v54 = vld [vmem:[#allocation2 + $0x170] sm:$0xff] }
 0x107   : > { %4079 = vmatprep.subr.bf16.mxu0 %v11926_v55  ;;  %3917 = vmatprep.mubr.bf16.mxu0 %v13025_v61  ;;  %v539_v58 = vld [vmem:[#allocation2 + $0x570] sm:$0xff]  ;;  %v11599_v14 = vcombine.low %v407_v53, %v411_v54 }
 0x108   : > { %4030 = vmatprep.mubr.bf16.mxu1 %v13026_v63  ;;  %v13039_v61 = vld [vmem:[%s13299_s16 + $0x18] ss:$28 sps:$4 sm:$0xff]   ;;  %v11600_v63 = vcombine.high %v407_v53, %v411_v54  ;;  %v11728_v4 = vcombine.high %v535_v57, %v539_v58  ;;  %v13042_v32 = vld [vmem:[%s13299_s16 + $0x50] ss:$28 sps:$4 sm:$0xff]  }
 0x109   : > { %v523_v29 = vld [vmem:[#allocation2 + $0x4f0] sm:$0xff] }
 0x10a   : > { %4080 = vmatpush2.bf16.msra.mxu0 %v11925_v60 }
 0x10b   : > { %4081 = vmatprep.subr.bf16.mxu0 %v11918_v62  ;;  %v11735_v62 = vcombine.low %v543_v43, %v547_v44  ;;  %v11712_v43 = vcombine.high %v519_v28, %v523_v29  ;;  %v383_v44 = vld [vmem:[#allocation2 + $0x90] sm:$0xff] }
 0x10d   : > { %3918 = vmatmul.mubr.bf16.gmra.mxu0 %v13027_v6  ;;  %v403_v6 = vld [vmem:[#allocation2 + $0x130] sm:$0xff] }
 0x10e   : > { %4031 = vmatmul.mubr.bf16.gmra.mxu1 %v13028_v7  ;;  %4082 = vmatpush2.bf16.msra.mxu0 %v11917_v2  ;;  %v11592_v17 = vcombine.high %v399_v5, %v403_v6 }
 0x10f   : > { %4083 = vmatprep.subr.bf16.mxu0 %v11910_v3  ;;  %3927 = vmatprep.mubr.bf16.mxu0 %v13029_v9  ;;  %v13040_v3 = vld [vmem:[%s13299_s16 + $0x4c] ss:$28 sps:$4 sm:$0xff]   ;;  %v531_v9 = vld [vmem:[#allocation2 + $0x530] sm:$0xff] }
 0x110   : > { %4040 = vmatprep.mubr.bf16.mxu1 %v13030_v12 }
 0x112   : > { %4084 = vmatpush2.bf16.msra.mxu0 %v11909_v8  ;;  %v527_v8 = vld [vmem:[#allocation2 + $0x510] sm:$0xff] }
 0x113   : > { %4085 = vmatprep.subr.bf16.mxu0 %v11902_v10 }
 0x115   : > { %3928 = vmatmul.mubr.bf16.gmra.mxu0 %v13031_v21 }
 0x116   : > { %4041 = vmatmul.mubr.bf16.gmra.mxu1 %v13032_v22  ;;  %4086 = vmatpush2.bf16.msra.mxu0 %v11901_v15 }
 0x117   : > { %4087 = vmatprep.subr.bf16.mxu0 %v11894_v16  ;;  %3937 = vmatprep.mubr.bf16.mxu0 %v13033_v25  ;;  %v11727_v16 = vcombine.low %v535_v57, %v539_v58  ;;  %v395_v25 = vld [vmem:[#allocation2 + $0xf0] sm:$0xff]  ;;  %v11711_v58 = vcombine.low %v519_v28, %v523_v29 }
 0x118   : > { %4050 = vmatprep.mubr.bf16.mxu1 %v13034_v27  ;;  %v13041_v27 = vld [vmem:[%s13299_s16 + $0x48] ss:$28 sps:$4 sm:$0xff]  }
 0x11a   : > { %4088 = vmatpush2.bf16.msra.mxu0 %v11893_v23  ;;  %v11720_v23 = vcombine.high %v527_v8, %v531_v9 }
 0x11b   : > { %4089 = vmatprep.subr.bf16.mxu0 %v11886_v26 }
 0x11d   : > { %3938 = vmatmul.mubr.bf16.gmra.mxu0 %v13035_v33  ;;  %v11591_v33 = vcombine.low %v399_v5, %v403_v6 }
 0x11e   : > { %4051 = vmatmul.mubr.bf16.gmra.mxu1 %v13036_v34  ;;  %4090 = vmatpush2.bf16.msra.mxu0 %v11885_v30 }
 0x11f   : > { %4091 = vmatprep.subr.bf16.mxu0 %v11878_v20  ;;  %4093 = vmatprep.mubr.bf16.mxu0 %v13037_v37  ;;  %v11584_v37 = vcombine.high %v391_v24, %v395_v25 }
 0x120   : > { %4206 = vmatprep.mubr.bf16.mxu1 %v18554_v11 }
 0x122   : > { %4092 = vmatpush2.bf16.msra.mxu0 %v11877_v35  ;;  %v11719_v35 = vcombine.low %v527_v8, %v531_v9  ;;  %v13045_v8 = vld [vmem:[%s13299_s16 + $0x88] ss:$28 sps:$4 sm:$0xff]  }
 0x123   : > { %4287 = vmatprep.subr.bf16.mxu0 %v11616_v39  ;;  %v3417_v55 = vpop.f32.mrf.mxu0  ;;  %v3530_v60 = vpop.f32.mrf.mxu1 }
 0x124   : > { %v3418_v59 = vadd.f32 %v3417_v55, %v13422_v47 }
 0x125   : > { %4094 = vmatmul.mubr.bf16.vlgmr.msra.gmra.mxu0 %v13038_v56  ;;  %v3419_v46 = vpop.f32.mrf.mxu0  ;;  %v3532_v2 = vpop.f32.mrf.mxu1  ;;  %v11583_v56 = vcombine.low %v391_v24, %v395_v25  ;;  %v371_v24 = vld [vmem:[#allocation2 + $0x30] sm:$0xff] }
 0x126   : > { %4207 = vmatmul.mubr.bf16.vlgmr.msra.gmra.mxu1 %v13039_v61  ;;  %4288 = vmatpush1.bf16.msra.mxu0 %v11615_v48  ;;  %v13433_v0 = vadd.f32 %v3530_v60, %v3418_v59  ;;  %v3420_v1 = vadd.f32 %v3419_v46, %v13428_v51  ;;  %v387_v48 = vld [vmem:[#allocation2 + $0xb0] sm:$0xff] }
 0x127   : > { %4401 = vmatpush1.bf16.msra.mxu1 %v11743_v49  ;;  %4289 = vmatprep.subr.bf16.mxu0 %v11608_v50  ;;  %v3421_v7 = vpop.f32.mrf.mxu0  ;;  %v3534_v13 = vpop.f32.mrf.mxu1  ;;  %v511_v50 = vld [vmem:[#allocation2 + $0x490] sm:$0xff]  ;;  %v11576_v59 = vcombine.high %v383_v44, %v387_v48  ;;  %v11575_v9 = vcombine.low %v383_v44, %v387_v48 }
 0x128   : > { %4402 = vmatprep.subr.bf16.mxu1 %v11736_v52  ;;  %4103 = vmatprep.mubr.bf16.mxu0 %v13040_v3  ;;  %v13438_v10 = vadd.f32 %v3532_v2, %v3420_v1  ;;  %v3422_v12 = vadd.f32 %v3421_v7, %v13422_v47  ;;  %v515_v52 = vld [vmem:[#allocation2 + $0x4b0] sm:$0xff]  ;;  %v13044_v2 = vld [vmem:[%s13299_s16 + $0x80] ss:$28 sps:$4 sm:$0xff]  }
 0x129   : > { %4216 = vmatprep.mubr.bf16.mxu1 %v18554_v11  ;;  %v3423_v15 = vpop.f32.mrf.mxu0  ;;  %v3536_v22 = vpop.f32.mrf.mxu1  ;;  %v11704_v46 = vcombine.high %v511_v50, %v515_v52  ;;  %v503_v3 = vld [vmem:[#allocation2 + $0x450] sm:$0xff] }
 0x12a   : > { %4290 = vmatpush1.bf16.msra.mxu0 %v11607_v45  ;;  %v13441_v18 = vadd.f32 %v3534_v13, %v3422_v12  ;;  %v3424_v21 = vadd.f32 %v3423_v15, %v13428_v51  ;;  %v11703_v13 = vcombine.low %v511_v50, %v515_v52  ;;  %v13047_v48 = vld [vmem:[%s13299_s16 + $0xb8] ss:$28 sps:$4 sm:$0xff]  }
 0x12b   : > { %4403 = vmatpush1.bf16.msra.mxu1 %v11735_v62  ;;  %4291 = vmatprep.subr.bf16.mxu0 %v11600_v63  ;;  %v3427_v26 = vpop.f32.mrf.mxu0  ;;  %v375_v62 = vld [vmem:[#allocation2 + $0x50] sm:$0xff] }
 0x12c   : > { %4404 = vmatprep.subr.bf16.mxu1 %v11728_v4  ;;  %v13445_v30 = vadd.f32 %v3536_v22, %v3424_v21  ;;  %v3428_v20 = vadd.f32 %v3427_v26, %v13422_v47  ;;  %v379_v63 = vld [vmem:[#allocation2 + $0x70] sm:$0xff]  ;;  %v13046_v21 = vld [vmem:[%s13299_s16 + $0xbc] ss:$28 sps:$4 sm:$0xff]  }
 0x12d   : > { %4104 = vmatmul.mubr.bf16.gmra.mxu0 %v13041_v27  ;;  %v3540_v31 = vpop.f32.mrf.mxu1  ;;  %v3429_v34 = vpop.f32.mrf.mxu0  ;;  %v507_v4 = vld [vmem:[#allocation2 + $0x470] sm:$0xff] }
 0x12e   : > { %4217 = vmatmul.mubr.bf16.gmra.mxu1 %v13042_v32  ;;  %4292 = vmatpush1.bf16.msra.mxu0 %v11599_v14  ;;  %v13449_v38 = vadd.f32 %v3540_v31, %v3428_v20  ;;  %v3430_v39 = vadd.f32 %v3429_v34, %v13428_v51  ;;  %v11568_v14 = vcombine.high %v375_v62, %v379_v63  ;;  %v495_v26 = vld [vmem:[#allocation2 + $0x410] sm:$0xff] }
 0x12f   : > { %4405 = vmatpush1.bf16.msra.mxu1 %v11727_v16  ;;  %4293 = vmatprep.subr.bf16.mxu0 %v11592_v17  ;;  %v3542_v41 = vpop.f32.mrf.mxu1  ;;  %v3431_v49 = vpop.f32.mrf.mxu0  ;;  %v11696_v22 = vcombine.high %v503_v3, %v507_v4  ;;  %v499_v27 = vld [vmem:[#allocation2 + $0x430] sm:$0xff]  ;;  %v11567_v31 = vcombine.low %v375_v62, %v379_v63 }
 0x130   : > { %4406 = vmatprep.subr.bf16.mxu1 %v11720_v23  ;;  %4113 = vmatprep.mubr.bf16.mxu0 %v13043_v42  ;;  %v13454_v53 = vadd.f32 %v3542_v41, %v3430_v39  ;;  %v3432_v54 = vadd.f32 %v3431_v49, %v13422_v47  ;;  %v367_v23 = vld [vmem:[#allocation2 + $0x10] sm:$0xff]  ;;  %v11688_v41 = vcombine.high %v495_v26, %v499_v27 }
 0x131   : > { %4226 = vmatprep.mubr.bf16.mxu1 %v18554_v11  ;;  %v3544_v55 = vpop.f32.mrf.mxu1  ;;  %v3433_v57 = vpop.f32.mrf.mxu0  ;;  %v11560_v34 = vcombine.high %v367_v23, %v371_v24  ;;  %v487_v42 = vld [vmem:[#allocation2 + $0x3d0] sm:$0xff] }
 0x132   : > { %4294 = vmatpush1.bf16.msra.mxu0 %v11591_v33  ;;  %v13457_v60 = vadd.f32 %v3544_v55, %v3432_v54  ;;  %v3434_v61 = vadd.f32 %v3433_v57, %v13428_v51  ;;  %v11695_v33 = vcombine.low %v503_v3, %v507_v4  ;;  %v615_v49 = vld [vmem:[#allocation2 + $0x7d0] sm:$0xff]  ;;  %v11559_v57 = vcombine.low %v367_v23, %v371_v24 }
 0x133   : > { %4407 = vmatpush1.bf16.msra.mxu1 %v11719_v35  ;;  %4295 = vmatprep.subr.bf16.mxu0 %v11584_v37  ;;  %v3546_v45 = vpop.f32.mrf.mxu1  ;;  %v619_v50 = vld [vmem:[#allocation2 + $0x7f0] sm:$0xff] }
 0x134   : > { %4408 = vmatprep.subr.bf16.mxu1 %v11712_v43  ;;  %v3437_v1 = vpop.f32.mrf.mxu0  ;;  %v13461_v5 = vadd.f32 %v3546_v45, %v3434_v61  ;;  %v491_v43 = vld [vmem:[#allocation2 + $0x3f0] sm:$0xff] }
 0x135   : > { %4114 = vmatmul.mubr.bf16.gmra.mxu0 %v13044_v2  ;;  %v3438_v6 = vadd.f32 %v3437_v1, %v13422_v47  ;;  %v3550_v7 = vpop.f32.mrf.mxu1  ;;  %v11680_v61 = vcombine.high %v487_v42, %v491_v43  ;;  %v13049_v63 = vld [vmem:[%s13299_s16 + $0xf4] ss:$28 sps:$4 sm:$0xff]   ;;  %v11808_v1 = vcombine.high %v615_v49, %v619_v50 }
 0x136   : > { %4227 = vmatmul.mubr.bf16.gmra.mxu1 %v13045_v8  ;;  %4296 = vmatpush1.bf16.msra.mxu0 %v11583_v56  ;;  %v3439_v12 = vpop.f32.mrf.mxu0  ;;  %v13048_v56 = vld [vmem:[%s13299_s16 + $0xc0] ss:$28 sps:$4 sm:$0xff]   ;;  %v479_v2 = vld [vmem:[#allocation2 + $0x390] sm:$0xff] }
 0x137   : > { %4409 = vmatpush1.bf16.msra.mxu1 %v11711_v58  ;;  %4297 = vmatprep.subr.bf16.mxu0 %v11576_v59  ;;  %v13465_v15 = vadd.f32 %v3550_v7, %v3438_v6  ;;  %v3440_v16 = vadd.f32 %v3439_v12, %v13428_v51  ;;  %v3552_v17 = vpop.f32.mrf.mxu1  ;;  %v11687_v59 = vcombine.low %v495_v26, %v499_v27  ;;  %v483_v3 = vld [vmem:[#allocation2 + $0x3b0] sm:$0xff] }
 0x138   : > { %4410 = vmatprep.subr.bf16.mxu1 %v11704_v46  ;;  %4123 = vmatprep.mubr.bf16.mxu0 %v13046_v21  ;;  %v3441_v25 = vpop.f32.mrf.mxu0  ;;  %v607_v6 = vld [vmem:[#allocation2 + $0x790] sm:$0xff] }
 0x139   : > { %4236 = vmatprep.mubr.bf16.mxu1 %v18554_v11  ;;  %v13470_v28 = vadd.f32 %v3552_v17, %v3440_v16  ;;  %v3442_v29 = vadd.f32 %v3441_v25, %v13422_v47  ;;  %v3554_v20 = vpop.f32.mrf.mxu1  ;;  %v611_v7 = vld [vmem:[#allocation2 + $0x7b0] sm:$0xff]  ;;  %v11807_v16 = vcombine.low %v615_v49, %v619_v50  ;;  %v11672_v17 = vcombine.high %v479_v2, %v483_v3  ;;  %v13052_v50 = vld [vmem:[%s13299_s16 + $0x12c] ss:$28 sps:$4 sm:$0xff]  }
 0x13a   : > { %4298 = vmatpush1.bf16.msra.mxu0 %v11575_v9  ;;  %v3443_v32 = vpop.f32.mrf.mxu0  ;;  %v11800_v24 = vcombine.high %v607_v6, %v611_v7  ;;  %v471_v25 = vld [vmem:[#allocation2 + $0x350] sm:$0xff] }
 0x13b   : > { %4411 = vmatpush1.bf16.msra.mxu1 %v11703_v13  ;;  %4299 = vmatprep.subr.bf16.mxu0 %v11568_v14  ;;  %v13473_v35 = vadd.f32 %v3554_v20, %v3442_v29  ;;  %v3444_v37 = vadd.f32 %v3443_v32, %v13428_v51  ;;  %v3556_v39 = vpop.f32.mrf.mxu1  ;;  %v11679_v13 = vcombine.low %v487_v42, %v491_v43  ;;  %v475_v26 = vld [vmem:[#allocation2 + $0x370] sm:$0xff] }
 0x13c   : > { %4412 = vmatprep.subr.bf16.mxu1 %v11696_v22  ;;  %v3447_v44 = vpop.f32.mrf.mxu0  ;;  %v13050_v29 = vld [vmem:[%s13299_s16 + $0xf0] ss:$28 sps:$4 sm:$0xff]   ;;  %v11799_v42 = vcombine.low %v607_v6, %v611_v7  ;;  %v11664_v43 = vcombine.high %v471_v25, %v475_v26 }
 0x13d   : > { %4124 = vmatmul.mubr.bf16.gmra.mxu0 %v13047_v48  ;;  %v13477_v52 = vadd.f32 %v3556_v39, %v3444_v37  ;;  %v3448_v54 = vadd.f32 %v3447_v44, %v13422_v47  ;;  %v3560_v55 = vpop.f32.mrf.mxu1  ;;  %v599_v20 = vld [vmem:[#allocation2 + $0x750] sm:$0xff]  ;;  %v11671_v39 = vcombine.low %v479_v2, %v483_v3 }
 0x13e   : > { %4237 = vmatmul.mubr.bf16.gmra.mxu1 %v13048_v56  ;;  %4300 = vmatpush1.bf16.msra.mxu0 %v11567_v31  ;;  %v3449_v58 = vpop.f32.mrf.mxu0  ;;  %v603_v31 = vld [vmem:[#allocation2 + $0x770] sm:$0xff] }
 0x13f   : > { %4413 = vmatpush1.bf16.msra.mxu1 %v11695_v33  ;;  %4301 = vmatprep.subr.bf16.mxu0 %v11560_v34  ;;  %v13481_v45 = vadd.f32 %v3560_v55, %v3448_v54  ;;  %v3450_v46 = vadd.f32 %v3449_v58, %v13428_v51  ;;  %v3562_v62 = vpop.f32.mrf.mxu1  ;;  %v13051_v37 = vld [vmem:[%s13299_s16 + $0xf8] ss:$28 sps:$4 sm:$0xff]   ;;  %v11792_v54 = vcombine.high %v599_v20, %v603_v31 }
 0x140   : > { %4414 = vmatprep.subr.bf16.mxu1 %v11688_v41  ;;  %4133 = vmatprep.mubr.bf16.mxu0 %v13049_v63  ;;  %v3451_v4 = vpop.f32.mrf.mxu0  ;;  %v463_v55 = vld [vmem:[#allocation2 + $0x310] sm:$0xff]  ;;  %v11663_v63 = vcombine.low %v471_v25, %v475_v26  ;;  %v11791_v2 = vcombine.low %v599_v20, %v603_v31 }
 0x141   : > { %4246 = vmatprep.mubr.bf16.mxu1 %v18554_v11  ;;  %v13486_v8 = vadd.f32 %v3562_v62, %v3450_v46  ;;  %v3452_v9 = vadd.f32 %v3451_v4, %v13422_v47  ;;  %v3564_v12 = vpop.f32.mrf.mxu1  ;;  %v467_v56 = vld [vmem:[#allocation2 + $0x330] sm:$0xff] }
 0x142   : > { %4302 = vmatpush1.bf16.msra.mxu0 %v11559_v57  ;;  %v3453_v14 = vpop.f32.mrf.mxu0  ;;  %v591_v58 = vld [vmem:[#allocation2 + $0x710] sm:$0xff]  ;;  %v11656_v3 = vcombine.high %v463_v55, %v467_v56 }
 0x143   : > { %4415 = vmatpush1.bf16.msra.mxu1 %v11687_v59  ;;  %4303 = vmatprep.subr.bf16.mxu0 %v11680_v61  ;;  %v13489_v21 = vadd.f32 %v3564_v12, %v3452_v9  ;;  %v3454_v22 = vadd.f32 %v3453_v14, %v13428_v51  ;;  %v3566_v23 = vpop.f32.mrf.mxu1  ;;  %v595_v59 = vld [vmem:[#allocation2 + $0x730] sm:$0xff] }
 0x144   : > { %4416 = vmatprep.subr.bf16.mxu1 %v11808_v1  ;;  %v11784_v9 = vcombine.high %v591_v58, %v595_v59  ;;  %v455_v12 = vld [vmem:[#allocation2 + $0x2d0] sm:$0xff]  ;;  %v11783_v20 = vcombine.low %v591_v58, %v595_v59 }
 0x145   : > { %v3457_v27 = vpop.f32.mrf.mxu0  ;;  %4134 = vmatmul.mubr.bf16.gmra.mxu0 %v13050_v29  ;;  %v13493_v32 = vadd.f32 %v3566_v23, %v3454_v22  ;;  %v587_v22 = vld [vmem:[#allocation2 + $0x6f0] sm:$0xff] }
 0x146   : > { %v3458_v33 = vadd.f32 %v3457_v27, %v13422_v47  ;;  %v3570_v34 = vpop.f32.mrf.mxu1  ;;  %4247 = vmatmul.mubr.bf16.gmra.mxu1 %v13051_v37  ;;  %4304 = vmatpush2.bf16.msra.mxu0 %v11679_v13  ;;  %v459_v13 = vld [vmem:[#allocation2 + $0x2f0] sm:$0xff]  ;;  %v11655_v27 = vcombine.low %v463_v55, %v467_v56 }
 0x147   : > { %4417 = vmatpush2.bf16.msra.mxu1 %v11807_v16  ;;  %v3459_v41 = vpop.f32.mrf.mxu0  ;;  %4305 = vmatprep.subr.bf16.mxu0 %v11672_v17  ;;  %v13053_v16 = vld [vmem:[%s13299_s16 + $0x128] ss:$28 sps:$4 sm:$0xff]   ;;  %v583_v17 = vld [vmem:[#allocation2 + $0x6d0] sm:$0xff]  ;;  %v11648_v31 = vcombine.high %v455_v12, %v459_v13 }
 0x148   : > { %v13497_v44 = vadd.f32 %v3570_v34, %v3458_v33  ;;  %v3460_v48 = vadd.f32 %v3459_v41, %v13428_v51  ;;  %v3572_v49 = vpop.f32.mrf.mxu1  ;;  %4418 = vmatprep.subr.bf16.mxu1 %v11800_v24  ;;  %4143 = vmatprep.mubr.bf16.mxu0 %v13052_v50  ;;  %v13054_v26 = vld [vmem:[%s13299_s16 + $0x130] ss:$28 sps:$4 sm:$0xff]   ;;  %v11776_v41 = vcombine.high %v583_v17, %v587_v22 }
 0x149   : > { %v3461_v57 = vpop.f32.mrf.mxu0  ;;  %4256 = vmatprep.mubr.bf16.mxu1 %v18554_v11  ;;  %v579_v50 = vld [vmem:[#allocation2 + $0x6b0] sm:$0xff]  ;;  %v11775_v59 = vcombine.low %v583_v17, %v587_v22  ;;  %v13057_v22 = vld [vmem:[%s13299_s16 + $0x168] ss:$28 sps:$4 sm:$0xff]  }
 0x14a   : > { %v13502_v61 = vadd.f32 %v3572_v49, %v3460_v48  ;;  %v3462_v46 = vadd.f32 %v3461_v57, %v13422_v47  ;;  %v3574_v62 = vpop.f32.mrf.mxu1  ;;  %4306 = vmatpush2.bf16.msra.mxu0 %v11671_v39  ;;  %v13055_v39 = vld [vmem:[%s13299_s16 + $0x164] ss:$28 sps:$4 sm:$0xff]   ;;  %v575_v49 = vld [vmem:[#allocation2 + $0x690] sm:$0xff]  ;;  %v11647_v57 = vcombine.low %v455_v12, %v459_v13 }
 0x14b   : > { %4419 = vmatpush2.bf16.msra.mxu1 %v11799_v42  ;;  %v3463_v1 = vpop.f32.mrf.mxu0  ;;  %4307 = vmatprep.subr.bf16.mxu0 %v11664_v43  ;;  %v447_v42 = vld [vmem:[#allocation2 + $0x290] sm:$0xff] }
 0x14c   : > { %v13505_v4 = vadd.f32 %v3574_v62, %v3462_v46  ;;  %v3464_v6 = vadd.f32 %v3463_v1, %v13428_v51  ;;  %v3576_v7 = vpop.f32.mrf.mxu1  ;;  %4420 = vmatprep.subr.bf16.mxu1 %v11792_v54  ;;  %v451_v43 = vld [vmem:[#allocation2 + $0x2b0] sm:$0xff] }
 0x14d   : > { %v3467_v14 = vpop.f32.mrf.mxu0  ;;  %4144 = vmatmul.mubr.bf16.gmra.mxu0 %v13053_v16  ;;  %v11640_v46 = vcombine.high %v447_v42, %v451_v43  ;;  %v571_v12 = vld [vmem:[#allocation2 + $0x670] sm:$0xff] }
 0x14e   : > { %v13509_v23 = vadd.f32 %v3576_v7, %v3464_v6  ;;  %v3468_v24 = vadd.f32 %v3467_v14, %v13422_v47  ;;  %v3580_v25 = vpop.f32.mrf.mxu1  ;;  %4257 = vmatmul.mubr.bf16.gmra.mxu1 %v13054_v26  ;;  %4308 = vmatpush2.bf16.msra.mxu0 %v11663_v63  ;;  %v443_v6 = vld [vmem:[#allocation2 + $0x270] sm:$0xff]  ;;  %v11767_v26 = vcombine.low %v575_v49, %v579_v50 }
 0x14f   : > { %4421 = vmatpush2.bf16.msra.mxu1 %v11791_v2  ;;  %v3469_v29 = vpop.f32.mrf.mxu0  ;;  %4309 = vmatprep.subr.bf16.mxu0 %v11656_v3  ;;  %v11768_v2 = vcombine.high %v575_v49, %v579_v50  ;;  %v439_v3 = vld [vmem:[#allocation2 + $0x250] sm:$0xff] }
 0x150   : > { %v13513_v33 = vadd.f32 %v3580_v25, %v3468_v24  ;;  %v3470_v34 = vadd.f32 %v3469_v29, %v13428_v51  ;;  %v3582_v37 = vpop.f32.mrf.mxu1  ;;  %4422 = vmatprep.subr.bf16.mxu1 %v11784_v9  ;;  %4153 = vmatprep.mubr.bf16.mxu0 %v13055_v39  ;;  %v13056_v9 = vld [vmem:[%s13299_s16 + $0x160] ss:$28 sps:$4 sm:$0xff]   ;;  %v567_v14 = vld [vmem:[#allocation2 + $0x650] sm:$0xff]  ;;  %v11639_v24 = vcombine.low %v447_v42, %v451_v43 }
 0x151   : > { %v3471_v48 = vpop.f32.mrf.mxu0  ;;  %4266 = vmatprep.mubr.bf16.mxu1 %v18554_v11  ;;  %v431_v39 = vld [vmem:[#allocation2 + $0x210] sm:$0xff] }
 0x152   : > { %v13518_v54 = vadd.f32 %v3582_v37, %v3470_v34  ;;  %v3472_v55 = vadd.f32 %v3471_v48, %v13422_v47  ;;  %v3584_v56 = vpop.f32.mrf.mxu1  ;;  %4310 = vmatpush2.bf16.msra.mxu0 %v11655_v27  ;;  %v11632_v27 = vcombine.high %v439_v3, %v443_v6  ;;  %v13058_v34 = vld [vmem:[%s13299_s16 + $0x19c] ss:$28 sps:$4 sm:$0xff]   ;;  %v11760_v37 = vcombine.high %v567_v14, %v571_v12  ;;  %v559_v42 = vld [vmem:[#allocation2 + $0x610] sm:$0xff] }
 0x153   : > { %4423 = vmatpush2.bf16.msra.mxu1 %v11783_v20  ;;  %v3473_v58 = vpop.f32.mrf.mxu0  ;;  %4311 = vmatprep.subr.bf16.mxu0 %v11648_v31  ;;  %v563_v43 = vld [vmem:[#allocation2 + $0x630] sm:$0xff] }
 0x154   : > { %v13521_v62 = vadd.f32 %v3584_v56, %v3472_v55  ;;  %v3474_v63 = vadd.f32 %v3473_v58, %v13428_v51  ;;  %v3586_v1 = vpop.f32.mrf.mxu1  ;;  %4424 = vmatprep.subr.bf16.mxu1 %v11776_v41  ;;  %v435_v41 = vld [vmem:[#allocation2 + $0x230] sm:$0xff]  ;;  %v11631_v56 = vcombine.low %v439_v3, %v443_v6  ;;  %v11759_v58 = vcombine.low %v567_v14, %v571_v12 }
 0x155   : > { %v3477_v7 = vpop.f32.mrf.mxu0  ;;  %4154 = vmatmul.mubr.bf16.gmra.mxu0 %v13056_v9  ;;  %v683_v9 = vld [vmem:[#allocation2 + $0x9f0] sm:$0xff] }
 0x156   : > { %v13525_v13 = vadd.f32 %v3586_v1, %v3474_v63  ;;  %v3478_v16 = vadd.f32 %v3477_v7, %v13422_v47  ;;  %v3590_v17 = vpop.f32.mrf.mxu1  ;;  %4267 = vmatmul.mubr.bf16.gmra.mxu1 %v13057_v22  ;;  %4312 = vmatpush2.bf16.msra.mxu0 %v11647_v57  ;;  %v679_v7 = vld [vmem:[#allocation2 + $0x9d0] sm:$0xff] }
 0x157   : > { %4425 = vmatpush2.bf16.msra.mxu1 %v11775_v59  ;;  %v3479_v25 = vpop.f32.mrf.mxu0  ;;  %4313 = vmatprep.subr.bf16.mxu0 %v11640_v46  ;;  %v11624_v59 = vcombine.high %v431_v39, %v435_v41  ;;  %v807_v22 = vld [vmem:[#allocation2 + $0xdd0] sm:$0xff] }
 0x158   : > { %v13529_v29 = vadd.f32 %v3590_v17, %v3478_v16  ;;  %v3480_v20 = vadd.f32 %v3479_v25, %v13428_v51  ;;  %v3592_v31 = vpop.f32.mrf.mxu1  ;;  %4426 = vmatprep.subr.bf16.mxu1 %v11768_v2  ;;  %4163 = vmatprep.mubr.bf16.mxu0 %v13058_v34  ;;  %v11752_v2 = vcombine.high %v559_v42, %v563_v43  ;;  %v13059_v17 = vld [vmem:[%s13299_s16 + $0x198] ss:$28 sps:$4 sm:$0xff]  }
 0x159   : > { %v3481_v48 = vpop.f32.mrf.mxu0  ;;  %4276 = vmatprep.mubr.bf16.mxu1 %v18554_v11  ;;  %v811_v3 = vld [vmem:[#allocation2 + $0xdf0] sm:$0xff]  ;;  %v11623_v25 = vcombine.low %v431_v39, %v435_v41 }
 0x15a   : > { %v13534_v55 = vadd.f32 %v3592_v31, %v3480_v20  ;;  %v3482_v49 = vadd.f32 %v3481_v48, %v13422_v47  ;;  %v3594_v50 = vpop.f32.mrf.mxu1  ;;  %4314 = vmatpush2.bf16.msra.mxu0 %v11639_v24  ;;  %v13060_v24 = vld [vmem:[%s13299_s16 + $0x1a0] ss:$28 sps:$4 sm:$0xff]   ;;  %v11872_v20 = vcombine.high %v679_v7, %v683_v9 }
 0x15b   : > { %4427 = vmatpush2.bf16.msra.mxu1 %v11767_v26  ;;  %v3483_v57 = vpop.f32.mrf.mxu0  ;;  %4315 = vmatprep.subr.bf16.mxu0 %v11632_v27  ;;  %v11751_v27 = vcombine.low %v559_v42, %v563_v43  ;;  %v13061_v48 = vld [vmem:[%s13299_s16 + $0x4] ss:$28 sps:$4 sm:$0xff]   ;;  %v11871_v43 = vcombine.low %v679_v7, %v683_v9  ;;  %v13557_v9 = vld [vmem:[#allocation2 + $0xd50] sm:$0xff] }
 0x15c   : > { %v13537_v46 = vadd.f32 %v3594_v50, %v3482_v49  ;;  %v3484_v63 = vadd.f32 %v3483_v57, %v13428_v51  ;;  %v3596_v1 = vpop.f32.mrf.mxu1  ;;  %4428 = vmatprep.subr.bf16.mxu1 %v11760_v37  ;;  %v12000_v49 = vcombine.high %v807_v22, %v811_v3  ;;  %v671_v50 = vld [vmem:[#allocation2 + $0x990] sm:$0xff] }
 0x15d   : > { %v3487_v16 = vpop.f32.mrf.mxu0  ;;  %4164 = vmatmul.mubr.bf16.gmra.mxu0 %v13059_v17  ;;  %v675_v57 = vld [vmem:[#allocation2 + $0x9b0] sm:$0xff] }
 0x15e   : > { %v13541_v6 = vadd.f32 %v3596_v1, %v3484_v63  ;;  %v3488_v14 = vadd.f32 %v3487_v16, %v13422_v47  ;;  %v3600_v12 = vpop.f32.mrf.mxu1  ;;  %4277 = vmatmul.mubr.bf16.gmra.mxu1 %v13060_v24  ;;  %4316 = vmatpush2.bf16.msra.mxu0 %v11631_v56  ;;  %v13062_v56 = vld [vmem:[%s13299_s16 + $0xc] ss:$28 sps:$4 sm:$0xff]   ;;  %v11864_v16 = vcombine.high %v671_v50, %v675_v57  ;;  %v663_v24 = vld [vmem:[#allocation2 + $0x950] sm:$0xff] }
 0x15f   : > { %4429 = vmatpush2.bf16.msra.mxu1 %v11759_v58  ;;  %v3489_v26 = vpop.f32.mrf.mxu0  ;;  %4317 = vmatprep.subr.bf16.mxu0 %v11624_v59  ;;  %v799_v58 = vld [vmem:[#allocation2 + $0xd90] sm:$0xff] }
 0x160   : > { %v13545_v31 = vadd.f32 %v3600_v12, %v3488_v14  ;;  %v3490_v34 = vadd.f32 %v3489_v26, %v13428_v51  ;;  %v3602_v37 = vpop.f32.mrf.mxu1  ;;  %4430 = vmatprep.subr.bf16.mxu1 %v11752_v2  ;;  %4319 = vmatprep.mubr.bf16.mxu0 %v13061_v48  ;;  %v803_v59 = vld [vmem:[#allocation2 + $0xdb0] sm:$0xff]  ;;  %v11999_v2 = vcombine.low %v807_v22, %v811_v3 }
 0x161   : > { %v3491_v63 = vpop.f32.mrf.mxu0  ;;  %4432 = vmatprep.mubr.bf16.mxu1 %v13062_v56  ;;  %v11992_v7 = vcombine.high %v799_v58, %v803_v59 }
 0x162   : > { %v13550_v39 = vadd.f32 %v3602_v37, %v3490_v34  ;;  %v3492_v41 = vadd.f32 %v3491_v63, %v13422_v47  ;;  %v3604_v42 = vpop.f32.mrf.mxu1  ;;  %4318 = vmatpush2.bf16.msra.mxu0 %v11623_v25  ;;  %v667_v47 = vld [vmem:[#allocation2 + $0x970] sm:$0xff]  ;;  %v13063_v25 = vld [vmem:[%s13299_s16] ss:$28 sps:$4 sm:$0xff]   ;;  %v11863_v34 = vcombine.low %v671_v50, %v675_v57 }
 0x163   : > { %4431 = vmatpush2.bf16.msra.mxu1 %v11751_v27  ;;  %v3493_v1 = vpop.f32.mrf.mxu0  ;;  %4513 = vmatprep.subr.bf16.mxu0 %v11872_v20  ;;  %v13559_v27 = vld [vmem:[#allocation2 + $0xd70] sm:$0xff]  ;;  %v11856_v48 = vcombine.high %v663_v24, %v667_v47 }
 0x164   : > { %v13553_v17 = vadd.f32 %v3604_v42, %v3492_v41  ;;  %v3494_v14 = vadd.f32 %v3493_v1, %v13428_v51  ;;  %v3606_v12 = vpop.f32.mrf.mxu1  ;;  %4626 = vmatprep.subr.bf16.mxu1 %v12000_v49  ;;  %v13064_v51 = vld [vmem:[%s13299_s16 + $0x8] ss:$28 sps:$4 sm:$0xff]   ;;  %v11991_v49 = vcombine.low %v799_v58, %v803_v59  ;;  %v13065_v42 = vld [vmem:[%s13299_s16 + $0x3c] ss:$28 sps:$4 sm:$0xff]   ;;  %v11855_v58 = vcombine.low %v663_v24, %v667_v47  ;;  %v13573_v59 = vld [vmem:[#allocation2 + $0xd30] sm:$0xff] }
 0x165   : > { %v3643_v26 = vpop.f32.mrf.mxu0  ;;  %4320 = vmatmul.mubr.bf16.vlgmr.msra.gmra.mxu0 %v13063_v25  ;;  %v13066_v1 = vld [vmem:[%s13299_s16 + $0x44] ss:$28 sps:$4 sm:$0xff]   ;;  %v11983_v24 = vcombine.low %v13557_v9, %v13559_v27 }
 0x166   : > { %v13561_v22 = vadd.f32 %v3606_v12, %v3494_v14  ;;  %v3644_v3 = vadd.f32 %v3643_v26, %v13433_v0  ;;  %v3756_v20 = vpop.f32.mrf.mxu1  ;;  %4433 = vmatmul.mubr.bf16.vlgmr.msra.gmra.mxu1 %v13064_v51  ;;  %4514 = vmatpush1.bf16.msra.mxu0 %v11871_v43  ;;  %v655_v0 = vld [vmem:[#allocation2 + $0x910] sm:$0xff]  ;;  %v11984_v12 = vcombine.high %v13557_v9, %v13559_v27 }
 0x167   : > { %v3645_v37 = vpop.f32.mrf.mxu0  ;;  %4627 = vmatpush1.bf16.msra.mxu1 %v11999_v2  ;;  %4515 = vmatprep.subr.bf16.mxu0 %v11864_v16  ;;  %v659_v14 = vld [vmem:[#allocation2 + $0x930] sm:$0xff] }
 0x168   : > { %v3757_v63 = vadd.f32 %v3756_v20, %v3644_v3  ;;  %v3646_v56 = vadd.f32 %v3645_v37, %v13438_v10  ;;  %v3758_v41 = vpop.f32.mrf.mxu1  ;;  %4329 = vmatprep.mubr.bf16.mxu0 %v13065_v42  ;;  %4442 = vmatprep.mubr.bf16.mxu1 %v13066_v1  ;;  %v13571_v10 = vld [vmem:[#allocation2 + $0xd10] sm:$0xff]  ;;  %v11848_v26 = vcombine.high %v655_v0, %v659_v14  ;;  %v13068_v42 = vld [vmem:[%s13299_s16 + $0x40] ss:$28 sps:$4 sm:$0xff]  }
 0x169   : > { %v3647_v43 = vpop.f32.mrf.mxu0  ;;  %4628 = vmatprep.subr.bf16.mxu1 %v11992_v7  ;;  %v13576_v20 = vld [vmem:[#allocation2 + $0x8d0] sm:$0xff]  ;;  %v11976_v37 = vcombine.high %v13571_v10, %v13573_v59 }
 0x16a   : > { %v3759_v50 = vadd.f32 %v3758_v41, %v3646_v56  ;;  %v3648_v57 = vadd.f32 %v3647_v43, %v13441_v18  ;;  %v3760_v2 = vpop.f32.mrf.mxu1  ;;  %4516 = vmatpush1.bf16.msra.mxu0 %v11863_v34  ;;  %v13578_v18 = vld [vmem:[#allocation2 + $0x8f0] sm:$0xff]  ;;  %v11847_v34 = vcombine.low %v655_v0, %v659_v14 }
 0x16b   : > { %v3649_v16 = vpop.f32.mrf.mxu0  ;;  %4517 = vmatprep.subr.bf16.mxu0 %v11856_v48  ;;  %4629 = vmatpush1.bf16.msra.mxu1 %v11991_v49  ;;  %v13067_v51 = vld [vmem:[%s13299_s16 + $0x38] ss:$28 sps:$4 sm:$0xff]   ;;  %v5191_v48 = vmax.f32 %v3757_v63, 0.0  ;;  %v11840_v63 = vcombine.high %v13576_v20, %v13578_v18 }
 0x16c   : > { %v3761_v25 = vadd.f32 %v3760_v2, %v3648_v57  ;;  %v3650_v3 = vadd.f32 %v3649_v16, %v13445_v30  ;;  %v3762_v7 = vpop.f32.mrf.mxu1  ;;  %4630 = vmatprep.subr.bf16.mxu1 %v11984_v12  ;;  %v13587_v9 = vld [vmem:[#allocation2 + $0xcd0] sm:$0xff]  ;;  %v5192_v1 = vmax.f32 %v3759_v50, 0.0  ;;  %v13070_v16 = vld [vmem:[%s13299_s16 + $0x7c] ss:$28 sps:$4 sm:$0xff]  }
 0x16d   : > { %v3653_v47 = vpop.f32.mrf.mxu0  ;;  %4330 = vmatmul.mubr.bf16.gmra.mxu0 %v13067_v51  ;;  %v13589_v27 = vld [vmem:[#allocation2 + $0xcf0] sm:$0xff] }
 0x16e   : > { %v5199_v30 = vmax.f32 %v3761_v25, 0.0  ;;  %v3763_v49 = vadd.f32 %v3762_v7, %v3650_v3  ;;  %v3654_v56 = vadd.f32 %v3653_v47, %v13449_v38  ;;  %v3766_v41 = vpop.f32.mrf.mxu1  ;;  %4443 = vmatmul.mubr.bf16.gmra.mxu1 %v13068_v42  ;;  %4518 = vmatpush1.bf16.msra.mxu0 %v11855_v58  ;;  %v13069_v0 = vld [vmem:[%s13299_s16 + $0x74] ss:$28 sps:$4 sm:$0xff]   ;;  %v11975_v38 = vcombine.low %v13571_v10, %v13573_v59 }
 0x16f   : > { %v3655_v12 = vpop.f32.mrf.mxu0  ;;  %4519 = vmatprep.subr.bf16.mxu0 %v11848_v26  ;;  %4339 = vmatprep.mubr.bf16.mxu0 %v13069_v0  ;;  %v13600_v50 = vld [vmem:[#allocation2 + $0x890] sm:$0xff]  ;;  %v11968_v3 = vcombine.high %v13587_v9, %v13589_v27 }
 0x170   : > { %v13596_v14 = vpack.c.bf16 %v5199_v30, %v5191_v48  ;;  %v5200_v43 = vmax.f32 %v3763_v49, 0.0  ;;  %v3767_v57 = vadd.f32 %v3766_v41, %v3654_v56  ;;  %v3656_v2 = vadd.f32 %v3655_v12, %v13454_v53  ;;  %v3768_v58 = vpop.f32.mrf.mxu1  ;;  %4452 = vmatprep.mubr.bf16.mxu1 %v13070_v16  ;;  %4631 = vmatpush1.bf16.msra.mxu1 %v11983_v24  ;;  %v643_v26 = vld [vmem:[#allocation2 + $0x8b0] sm:$0xff]  ;;  %v13073_v16 = vld [vmem:[%s13299_s16 + $0xac] ss:$28 sps:$4 sm:$0xff]  }
 0x171   : > { %v3657_v25 = vpop.f32.mrf.mxu0  ;;  %4632 = vmatprep.subr.bf16.mxu1 %v11976_v37  ;;  %v11839_v53 = vcombine.low %v13576_v20, %v13578_v18  ;;  %v13609_v24 = vld [vmem:[#allocation2 + $0xc90] sm:$0xff]  ;;  %v11832_v37 = vcombine.high %v13600_v50, %v643_v26  ;;  %v11967_v20 = vcombine.low %v13587_v9, %v13589_v27  ;;  %v11831_v42 = vcombine.low %v13600_v50, %v643_v26 }
 0x172   : > { %18685 = vst [vmem:[#allocation6_spill] sm:$0xff] %v13596_v14  ;;  %v13604_v7 = vpack.c.bf16 %v5200_v43, %v5192_v1  ;;  %v3769_v10 = vadd.f32 %v3768_v58, %v3656_v2  ;;  %v3658_v59 = vadd.f32 %v3657_v25, %v13457_v60  ;;  %v3770_v47 = vpop.f32.mrf.mxu1  ;;  %4520 = vmatpush1.bf16.msra.mxu0 %v11847_v34  ;;  %v13611_v51 = vld [vmem:[#allocation2 + $0xcb0] sm:$0xff]  ;;  %v5207_v1 = vmax.f32 %v3767_v57, 0.0 }
 0x173   : > { %v3659_v48 = vpop.f32.mrf.mxu0  ;;  %4521 = vmatprep.subr.bf16.mxu0 %v11840_v63  ;;  %v13615_v60 = vld [vmem:[#allocation2 + $0x850] sm:$0xff] }
 0x174   : > { %18686 = vst [vmem:[#allocation7_spill] sm:$0xff] %v13604_v7  ;;  %v3771_v30 = vadd.f32 %v3770_v47, %v3658_v59  ;;  %v3660_v49 = vadd.f32 %v3659_v48, %v13461_v5  ;;  %v3772_v56 = vpop.f32.mrf.mxu1  ;;  %v13617_v41 = vld [vmem:[#allocation2 + $0x870] sm:$0xff]  ;;  %4633 = vmatpush1.bf16.msra.mxu1 %v11975_v38  ;;  %v11960_v5 = vcombine.high %v13609_v24, %v13611_v51  ;;  %v5208_v2 = vmax.f32 %v3769_v10, 0.0 }
 0x175   : > { %v3663_v18 = vpop.f32.mrf.mxu0  ;;  %v13071_v34 = vld [vmem:[%s13299_s16 + $0x70] ss:$28 sps:$4 sm:$0xff]   ;;  %4634 = vmatprep.subr.bf16.mxu1 %v11968_v3  ;;  %v13072_v38 = vld [vmem:[%s13299_s16 + $0x78] ss:$28 sps:$4 sm:$0xff]   ;;  %v11824_v57 = vcombine.high %v13615_v60, %v13617_v41 }
 0x176   : > { %4340 = vmatmul.mubr.bf16.gmra.mxu0 %v13071_v34  ;;  %v5215_v12 = vmax.f32 %v3771_v30, 0.0  ;;  %v3773_v0 = vadd.f32 %v3772_v56, %v3660_v49  ;;  %v3664_v63 = vadd.f32 %v3663_v18, %v13465_v15  ;;  %v3776_v43 = vpop.f32.mrf.mxu1  ;;  %4453 = vmatmul.mubr.bf16.gmra.mxu1 %v13072_v38  ;;  %v13627_v9 = vld [vmem:[#allocation2 + $0xc50] sm:$0xff]  ;;  %v11959_v15 = vcombine.low %v13609_v24, %v13611_v51 }
 0x177   : > { %4522 = vmatpush1.bf16.msra.mxu0 %v11839_v53  ;;  %v13629_v27 = vld [vmem:[#allocation2 + $0xc70] sm:$0xff]  ;;  %v3665_v58 = vpop.f32.mrf.mxu0  ;;  %4349 = vmatprep.mubr.bf16.mxu0 %v13073_v16 }
 0x178   : > { %4523 = vmatprep.subr.bf16.mxu0 %v11832_v37  ;;  %v13636_v50 = vpack.c.bf16 %v5215_v12, %v5207_v1  ;;  %v5216_v26 = vmax.f32 %v3773_v0, 0.0  ;;  %v3777_v25 = vadd.f32 %v3776_v43, %v3664_v63  ;;  %v3666_v3 = vadd.f32 %v3665_v58, %v13470_v28  ;;  %v3778_v59 = vpop.f32.mrf.mxu1  ;;  %v13074_v47 = vld [vmem:[%s13299_s16 + $0xb4] ss:$28 sps:$4 sm:$0xff]   ;;  %4635 = vmatpush1.bf16.msra.mxu1 %v11967_v20 }
 0x179   : > { %4462 = vmatprep.mubr.bf16.mxu1 %v13074_v47  ;;  %v13640_v10 = vld [vmem:[#allocation2 + $0x810] sm:$0xff]  ;;  %v3667_v48 = vpop.f32.mrf.mxu0  ;;  %4636 = vmatprep.subr.bf16.mxu1 %v11960_v5  ;;  %v11952_v37 = vcombine.high %v13627_v9, %v13629_v27  ;;  %v11823_v28 = vcombine.low %v13615_v60, %v13617_v41  ;;  %v11951_v60 = vcombine.low %v13627_v9, %v13629_v27  ;;  %v13665_v9 = vld [vmem:[#allocation2 + $0x5d8] sm:$0xff] }
 0x17a   : > { %v13642_v53 = vld [vmem:[#allocation2 + $0x830] sm:$0xff]  ;;  %v13646_v24 = vpack.c.bf16 %v5216_v26, %v5208_v2  ;;  %v3779_v51 = vadd.f32 %v3778_v59, %v3666_v3  ;;  %v3668_v30 = vadd.f32 %v3667_v48, %v13473_v35  ;;  %v3780_v49 = vpop.f32.mrf.mxu1  ;;  %v13667_v27 = vld [vmem:[#allocation2 + $0x5f8] sm:$0xff]  ;;  %v13077_v3 = vld [vmem:[%s13299_s16 + $0xe4] ss:$28 sps:$4 sm:$0xff]  }
 0x17b   : > { %4524 = vmatpush1.bf16.msra.mxu0 %v11831_v42  ;;  %v751_v56 = vld [vmem:[#allocation2 + $0xc10] sm:$0xff]  ;;  %v3669_v34 = vpop.f32.mrf.mxu0  ;;  %v11816_v20 = vcombine.high %v13640_v10, %v13642_v53  ;;  %v13075_v42 = vld [vmem:[%s13299_s16 + $0xa8] ss:$28 sps:$4 sm:$0xff]   ;;  %v11815_v63 = vcombine.low %v13640_v10, %v13642_v53 }
 0x17c   : > { %18687 = vst [vmem:[#allocation8_spill] sm:$0xff] %v13646_v24  ;;  %v755_v18 = vld [vmem:[#allocation2 + $0xc30] sm:$0xff]  ;;  %4525 = vmatprep.subr.bf16.mxu0 %v11824_v57  ;;  %v3781_v5 = vadd.f32 %v3780_v49, %v3668_v30  ;;  %v3670_v1 = vadd.f32 %v3669_v34, %v13477_v52  ;;  %v3782_v12 = vpop.f32.mrf.mxu1  ;;  %4637 = vmatpush1.bf16.msra.mxu1 %v11959_v15  ;;  %v5223_v52 = vmax.f32 %v3777_v25, 0.0  ;;  %v5224_v15 = vmax.f32 %v3779_v51, 0.0 }
 0x17d   : > { %v13654_v0 = vld [vmem:[#allocation2 + $0xbd0] sm:$0xff]  ;;  %v3673_v41 = vpop.f32.mrf.mxu0  ;;  %4638 = vmatprep.subr.bf16.mxu1 %v11952_v37  ;;  %v11944_v43 = vcombine.high %v751_v56, %v755_v18  ;;  %v11943_v59 = vcombine.low %v751_v56, %v755_v18  ;;  %v13078_v37 = vld [vmem:[%s13299_s16 + $0xec] ss:$28 sps:$4 sm:$0xff]  }
 0x17e   : > { %v13656_v35 = vld [vmem:[#allocation2 + $0xbf0] sm:$0xff]  ;;  %4350 = vmatmul.mubr.bf16.gmra.mxu0 %v13075_v42  ;;  %v5231_v38 = vmax.f32 %v3781_v5, 0.0  ;;  %v3783_v2 = vadd.f32 %v3782_v12, %v3670_v1  ;;  %v3674_v58 = vadd.f32 %v3673_v41, %v13481_v45  ;;  %v3786_v16 = vpop.f32.mrf.mxu1 }
 0x17f   : > { %v13076_v57 = vld [vmem:[%s13299_s16 + $0xb0] ss:$28 sps:$4 sm:$0xff]   ;;  %4526 = vmatpush1.bf16.msra.mxu0 %v11823_v28  ;;  %v3675_v26 = vpop.f32.mrf.mxu0  ;;  %4359 = vmatprep.mubr.bf16.mxu0 %v13077_v3  ;;  %v11936_v25 = vcombine.high %v13654_v0, %v13656_v35  ;;  %v11746_v28 = vcombine.high %v13665_v9, %v13667_v27 }
 0x180   : > { %4463 = vmatmul.mubr.bf16.gmra.mxu1 %v13076_v57  ;;  %4527 = vmatprep.subr.bf16.mxu0 %v11816_v20  ;;  %v13672_v47 = vpack.c.bf16 %v5231_v38, %v5223_v52  ;;  %v5232_v45 = vmax.f32 %v3783_v2, 0.0  ;;  %v3787_v10 = vadd.f32 %v3786_v16, %v3674_v58  ;;  %v3676_v53 = vadd.f32 %v3675_v26, %v13486_v8  ;;  %v3788_v48 = vpop.f32.mrf.mxu1  ;;  %v735_v30 = vld [vmem:[#allocation2 + $0xb90] sm:$0xff]  ;;  %v13079_v38 = vld [vmem:[%s13299_s16 + $0xe0] ss:$28 sps:$4 sm:$0xff]   ;;  %v13080_v16 = vld [vmem:[%s13299_s16 + $0xe8] ss:$28 sps:$4 sm:$0xff]  }
 0x181   : > { %4472 = vmatprep.mubr.bf16.mxu1 %v13078_v37  ;;  %v739_v49 = vld [vmem:[#allocation2 + $0xbb0] sm:$0xff]  ;;  %4639 = vmatpush1.bf16.msra.mxu1 %v11951_v60  ;;  %v3677_v51 = vpop.f32.mrf.mxu0  ;;  %v11935_v8 = vcombine.low %v13654_v0, %v13656_v35 }
 0x182   : > { %18688 = vst [vmem:[#allocation9_spill] sm:$0xff] %v13672_v47  ;;  %4640 = vmatprep.subr.bf16.mxu1 %v11944_v43  ;;  %v13678_v34 = vpack.c.bf16 %v5232_v45, %v5224_v15  ;;  %v3789_v56 = vadd.f32 %v3788_v48, %v3676_v53  ;;  %v3678_v18 = vadd.f32 %v3677_v51, %v13489_v21  ;;  %v3790_v20 = vpop.f32.mrf.mxu1  ;;  %v727_v42 = vld [vmem:[#allocation2 + $0xb50] sm:$0xff]  ;;  %v13081_v15 = vld [vmem:[%s13299_s16 + $0x11c] ss:$28 sps:$4 sm:$0xff]   ;;  %v13082_v53 = vld [vmem:[%s13299_s16 + $0x124] ss:$28 sps:$4 sm:$0xff]  }
 0x183   : > { %4528 = vmatpush1.bf16.msra.mxu0 %v11815_v63  ;;  %v3679_v5 = vpop.f32.mrf.mxu0  ;;  %v11928_v1 = vcombine.high %v735_v30, %v739_v49  ;;  %v731_v43 = vld [vmem:[#allocation2 + $0xb70] sm:$0xff]  ;;  %v11927_v21 = vcombine.low %v735_v30, %v739_v49  ;;  %v5239_v63 = vmax.f32 %v3787_v10, 0.0 }
 0x184   : > { %18689 = vst [vmem:[#allocation10_spill] sm:$0xff] %v13678_v34  ;;  %4529 = vmatprep.subr.bf16.mxu0 %v11936_v25  ;;  %v3791_v12 = vadd.f32 %v3790_v20, %v3678_v18  ;;  %v3680_v60 = vadd.f32 %v3679_v5, %v13493_v32  ;;  %v3792_v41 = vpop.f32.mrf.mxu1  ;;  %v5240_v32 = vmax.f32 %v3789_v56, 0.0  ;;  %v11920_v26 = vcombine.high %v727_v42, %v731_v43  ;;  %v723_v48 = vld [vmem:[#allocation2 + $0xb30] sm:$0xff]  ;;  %v13122_v34 = vld [vmem:[%s13299_s16 + $0x3c] ss:$28 sps:$4 sm:$0xff]  }
 0x185   : > { %4641 = vmatpush1.bf16.msra.mxu1 %v11943_v59  ;;  %v3683_v52 = vpop.f32.mrf.mxu0  ;;  %v11919_v56 = vcombine.low %v727_v42, %v731_v43 }
 0x186   : > { %4360 = vmatmul.mubr.bf16.gmra.mxu0 %v13079_v38  ;;  %4852 = vmatprep.subr.bf16.mxu1 %v11746_v28  ;;  %v5247_v2 = vmax.f32 %v3791_v12, 0.0  ;;  %v3793_v0 = vadd.f32 %v3792_v41, %v3680_v60  ;;  %v3684_v35 = vadd.f32 %v3683_v52, %v13497_v44  ;;  %v3796_v58 = vpop.f32.mrf.mxu1  ;;  %v719_v44 = vld [vmem:[#allocation2 + $0xb10] sm:$0xff] }
 0x187   : > { %4530 = vmatpush2.bf16.msra.mxu0 %v11935_v8  ;;  %v3685_v57 = vpop.f32.mrf.mxu0  ;;  %4369 = vmatprep.mubr.bf16.mxu0 %v13081_v15  ;;  %v11912_v20 = vcombine.high %v719_v44, %v723_v48  ;;  %v715_v12 = vld [vmem:[#allocation2 + $0xaf0] sm:$0xff]  ;;  %v11911_v52 = vcombine.low %v719_v44, %v723_v48 }
 0x188   : > { %4473 = vmatmul.mubr.bf16.gmra.mxu1 %v13080_v16  ;;  %4531 = vmatprep.subr.bf16.mxu0 %v11928_v1  ;;  %v13688_v3 = vpack.c.bf16 %v5247_v2, %v5239_v63  ;;  %v5248_v25 = vmax.f32 %v3793_v0, 0.0  ;;  %v3797_v59 = vadd.f32 %v3796_v58, %v3684_v35  ;;  %v3686_v45 = vadd.f32 %v3685_v57, %v13502_v61  ;;  %v3798_v10 = vpop.f32.mrf.mxu1  ;;  %v711_v1 = vld [vmem:[#allocation2 + $0xad0] sm:$0xff] }
 0x189   : > { %4482 = vmatprep.mubr.bf16.mxu1 %v13082_v53  ;;  %v3687_v37 = vpop.f32.mrf.mxu0  ;;  %v13083_v41 = vld [vmem:[%s13299_s16 + $0x118] ss:$28 sps:$4 sm:$0xff]   ;;  %v11904_v35 = vcombine.high %v711_v1, %v715_v12  ;;  %v11903_v48 = vcombine.low %v711_v1, %v715_v12 }
 0x18a   : > { %18690 = vst [vmem:[#allocation11_spill] sm:$0xff] %v13688_v3  ;;  %v13692_v30 = vpack.c.bf16 %v5248_v25, %v5240_v32  ;;  %v3799_v49 = vadd.f32 %v3798_v10, %v3686_v45  ;;  %v3688_v51 = vadd.f32 %v3687_v37, %v13505_v4  ;;  %v3800_v28 = vpop.f32.mrf.mxu1  ;;  %v5255_v38 = vmax.f32 %v3797_v59, 0.0  ;;  %v13085_v0 = vld [vmem:[%s13299_s16 + $0x154] ss:$28 sps:$4 sm:$0xff]   ;;  %v672_v3 = vld [vmem:[#allocation2 + $0x998] sm:$0xff] }
 0x18b   : > { %4532 = vmatpush2.bf16.msra.mxu0 %v11927_v21  ;;  %v3689_v18 = vpop.f32.mrf.mxu0  ;;  %v13084_v21 = vld [vmem:[%s13299_s16 + $0x120] ss:$28 sps:$4 sm:$0xff]   ;;  %v707_v25 = vld [vmem:[#allocation2 + $0xab0] sm:$0xff] }
 0x18c   : > { %18691 = vst [vmem:[#allocation12_spill] sm:$0xff] %v13692_v30  ;;  %4533 = vmatprep.subr.bf16.mxu0 %v11920_v26  ;;  %v3801_v61 = vadd.f32 %v3800_v28, %v3688_v51  ;;  %v3690_v8 = vadd.f32 %v3689_v18, %v13509_v23  ;;  %v3802_v5 = vpop.f32.mrf.mxu1  ;;  %v5256_v2 = vmax.f32 %v3799_v49, 0.0  ;;  %v13086_v26 = vld [vmem:[%s13299_s16 + $0x15c] ss:$28 sps:$4 sm:$0xff]   ;;  %v699_v18 = vld [vmem:[#allocation2 + $0xa70] sm:$0xff] }
 0x18d   : > { %v3693_v60 = vpop.f32.mrf.mxu0  ;;  %v676_v30 = vld [vmem:[#allocation2 + $0x9b8] sm:$0xff] }
 0x18e   : > { %4370 = vmatmul.mubr.bf16.gmra.mxu0 %v13083_v41  ;;  %v5263_v4 = vmax.f32 %v3801_v61, 0.0  ;;  %v3803_v63 = vadd.f32 %v3802_v5, %v3690_v8  ;;  %v3694_v42 = vadd.f32 %v3693_v60, %v13513_v33  ;;  %v3806_v43 = vpop.f32.mrf.mxu1  ;;  %v703_v33 = vld [vmem:[#allocation2 + $0xa90] sm:$0xff] }
 0x18f   : > { %4534 = vmatpush2.bf16.msra.mxu0 %v11919_v56  ;;  %v3695_v23 = vpop.f32.mrf.mxu0  ;;  %4379 = vmatprep.mubr.bf16.mxu0 %v13085_v0  ;;  %v11896_v49 = vcombine.high %v703_v33, %v707_v25  ;;  %v695_v56 = vld [vmem:[#allocation2 + $0xa50] sm:$0xff]  ;;  %v11895_v8 = vcombine.low %v703_v33, %v707_v25 }
 0x190   : > { %4483 = vmatmul.mubr.bf16.gmra.mxu1 %v13084_v21  ;;  %4535 = vmatprep.subr.bf16.mxu0 %v11912_v20  ;;  %v13700_v58 = vpack.c.bf16 %v5263_v4, %v5255_v38  ;;  %v5264_v16 = vmax.f32 %v3803_v63, 0.0  ;;  %v3807_v32 = vadd.f32 %v3806_v43, %v3694_v42  ;;  %v3696_v57 = vadd.f32 %v3695_v23, %v13518_v54  ;;  %v3808_v15 = vpop.f32.mrf.mxu1  ;;  %v13087_v61 = vld [vmem:[%s13299_s16 + $0x150] ss:$28 sps:$4 sm:$0xff]   ;;  %v13088_v41 = vld [vmem:[%s13299_s16 + $0x158] ss:$28 sps:$4 sm:$0xff]  }
 0x191   : > { %4492 = vmatprep.mubr.bf16.mxu1 %v13086_v26  ;;  %v3697_v59 = vpop.f32.mrf.mxu0  ;;  %v13089_v38 = vld [vmem:[%s13299_s16 + $0x18c] ss:$28 sps:$4 sm:$0xff]   ;;  %v11888_v4 = vcombine.high %v695_v56, %v699_v18  ;;  %v13090_v23 = vld [vmem:[%s13299_s16 + $0x194] ss:$28 sps:$4 sm:$0xff]   ;;  %v11887_v26 = vcombine.low %v695_v56, %v699_v18 }
 0x192   : > { %18692 = vst [vmem:[#allocation13_spill] sm:$0xff] %v13700_v58  ;;  %v13704_v45 = vpack.c.bf16 %v5264_v16, %v5256_v2  ;;  %v3809_v10 = vadd.f32 %v3808_v15, %v3696_v57  ;;  %v3698_v53 = vadd.f32 %v3697_v59, %v13521_v62  ;;  %v3810_v44 = vpop.f32.mrf.mxu1  ;;  %v5271_v5 = vmax.f32 %v3807_v32, 0.0  ;;  %v691_v0 = vld [vmem:[#allocation2 + $0xa30] sm:$0xff] }
 0x193   : > { %4536 = vmatpush2.bf16.msra.mxu0 %v11911_v52  ;;  %v3699_v37 = vpop.f32.mrf.mxu0 }
 0x194   : > { %18693 = vst [vmem:[#allocation14_spill] sm:$0xff] %v13704_v45  ;;  %4537 = vmatprep.subr.bf16.mxu0 %v11904_v35  ;;  %v3811_v54 = vadd.f32 %v3810_v44, %v3698_v53  ;;  %v3700_v51 = vadd.f32 %v3699_v37, %v13525_v13  ;;  %v3812_v28 = vpop.f32.mrf.mxu1  ;;  %v5272_v52 = vmax.f32 %v3809_v10, 0.0  ;;  %v13720_v53 = vld [vmem:[#allocation2 + $0x1d8] sm:$0xff]  ;;  %v13091_v37 = vld [vmem:[%s13299_s16 + $0x188] ss:$28 sps:$4 sm:$0xff]  }
 0x195   : > { %v3703_v20 = vpop.f32.mrf.mxu0  ;;  %v13722_v44 = vld [vmem:[#allocation2 + $0x1f8] sm:$0xff] }
 0x196   : > { %4380 = vmatmul.mubr.bf16.gmra.mxu0 %v13087_v61  ;;  %v5279_v62 = vmax.f32 %v3811_v54, 0.0  ;;  %v3813_v60 = vadd.f32 %v3812_v28, %v3700_v51  ;;  %v3704_v1 = vadd.f32 %v3703_v20, %v13529_v29  ;;  %v3816_v12 = vpop.f32.mrf.mxu1  ;;  %v687_v29 = vld [vmem:[#allocation2 + $0xa10] sm:$0xff] }
 0x197   : > { %4538 = vmatpush2.bf16.msra.mxu0 %v11903_v48  ;;  %v3705_v13 = vpop.f32.mrf.mxu0  ;;  %4389 = vmatprep.mubr.bf16.mxu0 %v13089_v38  ;;  %v11880_v25 = vcombine.high %v687_v29, %v691_v0  ;;  %v13092_v20 = vld [vmem:[%s13299_s16 + $0x190] ss:$28 sps:$4 sm:$0xff]   ;;  %v13116_v45 = vld [vmem:[%s13299_s16 + $0x198] ss:$28 sps:$4 sm:$0xff]  }
 0x198   : > { %4493 = vmatmul.mubr.bf16.gmra.mxu1 %v13088_v41  ;;  %4539 = vmatprep.subr.bf16.mxu0 %v11896_v49  ;;  %v13712_v63 = vpack.c.bf16 %v5279_v62, %v5271_v5  ;;  %v5280_v42 = vmax.f32 %v3813_v60, 0.0  ;;  %v3817_v43 = vadd.f32 %v3816_v12, %v3704_v1  ;;  %v3706_v21 = vadd.f32 %v3705_v13, %v13534_v55  ;;  %v3818_v2 = vpop.f32.mrf.mxu1  ;;  %v420_v13 = vld [vmem:[#allocation2 + $0x1b8] sm:$0xff] }
 0x199   : > { %4502 = vmatprep.mubr.bf16.mxu1 %v13090_v23  ;;  %v3707_v35 = vpop.f32.mrf.mxu0  ;;  %v18551_v49 = vsub.s32 2, %v13409_v19  ;;  %v11618_v5 = vcombine.high %v13720_v53, %v13722_v44  ;;  %v18550_v62 = vsub.s32 3, %v13409_v19 }
 0x19a   : > { %18694 = vst [vmem:[#allocation15_spill] sm:$0xff] %v13712_v63  ;;  %v13716_v16 = vpack.c.bf16 %v5280_v42, %v5272_v52  ;;  %v3819_v32 = vadd.f32 %v3818_v2, %v3706_v21  ;;  %v3708_v57 = vadd.f32 %v3707_v35, %v13537_v46  ;;  %v3820_v15 = vpop.f32.mrf.mxu1  ;;  %v11879_v46 = vcombine.low %v687_v29, %v691_v0  ;;  %v13736_v52 = vld [vmem:[#allocation2 + $0x198] sm:$0xff] }
 0x19b   : > { %4540 = vmatpush2.bf16.msra.mxu0 %v11895_v8  ;;  %v3709_v33 = vpop.f32.mrf.mxu0  ;;  %v5287_v54 = vmax.f32 %v3817_v43, 0.0  ;;  %v13093_v8 = vld [vmem:[%s13299_s16 + $0x14] ss:$28 sps:$4 sm:$0xff]   ;;  %v544_v43 = vld [vmem:[#allocation2 + $0x598] sm:$0xff]  ;;  %v11617_v0 = vcombine.low %v13720_v53, %v13722_v44  ;;  %v11609_v44 = vcombine.low %v13736_v52, %v420_v13 }
 0x19c   : > { %18695 = vst [vmem:[#allocation16_spill] sm:$0xff] %v13716_v16  ;;  %4541 = vmatprep.subr.bf16.mxu0 %v11888_v4  ;;  %v3821_v55 = vadd.f32 %v3820_v15, %v3708_v57  ;;  %v3710_v59 = vadd.f32 %v3709_v33, %v13541_v6  ;;  %v3822_v10 = vpop.f32.mrf.mxu1  ;;  %v5288_v6 = vmax.f32 %v3819_v32, 0.0  ;;  %v13094_v4 = vld [vmem:[%s18544_s2] sm:$0xff]  ;;  %v548_v21 = vld [vmem:[#allocation2 + $0x5b8] sm:$0xff]  ;;  %v11745_v32 = vcombine.low %v13665_v9, %v13667_v27  ;;  %v13095_v27 = vld [vmem:[%s13299_s16 + $0x10] ss:$28 sps:$4 sm:$0xff]  }
 0x19d   : > { %v3713_v48 = vpop.f32.mrf.mxu0  ;;  %v13743_v42 = vrot.slane %v13094_v4, %v18551_v49  ;;  %v11610_v57 = vcombine.high %v13736_v52, %v420_v13  ;;  %v13753_v15 = vld [vmem:[#allocation2 + $0x158] sm:$0xff] }
 0x19e   : > { %4390 = vmatmul.mubr.bf16.gmra.mxu0 %v13091_v37  ;;  %v5295_v51 = vmax.f32 %v3821_v55, 0.0  ;;  %v3823_v28 = vadd.f32 %v3822_v10, %v3710_v59  ;;  %v3714_v56 = vadd.f32 %v3713_v48, %v13545_v31  ;;  %v3826_v18 = vpop.f32.mrf.mxu1  ;;  %v11738_v55 = vcombine.high %v544_v43, %v548_v21  ;;  %v13760_v59 = vld [vmem:[#allocation2 + $0x178] sm:$0xff] }
 0x19f   : > { %4542 = vmatpush2.bf16.msra.mxu0 %v11887_v26  ;;  %v3715_v61 = vpop.f32.mrf.mxu0  ;;  %4545 = vmatprep.mubr.bf16.mxu0 %v13093_v8  ;;  %v13762_v10 = vld [vmem:[#allocation2 + $0x558] sm:$0xff] }
 0x1a0   : > { %4503 = vmatmul.mubr.bf16.gmra.mxu1 %v13092_v20  ;;  %4543 = vmatprep.subr.bf16.mxu0 %v11880_v25  ;;  %v13732_v60 = vpack.c.bf16 %v5295_v51, %v5287_v54  ;;  %v5296_v1 = vmax.f32 %v3823_v28, 0.0  ;;  %v3827_v12 = vadd.f32 %v3826_v18, %v3714_v56  ;;  %v3716_v31 = vadd.f32 %v3715_v61, %v13550_v39  ;;  %v3828_v41 = vpop.f32.mrf.mxu1  ;;  %v13764_v53 = vld [vmem:[#allocation2 + $0x578] sm:$0xff] }
 0x1a1   : > { %4658 = vmatprep.mubr.bf16.mxu1 %v18554_v11  ;;  %v3717_v38 = vpop.f32.mrf.mxu0  ;;  %v13758_v25 = vrot.slane %v13094_v4, %v18550_v62  ;;  %v13096_v51 = vld [vmem:[%s13299_s16 + $0x18] ss:$28 sps:$4 sm:$0xff]   ;;  %v11737_v18 = vcombine.low %v544_v43, %v548_v21  ;;  %v11602_v20 = vcombine.high %v13753_v15, %v13760_v59 }
 0x1a2   : > { %18696 = vst [vmem:[#allocation17_spill] sm:$0xff] %v13732_v60  ;;  %v13745_v2 = vpack.c.bf16 %v5296_v1, %v5288_v6  ;;  %v3829_v39 = vadd.f32 %v3828_v41, %v3716_v31  ;;  %v3718_v23 = vadd.f32 %v3717_v38, %v13553_v17  ;;  %v3830_v29 = vpop.f32.mrf.mxu1  ;;  %v5303_v48 = vmax.f32 %v3827_v12, 0.0  ;;  %v13097_v31 = vld [vmem:[%s13299_s16 + $0x4c] ss:$28 sps:$4 sm:$0xff]   ;;  %v400_v41 = vld [vmem:[#allocation2 + $0x118] sm:$0xff] }
 0x1a3   : > { %4544 = vmatpush2.bf16.msra.mxu0 %v11879_v46  ;;  %v3719_v35 = vpop.f32.mrf.mxu0  ;;  %v11730_v6 = vcombine.high %v13762_v10, %v13764_v53  ;;  %v404_v52 = vld [vmem:[#allocation2 + $0x138] sm:$0xff] }
 0x1a4   : > { %18697 = vst [vmem:[#allocation18_spill] sm:$0xff] %v13745_v2  ;;  %4739 = vmatprep.subr.bf16.mxu0 %v11618_v5  ;;  %v3831_v26 = vadd.f32 %v3830_v29, %v3718_v23  ;;  %v3720_v33 = vadd.f32 %v3719_v35, %v13561_v22  ;;  %v3832_v17 = vpop.f32.mrf.mxu1  ;;  %v5304_v28 = vmax.f32 %v3829_v39, 0.0  ;;  %v528_v38 = vld [vmem:[#allocation2 + $0x518] sm:$0xff]  ;;  %v11601_v29 = vcombine.low %v13753_v15, %v13760_v59 }
 0x1a5   : > { %v3869_v9 = vpop.f32.mrf.mxu0  ;;  %v532_v4 = vld [vmem:[#allocation2 + $0x538] sm:$0xff]  ;;  %v11729_v35 = vcombine.low %v13762_v10, %v13764_v53 }
 0x1a6   : > { %4546 = vmatmul.mubr.bf16.vlgmr.msra.gmra.mxu0 %v13095_v27  ;;  %v5311_v22 = vmax.f32 %v3831_v26, 0.0  ;;  %v3833_v37 = vadd.f32 %v3832_v17, %v3720_v33  ;;  %v3870_v46 = vadd.f32 %v3869_v9, %v13743_v42  ;;  %v3982_v54 = vpop.f32.mrf.mxu1  ;;  %v11722_v17 = vcombine.high %v528_v38, %v532_v4  ;;  %v396_v9 = vld [vmem:[#allocation2 + $0xf8] sm:$0xff] }
 0x1a7   : > { %4740 = vmatpush1.bf16.msra.mxu0 %v11617_v0  ;;  %v3871_v56 = vpop.f32.mrf.mxu0  ;;  %4555 = vmatprep.mubr.bf16.mxu0 %v13097_v31  ;;  %v520_v15 = vld [vmem:[#allocation2 + $0x4d8] sm:$0xff] }
 0x1a8   : > { %4659 = vmatmul.mubr.bf16.vlgmr.msra.gmra.mxu1 %v13096_v51  ;;  %4741 = vmatprep.subr.bf16.mxu0 %v11610_v57  ;;  %v13774_v61 = vpack.c.bf16 %v5311_v22, %v5303_v48  ;;  %v5312_v8 = vmax.f32 %v3833_v37, 0.0  ;;  %v13776_v5 = vadd.f32 %v3982_v54, %v3870_v46  ;;  %v3872_v1 = vadd.f32 %v3871_v56, %v13758_v25  ;;  %v3984_v12 = vpop.f32.mrf.mxu1  ;;  %v524_v59 = vld [vmem:[#allocation2 + $0x4f8] sm:$0xff]  ;;  %v13099_v22 = vld [vmem:[%s13299_s16 + $0x50] ss:$28 sps:$4 sm:$0xff]  }
 0x1a9   : > { %4853 = vmatpush1.bf16.msra.mxu1 %v11745_v32  ;;  %v3873_v13 = vpop.f32.mrf.mxu0  ;;  %4668 = vmatprep.mubr.bf16.mxu1 %v18554_v11  ;;  %v11594_v32 = vcombine.high %v400_v41, %v404_v52  ;;  %v11593_v37 = vcombine.low %v400_v41, %v404_v52  ;;  %v11721_v54 = vcombine.low %v528_v38, %v532_v4  ;;  %v512_v31 = vld [vmem:[#allocation2 + $0x498] sm:$0xff] }
 0x1aa   : > { %18698 = vst [vmem:[#allocation19_spill] sm:$0xff] %v13774_v61  ;;  %4854 = vmatprep.subr.bf16.mxu1 %v11738_v55  ;;  %v13781_v43 = vpack.c.bf16 %v5312_v8, %v5304_v28  ;;  %v13783_v21 = vadd.f32 %v3984_v12, %v3872_v1  ;;  %v3874_v39 = vadd.f32 %v3873_v13, %v13743_v42  ;;  %v3986_v23 = vpop.f32.mrf.mxu1  ;;  %v392_v55 = vld [vmem:[#allocation2 + $0xd8] sm:$0xff] }
 0x1ab   : > { %4742 = vmatpush1.bf16.msra.mxu0 %v11609_v44  ;;  %v3875_v0 = vpop.f32.mrf.mxu0  ;;  %v13098_v44 = vld [vmem:[%s13299_s16 + $0x48] ss:$28 sps:$4 sm:$0xff]   ;;  %v11586_v51 = vcombine.high %v392_v55, %v396_v9  ;;  %v384_v8 = vld [vmem:[#allocation2 + $0x98] sm:$0xff]  ;;  %v11585_v4 = vcombine.low %v392_v55, %v396_v9 }
 0x1ac   : > { %18699 = vst [vmem:[#allocation20_spill] sm:$0xff] %v13781_v43  ;;  %4743 = vmatprep.subr.bf16.mxu0 %v11602_v20  ;;  %v13790_v57 = vadd.f32 %v3986_v23, %v3874_v39  ;;  %v3876_v26 = vadd.f32 %v3875_v0, %v13758_v25  ;;  %v3988_v33 = vpop.f32.mrf.mxu1  ;;  %v13100_v20 = vld [vmem:[%s13299_s16 + $0x84] ss:$28 sps:$4 sm:$0xff]   ;;  %v388_v1 = vld [vmem:[#allocation2 + $0xb8] sm:$0xff]  ;;  %v11713_v23 = vcombine.low %v520_v15, %v524_v59 }
 0x1ad   : > { %4855 = vmatpush1.bf16.msra.mxu1 %v11737_v18  ;;  %v3879_v27 = vpop.f32.mrf.mxu0  ;;  %v516_v41 = vld [vmem:[#allocation2 + $0x4b8] sm:$0xff] }
 0x1ae   : > { %4856 = vmatprep.subr.bf16.mxu1 %v11730_v6  ;;  %4556 = vmatmul.mubr.bf16.gmra.mxu0 %v13098_v44  ;;  %v13794_v48 = vadd.f32 %v3988_v33, %v3876_v26  ;;  %v3880_v10 = vadd.f32 %v3879_v27, %v13743_v42  ;;  %v3992_v53 = vpop.f32.mrf.mxu1  ;;  %v11714_v6 = vcombine.high %v520_v15, %v524_v59  ;;  %v376_v33 = vld [vmem:[#allocation2 + $0x58] sm:$0xff] }
 0x1af   : > { %4744 = vmatpush1.bf16.msra.mxu0 %v11601_v29  ;;  %v3881_v46 = vpop.f32.mrf.mxu0  ;;  %4565 = vmatprep.mubr.bf16.mxu0 %v13100_v20  ;;  %v11578_v29 = vcombine.high %v384_v8, %v388_v1  ;;  %v11706_v26 = vcombine.high %v512_v31, %v516_v41  ;;  %v13101_v44 = vld [vmem:[%s13299_s16 + $0x80] ss:$28 sps:$4 sm:$0xff]  }
 0x1b0   : > { %4669 = vmatmul.mubr.bf16.gmra.mxu1 %v13099_v22  ;;  %4745 = vmatprep.subr.bf16.mxu0 %v11594_v32  ;;  %v13798_v28 = vadd.f32 %v3992_v53, %v3880_v10  ;;  %v3882_v56 = vadd.f32 %v3881_v46, %v13758_v25  ;;  %v3994_v18 = vpop.f32.mrf.mxu1  ;;  %v504_v10 = vld [vmem:[#allocation2 + $0x458] sm:$0xff]  ;;  %v13102_v53 = vld [vmem:[%s13299_s16 + $0x88] ss:$28 sps:$4 sm:$0xff]   ;;  %v11577_v22 = vcombine.low %v384_v8, %v388_v1 }
 0x1b1   : > { %4857 = vmatpush1.bf16.msra.mxu1 %v11729_v35  ;;  %v3883_v12 = vpop.f32.mrf.mxu0  ;;  %4678 = vmatprep.mubr.bf16.mxu1 %v18554_v11  ;;  %v508_v55 = vld [vmem:[#allocation2 + $0x478] sm:$0xff]  ;;  %v11705_v46 = vcombine.low %v512_v31, %v516_v41 }
 0x1b2   : > { %4858 = vmatprep.subr.bf16.mxu1 %v11722_v17  ;;  %v13803_v52 = vadd.f32 %v3994_v18, %v3882_v56  ;;  %v3884_v13 = vadd.f32 %v3883_v12, %v13743_v42  ;;  %v3996_v38 = vpop.f32.mrf.mxu1  ;;  %v380_v17 = vld [vmem:[#allocation2 + $0x78] sm:$0xff] }
 0x1b3   : > { %4746 = vmatpush1.bf16.msra.mxu0 %v11593_v37  ;;  %v3885_v39 = vpop.f32.mrf.mxu0  ;;  %v13103_v20 = vld [vmem:[%s13299_s16 + $0xbc] ss:$28 sps:$4 sm:$0xff]  }
 0x1b4   : > { %4747 = vmatprep.subr.bf16.mxu0 %v11586_v51  ;;  %v13806_v0 = vadd.f32 %v3996_v38, %v3884_v13  ;;  %v3886_v35 = vadd.f32 %v3885_v39, %v13758_v25  ;;  %v3998_v32 = vpop.f32.mrf.mxu1  ;;  %v368_v12 = vld [vmem:[#allocation2 + $0x18] sm:$0xff]  ;;  %v11569_v39 = vcombine.low %v376_v33, %v380_v17 }
 0x1b5   : > { %4859 = vmatpush1.bf16.msra.mxu1 %v11721_v54  ;;  %v3889_v27 = vpop.f32.mrf.mxu0  ;;  %v11570_v54 = vcombine.high %v376_v33, %v380_v17  ;;  %v372_v13 = vld [vmem:[#allocation2 + $0x38] sm:$0xff] }
 0x1b6   : > { %4860 = vmatprep.subr.bf16.mxu1 %v11714_v6  ;;  %4566 = vmatmul.mubr.bf16.gmra.mxu0 %v13101_v44  ;;  %v13810_v9 = vadd.f32 %v3998_v32, %v3886_v35  ;;  %v3890_v15 = vadd.f32 %v3889_v27, %v13743_v42  ;;  %v4002_v59 = vpop.f32.mrf.mxu1  ;;  %v11698_v6 = vcombine.high %v504_v10, %v508_v55  ;;  %v496_v8 = vld [vmem:[#allocation2 + $0x418] sm:$0xff] }
 0x1b7   : > { %4748 = vmatpush1.bf16.msra.mxu0 %v11585_v4  ;;  %v3891_v37 = vpop.f32.mrf.mxu0  ;;  %4575 = vmatprep.mubr.bf16.mxu0 %v13103_v20  ;;  %v500_v1 = vld [vmem:[#allocation2 + $0x438] sm:$0xff]  ;;  %v11562_v35 = vcombine.high %v368_v12, %v372_v13 }
 0x1b8   : > { %4679 = vmatmul.mubr.bf16.gmra.mxu1 %v13102_v53  ;;  %4749 = vmatprep.subr.bf16.mxu0 %v11578_v29  ;;  %v13814_v51 = vadd.f32 %v4002_v59, %v3890_v15  ;;  %v3892_v56 = vadd.f32 %v3891_v37, %v13758_v25  ;;  %v4004_v18 = vpop.f32.mrf.mxu1  ;;  %v11697_v29 = vcombine.low %v504_v10, %v508_v55  ;;  %v488_v15 = vld [vmem:[#allocation2 + $0x3d8] sm:$0xff] }
 0x1b9   : > { %4861 = vmatpush1.bf16.msra.mxu1 %v11713_v23  ;;  %v3893_v38 = vpop.f32.mrf.mxu0  ;;  %4688 = vmatprep.mubr.bf16.mxu1 %v18554_v11  ;;  %v11690_v44 = vcombine.high %v496_v8, %v500_v1  ;;  %v492_v59 = vld [vmem:[#allocation2 + $0x3f8] sm:$0xff] }
 0x1ba   : > { %4862 = vmatprep.subr.bf16.mxu1 %v11706_v26  ;;  %v13819_v4 = vadd.f32 %v4004_v18, %v3892_v56  ;;  %v3894_v31 = vadd.f32 %v3893_v38, %v13743_v42  ;;  %v4006_v41 = vpop.f32.mrf.mxu1  ;;  %v13104_v37 = vld [vmem:[%s13299_s16 + $0xb8] ss:$28 sps:$4 sm:$0xff]   ;;  %v11689_v18 = vcombine.low %v496_v8, %v500_v1  ;;  %v11682_v20 = vcombine.high %v488_v15, %v492_v59  ;;  %v13113_v2 = vld [vmem:[%s13299_s16 + $0x160] ss:$28 sps:$4 sm:$0xff]  }
 0x1bb   : > { %4750 = vmatpush1.bf16.msra.mxu0 %v11577_v22  ;;  %v3895_v23 = vpop.f32.mrf.mxu0  ;;  %v616_v22 = vld [vmem:[#allocation2 + $0x7d8] sm:$0xff] }
 0x1bc   : > { %4751 = vmatprep.subr.bf16.mxu0 %v11570_v54  ;;  %v13822_v32 = vadd.f32 %v4006_v41, %v3894_v31  ;;  %v3896_v26 = vadd.f32 %v3895_v23, %v13758_v25  ;;  %v4008_v27 = vpop.f32.mrf.mxu1  ;;  %v620_v33 = vld [vmem:[#allocation2 + $0x7f8] sm:$0xff]  ;;  %v11561_v54 = vcombine.low %v368_v12, %v372_v13  ;;  %v13106_v41 = vld [vmem:[%s13299_s16 + $0xf4] ss:$28 sps:$4 sm:$0xff]  }
 0x1bd   : > { %4863 = vmatpush1.bf16.msra.mxu1 %v11705_v46  ;;  %v3899_v53 = vpop.f32.mrf.mxu0  ;;  %v13105_v46 = vld [vmem:[%s13299_s16 + $0xc0] ss:$28 sps:$4 sm:$0xff]   ;;  %v11810_v23 = vcombine.high %v616_v22, %v620_v33 }
 0x1be   : > { %4864 = vmatprep.subr.bf16.mxu1 %v11698_v6  ;;  %4576 = vmatmul.mubr.bf16.gmra.mxu0 %v13104_v37  ;;  %v13826_v17 = vadd.f32 %v4008_v27, %v3896_v26  ;;  %v3900_v10 = vadd.f32 %v3899_v53, %v13743_v42  ;;  %v4012_v55 = vpop.f32.mrf.mxu1  ;;  %v480_v26 = vld [vmem:[#allocation2 + $0x398] sm:$0xff] }
 0x1bf   : > { %4752 = vmatpush1.bf16.msra.mxu0 %v11569_v39  ;;  %v3901_v56 = vpop.f32.mrf.mxu0  ;;  %4585 = vmatprep.mubr.bf16.mxu0 %v13106_v41  ;;  %v484_v27 = vld [vmem:[#allocation2 + $0x3b8] sm:$0xff] }
 0x1c0   : > { %4689 = vmatmul.mubr.bf16.gmra.mxu1 %v13105_v46  ;;  %4753 = vmatprep.subr.bf16.mxu0 %v11562_v35  ;;  %v13830_v6 = vadd.f32 %v4012_v55, %v3900_v10  ;;  %v3902_v38 = vadd.f32 %v3901_v56, %v13758_v25  ;;  %v4014_v31 = vpop.f32.mrf.mxu1  ;;  %v608_v12 = vld [vmem:[#allocation2 + $0x798] sm:$0xff]  ;;  %v11674_v37 = vcombine.high %v480_v26, %v484_v27 }
 0x1c1   : > { %4865 = vmatpush1.bf16.msra.mxu1 %v11697_v29  ;;  %v3903_v53 = vpop.f32.mrf.mxu0  ;;  %4698 = vmatprep.mubr.bf16.mxu1 %v18554_v11  ;;  %v612_v13 = vld [vmem:[#allocation2 + $0x7b8] sm:$0xff]  ;;  %v11681_v29 = vcombine.low %v488_v15, %v492_v59 }
 0x1c2   : > { %4866 = vmatprep.subr.bf16.mxu1 %v11690_v44  ;;  %v13835_v39 = vadd.f32 %v4014_v31, %v3902_v38  ;;  %v3904_v8 = vadd.f32 %v3903_v53, %v13743_v42  ;;  %v4016_v1 = vpop.f32.mrf.mxu1  ;;  %v11809_v44 = vcombine.low %v616_v22, %v620_v33  ;;  %v11802_v56 = vcombine.high %v608_v12, %v612_v13  ;;  %v472_v38 = vld [vmem:[#allocation2 + $0x358] sm:$0xff]  ;;  %v13107_v53 = vld [vmem:[%s13299_s16 + $0xf0] ss:$28 sps:$4 sm:$0xff]  }
 0x1c3   : > { %4754 = vmatpush1.bf16.msra.mxu0 %v11561_v54  ;;  %v3905_v35 = vpop.f32.mrf.mxu0  ;;  %v476_v31 = vld [vmem:[#allocation2 + $0x378] sm:$0xff] }
 0x1c4   : > { %4755 = vmatprep.subr.bf16.mxu0 %v11682_v20  ;;  %v13838_v10 = vadd.f32 %v4016_v1, %v3904_v8  ;;  %v3906_v55 = vadd.f32 %v3905_v35, %v13758_v25  ;;  %v4018_v46 = vpop.f32.mrf.mxu1  ;;  %v600_v54 = vld [vmem:[#allocation2 + $0x758] sm:$0xff]  ;;  %v11673_v20 = vcombine.low %v480_v26, %v484_v27  ;;  %v11801_v8 = vcombine.low %v608_v12, %v612_v13 }
 0x1c5   : > { %4867 = vmatpush1.bf16.msra.mxu1 %v11689_v18  ;;  %v3909_v41 = vpop.f32.mrf.mxu0  ;;  %v604_v15 = vld [vmem:[#allocation2 + $0x778] sm:$0xff]  ;;  %v11666_v1 = vcombine.high %v472_v38, %v476_v31 }
 0x1c6   : > { %4868 = vmatprep.subr.bf16.mxu1 %v11810_v23  ;;  %4586 = vmatmul.mubr.bf16.gmra.mxu0 %v13107_v53  ;;  %v13842_v59 = vadd.f32 %v4018_v46, %v3906_v55  ;;  %v3910_v22 = vadd.f32 %v3909_v41, %v13743_v42  ;;  %v4022_v33 = vpop.f32.mrf.mxu1  ;;  %v13108_v18 = vld [vmem:[%s13299_s16 + $0xf8] ss:$28 sps:$4 sm:$0xff]   ;;  %v13109_v55 = vld [vmem:[%s13299_s16 + $0x12c] ss:$28 sps:$4 sm:$0xff]   ;;  %v11794_v46 = vcombine.high %v600_v54, %v604_v15 }
 0x1c7   : > { %4756 = vmatpush2.bf16.msra.mxu0 %v11681_v29  ;;  %v3911_v23 = vpop.f32.mrf.mxu0  ;;  %4595 = vmatprep.mubr.bf16.mxu0 %v13109_v55  ;;  %v464_v41 = vld [vmem:[#allocation2 + $0x318] sm:$0xff] }
 0x1c8   : > { %4699 = vmatmul.mubr.bf16.gmra.mxu1 %v13108_v18  ;;  %4757 = vmatprep.subr.bf16.mxu0 %v11674_v37  ;;  %v13846_v35 = vadd.f32 %v4022_v33, %v3910_v22  ;;  %v3912_v53 = vadd.f32 %v3911_v23, %v13758_v25  ;;  %v4024_v62 = vpop.f32.mrf.mxu1  ;;  %v468_v49 = vld [vmem:[#allocation2 + $0x338] sm:$0xff] }
 0x1c9   : > { %4869 = vmatpush2.bf16.msra.mxu1 %v11809_v44  ;;  %v3913_v40 = vpop.f32.mrf.mxu0  ;;  %4708 = vmatprep.mubr.bf16.mxu1 %v18554_v11  ;;  %v592_v26 = vld [vmem:[#allocation2 + $0x718] sm:$0xff]  ;;  %v11665_v44 = vcombine.low %v472_v38, %v476_v31  ;;  %v11658_v22 = vcombine.high %v464_v41, %v468_v49 }
 0x1ca   : > { %4870 = vmatprep.subr.bf16.mxu1 %v11802_v56  ;;  %v596_v27 = vld [vmem:[#allocation2 + $0x738] sm:$0xff]  ;;  %v13851_v29 = vadd.f32 %v4024_v62, %v3912_v53  ;;  %v3914_v12 = vadd.f32 %v3913_v40, %v13743_v42  ;;  %v4026_v13 = vpop.f32.mrf.mxu1  ;;  %v11793_v56 = vcombine.low %v600_v54, %v604_v15 }
 0x1cb   : > { %4758 = vmatpush2.bf16.msra.mxu0 %v11673_v20  ;;  %v3915_v37 = vpop.f32.mrf.mxu0  ;;  %v11786_v62 = vcombine.high %v592_v26, %v596_v27  ;;  %v456_v53 = vld [vmem:[#allocation2 + $0x2d8] sm:$0xff] }
 0x1cc   : > { %4759 = vmatprep.subr.bf16.mxu0 %v11666_v1  ;;  %v13854_v33 = vadd.f32 %v4026_v13, %v3914_v12  ;;  %v3916_v18 = vadd.f32 %v3915_v37, %v13758_v25  ;;  %v4028_v23 = vpop.f32.mrf.mxu1  ;;  %v460_v55 = vld [vmem:[#allocation2 + $0x2f8] sm:$0xff]  ;;  %v11657_v1 = vcombine.low %v464_v41, %v468_v49  ;;  %v11785_v12 = vcombine.low %v592_v26, %v596_v27 }
 0x1cd   : > { %4871 = vmatpush2.bf16.msra.mxu1 %v11801_v8  ;;  %v3919_v40 = vpop.f32.mrf.mxu0  ;;  %v584_v20 = vld [vmem:[#allocation2 + $0x6d8] sm:$0xff]  ;;  %v13111_v8 = vld [vmem:[%s13299_s16 + $0x130] ss:$28 sps:$4 sm:$0xff]   ;;  %v11650_v13 = vcombine.high %v456_v53, %v460_v55 }
 0x1ce   : > { %4872 = vmatprep.subr.bf16.mxu1 %v11794_v46  ;;  %4596 = vmatmul.mubr.bf16.gmra.mxu0 %v13110_v36  ;;  %v588_v38 = vld [vmem:[#allocation2 + $0x6f8] sm:$0xff]  ;;  %v13858_v31 = vadd.f32 %v4028_v23, %v3916_v18  ;;  %v3920_v54 = vadd.f32 %v3919_v40, %v13743_v42  ;;  %v4032_v15 = vpop.f32.mrf.mxu1  ;;  %v13112_v18 = vld [vmem:[%s13299_s16 + $0x164] ss:$28 sps:$4 sm:$0xff]  }
 0x1cf   : > { %4760 = vmatpush2.bf16.msra.mxu0 %v11665_v44  ;;  %v3921_v46 = vpop.f32.mrf.mxu0  ;;  %4605 = vmatprep.mubr.bf16.mxu0 %v13112_v18  ;;  %v11778_v23 = vcombine.high %v584_v20, %v588_v38  ;;  %v448_v40 = vld [vmem:[#allocation2 + $0x298] sm:$0xff] }
 0x1d0   : > { %4709 = vmatmul.mubr.bf16.gmra.mxu1 %v13111_v8  ;;  %4761 = vmatprep.subr.bf16.mxu0 %v11658_v22  ;;  %v13862_v37 = vadd.f32 %v4032_v15, %v3920_v54  ;;  %v3922_v36 = vadd.f32 %v3921_v46, %v13758_v25  ;;  %v4034_v11 = vpop.f32.mrf.mxu1  ;;  %v452_v61 = vld [vmem:[#allocation2 + $0x2b8] sm:$0xff]  ;;  %v18700_v8 = vmov 0  }
 0x1d1   : > { %4873 = vmatpush2.bf16.msra.mxu1 %v11793_v56  ;;  %v3923_v43 = vpop.f32.mrf.mxu0  ;;  %4718 = vmatprep.mubr.bf16.mxu1 %v18700_v8  ;;  %v576_v49 = vld [vmem:[#allocation2 + $0x698] sm:$0xff]  ;;  %v11649_v56 = vcombine.low %v456_v53, %v460_v55  ;;  %v11642_v54 = vcombine.high %v448_v40, %v452_v61 }
 0x1d2   : > { %4874 = vmatprep.subr.bf16.mxu1 %v11786_v62  ;;  %v580_v41 = vld [vmem:[#allocation2 + $0x6b8] sm:$0xff]  ;;  %v13867_v44 = vadd.f32 %v4034_v11, %v3922_v36  ;;  %v3924_v26 = vadd.f32 %v3923_v43, %v13743_v42  ;;  %v4036_v27 = vpop.f32.mrf.mxu1  ;;  %v11777_v62 = vcombine.low %v584_v20, %v588_v38 }
 0x1d3   : > { %4762 = vmatpush2.bf16.msra.mxu0 %v11657_v1  ;;  %v3925_v22 = vpop.f32.mrf.mxu0  ;;  %v11770_v11 = vcombine.high %v576_v49, %v580_v41  ;;  %v440_v36 = vld [vmem:[#allocation2 + $0x258] sm:$0xff] }
 0x1d4   : > { %4763 = vmatprep.subr.bf16.mxu0 %v11650_v13  ;;  %v13870_v15 = vadd.f32 %v4036_v27, %v3924_v26  ;;  %v3926_v46 = vadd.f32 %v3925_v22, %v13758_v25  ;;  %v4038_v18 = vpop.f32.mrf.mxu1  ;;  %v444_v60 = vld [vmem:[#allocation2 + $0x278] sm:$0xff]  ;;  %v11641_v13 = vcombine.low %v448_v40, %v452_v61  ;;  %v11769_v26 = vcombine.low %v576_v49, %v580_v41 }
 0x1d5   : > { %4875 = vmatpush2.bf16.msra.mxu1 %v11785_v12  ;;  %v3929_v43 = vpop.f32.mrf.mxu0  ;;  %v568_v1 = vld [vmem:[#allocation2 + $0x658] sm:$0xff]  ;;  %v13114_v12 = vld [vmem:[%s13299_s16 + $0x168] ss:$28 sps:$4 sm:$0xff]   ;;  %v11634_v27 = vcombine.high %v440_v36, %v444_v60 }
 0x1d6   : > { %4876 = vmatprep.subr.bf16.mxu1 %v11778_v23  ;;  %4606 = vmatmul.mubr.bf16.gmra.mxu0 %v13113_v2  ;;  %v572_v53 = vld [vmem:[#allocation2 + $0x678] sm:$0xff]  ;;  %v13874_v55 = vadd.f32 %v4038_v18, %v3926_v46  ;;  %v3930_v20 = vadd.f32 %v3929_v43, %v13743_v42  ;;  %v4042_v38 = vpop.f32.mrf.mxu1 }
 0x1d7   : > { %4764 = vmatpush2.bf16.msra.mxu0 %v11649_v56  ;;  %v3931_v23 = vpop.f32.mrf.mxu0  ;;  %v13115_v46 = vld [vmem:[%s13299_s16 + $0x19c] ss:$28 sps:$4 sm:$0xff]   ;;  %v11762_v18 = vcombine.high %v568_v1, %v572_v53 }
 0x1d8   : > { %4719 = vmatmul.mubr.bf16.gmra.mxu1 %v13114_v12  ;;  %4765 = vmatprep.subr.bf16.mxu0 %v11642_v54  ;;  %v13878_v22 = vadd.f32 %v4042_v38, %v3930_v20  ;;  %v3932_v2 = vadd.f32 %v3931_v23, %v13758_v25  ;;  %v4044_v63 = vpop.f32.mrf.mxu1  ;;  %v432_v43 = vld [vmem:[#allocation2 + $0x218] sm:$0xff] }
 0x1d9   : > { %4877 = vmatpush2.bf16.msra.mxu1 %v11777_v62  ;;  %4615 = vmatprep.mubr.bf16.mxu0 %v13115_v46  ;;  %v436_v16 = vld [vmem:[#allocation2 + $0x238] sm:$0xff]  ;;  %v3933_v58 = vpop.f32.mrf.mxu0  ;;  %v11633_v62 = vcombine.low %v440_v36, %v444_v60 }
 0x1da   : > { %4878 = vmatprep.subr.bf16.mxu1 %v11770_v11  ;;  %4728 = vmatprep.mubr.bf16.mxu1 %v18700_v8  ;;  %v560_v61 = vld [vmem:[#allocation2 + $0x618] sm:$0xff]  ;;  %v13883_v56 = vadd.f32 %v4044_v63, %v3932_v2  ;;  %v3934_v49 = vadd.f32 %v3933_v58, %v13743_v42  ;;  %v4046_v41 = vpop.f32.mrf.mxu1  ;;  %v11761_v11 = vcombine.low %v568_v1, %v572_v53 }
 0x1db   : > { %v564_v40 = vld [vmem:[#allocation2 + $0x638] sm:$0xff]  ;;  %4766 = vmatpush2.bf16.msra.mxu0 %v11641_v13  ;;  %v3935_v54 = vpop.f32.mrf.mxu0  ;;  %v11626_v20 = vcombine.high %v432_v43, %v436_v16 }
 0x1dc   : > { %4767 = vmatprep.subr.bf16.mxu0 %v11634_v27  ;;  %v13886_v38 = vadd.f32 %v4046_v41, %v3934_v49  ;;  %v3936_v12 = vadd.f32 %v3935_v54, %v13758_v25  ;;  %v4048_v23 = vpop.f32.mrf.mxu1  ;;  %v11754_v63 = vcombine.high %v560_v61, %v564_v40  ;;  %v680_v2 = vld [vmem:[#allocation2 + $0x9d8] sm:$0xff]  ;;  %v11625_v27 = vcombine.low %v432_v43, %v436_v16 }
 0x1dd   : > { %4879 = vmatpush2.bf16.msra.mxu1 %v11769_v26  ;;  %v684_v46 = vld [vmem:[#allocation2 + $0x9f8] sm:$0xff]  ;;  %v3939_v58 = vpop.f32.mrf.mxu0  ;;  %v11753_v49 = vcombine.low %v560_v61, %v564_v40 }
 0x1de   : > { %4880 = vmatprep.subr.bf16.mxu1 %v11762_v18  ;;  %4616 = vmatmul.mubr.bf16.gmra.mxu0 %v13116_v45  ;;  %v808_v13 = vld [vmem:[#allocation2 + $0xdd8] sm:$0xff]  ;;  %v13890_v36 = vadd.f32 %v4048_v23, %v3936_v12  ;;  %v3940_v1 = vadd.f32 %v3939_v58, %v13743_v42  ;;  %v4052_v53 = vpop.f32.mrf.mxu1  ;;  %v11874_v41 = vcombine.high %v680_v2, %v684_v46  ;;  %v13118_v23 = vld [vmem:[%s13299_s16 + $0x4] ss:$28 sps:$4 sm:$0xff]  }
 0x1df   : > { %v812_v60 = vld [vmem:[#allocation2 + $0xdf8] sm:$0xff]  ;;  %4768 = vmatpush2.bf16.msra.mxu0 %v11633_v62  ;;  %v3941_v18 = vpop.f32.mrf.mxu0  ;;  %4771 = vmatprep.mubr.bf16.mxu0 %v13118_v23  ;;  %v13119_v62 = vld [vmem:[%s13299_s16 + $0xc] ss:$28 sps:$4 sm:$0xff]   ;;  %v11873_v40 = vcombine.low %v680_v2, %v684_v46 }
 0x1e0   : > { %v13117_v26 = vld [vmem:[%s13299_s16 + $0x1a0] ss:$28 sps:$4 sm:$0xff]   ;;  %4769 = vmatprep.subr.bf16.mxu0 %v11626_v20  ;;  %v13894_v54 = vadd.f32 %v4052_v53, %v3940_v1  ;;  %v3942_v45 = vadd.f32 %v3941_v18, %v13758_v25  ;;  %v4054_v12 = vpop.f32.mrf.mxu1  ;;  %v12002_v58 = vcombine.high %v808_v13, %v812_v60  ;;  %v12001_v1 = vcombine.low %v808_v13, %v812_v60 }
 0x1e1   : > { %4729 = vmatmul.mubr.bf16.gmra.mxu1 %v13117_v26  ;;  %v3943_v26 = vpop.f32.mrf.mxu0  ;;  %v804_v20 = vld [vmem:[#allocation2 + $0xdb8] sm:$0xff]  ;;  %v11866_v53 = vcombine.high %v672_v3, %v676_v30 }
 0x1e2   : > { %4881 = vmatpush2.bf16.msra.mxu1 %v11761_v11  ;;  %4884 = vmatprep.mubr.bf16.mxu1 %v13119_v62  ;;  %v13899_v16 = vadd.f32 %v4054_v12, %v3942_v45  ;;  %v3944_v43 = vadd.f32 %v3943_v26, %v13743_v42  ;;  %v4056_v61 = vpop.f32.mrf.mxu1  ;;  %v800_v11 = vld [vmem:[#allocation2 + $0xd98] sm:$0xff] }
 0x1e3   : > { %4882 = vmatprep.subr.bf16.mxu1 %v11754_v63  ;;  %4770 = vmatpush2.bf16.msra.mxu0 %v11625_v27  ;;  %v3945_v63 = vpop.f32.mrf.mxu0  ;;  %v664_v12 = vld [vmem:[#allocation2 + $0x958] sm:$0xff]  ;;  %v11994_v2 = vcombine.high %v800_v11, %v804_v20 }
 0x1e4   : > { %4965 = vmatprep.subr.bf16.mxu0 %v11874_v41  ;;  %v13902_v18 = vadd.f32 %v4056_v61, %v3944_v43  ;;  %v3946_v23 = vadd.f32 %v3945_v63, %v13758_v25  ;;  %v4058_v45 = vpop.f32.mrf.mxu1  ;;  %v668_v42 = vld [vmem:[#allocation2 + $0x978] sm:$0xff]  ;;  %v13121_v25 = vld [vmem:[%s13299_s16 + $0x8] ss:$28 sps:$4 sm:$0xff]   ;;  %v11993_v61 = vcombine.low %v800_v11, %v804_v20 }
 0x1e5   : > { %v4095_v26 = vpop.f32.mrf.mxu0  ;;  %v13120_v27 = vld [vmem:[%s13299_s16] ss:$28 sps:$4 sm:$0xff]   ;;  %v11858_v43 = vcombine.high %v664_v12, %v668_v42  ;;  %v11857_v11 = vcombine.low %v664_v12, %v668_v42 }
 0x1e6   : > { %4883 = vmatpush2.bf16.msra.mxu1 %v11753_v49  ;;  %4772 = vmatmul.mubr.bf16.vlgmr.msra.gmra.mxu0 %v13120_v27  ;;  %v13906_v46 = vld [vmem:[#allocation2 + $0xd58] sm:$0xff]  ;;  %v13910_v13 = vadd.f32 %v4058_v45, %v3946_v23  ;;  %v4096_v60 = vadd.f32 %v4095_v26, %v13776_v5  ;;  %v4208_v41 = vpop.f32.mrf.mxu1  ;;  %v13123_v23 = vld [vmem:[%s13299_s16 + $0x44] ss:$28 sps:$4 sm:$0xff]  }
 0x1e7   : > { %5078 = vmatprep.subr.bf16.mxu1 %v12002_v58  ;;  %v13908_v49 = vld [vmem:[#allocation2 + $0xd78] sm:$0xff]  ;;  %4966 = vmatpush1.bf16.msra.mxu0 %v11873_v40  ;;  %v11865_v58 = vcombine.low %v672_v3, %v676_v30  ;;  %v4097_v62 = vpop.f32.mrf.mxu0 }
 0x1e8   : > { %4967 = vmatprep.subr.bf16.mxu0 %v11866_v53  ;;  %v4209_v63 = vadd.f32 %v4208_v41, %v4096_v60  ;;  %v4098_v27 = vadd.f32 %v4097_v62, %v13783_v21  ;;  %v4210_v47 = vpop.f32.mrf.mxu1  ;;  %4781 = vmatprep.mubr.bf16.mxu0 %v13122_v34  ;;  %v656_v5 = vld [vmem:[#allocation2 + $0x918] sm:$0xff]  ;;  %v11986_v26 = vcombine.high %v13906_v46, %v13908_v49 }
 0x1e9   : > { %4885 = vmatmul.mubr.bf16.vlgmr.msra.gmra.mxu1 %v13121_v25  ;;  %v660_v45 = vld [vmem:[#allocation2 + $0x938] sm:$0xff]  ;;  %v4099_v40 = vpop.f32.mrf.mxu0  ;;  %v11985_v12 = vcombine.low %v13906_v46, %v13908_v49 }
 0x1ea   : > { %5079 = vmatpush1.bf16.msra.mxu1 %v12001_v1  ;;  %4894 = vmatprep.mubr.bf16.mxu1 %v13123_v23  ;;  %v4211_v3 = vadd.f32 %v4210_v47, %v4098_v27  ;;  %v4100_v30 = vadd.f32 %v4099_v40, %v13790_v57  ;;  %v4212_v1 = vpop.f32.mrf.mxu1  ;;  %v13920_v21 = vld [vmem:[#allocation2 + $0xd18] sm:$0xff]  ;;  %v11850_v53 = vcombine.high %v656_v5, %v660_v45 }
 0x1eb   : > { %5080 = vmatprep.subr.bf16.mxu1 %v11994_v2  ;;  %4968 = vmatpush1.bf16.msra.mxu0 %v11865_v58  ;;  %v13922_v20 = vld [vmem:[#allocation2 + $0xd38] sm:$0xff]  ;;  %v4101_v34 = vpop.f32.mrf.mxu0  ;;  %v11849_v58 = vcombine.low %v656_v5, %v660_v45  ;;  %v13126_v5 = vld [vmem:[%s13299_s16 + $0x74] ss:$28 sps:$4 sm:$0xff]  }
 0x1ec   : > { %4969 = vmatprep.subr.bf16.mxu0 %v11858_v43  ;;  %v4213_v60 = vadd.f32 %v4212_v1, %v4100_v30  ;;  %v4102_v41 = vadd.f32 %v4101_v34, %v13794_v48  ;;  %v4214_v2 = vpop.f32.mrf.mxu1  ;;  %v13925_v47 = vld [vmem:[#allocation2 + $0x8d8] sm:$0xff]  ;;  %v11978_v62 = vcombine.high %v13920_v21, %v13922_v20  ;;  %v5193_v43 = vmax.f32 %v4209_v63, 0.0 }
 0x1ed   : > { %v13927_v57 = vld [vmem:[#allocation2 + $0x8f8] sm:$0xff]  ;;  %v4105_v42 = vpop.f32.mrf.mxu0 }
 0x1ee   : > { %5081 = vmatpush1.bf16.msra.mxu1 %v11993_v61  ;;  %v13124_v25 = vld [vmem:[%s13299_s16 + $0x38] ss:$28 sps:$4 sm:$0xff]   ;;  %v5201_v48 = vmax.f32 %v4213_v60, 0.0  ;;  %v4215_v61 = vadd.f32 %v4214_v2, %v4102_v41  ;;  %v4106_v27 = vadd.f32 %v4105_v42, %v13798_v28  ;;  %v4218_v23 = vpop.f32.mrf.mxu1  ;;  %v13125_v40 = vld [vmem:[%s13299_s16 + $0x40] ss:$28 sps:$4 sm:$0xff]   ;;  %v11842_v63 = vcombine.high %v13925_v47, %v13927_v57 }
 0x1ef   : > { %5082 = vmatprep.subr.bf16.mxu1 %v11986_v26  ;;  %4782 = vmatmul.mubr.bf16.gmra.mxu0 %v13124_v25  ;;  %v13936_v46 = vld [vmem:[#allocation2 + $0xcd8] sm:$0xff]  ;;  %v5194_v26 = vmax.f32 %v4211_v3, 0.0  ;;  %v4107_v30 = vpop.f32.mrf.mxu0  ;;  %v11977_v28 = vcombine.low %v13920_v21, %v13922_v20 }
 0x1f0   : > { %4970 = vmatpush1.bf16.msra.mxu0 %v11857_v11  ;;  %v13938_v49 = vld [vmem:[#allocation2 + $0xcf8] sm:$0xff]  ;;  %4791 = vmatprep.mubr.bf16.mxu0 %v13126_v5  ;;  %v13945_v45 = vpack.c.bf16 %v5201_v48, %v5193_v43  ;;  %v5202_v1 = vmax.f32 %v4215_v61, 0.0  ;;  %v4219_v34 = vadd.f32 %v4218_v23, %v4106_v27  ;;  %v4108_v11 = vadd.f32 %v4107_v30, %v13803_v52  ;;  %v4220_v60 = vpop.f32.mrf.mxu1 }
 0x1f1   : > { %4895 = vmatmul.mubr.bf16.gmra.mxu1 %v13125_v40  ;;  %4971 = vmatprep.subr.bf16.mxu0 %v11850_v53  ;;  %v13127_v41 = vld [vmem:[%s13299_s16 + $0x7c] ss:$28 sps:$4 sm:$0xff]   ;;  %v4109_v2 = vpop.f32.mrf.mxu0  ;;  %v11970_v42 = vcombine.high %v13936_v46, %v13938_v49  ;;  %v11841_v52 = vcombine.low %v13925_v47, %v13927_v57  ;;  %v11969_v47 = vcombine.low %v13936_v46, %v13938_v49 }
 0x1f2   : > { %18701 = vst [vmem:[#allocation21_spill] sm:$0xff] %v13945_v45  ;;  %4904 = vmatprep.mubr.bf16.mxu1 %v13127_v41  ;;  %5083 = vmatpush1.bf16.msra.mxu1 %v11985_v12  ;;  %v13949_v3 = vld [vmem:[#allocation2 + $0x898] sm:$0xff]  ;;  %v13953_v25 = vpack.c.bf16 %v5202_v1, %v5194_v26  ;;  %v4221_v21 = vadd.f32 %v4220_v60, %v4108_v11  ;;  %v4222_v43 = vpop.f32.mrf.mxu1  ;;  %v5209_v5 = vmax.f32 %v4219_v34, 0.0 }
 0x1f3   : > { %v644_v53 = vld [vmem:[#allocation2 + $0x8b8] sm:$0xff]  ;;  %5084 = vmatprep.subr.bf16.mxu1 %v11978_v62  ;;  %v4110_v20 = vadd.f32 %v4109_v2, %v13806_v0  ;;  %v4111_v61 = vpop.f32.mrf.mxu0 }
 0x1f4   : > { %18702 = vst [vmem:[#allocation22_spill] sm:$0xff] %v13953_v25  ;;  %4972 = vmatpush1.bf16.msra.mxu0 %v11849_v58  ;;  %v13958_v12 = vld [vmem:[#allocation2 + $0xc98] sm:$0xff]  ;;  %v11834_v62 = vcombine.high %v13949_v3, %v644_v53  ;;  %v4112_v23 = vadd.f32 %v4111_v61, %v13810_v9  ;;  %v4224_v40 = vpop.f32.mrf.mxu1  ;;  %v13128_v58 = vld [vmem:[%s13299_s16 + $0x70] ss:$28 sps:$4 sm:$0xff]   ;;  %v11833_v30 = vcombine.low %v13949_v3, %v644_v53  ;;  %v5210_v41 = vmax.f32 %v4221_v21, 0.0 }
 0x1f5   : > { %v13960_v48 = vld [vmem:[#allocation2 + $0xcb8] sm:$0xff]  ;;  %4973 = vmatprep.subr.bf16.mxu0 %v11842_v63  ;;  %v4223_v27 = vadd.f32 %v4222_v43, %v4110_v20  ;;  %v4115_v57 = vpop.f32.mrf.mxu0  ;;  %v13130_v53 = vld [vmem:[%s13299_s16 + $0xac] ss:$28 sps:$4 sm:$0xff]   ;;  %v13131_v61 = vld [vmem:[%s13299_s16 + $0xb4] ss:$28 sps:$4 sm:$0xff]  }
 0x1f6   : > { %v13964_v0 = vld [vmem:[#allocation2 + $0x858] sm:$0xff]  ;;  %5085 = vmatpush1.bf16.msra.mxu1 %v11977_v28  ;;  %v11962_v9 = vcombine.high %v13958_v12, %v13960_v48  ;;  %v4225_v1 = vadd.f32 %v4224_v40, %v4112_v23  ;;  %v4116_v11 = vadd.f32 %v4115_v57, %v13814_v51  ;;  %v4228_v60 = vpop.f32.mrf.mxu1  ;;  %v11961_v51 = vcombine.low %v13958_v12, %v13960_v48 }
 0x1f7   : > { %v13966_v26 = vld [vmem:[#allocation2 + $0x878] sm:$0xff]  ;;  %4792 = vmatmul.mubr.bf16.gmra.mxu0 %v13128_v58  ;;  %5086 = vmatprep.subr.bf16.mxu1 %v11970_v42  ;;  %v5217_v63 = vmax.f32 %v4223_v27, 0.0  ;;  %v4117_v3 = vpop.f32.mrf.mxu0 }
 0x1f8   : > { %v13129_v28 = vld [vmem:[%s13299_s16 + $0x78] ss:$28 sps:$4 sm:$0xff]   ;;  %4974 = vmatpush1.bf16.msra.mxu0 %v11841_v52  ;;  %4801 = vmatprep.mubr.bf16.mxu0 %v13130_v53  ;;  %v11826_v34 = vcombine.high %v13964_v0, %v13966_v26  ;;  %v5218_v42 = vmax.f32 %v4225_v1, 0.0  ;;  %v4229_v20 = vadd.f32 %v4228_v60, %v4116_v11  ;;  %v4118_v43 = vadd.f32 %v4117_v3, %v13819_v4  ;;  %v4230_v52 = vpop.f32.mrf.mxu1 }
 0x1f9   : > { %4905 = vmatmul.mubr.bf16.gmra.mxu1 %v13129_v28  ;;  %v13976_v46 = vld [vmem:[#allocation2 + $0xc58] sm:$0xff]  ;;  %4975 = vmatprep.subr.bf16.mxu0 %v11834_v62  ;;  %v13985_v2 = vpack.c.bf16 %v5217_v63, %v5209_v5  ;;  %v4119_v27 = vpop.f32.mrf.mxu0  ;;  %v11825_v4 = vcombine.low %v13964_v0, %v13966_v26 }
 0x1fa   : > { %v13978_v49 = vld [vmem:[#allocation2 + $0xc78] sm:$0xff]  ;;  %4914 = vmatprep.mubr.bf16.mxu1 %v13131_v61  ;;  %5087 = vmatpush1.bf16.msra.mxu1 %v11969_v47  ;;  %v13995_v12 = vpack.c.bf16 %v5218_v42, %v5210_v41  ;;  %v4231_v48 = vadd.f32 %v4230_v52, %v4118_v43  ;;  %v4120_v40 = vadd.f32 %v4119_v27, %v13822_v32  ;;  %v4232_v57 = vpop.f32.mrf.mxu1  ;;  %v13133_v43 = vld [vmem:[%s13299_s16 + $0xb0] ss:$28 sps:$4 sm:$0xff]   ;;  %v13134_v52 = vld [vmem:[%s13299_s16 + $0xe4] ss:$28 sps:$4 sm:$0xff]  }
 0x1fb   : > { %18703 = vst [vmem:[#allocation23_spill] sm:$0xff] %v13985_v2  ;;  %v13989_v21 = vld [vmem:[#allocation2 + $0x818] sm:$0xff]  ;;  %5088 = vmatprep.subr.bf16.mxu1 %v11962_v9  ;;  %v11954_v23 = vcombine.high %v13976_v46, %v13978_v49  ;;  %v4121_v63 = vpop.f32.mrf.mxu0  ;;  %v11953_v0 = vcombine.low %v13976_v46, %v13978_v49  ;;  %v14017_v46 = vld [vmem:[%s18545_s3 + $0x5c0] sm:$0xff] }
 0x1fc   : > { %v13991_v62 = vld [vmem:[#allocation2 + $0x838] sm:$0xff]  ;;  %18704 = vst [vmem:[#allocation24_spill] sm:$0xff] %v13995_v12  ;;  %4976 = vmatpush1.bf16.msra.mxu0 %v11833_v30  ;;  %v4233_v9 = vadd.f32 %v4232_v57, %v4120_v40  ;;  %v4122_v1 = vadd.f32 %v4121_v63, %v13826_v17  ;;  %v4234_v11 = vpop.f32.mrf.mxu1  ;;  %v13132_v30 = vld [vmem:[%s13299_s16 + $0xa8] ss:$28 sps:$4 sm:$0xff]   ;;  %v5225_v17 = vmax.f32 %v4229_v20, 0.0 }
 0x1fd   : > { %v752_v58 = vld [vmem:[#allocation2 + $0xc18] sm:$0xff]  ;;  %4977 = vmatprep.subr.bf16.mxu0 %v11826_v34  ;;  %v11818_v47 = vcombine.high %v13989_v21, %v13991_v62  ;;  %v4125_v26 = vpop.f32.mrf.mxu0  ;;  %v11817_v28 = vcombine.low %v13989_v21, %v13991_v62  ;;  %v14022_v49 = vld [vmem:[%s18545_s3 + $0x5e0] sm:$0xff]  ;;  %v13135_v57 = vld [vmem:[%s13299_s16 + $0xec] ss:$28 sps:$4 sm:$0xff]  }
 0x1fe   : > { %v756_v5 = vld [vmem:[#allocation2 + $0xc38] sm:$0xff]  ;;  %5089 = vmatpush1.bf16.msra.mxu1 %v11961_v51  ;;  %v5233_v3 = vmax.f32 %v4233_v9, 0.0  ;;  %v4235_v53 = vadd.f32 %v4234_v11, %v4122_v1  ;;  %v4126_v34 = vadd.f32 %v4125_v26, %v13830_v6  ;;  %v4238_v42 = vpop.f32.mrf.mxu1  ;;  %v5226_v51 = vmax.f32 %v4231_v48, 0.0 }
 0x1ff   : > { %v14003_v60 = vld [vmem:[#allocation2 + $0xbd8] sm:$0xff]  ;;  %4802 = vmatmul.mubr.bf16.gmra.mxu0 %v13132_v30  ;;  %5090 = vmatprep.subr.bf16.mxu1 %v11954_v23  ;;  %v11946_v41 = vcombine.high %v752_v58, %v756_v5  ;;  %v4127_v20 = vpop.f32.mrf.mxu0  ;;  %v11945_v61 = vcombine.low %v752_v58, %v756_v5 }
 0x200   : > { %v14005_v32 = vld [vmem:[#allocation2 + $0xbf8] sm:$0xff]  ;;  %4978 = vmatpush1.bf16.msra.mxu0 %v11825_v4  ;;  %4811 = vmatprep.mubr.bf16.mxu0 %v13134_v52  ;;  %v14027_v21 = vpack.c.bf16 %v5233_v3, %v5225_v17  ;;  %v5234_v62 = vmax.f32 %v4235_v53, 0.0  ;;  %v4239_v27 = vadd.f32 %v4238_v42, %v4126_v34  ;;  %v4128_v23 = vadd.f32 %v4127_v20, %v13835_v39  ;;  %v4240_v40 = vpop.f32.mrf.mxu1 }
 0x201   : > { %4915 = vmatmul.mubr.bf16.gmra.mxu1 %v13133_v43  ;;  %4979 = vmatprep.subr.bf16.mxu0 %v11818_v47  ;;  %v11938_v6 = vcombine.high %v14003_v60, %v14005_v32  ;;  %v736_v4 = vld [vmem:[#allocation2 + $0xb98] sm:$0xff]  ;;  %v4129_v48 = vpop.f32.mrf.mxu0  ;;  %v12188_v47 = vcombine.high %v14017_v46, %v14022_v49  ;;  %v11937_v39 = vcombine.low %v14003_v60, %v14005_v32 }
 0x202   : > { %18705 = vst [vmem:[#allocation25_spill] sm:$0xff] %v14027_v21  ;;  %4924 = vmatprep.mubr.bf16.mxu1 %v13135_v57  ;;  %v740_v63 = vld [vmem:[#allocation2 + $0xbb8] sm:$0xff]  ;;  %5091 = vmatpush1.bf16.msra.mxu1 %v11953_v0  ;;  %v14033_v9 = vpack.c.bf16 %v5234_v62, %v5226_v51  ;;  %v4241_v58 = vadd.f32 %v4240_v40, %v4128_v23  ;;  %v4242_v1 = vpop.f32.mrf.mxu1  ;;  %v13137_v51 = vld [vmem:[%s13299_s16 + $0xe8] ss:$28 sps:$4 sm:$0xff]  }
 0x203   : > { %5092 = vmatprep.subr.bf16.mxu1 %v11946_v41  ;;  %v4130_v5 = vadd.f32 %v4129_v48, %v13838_v10  ;;  %v4131_v11 = vpop.f32.mrf.mxu0  ;;  %v11930_v26 = vcombine.high %v736_v4, %v740_v63  ;;  %v728_v17 = vld [vmem:[#allocation2 + $0xb58] sm:$0xff]  ;;  %v11929_v10 = vcombine.low %v736_v4, %v740_v63  ;;  %v13139_v57 = vld [vmem:[%s13299_s16 + $0x124] ss:$28 sps:$4 sm:$0xff]  }
 0x204   : > { %18706 = vst [vmem:[#allocation26_spill] sm:$0xff] %v14033_v9  ;;  %4980 = vmatpush1.bf16.msra.mxu0 %v11817_v28  ;;  %v4132_v30 = vadd.f32 %v4131_v11, %v13842_v59  ;;  %v4244_v41 = vpop.f32.mrf.mxu1  ;;  %v732_v3 = vld [vmem:[#allocation2 + $0xb78] sm:$0xff]  ;;  %v5241_v28 = vmax.f32 %v4239_v27, 0.0  ;;  %v5242_v59 = vmax.f32 %v4241_v58, 0.0 }
 0x205   : > { %4981 = vmatprep.subr.bf16.mxu0 %v11938_v6  ;;  %v4243_v0 = vadd.f32 %v4242_v1, %v4130_v5  ;;  %v4135_v53 = vpop.f32.mrf.mxu0  ;;  %v13136_v34 = vld [vmem:[%s13299_s16 + $0xe0] ss:$28 sps:$4 sm:$0xff]   ;;  %v11922_v6 = vcombine.high %v728_v17, %v732_v3  ;;  %v11921_v1 = vcombine.low %v728_v17, %v732_v3 }
 0x206   : > { %5093 = vmatpush1.bf16.msra.mxu1 %v11945_v61  ;;  %v4245_v60 = vadd.f32 %v4244_v41, %v4132_v30  ;;  %v4136_v32 = vadd.f32 %v4135_v53, %v13846_v35  ;;  %v4248_v43 = vpop.f32.mrf.mxu1  ;;  %v13138_v52 = vld [vmem:[%s13299_s16 + $0x11c] ss:$28 sps:$4 sm:$0xff]  }
 0x207   : > { %4812 = vmatmul.mubr.bf16.gmra.mxu0 %v13136_v34  ;;  %8610 = vmatprep.subr.bf16.mxu1 %v12188_v47  ;;  %v5249_v42 = vmax.f32 %v4243_v0, 0.0  ;;  %v4137_v20 = vpop.f32.mrf.mxu0  ;;  %v720_v35 = vld [vmem:[#allocation2 + $0xb18] sm:$0xff] }
 0x208   : > { %4982 = vmatpush2.bf16.msra.mxu0 %v11937_v39  ;;  %4821 = vmatprep.mubr.bf16.mxu0 %v13138_v52  ;;  %v5250_v62 = vmax.f32 %v4245_v60, 0.0  ;;  %v4249_v23 = vadd.f32 %v4248_v43, %v4136_v32  ;;  %v4138_v27 = vadd.f32 %v4137_v20, %v13851_v29  ;;  %v4250_v40 = vpop.f32.mrf.mxu1  ;;  %v724_v4 = vld [vmem:[#allocation2 + $0xb38] sm:$0xff]  ;;  %v13142_v43 = vld [vmem:[%s13299_s16 + $0x154] ss:$28 sps:$4 sm:$0xff]  }
 0x209   : > { %4925 = vmatmul.mubr.bf16.gmra.mxu1 %v13137_v51  ;;  %4983 = vmatprep.subr.bf16.mxu0 %v11930_v26  ;;  %v14043_v61 = vpack.c.bf16 %v5249_v42, %v5241_v28  ;;  %v4139_v63 = vpop.f32.mrf.mxu0  ;;  %v11914_v11 = vcombine.high %v720_v35, %v724_v4  ;;  %v712_v30 = vld [vmem:[#allocation2 + $0xad8] sm:$0xff]  ;;  %v11913_v28 = vcombine.low %v720_v35, %v724_v4 }
 0x20a   : > { %4934 = vmatprep.mubr.bf16.mxu1 %v13139_v57  ;;  %v14047_v48 = vpack.c.bf16 %v5250_v62, %v5242_v59  ;;  %v4251_v47 = vadd.f32 %v4250_v40, %v4138_v27  ;;  %v4140_v58 = vadd.f32 %v4139_v63, %v13854_v33  ;;  %v4252_v5 = vpop.f32.mrf.mxu1  ;;  %v716_v41 = vld [vmem:[#allocation2 + $0xaf8] sm:$0xff]  ;;  %v5257_v42 = vmax.f32 %v4249_v23, 0.0 }
 0x20b   : > { %18707 = vst [vmem:[#allocation27_spill] sm:$0xff] %v14043_v61  ;;  %v4141_v39 = vpop.f32.mrf.mxu0  ;;  %v13140_v34 = vld [vmem:[%s13299_s16 + $0x118] ss:$28 sps:$4 sm:$0xff]   ;;  %v11906_v51 = vcombine.high %v712_v30, %v716_v41 }
 0x20c   : > { %18708 = vst [vmem:[#allocation28_spill] sm:$0xff] %v14047_v48  ;;  %4984 = vmatpush2.bf16.msra.mxu0 %v11929_v10  ;;  %v4253_v29 = vadd.f32 %v4252_v5, %v4140_v58  ;;  %v4142_v26 = vadd.f32 %v4141_v39, %v13858_v31  ;;  %v4254_v0 = vpop.f32.mrf.mxu1  ;;  %v13141_v10 = vld [vmem:[%s13299_s16 + $0x120] ss:$28 sps:$4 sm:$0xff]   ;;  %v5258_v32 = vmax.f32 %v4251_v47, 0.0  ;;  %v11905_v47 = vcombine.low %v712_v30, %v716_v41 }
 0x20d   : > { %4985 = vmatprep.subr.bf16.mxu0 %v11922_v6  ;;  %v4145_v53 = vpop.f32.mrf.mxu0  ;;  %v13143_v23 = vld [vmem:[%s13299_s16 + $0x15c] ss:$28 sps:$4 sm:$0xff]  }
 0x20e   : > { %v5265_v33 = vmax.f32 %v4253_v29, 0.0  ;;  %v4255_v60 = vadd.f32 %v4254_v0, %v4142_v26  ;;  %v4146_v17 = vadd.f32 %v4145_v53, %v13862_v37  ;;  %v4258_v3 = vpop.f32.mrf.mxu1  ;;  %v704_v37 = vld [vmem:[#allocation2 + $0xa98] sm:$0xff]  ;;  %v13144_v0 = vld [vmem:[%s13299_s16 + $0x150] ss:$28 sps:$4 sm:$0xff]  }
 0x20f   : > { %4822 = vmatmul.mubr.bf16.gmra.mxu0 %v13140_v34  ;;  %v4147_v31 = vpop.f32.mrf.mxu0  ;;  %v708_v27 = vld [vmem:[#allocation2 + $0xab8] sm:$0xff] }
 0x210   : > { %4986 = vmatpush2.bf16.msra.mxu0 %v11921_v1  ;;  %4831 = vmatprep.mubr.bf16.mxu0 %v13142_v43  ;;  %v14055_v59 = vpack.c.bf16 %v5265_v33, %v5257_v42  ;;  %v5266_v20 = vmax.f32 %v4255_v60, 0.0  ;;  %v4259_v52 = vadd.f32 %v4258_v3, %v4146_v17  ;;  %v4148_v6 = vadd.f32 %v4147_v31, %v13867_v44  ;;  %v4260_v62 = vpop.f32.mrf.mxu1  ;;  %v700_v29 = vld [vmem:[#allocation2 + $0xa78] sm:$0xff]  ;;  %v13146_v60 = vld [vmem:[%s13299_s16 + $0x18c] ss:$28 sps:$4 sm:$0xff]  }
 0x211   : > { %4935 = vmatmul.mubr.bf16.gmra.mxu1 %v13141_v10  ;;  %4987 = vmatprep.subr.bf16.mxu0 %v11914_v11  ;;  %v4149_v40 = vpop.f32.mrf.mxu0  ;;  %v11898_v5 = vcombine.high %v704_v37, %v708_v27  ;;  %v696_v11 = vld [vmem:[#allocation2 + $0xa58] sm:$0xff]  ;;  %v11897_v53 = vcombine.low %v704_v37, %v708_v27 }
 0x212   : > { %18709 = vst [vmem:[#allocation29_spill] sm:$0xff] %v14055_v59  ;;  %4944 = vmatprep.mubr.bf16.mxu1 %v13143_v23  ;;  %v14059_v57 = vpack.c.bf16 %v5266_v20, %v5258_v32  ;;  %v4261_v35 = vadd.f32 %v4260_v62, %v4148_v6  ;;  %v4150_v4 = vadd.f32 %v4149_v40, %v13870_v15  ;;  %v4262_v63 = vpop.f32.mrf.mxu1  ;;  %v5273_v34 = vmax.f32 %v4259_v52, 0.0  ;;  %v692_v20 = vld [vmem:[#allocation2 + $0xa38] sm:$0xff] }
 0x213   : > { %v4151_v58 = vpop.f32.mrf.mxu0  ;;  %v11890_v17 = vcombine.high %v696_v11, %v700_v29  ;;  %v11889_v27 = vcombine.low %v696_v11, %v700_v29 }
 0x214   : > { %18710 = vst [vmem:[#allocation30_spill] sm:$0xff] %v14059_v57  ;;  %4988 = vmatpush2.bf16.msra.mxu0 %v11913_v28  ;;  %v4263_v44 = vadd.f32 %v4262_v63, %v4150_v4  ;;  %v4152_v1 = vadd.f32 %v4151_v58, %v13874_v55  ;;  %v4264_v39 = vpop.f32.mrf.mxu1  ;;  %v13145_v28 = vld [vmem:[%s13299_s16 + $0x158] ss:$28 sps:$4 sm:$0xff]   ;;  %v5274_v33 = vmax.f32 %v4261_v35, 0.0 }
 0x215   : > { %4989 = vmatprep.subr.bf16.mxu0 %v11906_v51  ;;  %v4155_v26 = vpop.f32.mrf.mxu0  ;;  %v13147_v51 = vld [vmem:[%s13299_s16 + $0x194] ss:$28 sps:$4 sm:$0xff]  }
 0x216   : > { %v5281_v15 = vmax.f32 %v4263_v44, 0.0  ;;  %v4265_v42 = vadd.f32 %v4264_v39, %v4152_v1  ;;  %v4156_v30 = vadd.f32 %v4155_v26, %v13878_v22  ;;  %v4268_v41 = vpop.f32.mrf.mxu1  ;;  %v688_v22 = vld [vmem:[#allocation2 + $0xa18] sm:$0xff]  ;;  %v18569_v1 = vsub.s32 4, %v13409_v19 }
 0x217   : > { %4832 = vmatmul.mubr.bf16.gmra.mxu0 %v13144_v0  ;;  %v4157_v55 = vpop.f32.mrf.mxu0  ;;  %v11882_v35 = vcombine.high %v688_v22, %v692_v20  ;;  %v11881_v44 = vcombine.low %v688_v22, %v692_v20  ;;  %v13149_v0 = vld [vmem:[%s13299_s16 + $0x190] ss:$28 sps:$4 sm:$0xff]  }
 0x218   : > { %4990 = vmatpush2.bf16.msra.mxu0 %v11905_v47  ;;  %4841 = vmatprep.mubr.bf16.mxu0 %v13146_v60  ;;  %v14067_v3 = vpack.c.bf16 %v5281_v15, %v5273_v34  ;;  %v5282_v10 = vmax.f32 %v4265_v42, 0.0  ;;  %v4269_v32 = vadd.f32 %v4268_v41, %v4156_v30  ;;  %v4158_v31 = vadd.f32 %v4157_v55, %v13883_v56  ;;  %v4270_v43 = vpop.f32.mrf.mxu1  ;;  %v14078_v47 = vld [vmem:[%s18545_s3 + $0x1c0] sm:$0xff]  ;;  %v13150_v15 = vld [vmem:[%s13299_s16 + $0x14] ss:$28 sps:$4 sm:$0xff]  }
 0x219   : > { %4945 = vmatmul.mubr.bf16.gmra.mxu1 %v13145_v28  ;;  %4991 = vmatprep.subr.bf16.mxu0 %v11898_v5  ;;  %v4159_v52 = vpop.f32.mrf.mxu0  ;;  %v13148_v5 = vld [vmem:[%s13299_s16 + $0x188] ss:$28 sps:$4 sm:$0xff]   ;;  %v18568_v30 = vsub.s32 5, %v13409_v19 }
 0x21a   : > { %18711 = vst [vmem:[#allocation31_spill] sm:$0xff] %v14067_v3  ;;  %4954 = vmatprep.mubr.bf16.mxu1 %v13147_v51  ;;  %v14071_v6 = vpack.c.bf16 %v5282_v10, %v5274_v33  ;;  %v4271_v62 = vadd.f32 %v4270_v43, %v4158_v31  ;;  %v4160_v23 = vadd.f32 %v4159_v52, %v13886_v38  ;;  %v4272_v37 = vpop.f32.mrf.mxu1  ;;  %v14083_v38 = vld [vmem:[%s18545_s3 + $0x1e0] sm:$0xff]  ;;  %v5289_v39 = vmax.f32 %v4269_v32, 0.0 }
 0x21b   : > { %v4161_v40 = vpop.f32.mrf.mxu0  ;;  %v12060_v42 = vcombine.high %v14078_v47, %v14083_v38  ;;  %v14100_v60 = vld [vmem:[%s18545_s3 + $0x180] sm:$0xff] }
 0x21c   : > { %18712 = vst [vmem:[#allocation32_spill] sm:$0xff] %v14071_v6  ;;  %4992 = vmatpush2.bf16.msra.mxu0 %v11897_v53  ;;  %v4273_v56 = vadd.f32 %v4272_v37, %v4160_v23  ;;  %v4162_v4 = vadd.f32 %v4161_v40, %v13890_v36  ;;  %v4274_v63 = vpop.f32.mrf.mxu1  ;;  %v5290_v53 = vmax.f32 %v4271_v62, 0.0  ;;  %v13151_v32 = vld [vmem:[%s18544_s2] sm:$0xff]  ;;  %v12059_v62 = vcombine.low %v14078_v47, %v14083_v38  ;;  %v13152_v38 = vld [vmem:[%s13299_s16 + $0x10] ss:$28 sps:$4 sm:$0xff]  }
 0x21d   : > { %4993 = vmatprep.subr.bf16.mxu0 %v11890_v17  ;;  %v4165_v58 = vpop.f32.mrf.mxu0  ;;  %v5435_v17 = vld [vmem:[%s18545_s3 + $0x1a0] sm:$0xff]  ;;  %v12187_v37 = vcombine.low %v14017_v46, %v14022_v49 }
 0x21e   : > { %v5297_v36 = vmax.f32 %v4273_v56, 0.0  ;;  %v4275_v11 = vadd.f32 %v4274_v63, %v4162_v4  ;;  %v4166_v29 = vadd.f32 %v4165_v58, %v13894_v54  ;;  %v4278_v26 = vpop.f32.mrf.mxu1  ;;  %v5559_v31 = vld [vmem:[%s18545_s3 + $0x580] sm:$0xff]  ;;  %v14134_v4 = vrot.slane %v13151_v32, %v18568_v30 }
 0x21f   : > { %4842 = vmatmul.mubr.bf16.gmra.mxu0 %v13148_v5  ;;  %v4167_v34 = vpop.f32.mrf.mxu0  ;;  %v5563_v43 = vld [vmem:[%s18545_s3 + $0x5a0] sm:$0xff]  ;;  %v12051_v58 = vcombine.low %v14100_v60, %v5435_v17 }
 0x220   : > { %4994 = vmatpush2.bf16.msra.mxu0 %v11889_v27  ;;  %4997 = vmatprep.mubr.bf16.mxu0 %v13150_v15  ;;  %v14093_v41 = vpack.c.bf16 %v5297_v36, %v5289_v39  ;;  %v5298_v28 = vmax.f32 %v4275_v11, 0.0  ;;  %v4279_v33 = vadd.f32 %v4278_v26, %v4166_v29  ;;  %v4168_v54 = vadd.f32 %v4167_v34, %v13899_v16  ;;  %v4280_v55 = vpop.f32.mrf.mxu1  ;;  %v14129_v40 = vld [vmem:[%s18545_s3 + $0x140] sm:$0xff]  ;;  %v13153_v29 = vld [vmem:[%s13299_s16 + $0x18] ss:$28 sps:$4 sm:$0xff]  }
 0x221   : > { %4955 = vmatmul.mubr.bf16.gmra.mxu1 %v13149_v0  ;;  %4995 = vmatprep.subr.bf16.mxu0 %v11882_v35  ;;  %v4169_v10 = vpop.f32.mrf.mxu0  ;;  %v14110_v16 = vrot.slane %v13151_v32, %v18569_v1  ;;  %v12052_v27 = vcombine.high %v14100_v60, %v5435_v17  ;;  %v12180_v63 = vcombine.high %v5559_v31, %v5563_v43  ;;  %v14139_v46 = vld [vmem:[%s18545_s3 + $0x160] sm:$0xff]  ;;  %v13154_v60 = vld [vmem:[%s13299_s16 + $0x4c] ss:$28 sps:$4 sm:$0xff]  }
 0x222   : > { %18713 = vst [vmem:[#allocation33_spill] sm:$0xff] %v14093_v41  ;;  %5110 = vmatprep.mubr.bf16.mxu1 %v18700_v8  ;;  %v14118_v51 = vpack.c.bf16 %v5298_v28, %v5290_v53  ;;  %v4281_v22 = vadd.f32 %v4280_v55, %v4168_v54  ;;  %v4170_v20 = vadd.f32 %v4169_v10, %v13902_v18  ;;  %v4282_v52 = vpop.f32.mrf.mxu1  ;;  %v14144_v49 = vld [vmem:[%s18545_s3 + $0x540] sm:$0xff]  ;;  %v5305_v5 = vmax.f32 %v4279_v33, 0.0 }
 0x223   : > { %v4171_v23 = vpop.f32.mrf.mxu0  ;;  %v12179_v53 = vcombine.low %v5559_v31, %v5563_v43  ;;  %v12044_v34 = vcombine.high %v14129_v40, %v14139_v46  ;;  %v5415_v17 = vld [vmem:[%s18545_s3 + $0x100] sm:$0xff] }
 0x224   : > { %18714 = vst [vmem:[#allocation34_spill] sm:$0xff] %v14118_v51  ;;  %4996 = vmatpush2.bf16.msra.mxu0 %v11881_v44  ;;  %v4283_v35 = vadd.f32 %v4282_v52, %v4170_v20  ;;  %v4172_v18 = vadd.f32 %v4171_v23, %v13910_v13  ;;  %v4284_v56 = vpop.f32.mrf.mxu1  ;;  %v14149_v13 = vld [vmem:[%s18545_s3 + $0x560] sm:$0xff]  ;;  %v5306_v26 = vmax.f32 %v4281_v22, 0.0  ;;  %v12043_v23 = vcombine.low %v14129_v40, %v14139_v46 }
 0x225   : > { %8497 = vmatprep.subr.bf16.mxu0 %v12060_v42  ;;  %v4321_v47 = vpop.f32.mrf.mxu0  ;;  %v12172_v15 = vcombine.high %v14144_v49, %v14149_v13  ;;  %v5419_v10 = vld [vmem:[%s18545_s3 + $0x120] sm:$0xff] }
 0x226   : > { %v5313_v44 = vmax.f32 %v4283_v35, 0.0  ;;  %v4285_v39 = vadd.f32 %v4284_v56, %v4172_v18  ;;  %v4322_v36 = vadd.f32 %v4321_v47, %v14110_v16  ;;  %v4434_v11 = vpop.f32.mrf.mxu1  ;;  %v5543_v31 = vld [vmem:[%s18545_s3 + $0x500] sm:$0xff]  ;;  %v12036_v35 = vcombine.high %v5415_v17, %v5419_v10 }
 0x227   : > { %4998 = vmatmul.mubr.bf16.vlgmr.msra.gmra.mxu0 %v13152_v38  ;;  %v4323_v0 = vpop.f32.mrf.mxu0  ;;  %v5547_v43 = vld [vmem:[%s18545_s3 + $0x520] sm:$0xff] }
 0x228   : > { %8498 = vmatpush1.bf16.msra.mxu0 %v12059_v62  ;;  %v14159_v42 = vpack.c.bf16 %v5313_v44, %v5305_v5  ;;  %v5314_v28 = vmax.f32 %v4285_v39, 0.0  ;;  %v14161_v33 = vadd.f32 %v4434_v11, %v4322_v36  ;;  %v4324_v54 = vadd.f32 %v4323_v0, %v14134_v4  ;;  %v4436_v55 = vpop.f32.mrf.mxu1  ;;  %5007 = vmatprep.mubr.bf16.mxu0 %v13154_v60  ;;  %v5407_v38 = vld [vmem:[%s18545_s3 + $0xc0] sm:$0xff]  ;;  %v13156_v36 = vld [vmem:[%s13299_s16 + $0x50] ss:$28 sps:$4 sm:$0xff]  }
 0x229   : > { %5111 = vmatmul.mubr.bf16.vlgmr.msra.gmra.mxu1 %v13153_v29  ;;  %8499 = vmatprep.subr.bf16.mxu0 %v12052_v27  ;;  %v4325_v32 = vpop.f32.mrf.mxu0  ;;  %v12171_v27 = vcombine.low %v14144_v49, %v14149_v13  ;;  %v12164_v47 = vcombine.high %v5543_v31, %v5547_v43  ;;  %v5411_v40 = vld [vmem:[%s18545_s3 + $0xe0] sm:$0xff]  ;;  %v12035_v11 = vcombine.low %v5415_v17, %v5419_v10 }
 0x22a   : > { %8611 = vmatpush1.bf16.msra.mxu1 %v12187_v37  ;;  %18715 = vst [vmem:[#allocation35_spill] sm:$0xff] %v14159_v42  ;;  %5120 = vmatprep.mubr.bf16.mxu1 %v18700_v8  ;;  %v14178_v22 = vpack.c.bf16 %v5314_v28, %v5306_v26  ;;  %v14180_v20 = vadd.f32 %v4436_v55, %v4324_v54  ;;  %v4438_v62 = vpop.f32.mrf.mxu1  ;;  %v5535_v49 = vld [vmem:[%s18545_s3 + $0x4c0] sm:$0xff] }
 0x22b   : > { %8612 = vmatprep.subr.bf16.mxu1 %v12180_v63  ;;  %v4326_v52 = vadd.f32 %v4325_v32, %v14110_v16  ;;  %v4327_v37 = vpop.f32.mrf.mxu0  ;;  %v5539_v13 = vld [vmem:[%s18545_s3 + $0x4e0] sm:$0xff]  ;;  %v12163_v26 = vcombine.low %v5543_v31, %v5547_v43  ;;  %v12028_v0 = vcombine.high %v5407_v38, %v5411_v40 }
 0x22c   : > { %18716 = vst [vmem:[#allocation36_spill] sm:$0xff] %v14178_v22  ;;  %8500 = vmatpush1.bf16.msra.mxu0 %v12051_v58  ;;  %v4328_v56 = vadd.f32 %v4327_v37, %v14134_v4  ;;  %v4440_v63 = vpop.f32.mrf.mxu1  ;;  %v13155_v58 = vld [vmem:[%s13299_s16 + $0x48] ss:$28 sps:$4 sm:$0xff]   ;;  %v12156_v54 = vcombine.high %v5535_v49, %v5539_v13  ;;  %v12155_v37 = vcombine.low %v5535_v49, %v5539_v13 }
 0x22d   : > { %8501 = vmatprep.subr.bf16.mxu0 %v12044_v34  ;;  %v14187_v18 = vadd.f32 %v4438_v62, %v4326_v52  ;;  %v4331_v46 = vpop.f32.mrf.mxu0  ;;  %v13157_v28 = vld [vmem:[%s13299_s16 + $0x84] ss:$28 sps:$4 sm:$0xff]   ;;  %v12027_v62 = vcombine.low %v5407_v38, %v5411_v40 }
 0x22e   : > { %8613 = vmatpush1.bf16.msra.mxu1 %v12179_v53  ;;  %v14203_v5 = vadd.f32 %v4440_v63, %v4328_v56  ;;  %v4332_v44 = vadd.f32 %v4331_v46, %v14110_v16  ;;  %v4444_v39 = vpop.f32.mrf.mxu1  ;;  %v5399_v55 = vld [vmem:[%s18545_s3 + $0x80] sm:$0xff] }
 0x22f   : > { %8614 = vmatprep.subr.bf16.mxu1 %v12172_v15  ;;  %5008 = vmatmul.mubr.bf16.gmra.mxu0 %v13155_v58  ;;  %v4333_v29 = vpop.f32.mrf.mxu0  ;;  %v5403_v60 = vld [vmem:[%s18545_s3 + $0xa0] sm:$0xff] }
 0x230   : > { %8502 = vmatpush1.bf16.msra.mxu0 %v12043_v23  ;;  %v14207_v53 = vadd.f32 %v4444_v39, %v4332_v44  ;;  %v4334_v34 = vadd.f32 %v4333_v29, %v14134_v4  ;;  %v4446_v15 = vpop.f32.mrf.mxu1  ;;  %5017 = vmatprep.mubr.bf16.mxu0 %v13157_v28  ;;  %v5527_v10 = vld [vmem:[%s18545_s3 + $0x480] sm:$0xff]  ;;  %v12019_v29 = vcombine.low %v5399_v55, %v5403_v60 }
 0x231   : > { %5121 = vmatmul.mubr.bf16.gmra.mxu1 %v13156_v36  ;;  %8503 = vmatprep.subr.bf16.mxu0 %v12036_v35  ;;  %v4335_v17 = vpop.f32.mrf.mxu0  ;;  %v5531_v32 = vld [vmem:[%s18545_s3 + $0x4a0] sm:$0xff] }
 0x232   : > { %8615 = vmatpush1.bf16.msra.mxu1 %v12171_v27  ;;  %5130 = vmatprep.mubr.bf16.mxu1 %v18700_v8  ;;  %v14224_v31 = vadd.f32 %v4446_v15, %v4334_v34  ;;  %v4336_v43 = vadd.f32 %v4335_v17, %v14110_v16  ;;  %v4448_v52 = vpop.f32.mrf.mxu1  ;;  %v12020_v27 = vcombine.high %v5399_v55, %v5403_v60  ;;  %v5391_v46 = vld [vmem:[%s18545_s3 + $0x40] sm:$0xff]  ;;  %v13160_v17 = vld [vmem:[%s13299_s16 + $0xbc] ss:$28 sps:$4 sm:$0xff]  }
 0x233   : > { %8616 = vmatprep.subr.bf16.mxu1 %v12164_v47  ;;  %v4337_v23 = vpop.f32.mrf.mxu0  ;;  %v12148_v47 = vcombine.high %v5527_v10, %v5531_v32  ;;  %v5395_v38 = vld [vmem:[%s18545_s3 + $0x60] sm:$0xff] }
 0x234   : > { %8504 = vmatpush1.bf16.msra.mxu0 %v12035_v11  ;;  %v14227_v35 = vadd.f32 %v4448_v52, %v4336_v43  ;;  %v4338_v56 = vadd.f32 %v4337_v23, %v14134_v4  ;;  %v4450_v63 = vpop.f32.mrf.mxu1  ;;  %v13158_v58 = vld [vmem:[%s13299_s16 + $0x80] ss:$28 sps:$4 sm:$0xff]   ;;  %v13159_v11 = vld [vmem:[%s13299_s16 + $0x88] ss:$28 sps:$4 sm:$0xff]   ;;  %v12012_v34 = vcombine.high %v5391_v46, %v5395_v38 }
 0x235   : > { %8505 = vmatprep.subr.bf16.mxu0 %v12028_v0  ;;  %v5519_v49 = vld [vmem:[%s18545_s3 + $0x440] sm:$0xff]  ;;  %v12147_v0 = vcombine.low %v5527_v10, %v5531_v32 }
 0x236   : > { %8617 = vmatpush1.bf16.msra.mxu1 %v12163_v26  ;;  %v4341_v40 = vpop.f32.mrf.mxu0  ;;  %v5523_v13 = vld [vmem:[%s18545_s3 + $0x460] sm:$0xff]  ;;  %v14243_v44 = vadd.f32 %v4450_v63, %v4338_v56  ;;  %v4454_v36 = vpop.f32.mrf.mxu1 }
 0x237   : > { %8618 = vmatprep.subr.bf16.mxu1 %v12156_v54  ;;  %5018 = vmatmul.mubr.bf16.gmra.mxu0 %v13158_v58  ;;  %v4342_v39 = vadd.f32 %v4341_v40, %v14110_v16  ;;  %v12140_v43 = vcombine.high %v5519_v49, %v5523_v13  ;;  %v5383_v52 = vld [vmem:[%s18545_s3] sm:$0xff]  ;;  %v12139_v63 = vcombine.low %v5519_v49, %v5523_v13 }
 0x238   : > { %8506 = vmatpush1.bf16.msra.mxu0 %v12027_v62  ;;  %v4343_v26 = vpop.f32.mrf.mxu0  ;;  %v4456_v54 = vpop.f32.mrf.mxu1  ;;  %5027 = vmatprep.mubr.bf16.mxu0 %v13160_v17  ;;  %v5387_v55 = vld [vmem:[%s18545_s3 + $0x20] sm:$0xff] }
 0x239   : > { %5131 = vmatmul.mubr.bf16.gmra.mxu1 %v13159_v11  ;;  %8507 = vmatprep.subr.bf16.mxu0 %v12020_v27  ;;  %v14247_v15 = vadd.f32 %v4454_v36, %v4342_v39  ;;  %v4344_v28 = vadd.f32 %v4343_v26, %v14134_v4  ;;  %v5511_v10 = vld [vmem:[%s18545_s3 + $0x400] sm:$0xff]  ;;  %v12011_v27 = vcombine.low %v5391_v46, %v5395_v38 }
 0x23a   : > { %8619 = vmatpush1.bf16.msra.mxu1 %v12155_v37  ;;  %v4345_v60 = vpop.f32.mrf.mxu0  ;;  %5140 = vmatprep.mubr.bf16.mxu1 %v18700_v8  ;;  %v5515_v32 = vld [vmem:[%s18545_s3 + $0x420] sm:$0xff]  ;;  %v4458_v37 = vpop.f32.mrf.mxu1 }
 0x23b   : > { %8620 = vmatprep.subr.bf16.mxu1 %v12148_v47  ;;  %v14264_v62 = vadd.f32 %v4456_v54, %v4344_v28  ;;  %v4346_v23 = vadd.f32 %v4345_v60, %v14110_v16  ;;  %v12004_v47 = vcombine.high %v5383_v52, %v5387_v55  ;;  %v12132_v36 = vcombine.high %v5511_v10, %v5515_v32  ;;  %v5503_v11 = vld [vmem:[%s18545_s3 + $0x3c0] sm:$0xff] }
 0x23c   : > { %8508 = vmatpush1.bf16.msra.mxu0 %v12019_v29  ;;  %v4347_v56 = vpop.f32.mrf.mxu0  ;;  %v4460_v39 = vpop.f32.mrf.mxu1  ;;  %v5507_v46 = vld [vmem:[%s18545_s3 + $0x3e0] sm:$0xff]  ;;  %v13161_v29 = vld [vmem:[%s13299_s16 + $0xb8] ss:$28 sps:$4 sm:$0xff]   ;;  %v12003_v54 = vcombine.low %v5383_v52, %v5387_v55 }
 0x23d   : > { %8509 = vmatprep.subr.bf16.mxu0 %v12012_v34  ;;  %v14267_v40 = vadd.f32 %v4458_v37, %v4346_v23  ;;  %v4348_v58 = vadd.f32 %v4347_v56, %v14134_v4  ;;  %v5631_v49 = vld [vmem:[%s18545_s3 + $0x7c0] sm:$0xff]  ;;  %v12124_v60 = vcombine.high %v5503_v11, %v5507_v46 }
 0x23e   : > { %8621 = vmatpush1.bf16.msra.mxu1 %v12147_v0  ;;  %v4351_v38 = vpop.f32.mrf.mxu0  ;;  %v5635_v13 = vld [vmem:[%s18545_s3 + $0x7e0] sm:$0xff] }
 0x23f   : > { %8622 = vmatprep.subr.bf16.mxu1 %v12140_v43  ;;  %5028 = vmatmul.mubr.bf16.gmra.mxu0 %v13161_v29  ;;  %v14283_v26 = vadd.f32 %v4460_v39, %v4348_v58  ;;  %v4352_v0 = vadd.f32 %v4351_v38, %v14110_v16  ;;  %v13162_v28 = vld [vmem:[%s13299_s16 + $0xc0] ss:$28 sps:$4 sm:$0xff]   ;;  %v12131_v43 = vcombine.low %v5511_v10, %v5515_v32  ;;  %v13163_v58 = vld [vmem:[%s13299_s16 + $0xf4] ss:$28 sps:$4 sm:$0xff]  }
 0x240   : > { %v4464_v34 = vpop.f32.mrf.mxu1  ;;  %8510 = vmatpush1.bf16.msra.mxu0 %v12011_v27  ;;  %v4353_v17 = vpop.f32.mrf.mxu0  ;;  %5037 = vmatprep.mubr.bf16.mxu0 %v13163_v58  ;;  %v12252_v39 = vcombine.high %v5631_v49, %v5635_v13  ;;  %v5495_v38 = vld [vmem:[%s18545_s3 + $0x380] sm:$0xff] }
 0x241   : > { %5141 = vmatmul.mubr.bf16.gmra.mxu1 %v13162_v28  ;;  %8511 = vmatprep.subr.bf16.mxu0 %v12004_v47  ;;  %v14287_v23 = vadd.f32 %v4464_v34, %v4352_v0  ;;  %v4354_v37 = vadd.f32 %v4353_v17, %v14134_v4  ;;  %v5499_v52 = vld [vmem:[%s18545_s3 + $0x3a0] sm:$0xff]  ;;  %v12251_v0 = vcombine.low %v5631_v49, %v5635_v13 }
 0x242   : > { %8623 = vmatpush1.bf16.msra.mxu1 %v12139_v63  ;;  %v4466_v56 = vpop.f32.mrf.mxu1  ;;  %v4355_v55 = vpop.f32.mrf.mxu0  ;;  %5150 = vmatprep.mubr.bf16.mxu1 %v18700_v8  ;;  %v5623_v10 = vld [vmem:[%s18545_s3 + $0x780] sm:$0xff]  ;;  %v12116_v34 = vcombine.high %v5495_v38, %v5499_v52 }
 0x243   : > { %8624 = vmatprep.subr.bf16.mxu1 %v12132_v36  ;;  %v5627_v32 = vld [vmem:[%s18545_s3 + $0x7a0] sm:$0xff]  ;;  %v14304_v27 = vadd.f32 %v4466_v56, %v4354_v37  ;;  %v4356_v63 = vadd.f32 %v4355_v55, %v14110_v16  ;;  %v12123_v36 = vcombine.low %v5503_v11, %v5507_v46  ;;  %v13165_v55 = vld [vmem:[%s13299_s16 + $0xf8] ss:$28 sps:$4 sm:$0xff]  }
 0x244   : > { %v4468_v47 = vpop.f32.mrf.mxu1  ;;  %8512 = vmatpush1.bf16.msra.mxu0 %v12003_v54  ;;  %v4357_v29 = vpop.f32.mrf.mxu0  ;;  %v12244_v37 = vcombine.high %v5623_v10, %v5627_v32  ;;  %v5487_v56 = vld [vmem:[%s18545_s3 + $0x340] sm:$0xff]  ;;  %v13164_v54 = vld [vmem:[%s13299_s16 + $0xf0] ss:$28 sps:$4 sm:$0xff]  }
 0x245   : > { %8513 = vmatprep.subr.bf16.mxu0 %v12124_v60  ;;  %v14307_v28 = vadd.f32 %v4468_v47, %v4356_v63  ;;  %v4358_v17 = vadd.f32 %v4357_v29, %v14134_v4  ;;  %v5491_v11 = vld [vmem:[%s18545_s3 + $0x360] sm:$0xff]  ;;  %v12115_v63 = vcombine.low %v5495_v38, %v5499_v52  ;;  %v12243_v29 = vcombine.low %v5623_v10, %v5627_v32 }
 0x246   : > { %8625 = vmatpush1.bf16.msra.mxu1 %v12131_v43  ;;  %v4470_v58 = vpop.f32.mrf.mxu1  ;;  %v4361_v46 = vpop.f32.mrf.mxu0  ;;  %v5615_v49 = vld [vmem:[%s18545_s3 + $0x740] sm:$0xff] }
 0x247   : > { %8626 = vmatprep.subr.bf16.mxu1 %v12252_v39  ;;  %5038 = vmatmul.mubr.bf16.gmra.mxu0 %v13164_v54  ;;  %v5619_v13 = vld [vmem:[%s18545_s3 + $0x760] sm:$0xff]  ;;  %v14323_v43 = vadd.f32 %v4470_v58, %v4358_v17  ;;  %v4362_v60 = vadd.f32 %v4361_v46, %v14110_v16  ;;  %v12108_v54 = vcombine.high %v5487_v56, %v5491_v11  ;;  %v13166_v17 = vld [vmem:[%s13299_s16 + $0x12c] ss:$28 sps:$4 sm:$0xff]  }
 0x248   : > { %v4474_v39 = vpop.f32.mrf.mxu1  ;;  %8514 = vmatpush2.bf16.msra.mxu0 %v12123_v36  ;;  %v4363_v47 = vpop.f32.mrf.mxu0  ;;  %5047 = vmatprep.mubr.bf16.mxu0 %v13166_v17  ;;  %v12236_v58 = vcombine.high %v5615_v49, %v5619_v13  ;;  %v5479_v46 = vld [vmem:[%s18545_s3 + $0x300] sm:$0xff] }
 0x249   : > { %5151 = vmatmul.mubr.bf16.gmra.mxu1 %v13165_v55  ;;  %8515 = vmatprep.subr.bf16.mxu0 %v12116_v34  ;;  %v14327_v30 = vadd.f32 %v4474_v39, %v4362_v60  ;;  %v4364_v1 = vadd.f32 %v4363_v47, %v14134_v4  ;;  %v5483_v38 = vld [vmem:[%s18545_s3 + $0x320] sm:$0xff]  ;;  %v12235_v39 = vcombine.low %v5615_v49, %v5619_v13 }
 0x24a   : > { %8627 = vmatpush2.bf16.msra.mxu1 %v12251_v0  ;;  %v4476_v42 = vpop.f32.mrf.mxu1  ;;  %v4365_v52 = vpop.f32.mrf.mxu0  ;;  %5160 = vmatprep.mubr.bf16.mxu1 %v18700_v8  ;;  %v5607_v10 = vld [vmem:[%s18545_s3 + $0x700] sm:$0xff]  ;;  %v12100_v55 = vcombine.high %v5479_v46, %v5483_v38 }
 0x24b   : > { %8628 = vmatprep.subr.bf16.mxu1 %v12244_v37  ;;  %v5611_v32 = vld [vmem:[%s18545_s3 + $0x720] sm:$0xff]  ;;  %v14344_v36 = vadd.f32 %v4476_v42, %v4364_v1  ;;  %v4366_v0 = vadd.f32 %v4365_v52, %v14110_v16  ;;  %v12107_v37 = vcombine.low %v5487_v56, %v5491_v11  ;;  %v13168_v52 = vld [vmem:[%s13299_s16 + $0x130] ss:$28 sps:$4 sm:$0xff]  }
 0x24c   : > { %v4478_v34 = vpop.f32.mrf.mxu1  ;;  %8516 = vmatpush2.bf16.msra.mxu0 %v12115_v63  ;;  %v4367_v60 = vpop.f32.mrf.mxu0  ;;  %v12228_v1 = vcombine.high %v5607_v10, %v5611_v32  ;;  %v5471_v42 = vld [vmem:[%s18545_s3 + $0x2c0] sm:$0xff] }
 0x24d   : > { %8517 = vmatprep.subr.bf16.mxu0 %v12108_v54  ;;  %v14347_v47 = vadd.f32 %v4478_v34, %v4366_v0  ;;  %v4368_v17 = vadd.f32 %v4367_v60, %v14134_v4  ;;  %v5475_v56 = vld [vmem:[%s18545_s3 + $0x2e0] sm:$0xff]  ;;  %v12099_v0 = vcombine.low %v5479_v46, %v5483_v38  ;;  %v12227_v60 = vcombine.low %v5607_v10, %v5611_v32 }
 0x24e   : > { %8629 = vmatpush2.bf16.msra.mxu1 %v12243_v29  ;;  %v4480_v19 = vpop.f32.mrf.mxu1  ;;  %v4371_v11 = vpop.f32.mrf.mxu0  ;;  %v13167_v63 = vld [vmem:[%s13299_s16 + $0x128] ss:$28 sps:$4 sm:$0xff]  }
 0x24f   : > { %8630 = vmatprep.subr.bf16.mxu1 %v12236_v58  ;;  %5048 = vmatmul.mubr.bf16.gmra.mxu0 %v13167_v63  ;;  %v5599_v49 = vld [vmem:[%s18545_s3 + $0x6c0] sm:$0xff]  ;;  %v14363_v29 = vadd.f32 %v4480_v19, %v4368_v17  ;;  %v4372_v54 = vadd.f32 %v4371_v11, %v14110_v16  ;;  %v12092_v63 = vcombine.high %v5471_v42, %v5475_v56 }
 0x250   : > { %v5603_v13 = vld [vmem:[%s18545_s3 + $0x6e0] sm:$0xff]  ;;  %v4484_v58 = vpop.f32.mrf.mxu1  ;;  %8518 = vmatpush2.bf16.msra.mxu0 %v12107_v37  ;;  %v4373_v34 = vpop.f32.mrf.mxu0 }
 0x251   : > { %5161 = vmatmul.mubr.bf16.gmra.mxu1 %v13168_v52  ;;  %8519 = vmatprep.subr.bf16.mxu0 %v12100_v55  ;;  %v14367_v22 = vadd.f32 %v4484_v58, %v4372_v54  ;;  %v4374_v41 = vadd.f32 %v4373_v34, %v14134_v4  ;;  %v13169_v19 = vld [vmem:[%s13299_s16 + $0x164] ss:$28 sps:$4 sm:$0xff]   ;;  %v12220_v17 = vcombine.high %v5599_v49, %v5603_v13 }
 0x252   : > { %8631 = vmatpush2.bf16.msra.mxu1 %v12235_v39  ;;  %v4486_v51 = vpop.f32.mrf.mxu1  ;;  %5057 = vmatprep.mubr.bf16.mxu0 %v13169_v19  ;;  %v5463_v11 = vld [vmem:[%s18545_s3 + $0x280] sm:$0xff]  ;;  %v4375_v38 = vpop.f32.mrf.mxu0  ;;  %v12219_v58 = vcombine.low %v5599_v49, %v5603_v13 }
 0x253   : > { %18717 = vst [vmem:[#allocation37_spill] sm:$0xff] %v14367_v22  ;;  %8632 = vmatprep.subr.bf16.mxu1 %v12228_v1  ;;  %v5467_v46 = vld [vmem:[%s18545_s3 + $0x2a0] sm:$0xff]  ;;  %5170 = vmatprep.mubr.bf16.mxu1 %v18700_v8  ;;  %v14384_v37 = vadd.f32 %v4486_v51, %v4374_v41  ;;  %v4376_v39 = vadd.f32 %v4375_v38, %v14110_v16 }
 0x254   : > { %v5591_v10 = vld [vmem:[%s18545_s3 + $0x680] sm:$0xff]  ;;  %v4488_v55 = vpop.f32.mrf.mxu1  ;;  %8520 = vmatpush2.bf16.msra.mxu0 %v12099_v0  ;;  %v12091_v1 = vcombine.low %v5471_v42, %v5475_v56  ;;  %v4377_v54 = vpop.f32.mrf.mxu0  ;;  %v12084_v52 = vcombine.high %v5463_v11, %v5467_v46 }
 0x255   : > { %v5595_v32 = vld [vmem:[%s18545_s3 + $0x6a0] sm:$0xff]  ;;  %18718 = vst [vmem:[#allocation38_spill] sm:$0xff] %v14384_v37  ;;  %8521 = vmatprep.subr.bf16.mxu0 %v12092_v63  ;;  %v14387_v34 = vadd.f32 %v4488_v55, %v4376_v39  ;;  %v4378_v19 = vadd.f32 %v4377_v54, %v14134_v4  ;;  %v12083_v39 = vcombine.low %v5463_v11, %v5467_v46 }
 0x256   : > { %8633 = vmatpush2.bf16.msra.mxu1 %v12227_v60  ;;  %v4490_v3 = vpop.f32.mrf.mxu1  ;;  %v12212_v41 = vcombine.high %v5591_v10, %v5595_v32  ;;  %v5455_v51 = vld [vmem:[%s18545_s3 + $0x240] sm:$0xff]  ;;  %v4381_v56 = vpop.f32.mrf.mxu0  ;;  %v12211_v54 = vcombine.low %v5591_v10, %v5595_v32 }
 0x257   : > { %18719 = vst [vmem:[#allocation39_spill] sm:$0xff] %v14387_v34  ;;  %8634 = vmatprep.subr.bf16.mxu1 %v12220_v17  ;;  %v5459_v42 = vld [vmem:[%s18545_s3 + $0x260] sm:$0xff]  ;;  %v14403_v60 = vadd.f32 %v4490_v3, %v4378_v19  ;;  %v4382_v63 = vadd.f32 %v4381_v56, %v14110_v16  ;;  %v13172_v3 = vld [vmem:[%s13299_s16 + $0x19c] ss:$28 sps:$4 sm:$0xff]  }
 0x258   : > { %v13170_v0 = vld [vmem:[%s13299_s16 + $0x160] ss:$28 sps:$4 sm:$0xff]   ;;  %v4494_v17 = vpop.f32.mrf.mxu1  ;;  %v13171_v38 = vld [vmem:[%s13299_s16 + $0x168] ss:$28 sps:$4 sm:$0xff]   ;;  %8522 = vmatpush2.bf16.msra.mxu0 %v12091_v1  ;;  %v4383_v55 = vpop.f32.mrf.mxu0 }
 0x259   : > { %5058 = vmatmul.mubr.bf16.gmra.mxu0 %v13170_v0  ;;  %v5583_v49 = vld [vmem:[%s18545_s3 + $0x640] sm:$0xff]  ;;  %5171 = vmatmul.mubr.bf16.gmra.mxu1 %v13171_v38  ;;  %v12076_v0 = vcombine.high %v5455_v51, %v5459_v42  ;;  %v14407_v34 = vadd.f32 %v4494_v17, %v4382_v63  ;;  %v4384_v37 = vadd.f32 %v4383_v55, %v14134_v4  ;;  %v13173_v55 = vld [vmem:[%s13299_s16 + $0x198] ss:$28 sps:$4 sm:$0xff]  }
 0x25a   : > { %v5587_v13 = vld [vmem:[%s18545_s3 + $0x660] sm:$0xff]  ;;  %8635 = vmatpush2.bf16.msra.mxu1 %v12219_v58  ;;  %8523 = vmatprep.subr.bf16.mxu0 %v12084_v52  ;;  %v4496_v22 = vpop.f32.mrf.mxu1  ;;  %v4385_v56 = vpop.f32.mrf.mxu0  ;;  %v12075_v58 = vcombine.low %v5455_v51, %v5459_v42 }
 0x25b   : > { %8636 = vmatprep.subr.bf16.mxu1 %v12212_v41  ;;  %5067 = vmatprep.mubr.bf16.mxu0 %v13172_v3  ;;  %v12204_v19 = vcombine.high %v5583_v49, %v5587_v13  ;;  %v5447_v11 = vld [vmem:[%s18545_s3 + $0x200] sm:$0xff]  ;;  %v14418_v10 = vadd.f32 %v4496_v22, %v4384_v37  ;;  %v4386_v32 = vadd.f32 %v4385_v56, %v14110_v16 }
 0x25c   : > { %5180 = vmatprep.mubr.bf16.mxu1 %v18700_v8  ;;  %v5451_v46 = vld [vmem:[%s18545_s3 + $0x220] sm:$0xff]  ;;  %v4498_v1 = vpop.f32.mrf.mxu1  ;;  %8524 = vmatpush2.bf16.msra.mxu0 %v12083_v39  ;;  %v4387_v41 = vpop.f32.mrf.mxu0  ;;  %v12203_v63 = vcombine.low %v5583_v49, %v5587_v13 }
 0x25d   : > { %v5575_v8 = vld [vmem:[%s18545_s3 + $0x600] sm:$0xff]  ;;  %8525 = vmatprep.subr.bf16.mxu0 %v12076_v0  ;;  %v14427_v22 = vadd.f32 %v4498_v1, %v4386_v32  ;;  %v4388_v37 = vadd.f32 %v4387_v41, %v14134_v4  ;;  %v12068_v51 = vcombine.high %v5447_v11, %v5451_v46  ;;  %v12067_v32 = vcombine.low %v5447_v11, %v5451_v46 }
 0x25e   : > { %v5579_v52 = vld [vmem:[%s18545_s3 + $0x620] sm:$0xff]  ;;  %8637 = vmatpush2.bf16.msra.mxu1 %v12211_v54  ;;  %v4500_v17 = vpop.f32.mrf.mxu1  ;;  %v4391_v39 = vpop.f32.mrf.mxu0 }
 0x25f   : > { %18720 = vst [vmem:[#allocation40_spill] sm:$0xff] %v14427_v22  ;;  %8638 = vmatprep.subr.bf16.mxu1 %v12204_v19  ;;  %v5695_v42 = vld [vmem:[%s18545_s3 + $0x9c0] sm:$0xff]  ;;  %v12196_v49 = vcombine.high %v5575_v8, %v5579_v52  ;;  %v14443_v0 = vadd.f32 %v4500_v17, %v4388_v37  ;;  %v4392_v3 = vadd.f32 %v4391_v39, %v14110_v16 }
 0x260   : > { %v5699_v38 = vld [vmem:[%s18545_s3 + $0x9e0] sm:$0xff]  ;;  %v4504_v19 = vpop.f32.mrf.mxu1  ;;  %8526 = vmatpush2.bf16.msra.mxu0 %v12075_v58  ;;  %v4393_v1 = vpop.f32.mrf.mxu0  ;;  %v12195_v41 = vcombine.low %v5575_v8, %v5579_v52 }
 0x261   : > { %5068 = vmatmul.mubr.bf16.gmra.mxu0 %v13173_v55  ;;  %v5823_v13 = vld [vmem:[%s18545_s3 + $0xdc0] sm:$0xff]  ;;  %18721 = vst [vmem:[#allocation41_spill] sm:$0xff] %v14443_v0  ;;  %v12316_v55 = vcombine.high %v5695_v42, %v5699_v38  ;;  %v14448_v22 = vadd.f32 %v4504_v19, %v4392_v3  ;;  %v4394_v37 = vadd.f32 %v4393_v1, %v14134_v4 }
 0x262   : > { %v5827_v54 = vld [vmem:[%s18545_s3 + $0xde0] sm:$0xff]  ;;  %8529 = vmatprep.mubr.bf16.mxu0 %v13604_v7  ;;  %8639 = vmatpush2.bf16.msra.mxu1 %v12203_v63  ;;  %v4506_v17 = vpop.f32.mrf.mxu1  ;;  %v4395_v0 = vpop.f32.mrf.mxu0  ;;  %v12315_v3 = vcombine.low %v5695_v42, %v5699_v38 }
 0x263   : > { %v13174_v56 = vld [vmem:[%s13299_s16 + $0x1a0] ss:$28 sps:$4 sm:$0xff]   ;;  %8527 = vmatprep.subr.bf16.mxu0 %v12068_v51  ;;  %v12444_v39 = vcombine.high %v5823_v13, %v5827_v54  ;;  %8640 = vmatprep.subr.bf16.mxu1 %v12196_v49  ;;  %v14458_v58 = vadd.f32 %v4506_v17, %v4394_v37  ;;  %v4396_v8 = vadd.f32 %v4395_v0, %v14110_v16  ;;  %s18430_s16 = scalar_lea.vmem %s18549_s7, %s11498_s15 }
 0x264   : > { %5181 = vmatmul.mubr.bf16.gmra.mxu1 %v13174_v56  ;;  %v5687_v11 = vld [vmem:[%s18545_s3 + $0x980] sm:$0xff]  ;;  %v4508_v52 = vpop.f32.mrf.mxu1  ;;  %8528 = vmatpush2.bf16.msra.mxu0 %v12067_v32  ;;  %v4397_v49 = vpop.f32.mrf.mxu0  ;;  %v12443_v0 = vcombine.low %v5823_v13, %v5827_v54 }
 0x265   : > { %8642 = vmatprep.mubr.bf16.mxu1 %v13953_v25  ;;  %v5691_v46 = vld [vmem:[%s18545_s3 + $0x9a0] sm:$0xff]  ;;  %8723 = vmatprep.subr.bf16.mxu0 %v12316_v55  ;;  %v14467_v19 = vadd.f32 %v4508_v52, %v4396_v8  ;;  %v4398_v56 = vadd.f32 %v4397_v49, %v14134_v4 }
 0x266   : > { %v5815_v63 = vld [vmem:[%s18545_s3 + $0xd80] sm:$0xff]  ;;  %8641 = vmatpush2.bf16.msra.mxu1 %v12195_v41  ;;  %v4510_v1 = vpop.f32.mrf.mxu1  ;;  %v12308_v16 = vcombine.high %v5687_v11, %v5691_v46  ;;  %v4547_v32 = vpop.f32.mrf.mxu0 }
 0x267   : > { %v5819_v51 = vld [vmem:[%s18545_s3 + $0xda0] sm:$0xff]  ;;  %8836 = vmatprep.subr.bf16.mxu1 %v12444_v39  ;;  %v14477_v41 = vadd.f32 %v4510_v1, %v4398_v56  ;;  %v4548_v4 = vadd.f32 %v4547_v32, %v14161_v33  ;;  %v12307_v39 = vcombine.low %v5687_v11, %v5691_v46 }
 0x268   : > { %v5679_v37 = vld [vmem:[%s18545_s3 + $0x940] sm:$0xff]  ;;  %v12436_v38 = vcombine.high %v5815_v63, %v5819_v51  ;;  %v4660_v55 = vpop.f32.mrf.mxu1  ;;  %v4549_v17 = vpop.f32.mrf.mxu0  ;;  %v12435_v1 = vcombine.low %v5815_v63, %v5819_v51 }
 0x269   : > { %8530 = vmatmul.mubr.bf16.vlgmr.msra.gmra.mxu0 %v13596_v14  ;;  %v5683_v42 = vld [vmem:[%s18545_s3 + $0x960] sm:$0xff]  ;;  %v4550_v33 = vadd.f32 %v4549_v17, %v14180_v20 }
 0x26a   : > { %8539 = vmatprep.mubr.bf16.mxu0 %v13646_v24  ;;  %v5807_v13 = vld [vmem:[%s18545_s3 + $0xd40] sm:$0xff]  ;;  %8724 = vmatpush1.bf16.msra.mxu0 %v12315_v3  ;;  %v4662_v8 = vpop.f32.mrf.mxu1  ;;  %v12300_v52 = vcombine.high %v5679_v37, %v5683_v42  ;;  %v4551_v32 = vpop.f32.mrf.mxu0  ;;  %v12299_v63 = vcombine.low %v5679_v37, %v5683_v42 }
 0x26b   : > { %v5811_v54 = vld [vmem:[%s18545_s3 + $0xd60] sm:$0xff]  ;;  %8725 = vmatprep.subr.bf16.mxu0 %v12308_v16  ;;  %v4552_v11 = vadd.f32 %v4551_v32, %v14187_v18  ;;  %v4663_v17 = vadd.f32 %v4662_v8, %v4550_v33  ;;  %v18722_v8 = vld [vmem:[#allocation10_spill] sm:$0xff] }
 0x26c   : > { %8643 = vmatmul.mubr.bf16.vlgmr.msra.gmra.mxu1 %v13945_v45  ;;  %v5671_v49 = vld [vmem:[%s18545_s3 + $0x900] sm:$0xff]  ;;  %v12428_v3 = vcombine.high %v5807_v13, %v5811_v54  ;;  %v4664_v20 = vpop.f32.mrf.mxu1 }
 0x26d   : > { %8652 = vmatprep.mubr.bf16.mxu1 %v13995_v12  ;;  %v5675_v56 = vld [vmem:[%s18545_s3 + $0x920] sm:$0xff]  ;;  %8837 = vmatpush1.bf16.msra.mxu1 %v12443_v0  ;;  %v4661_v12 = vadd.f32 %v4660_v55, %v4548_v4  ;;  %v4553_v0 = vpop.f32.mrf.mxu0  ;;  %v4665_v4 = vadd.f32 %v4664_v20, %v4552_v11  ;;  %v5196_v20 = vmax.f32 %v4663_v17, 0.0 }
 0x26e   : > { %8838 = vmatprep.subr.bf16.mxu1 %v12436_v38  ;;  %v14500_v46 = vld [vmem:[%s18545_s3 + $0xd00] sm:$0xff]  ;;  %8726 = vmatpush1.bf16.msra.mxu0 %v12307_v39  ;;  %v12292_v51 = vcombine.high %v5671_v49, %v5675_v56  ;;  %v12427_v38 = vcombine.low %v5807_v13, %v5811_v54  ;;  %v4554_v18 = vadd.f32 %v4553_v0, %v14203_v5  ;;  %v4666_v55 = vpop.f32.mrf.mxu1 }
 0x26f   : > { %v14505_v16 = vld [vmem:[%s18545_s3 + $0xd20] sm:$0xff]  ;;  %8727 = vmatprep.subr.bf16.mxu0 %v12300_v52  ;;  %v4557_v37 = vpop.f32.mrf.mxu0  ;;  %v5195_v42 = vmax.f32 %v4661_v12, 0.0  ;;  %v5203_v13 = vmax.f32 %v4665_v4, 0.0 }
 0x270   : > { %v14511_v32 = vld [vmem:[%s18545_s3 + $0x8c0] sm:$0xff]  ;;  %v12420_v5 = vcombine.high %v14500_v46, %v14505_v16  ;;  %v4667_v54 = vadd.f32 %v4666_v55, %v4554_v18  ;;  %v4558_v39 = vadd.f32 %v4557_v37, %v14207_v53  ;;  %v4670_v33 = vpop.f32.mrf.mxu1  ;;  %v12291_v53 = vcombine.low %v5671_v49, %v5675_v56 }
 0x271   : > { %v14516_v45 = vld [vmem:[%s18545_s3 + $0x8e0] sm:$0xff]  ;;  %8839 = vmatpush1.bf16.msra.mxu1 %v12435_v1  ;;  %8540 = vmatmul.mubr.bf16.gmra.mxu0 %v13636_v50  ;;  %v4559_v12 = vpop.f32.mrf.mxu0  ;;  %v12419_v11 = vcombine.low %v14500_v46, %v14505_v16  ;;  %v14539_v0 = vpack.c.bf16 %v5203_v13, %v5195_v42 }
 0x272   : > { %8840 = vmatprep.subr.bf16.mxu1 %v12428_v3  ;;  %8549 = vmatprep.mubr.bf16.mxu0 %v18722_v8  ;;  %v14527_v52 = vld [vmem:[%s18545_s3 + $0xcc0] sm:$0xff]  ;;  %v12284_v3 = vcombine.high %v14511_v32, %v14516_v45  ;;  %v5204_v4 = vmax.f32 %v4667_v54, 0.0  ;;  %v4560_v18 = vadd.f32 %v4559_v12, %v14224_v31  ;;  %v4672_v55 = vpop.f32.mrf.mxu1  ;;  %v4671_v56 = vadd.f32 %v4670_v33, %v4558_v39 }
 0x273   : > { %v14532_v1 = vld [vmem:[%s18545_s3 + $0xce0] sm:$0xff]  ;;  %8728 = vmatpush1.bf16.msra.mxu0 %v12299_v63  ;;  %18723 = vst [vmem:[#allocation10_spill] sm:$0xff] %v14539_v0  ;;  %v4561_v46 = vpop.f32.mrf.mxu0  ;;  %v12283_v42 = vcombine.low %v14511_v32, %v14516_v45  ;;  %v14587_v32 = vld [vmem:[%s18545_s3 + $0x5c8] sm:$0xff] }
 0x274   : > { %8653 = vmatmul.mubr.bf16.gmra.mxu1 %v13985_v2  ;;  %8729 = vmatprep.subr.bf16.mxu0 %v12292_v51  ;;  %v14545_v63 = vld [vmem:[%s18545_s3 + $0x880] sm:$0xff]  ;;  %v12412_v16 = vcombine.high %v14527_v52, %v14532_v1  ;;  %v14554_v31 = vpack.c.bf16 %v5204_v4, %v5196_v20  ;;  %v4562_v51 = vadd.f32 %v4561_v46, %v14227_v35  ;;  %v4674_v17 = vpop.f32.mrf.mxu1  ;;  %v18726_v46 = vld [vmem:[#allocation12_spill] sm:$0xff] }
 0x275   : > { %8662 = vmatprep.mubr.bf16.mxu1 %v14033_v9  ;;  %v14550_v49 = vld [vmem:[%s18545_s3 + $0x8a0] sm:$0xff]  ;;  %8841 = vmatpush1.bf16.msra.mxu1 %v12427_v38  ;;  %v12411_v54 = vcombine.low %v14527_v52, %v14532_v1  ;;  %v4673_v39 = vadd.f32 %v4672_v55, %v4560_v18  ;;  %v14592_v52 = vld [vmem:[%s18545_s3 + $0x5e8] sm:$0xff]  ;;  %v5211_v1 = vmax.f32 %v4671_v56, 0.0 }
 0x276   : > { %8842 = vmatprep.subr.bf16.mxu1 %v12420_v5  ;;  %18724 = vst [vmem:[#allocation42_spill] sm:$0xff] %v14554_v31  ;;  %v14560_v37 = vld [vmem:[%s18545_s3 + $0xc80] sm:$0xff]  ;;  %v4563_v5 = vpop.f32.mrf.mxu0  ;;  %v12276_v13 = vcombine.high %v14545_v63, %v14550_v49  ;;  %v4675_v33 = vadd.f32 %v4674_v17, %v4562_v51  ;;  %v12275_v17 = vcombine.low %v14545_v63, %v14550_v49 }
 0x277   : > { %v14565_v38 = vld [vmem:[%s18545_s3 + $0xca0] sm:$0xff]  ;;  %8730 = vmatpush1.bf16.msra.mxu0 %v12291_v53  ;;  %v4564_v12 = vadd.f32 %v4563_v5, %v14243_v44  ;;  %v4676_v53 = vpop.f32.mrf.mxu1 }
 0x278   : > { %v14574_v35 = vld [vmem:[%s18545_s3 + $0x840] sm:$0xff]  ;;  %8731 = vmatprep.subr.bf16.mxu0 %v12284_v3  ;;  %v4567_v44 = vpop.f32.mrf.mxu0  ;;  %v12404_v3 = vcombine.high %v14560_v37, %v14565_v38  ;;  %v5219_v4 = vmax.f32 %v4675_v33, 0.0  ;;  %v12403_v33 = vcombine.low %v14560_v37, %v14565_v38 }
 0x279   : > { %v14582_v45 = vld [vmem:[%s18545_s3 + $0x860] sm:$0xff]  ;;  %8843 = vmatpush1.bf16.msra.mxu1 %v12419_v11  ;;  %v4677_v11 = vadd.f32 %v4676_v53, %v4564_v12  ;;  %v4568_v18 = vadd.f32 %v4567_v44, %v14247_v15  ;;  %v4680_v55 = vpop.f32.mrf.mxu1  ;;  %v5212_v12 = vmax.f32 %v4673_v39, 0.0 }
 0x27a   : > { %v18725_v20 = vld [vmem:[#allocation9_spill] sm:$0xff]  ;;  %8844 = vmatprep.subr.bf16.mxu1 %v12412_v16  ;;  %v4569_v15 = vpop.f32.mrf.mxu0  ;;  %v12268_v5 = vcombine.high %v14574_v35, %v14582_v45  ;;  %v14619_v53 = vpack.c.bf16 %v5219_v4, %v5211_v1  ;;  %v12267_v4 = vcombine.low %v14574_v35, %v14582_v45  ;;  %v18729_v45 = vld [vmem:[#allocation11_spill] sm:$0xff] }
 0x27b   : > { %8550 = vmatmul.mubr.bf16.gmra.mxu0 %v18725_v20  ;;  %v14603_v56 = vld [vmem:[%s18545_s3 + $0xc40] sm:$0xff]  ;;  %v5220_v44 = vmax.f32 %v4677_v11, 0.0  ;;  %v4682_v51 = vpop.f32.mrf.mxu1  ;;  %v4681_v39 = vadd.f32 %v4680_v55, %v4568_v18 }
 0x27c   : > { %8663 = vmatmul.mubr.bf16.gmra.mxu1 %v14027_v21  ;;  %8559 = vmatprep.mubr.bf16.mxu0 %v18726_v46  ;;  %v14608_v16 = vld [vmem:[%s18545_s3 + $0xc60] sm:$0xff]  ;;  %18727 = vst [vmem:[#allocation43_spill] sm:$0xff] %v14619_v53  ;;  %v4570_v21 = vadd.f32 %v4569_v15, %v14264_v62  ;;  %v4571_v49 = vpop.f32.mrf.mxu0 }
 0x27d   : > { %8672 = vmatprep.mubr.bf16.mxu1 %v14047_v48  ;;  %8732 = vmatpush1.bf16.msra.mxu0 %v12283_v42  ;;  %v5639_v42 = vld [vmem:[%s18545_s3 + $0x800] sm:$0xff]  ;;  %v12396_v37 = vcombine.high %v14603_v56, %v14608_v16  ;;  %v14630_v38 = vpack.c.bf16 %v5220_v44, %v5212_v12  ;;  %v4572_v62 = vadd.f32 %v4571_v49, %v14267_v40  ;;  %v18730_v49 = vld [vmem:[#allocation14_spill] sm:$0xff] }
 0x27e   : > { %8733 = vmatprep.subr.bf16.mxu0 %v12276_v13  ;;  %v5643_v63 = vld [vmem:[%s18545_s3 + $0x820] sm:$0xff]  ;;  %8845 = vmatpush1.bf16.msra.mxu1 %v12411_v54  ;;  %v4684_v13 = vpop.f32.mrf.mxu1  ;;  %v12395_v40 = vcombine.low %v14603_v56, %v14608_v16  ;;  %v4683_v18 = vadd.f32 %v4682_v51, %v4570_v21 }
 0x27f   : > { %8846 = vmatprep.subr.bf16.mxu1 %v12404_v3  ;;  %18728 = vst [vmem:[#allocation44_spill] sm:$0xff] %v14630_v38  ;;  %v14636_v1 = vld [vmem:[%s18545_s3 + $0xc00] sm:$0xff]  ;;  %v4573_v3 = vpop.f32.mrf.mxu0  ;;  %v12260_v11 = vcombine.high %v5639_v42, %v5643_v63  ;;  %v4685_v55 = vadd.f32 %v4684_v13, %v4572_v62 }
 0x280   : > { %v14641_v54 = vld [vmem:[%s18545_s3 + $0xc20] sm:$0xff]  ;;  %v4574_v15 = vadd.f32 %v4573_v3, %v14283_v26  ;;  %v4686_v12 = vpop.f32.mrf.mxu1  ;;  %v5227_v26 = vmax.f32 %v4681_v39, 0.0  ;;  %v5228_v3 = vmax.f32 %v4683_v18, 0.0 }
 0x281   : > { %8734 = vmatpush1.bf16.msra.mxu0 %v12275_v17  ;;  %v14651_v44 = vld [vmem:[%s18545_s3 + $0xbc0] sm:$0xff]  ;;  %v4577_v35 = vpop.f32.mrf.mxu0  ;;  %v12388_v21 = vcombine.high %v14636_v1, %v14641_v54  ;;  %v5235_v56 = vmax.f32 %v4685_v55, 0.0  ;;  %v12387_v13 = vcombine.low %v14636_v1, %v14641_v54 }
 0x282   : > { %8735 = vmatprep.subr.bf16.mxu0 %v12268_v5  ;;  %v14656_v17 = vld [vmem:[%s18545_s3 + $0xbe0] sm:$0xff]  ;;  %8847 = vmatpush1.bf16.msra.mxu1 %v12403_v33  ;;  %v4687_v16 = vadd.f32 %v4686_v12, %v4574_v15  ;;  %v4578_v51 = vadd.f32 %v4577_v35, %v14287_v23  ;;  %v4690_v5 = vpop.f32.mrf.mxu1  ;;  %v12259_v23 = vcombine.low %v5639_v42, %v5643_v63 }
 0x283   : > { %8560 = vmatmul.mubr.bf16.gmra.mxu0 %v18729_v45  ;;  %8848 = vmatprep.subr.bf16.mxu1 %v12396_v37  ;;  %v14667_v33 = vld [vmem:[%s18545_s3 + $0xfc0] sm:$0xff]  ;;  %v4579_v39 = vpop.f32.mrf.mxu0  ;;  %v12380_v62 = vcombine.high %v14651_v44, %v14656_v17  ;;  %v14679_v55 = vpack.c.bf16 %v5235_v56, %v5227_v26  ;;  %v12379_v56 = vcombine.low %v14651_v44, %v14656_v17 }
 0x284   : > { %8673 = vmatmul.mubr.bf16.gmra.mxu1 %v14043_v61  ;;  %8569 = vmatprep.mubr.bf16.mxu0 %v18730_v49  ;;  %v14672_v37 = vld [vmem:[%s18545_s3 + $0xfe0] sm:$0xff]  ;;  %v5236_v15 = vmax.f32 %v4687_v16, 0.0  ;;  %v4580_v12 = vadd.f32 %v4579_v39, %v14304_v27  ;;  %v4692_v35 = vpop.f32.mrf.mxu1  ;;  %v4691_v18 = vadd.f32 %v4690_v5, %v4578_v51 }
 0x285   : > { %8682 = vmatprep.mubr.bf16.mxu1 %v14059_v57  ;;  %8736 = vmatpush1.bf16.msra.mxu0 %v12267_v4  ;;  %18731 = vst [vmem:[#allocation45_spill] sm:$0xff] %v14679_v55  ;;  %v5751_v4 = vld [vmem:[%s18545_s3 + $0xb80] sm:$0xff]  ;;  %v4581_v63 = vpop.f32.mrf.mxu0  ;;  %v12508_v1 = vcombine.high %v14667_v33, %v14672_v37 }
 0x286   : > { %8737 = vmatprep.subr.bf16.mxu0 %v12260_v11  ;;  %v5755_v42 = vld [vmem:[%s18545_s3 + $0xba0] sm:$0xff]  ;;  %8849 = vmatpush1.bf16.msra.mxu1 %v12395_v40  ;;  %v14690_v54 = vpack.c.bf16 %v5236_v15, %v5228_v3  ;;  %v4582_v27 = vadd.f32 %v4581_v63, %v14307_v28  ;;  %v4694_v11 = vpop.f32.mrf.mxu1  ;;  %v12507_v28 = vcombine.low %v14667_v33, %v14672_v37  ;;  %v5243_v33 = vmax.f32 %v4691_v18, 0.0  ;;  %v18734_v63 = vld [vmem:[#allocation16_spill] sm:$0xff] }
 0x287   : > { %8850 = vmatprep.subr.bf16.mxu1 %v12388_v21  ;;  %v14696_v26 = vld [vmem:[%s18545_s3 + $0xf80] sm:$0xff]  ;;  %v4583_v21 = vpop.f32.mrf.mxu0  ;;  %v12372_v16 = vcombine.high %v5751_v4, %v5755_v42  ;;  %v4693_v51 = vadd.f32 %v4692_v35, %v4580_v12 }
 0x288   : > { %18732 = vst [vmem:[#allocation46_spill] sm:$0xff] %v14690_v54  ;;  %v14701_v40 = vld [vmem:[%s18545_s3 + $0xfa0] sm:$0xff]  ;;  %v4695_v5 = vadd.f32 %v4694_v11, %v4582_v27  ;;  %v4584_v39 = vadd.f32 %v4583_v21, %v14323_v43  ;;  %v4696_v3 = vpop.f32.mrf.mxu1 }
 0x289   : > { %8738 = vmatpush1.bf16.msra.mxu0 %v12259_v23  ;;  %v14711_v15 = vld [vmem:[%s18545_s3 + $0xb40] sm:$0xff]  ;;  %v4587_v44 = vpop.f32.mrf.mxu0  ;;  %v12500_v43 = vcombine.high %v14696_v26, %v14701_v40  ;;  %v12499_v11 = vcombine.low %v14696_v26, %v14701_v40  ;;  %v5244_v21 = vmax.f32 %v4693_v51, 0.0 }
 0x28a   : > { %8739 = vmatprep.subr.bf16.mxu0 %v12380_v62  ;;  %v14716_v23 = vld [vmem:[%s18545_s3 + $0xb60] sm:$0xff]  ;;  %8851 = vmatpush1.bf16.msra.mxu1 %v12387_v13  ;;  %v5251_v37 = vmax.f32 %v4695_v5, 0.0  ;;  %v4697_v62 = vadd.f32 %v4696_v3, %v4584_v39  ;;  %v4588_v12 = vadd.f32 %v4587_v44, %v14327_v30  ;;  %v4700_v35 = vpop.f32.mrf.mxu1  ;;  %v12371_v30 = vcombine.low %v5751_v4, %v5755_v42 }
 0x28b   : > { %v18733_v17 = vld [vmem:[#allocation13_spill] sm:$0xff]  ;;  %8852 = vmatprep.subr.bf16.mxu1 %v12508_v1  ;;  %v4589_v18 = vpop.f32.mrf.mxu0  ;;  %v12364_v27 = vcombine.high %v14711_v15, %v14716_v23 }
 0x28c   : > { %8570 = vmatmul.mubr.bf16.gmra.mxu0 %v18733_v17  ;;  %8683 = vmatmul.mubr.bf16.gmra.mxu1 %v14055_v59  ;;  %v14727_v13 = vld [vmem:[%s18545_s3 + $0xf40] sm:$0xff]  ;;  %v14739_v5 = vpack.c.bf16 %v5251_v37, %v5243_v33  ;;  %v5252_v39 = vmax.f32 %v4697_v62, 0.0  ;;  %v4590_v3 = vadd.f32 %v4589_v18, %v14344_v36  ;;  %v4702_v44 = vpop.f32.mrf.mxu1  ;;  %v4701_v51 = vadd.f32 %v4700_v35, %v4588_v12 }
 0x28d   : > { %8579 = vmatprep.mubr.bf16.mxu0 %v18734_v63  ;;  %v14732_v1 = vld [vmem:[%s18545_s3 + $0xf60] sm:$0xff]  ;;  %8692 = vmatprep.mubr.bf16.mxu1 %v14071_v6  ;;  %v4591_v42 = vpop.f32.mrf.mxu0  ;;  %v12363_v37 = vcombine.low %v14711_v15, %v14716_v23  ;;  %v18737_v23 = vld [vmem:[#allocation15_spill] sm:$0xff]  ;;  %v18743_v6 = vld [vmem:[#allocation38_spill] sm:$0xff] }
 0x28e   : > { %8740 = vmatpush2.bf16.msra.mxu0 %v12379_v56  ;;  %18735 = vst [vmem:[#allocation47_spill] sm:$0xff] %v14739_v5  ;;  %v5735_v56 = vld [vmem:[%s18545_s3 + $0xb00] sm:$0xff]  ;;  %8853 = vmatpush2.bf16.msra.mxu1 %v12507_v28  ;;  %v12492_v26 = vcombine.high %v14727_v13, %v14732_v1  ;;  %v14750_v40 = vpack.c.bf16 %v5252_v39, %v5244_v21 }
 0x28f   : > { %8741 = vmatprep.subr.bf16.mxu0 %v12372_v16  ;;  %v5739_v4 = vld [vmem:[%s18545_s3 + $0xb20] sm:$0xff]  ;;  %8854 = vmatprep.subr.bf16.mxu1 %v12500_v43  ;;  %v4592_v36 = vadd.f32 %v4591_v42, %v14347_v47  ;;  %v4704_v16 = vpop.f32.mrf.mxu1  ;;  %v4593_v43 = vpop.f32.mrf.mxu0  ;;  %v12491_v47 = vcombine.low %v14727_v13, %v14732_v1  ;;  %v4703_v12 = vadd.f32 %v4702_v44, %v4590_v3  ;;  %v5259_v13 = vmax.f32 %v4701_v51, 0.0  ;;  %v18741_v51 = vld [vmem:[#allocation34_spill] sm:$0xff] }
 0x290   : > { %18736 = vst [vmem:[#allocation48_spill] sm:$0xff] %v14750_v40  ;;  %v14756_v33 = vld [vmem:[%s18545_s3 + $0xf00] sm:$0xff]  ;;  %v12356_v62 = vcombine.high %v5735_v56, %v5739_v4  ;;  %v4594_v18 = vadd.f32 %v4593_v43, %v14363_v29 }
 0x291   : > { %v14761_v28 = vld [vmem:[%s18545_s3 + $0xf20] sm:$0xff]  ;;  %v4705_v35 = vadd.f32 %v4704_v16, %v4592_v36  ;;  %v4706_v21 = vpop.f32.mrf.mxu1  ;;  %v4597_v15 = vpop.f32.mrf.mxu0  ;;  %v18739_v36 = vld [vmem:[#allocation31_spill] sm:$0xff]  ;;  %v18740_v16 = vld [vmem:[#allocation18_spill] sm:$0xff] }
 0x292   : > { %8742 = vmatpush2.bf16.msra.mxu0 %v12371_v30  ;;  %v14771_v39 = vld [vmem:[%s18545_s3 + $0xac0] sm:$0xff]  ;;  %8855 = vmatpush2.bf16.msra.mxu1 %v12499_v11  ;;  %v12484_v29 = vcombine.high %v14756_v33, %v14761_v28 }
 0x293   : > { %8743 = vmatprep.subr.bf16.mxu0 %v12364_v27  ;;  %v14776_v30 = vld [vmem:[%s18545_s3 + $0xae0] sm:$0xff]  ;;  %8856 = vmatprep.subr.bf16.mxu1 %v12492_v26  ;;  %v5267_v1 = vmax.f32 %v4705_v35, 0.0  ;;  %v4707_v27 = vadd.f32 %v4706_v21, %v4594_v18  ;;  %v4710_v42 = vpop.f32.mrf.mxu1  ;;  %v4599_v43 = vpop.f32.mrf.mxu0  ;;  %v12355_v35 = vcombine.low %v5735_v56, %v5739_v4  ;;  %v12483_v21 = vcombine.low %v14756_v33, %v14761_v28 }
 0x294   : > { %8580 = vmatmul.mubr.bf16.gmra.mxu0 %v18737_v23  ;;  %v18738_v3 = vld [vmem:[#allocation37_spill] sm:$0xff]  ;;  %8693 = vmatmul.mubr.bf16.gmra.mxu1 %v18739_v36  ;;  %v12348_v18 = vcombine.high %v14771_v39, %v14776_v30  ;;  %v4600_v59 = vadd.f32 %v4599_v43, %v18743_v6  ;;  %v18745_v6 = vld [vmem:[#allocation39_spill] sm:$0xff] }
 0x295   : > { %v4598_v44 = vadd.f32 %v4597_v15, %v18738_v3  ;;  %8589 = vmatprep.mubr.bf16.mxu0 %v18740_v16  ;;  %v14787_v11 = vld [vmem:[%s18545_s3 + $0xec0] sm:$0xff]  ;;  %8702 = vmatprep.mubr.bf16.mxu1 %v18741_v51  ;;  %v5260_v15 = vmax.f32 %v4703_v12, 0.0  ;;  %v14799_v3 = vpack.c.bf16 %v5267_v1, %v5259_v13  ;;  %v5268_v36 = vmax.f32 %v4707_v27, 0.0  ;;  %v4712_v57 = vpop.f32.mrf.mxu1  ;;  %v4601_v4 = vpop.f32.mrf.mxu0 }
 0x296   : > { %v14792_v26 = vld [vmem:[%s18545_s3 + $0xee0] sm:$0xff]  ;;  %8744 = vmatpush2.bf16.msra.mxu0 %v12363_v37  ;;  %8857 = vmatpush2.bf16.msra.mxu1 %v12491_v47  ;;  %v4602_v13 = vadd.f32 %v4601_v4, %v18745_v6  ;;  %v12347_v27 = vcombine.low %v14771_v39, %v14776_v30 }
 0x297   : > { %18742 = vst [vmem:[#allocation37_spill] sm:$0xff] %v14799_v3  ;;  %8745 = vmatprep.subr.bf16.mxu0 %v12356_v62  ;;  %v5719_v37 = vld [vmem:[%s18545_s3 + $0xa80] sm:$0xff]  ;;  %8858 = vmatprep.subr.bf16.mxu1 %v12484_v29  ;;  %v12476_v33 = vcombine.high %v14787_v11, %v14792_v26  ;;  %v14810_v28 = vpack.c.bf16 %v5268_v36, %v5260_v15  ;;  %v4714_v62 = vpop.f32.mrf.mxu1  ;;  %v4603_v29 = vpop.f32.mrf.mxu0 }
 0x298   : > { %v5723_v56 = vld [vmem:[%s18545_s3 + $0xaa0] sm:$0xff]  ;;  %v4711_v12 = vadd.f32 %v4710_v42, %v4598_v44  ;;  %v12475_v44 = vcombine.low %v14787_v11, %v14792_v26  ;;  %v4713_v42 = vadd.f32 %v4712_v57, %v4600_v59  ;;  %v4715_v43 = vadd.f32 %v4714_v62, %v4602_v13  ;;  %v18748_v62 = vld [vmem:[#allocation20_spill] sm:$0xff] }
 0x299   : > { %18744 = vst [vmem:[#allocation38_spill] sm:$0xff] %v14810_v28  ;;  %v14816_v1 = vld [vmem:[%s18545_s3 + $0xe80] sm:$0xff]  ;;  %v12340_v36 = vcombine.high %v5719_v37, %v5723_v56  ;;  %v4604_v15 = vadd.f32 %v4603_v29, %v14403_v60  ;;  %v4716_v4 = vpop.f32.mrf.mxu1  ;;  %v4607_v39 = vpop.f32.mrf.mxu0  ;;  %v18749_v29 = vld [vmem:[#allocation36_spill] sm:$0xff] }
 0x29a   : > { %v14821_v47 = vld [vmem:[%s18545_s3 + $0xea0] sm:$0xff]  ;;  %8746 = vmatpush2.bf16.msra.mxu0 %v12355_v35  ;;  %8859 = vmatpush2.bf16.msra.mxu1 %v12483_v21  ;;  %v5275_v57 = vmax.f32 %v4711_v12, 0.0  ;;  %v5283_v60 = vmax.f32 %v4715_v43, 0.0  ;;  %v4608_v26 = vadd.f32 %v4607_v39, %v14407_v34  ;;  %v12339_v43 = vcombine.low %v5719_v37, %v5723_v56 }
 0x29b   : > { %8747 = vmatprep.subr.bf16.mxu0 %v12348_v18  ;;  %v14831_v6 = vld [vmem:[%s18545_s3 + $0xa40] sm:$0xff]  ;;  %8860 = vmatprep.subr.bf16.mxu1 %v12476_v33  ;;  %v12468_v59 = vcombine.high %v14816_v1, %v14821_v47  ;;  %v4717_v11 = vadd.f32 %v4716_v4, %v4604_v15  ;;  %v4720_v18 = vpop.f32.mrf.mxu1  ;;  %v4609_v12 = vpop.f32.mrf.mxu0  ;;  %v12467_v15 = vcombine.low %v14816_v1, %v14821_v47  ;;  %v5276_v4 = vmax.f32 %v4713_v42, 0.0 }
 0x29c   : > { %v14836_v35 = vld [vmem:[%s18545_s3 + $0xa60] sm:$0xff]  ;;  %v14857_v39 = vpack.c.bf16 %v5283_v60, %v5275_v57  ;;  %v4610_v51 = vadd.f32 %v4609_v12, %v14418_v10  ;;  %v4721_v42 = vadd.f32 %v4720_v18, %v4608_v26  ;;  %v18752_v57 = vld [vmem:[#allocation40_spill] sm:$0xff] }
 0x29d   : > { %v18746_v30 = vld [vmem:[#allocation17_spill] sm:$0xff]  ;;  %v12332_v34 = vcombine.high %v14831_v6, %v14836_v35  ;;  %v4722_v61 = vpop.f32.mrf.mxu1  ;;  %v4611_v56 = vpop.f32.mrf.mxu0 }
 0x29e   : > { %8590 = vmatmul.mubr.bf16.gmra.mxu0 %v18746_v30  ;;  %v18747_v13 = vld [vmem:[#allocation33_spill] sm:$0xff]  ;;  %18750 = vst [vmem:[#allocation39_spill] sm:$0xff] %v14857_v39  ;;  %8861 = vmatpush2.bf16.msra.mxu1 %v12475_v44  ;;  %v4612_v10 = vadd.f32 %v4611_v56, %v18752_v57  ;;  %v4723_v18 = vadd.f32 %v4722_v61, %v4610_v51  ;;  %v5291_v51 = vmax.f32 %v4721_v42, 0.0 }
 0x29f   : > { %8703 = vmatmul.mubr.bf16.gmra.mxu1 %v18747_v13  ;;  %8599 = vmatprep.mubr.bf16.mxu0 %v18748_v62  ;;  %v14847_v21 = vld [vmem:[%s18545_s3 + $0xe40] sm:$0xff]  ;;  %v5284_v13 = vmax.f32 %v4717_v11, 0.0  ;;  %v4724_v60 = vpop.f32.mrf.mxu1  ;;  %v4613_v44 = vpop.f32.mrf.mxu0 }
 0x2a0   : > { %v5843_v33 = vld [vmem:[%s18545_s3 + $0xe60] sm:$0xff]  ;;  %8712 = vmatprep.mubr.bf16.mxu1 %v18749_v29  ;;  %8748 = vmatpush2.bf16.msra.mxu0 %v12347_v27  ;;  %v4725_v12 = vadd.f32 %v4724_v60, %v4612_v10  ;;  %v5440_v29 = vld [vmem:[%s18545_s3 + $0x1c8] sm:$0xff] }
 0x2a1   : > { %8749 = vmatprep.subr.bf16.mxu0 %v12340_v36  ;;  %v5703_v27 = vld [vmem:[%s18545_s3 + $0xa00] sm:$0xff]  ;;  %8862 = vmatprep.subr.bf16.mxu1 %v12468_v59  ;;  %v12460_v1 = vcombine.high %v14847_v21, %v5843_v33  ;;  %v14867_v47 = vpack.c.bf16 %v5284_v13, %v5276_v4  ;;  %v12331_v59 = vcombine.low %v14831_v6, %v14836_v35  ;;  %v4726_v57 = vpop.f32.mrf.mxu1  ;;  %v4617_v48 = vpop.f32.mrf.mxu0  ;;  %v18754_v6 = vld [vmem:[#allocation19_spill] sm:$0xff] }
 0x2a2   : > { %v5707_v37 = vld [vmem:[%s18545_s3 + $0xa20] sm:$0xff]  ;;  %v12459_v26 = vcombine.low %v14847_v21, %v5843_v33  ;;  %8863 = vmatpush2.bf16.msra.mxu1 %v12467_v15  ;;  %v5299_v33 = vmax.f32 %v4725_v12, 0.0  ;;  %v4618_v10 = vadd.f32 %v4617_v48, %v14448_v22  ;;  %v5292_v21 = vmax.f32 %v4723_v18, 0.0 }
 0x2a3   : > { %18751 = vst [vmem:[#allocation49_spill] sm:$0xff] %v14867_v47  ;;  %v14873_v36 = vld [vmem:[%s18545_s3 + $0xe00] sm:$0xff]  ;;  %v12324_v13 = vcombine.high %v5703_v27, %v5707_v37  ;;  %8864 = vmatprep.subr.bf16.mxu1 %v12460_v1  ;;  %v4730_v60 = vpop.f32.mrf.mxu1  ;;  %v4619_v15 = vpop.f32.mrf.mxu0 }
 0x2a4   : > { %v5835_v11 = vld [vmem:[%s18545_s3 + $0xe20] sm:$0xff]  ;;  %8750 = vmatpush2.bf16.msra.mxu0 %v12339_v43  ;;  %v5444_v43 = vld [vmem:[%s18545_s3 + $0x1e8] sm:$0xff]  ;;  %v14896_v25 = vpack.c.bf16 %v5299_v33, %v5291_v51  ;;  %v4620_v12 = vadd.f32 %v4619_v15, %v14458_v58 }
 0x2a5   : > { %v18753_v4 = vld [vmem:[#allocation41_spill] sm:$0xff]  ;;  %8751 = vmatprep.subr.bf16.mxu0 %v12332_v34  ;;  %v12452_v61 = vcombine.high %v14873_v36, %v5835_v11  ;;  %v12062_v9 = vcombine.high %v5440_v29, %v5444_v43  ;;  %v12451_v1 = vcombine.low %v14873_v36, %v5835_v11  ;;  %v4732_v48 = vpop.f32.mrf.mxu1  ;;  %v4621_v22 = vpop.f32.mrf.mxu0  ;;  %v4731_v11 = vadd.f32 %v4730_v60, %v4618_v10  ;;  %v5424_v60 = vld [vmem:[%s18545_s3 + $0x148] sm:$0xff] }
 0x2a6   : > { %v4614_v56 = vadd.f32 %v4613_v44, %v18753_v4  ;;  %8600 = vmatmul.mubr.bf16.gmra.mxu0 %v18754_v6  ;;  %v18755_v35 = vld [vmem:[#allocation5_spill] sm:$0xff]  ;;  %v18756_v44 = vld [vmem:[#allocation35_spill] sm:$0xff]  ;;  %v12323_v4 = vcombine.low %v5703_v27, %v5707_v37  ;;  %18757 = vst [vmem:[#allocation40_spill] sm:$0xff] %v14896_v25  ;;  %8865 = vmatpush2.bf16.msra.mxu1 %v12459_v26  ;;  %v5436_v27 = vld [vmem:[%s18545_s3 + $0x1a8] sm:$0xff] }
 0x2a7   : > { %8713 = vmatmul.mubr.bf16.gmra.mxu1 %v18756_v44  ;;  %8755 = vmatprep.mubr.bf16.mxu0 %v14554_v31  ;;  %v18599_v2 = vsub.s32 7, %v18755_v35  ;;  %v12190_v37 = vcombine.high %v14587_v32, %v14592_v52  ;;  %v4622_v58 = vadd.f32 %v4621_v22, %v14467_v19  ;;  %v13175_v26 = vld [vmem:[%s18544_s2] sm:$0xff]  ;;  %v18759_v18 = vsub.s32 6, %v18755_v35  ;;  %v5428_v15 = vld [vmem:[%s18545_s3 + $0x168] sm:$0xff] }
 0x2a8   : > { %v4727_v34 = vadd.f32 %v4726_v57, %v4614_v56  ;;  %8752 = vmatpush2.bf16.msra.mxu0 %v12331_v59  ;;  %v5432_v59 = vld [vmem:[%s18545_s3 + $0x188] sm:$0xff]  ;;  %8866 = vmatprep.subr.bf16.mxu1 %v12452_v61  ;;  %v4733_v57 = vadd.f32 %v4732_v48, %v4620_v12  ;;  %v4623_v61 = vpop.f32.mrf.mxu0  ;;  %v12061_v51 = vcombine.low %v5440_v29, %v5444_v43  ;;  %v5307_v43 = vmax.f32 %v4731_v11, 0.0 }
 0x2a9   : > { %8753 = vmatprep.subr.bf16.mxu0 %v12324_v13  ;;  %v4734_v13 = vpop.f32.mrf.mxu1  ;;  %v14915_v56 = vrot.slane %v13175_v26, %v18759_v18  ;;  %v4624_v19 = vadd.f32 %v4623_v61, %v14477_v41  ;;  %v12054_v10 = vcombine.high %v5432_v59, %v5436_v27  ;;  %v12053_v22 = vcombine.low %v5432_v59, %v5436_v27  ;;  %v5420_v59 = vld [vmem:[%s18545_s3 + $0x128] sm:$0xff] }
 0x2aa   : > { %v5300_v42 = vmax.f32 %v4727_v34, 0.0  ;;  %v4735_v33 = vadd.f32 %v4734_v13, %v4622_v58  ;;  %8867 = vmatpush2.bf16.msra.mxu1 %v12451_v1  ;;  %v4773_v29 = vpop.f32.mrf.mxu0  ;;  %v12046_v58 = vcombine.high %v5424_v60, %v5428_v15 }
 0x2ab   : > { %v4736_v34 = vpop.f32.mrf.mxu1  ;;  %9062 = vmatprep.subr.bf16.mxu1 %v12190_v37  ;;  %v4774_v12 = vadd.f32 %v4773_v29, %v14915_v56 }
 0x2ac   : > { %v14907_v36 = vpack.c.bf16 %v5300_v42, %v5292_v21  ;;  %8754 = vmatpush2.bf16.msra.mxu0 %v12323_v4  ;;  %v14919_v21 = vrot.slane %v13175_v26, %v18599_v2  ;;  %v5315_v4 = vmax.f32 %v4735_v33, 0.0  ;;  %v4737_v42 = vadd.f32 %v4736_v34, %v4624_v19  ;;  %v4775_v48 = vpop.f32.mrf.mxu0 }
 0x2ad   : > { %8949 = vmatprep.subr.bf16.mxu0 %v12062_v9  ;;  %v4886_v41 = vpop.f32.mrf.mxu1  ;;  %v5308_v9 = vmax.f32 %v4733_v57, 0.0  ;;  %v5416_v57 = vld [vmem:[%s18545_s3 + $0x108] sm:$0xff]  ;;  %v12045_v19 = vcombine.low %v5424_v60, %v5428_v15 }
 0x2ae   : > { %18758 = vst [vmem:[#allocation41_spill] sm:$0xff] %v14907_v36  ;;  %v14931_v13 = vpack.c.bf16 %v5315_v4, %v5307_v43  ;;  %v5316_v1 = vmax.f32 %v4737_v42, 0.0  ;;  %v14933_v26 = vadd.f32 %v4886_v41, %v4774_v12  ;;  %v4776_v37 = vadd.f32 %v4775_v48, %v14919_v21  ;;  %v14936_v18 = vpop.f32.mrf.mxu0  ;;  %v5408_v43 = vld [vmem:[%s18545_s3 + $0xc8] sm:$0xff] }
 0x2af   : > { %8756 = vmatmul.mubr.bf16.vlgmr.msra.gmra.mxu0 %v14539_v0  ;;  %v4888_v11 = vpop.f32.mrf.mxu1  ;;  %v5412_v4 = vld [vmem:[%s18545_s3 + $0xe8] sm:$0xff]  ;;  %v12037_v15 = vcombine.low %v5416_v57, %v5420_v59 }
 0x2b0   : > { %8765 = vmatprep.mubr.bf16.mxu0 %v14630_v38  ;;  %8950 = vmatpush1.bf16.msra.mxu0 %v12061_v51  ;;  %18760 = vst [vmem:[#allocation50_spill] sm:$0xff] %v14931_v13  ;;  %v14944_v27 = vpack.c.bf16 %v5316_v1, %v5308_v9  ;;  %v14946_v61 = vadd.f32 %v4888_v11, %v4776_v37  ;;  %v14950_v33 = vpop.f32.mrf.mxu0  ;;  %v5400_v1 = vld [vmem:[%s18545_s3 + $0x88] sm:$0xff] }
 0x2b1   : > { %8951 = vmatprep.subr.bf16.mxu0 %v12054_v10  ;;  %v14948_v51 = vpop.f32.mrf.mxu1  ;;  %v12038_v10 = vcombine.high %v5416_v57, %v5420_v59  ;;  %v5404_v37 = vld [vmem:[%s18545_s3 + $0xa8] sm:$0xff] }
 0x2b2   : > { %18761 = vst [vmem:[#allocation51_spill] sm:$0xff] %v14944_v27  ;;  %v4783_v29 = vpop.f32.mrf.mxu0 }
 0x2b3   : > { %v14952_v34 = vpop.f32.mrf.mxu1  ;;  %v4784_v42 = vadd.f32 %v4783_v29, %v14915_v56  ;;  %v12022_v29 = vcombine.high %v5400_v1, %v5404_v37 }
 0x2b4   : > { %8952 = vmatpush1.bf16.msra.mxu0 %v12053_v22  ;;  %v4785_v60 = vpop.f32.mrf.mxu0  ;;  %v12030_v22 = vcombine.high %v5408_v43, %v5412_v4 }
 0x2b5   : > { %8953 = vmatprep.subr.bf16.mxu0 %v12046_v58  ;;  %v4896_v12 = vpop.f32.mrf.mxu1  ;;  %v4786_v9 = vadd.f32 %v4785_v60, %v14919_v21  ;;  %v5396_v60 = vld [vmem:[%s18545_s3 + $0x68] sm:$0xff] }
 0x2b6   : > { %v14963_v41 = vadd.f32 %v4896_v12, %v4784_v42  ;;  %v14966_v58 = vpop.f32.mrf.mxu0  ;;  %v5392_v12 = vld [vmem:[%s18545_s3 + $0x48] sm:$0xff] }
 0x2b7   : > { %8766 = vmatmul.mubr.bf16.gmra.mxu0 %v14619_v53  ;;  %v4898_v48 = vpop.f32.mrf.mxu1  ;;  %v12014_v44 = vcombine.high %v5392_v12, %v5396_v60 }
 0x2b8   : > { %8775 = vmatprep.mubr.bf16.mxu0 %v14690_v54  ;;  %8954 = vmatpush1.bf16.msra.mxu0 %v12045_v19  ;;  %v14974_v11 = vadd.f32 %v4898_v48, %v4786_v9  ;;  %v14978_v59 = vpop.f32.mrf.mxu0  ;;  %v12029_v19 = vcombine.low %v5408_v43, %v5412_v4  ;;  %v12021_v4 = vcombine.low %v5400_v1, %v5404_v37 }
 0x2b9   : > { %8955 = vmatprep.subr.bf16.mxu0 %v12038_v10  ;;  %v14976_v57 = vpop.f32.mrf.mxu1 }
 0x2ba   : > { %v4793_v42 = vpop.f32.mrf.mxu0 }
 0x2bb   : > { %v14980_v10 = vpop.f32.mrf.mxu1  ;;  %v4794_v9 = vadd.f32 %v4793_v42, %v14915_v56  ;;  %v5384_v42 = vld [vmem:[%s18545_s3 + $0x8] sm:$0xff] }
 0x2bc   : > { %8956 = vmatpush1.bf16.msra.mxu0 %v12037_v15  ;;  %v4795_v43 = vpop.f32.mrf.mxu0 }
 0x2bd   : > { %8957 = vmatprep.subr.bf16.mxu0 %v12030_v22  ;;  %v4906_v48 = vpop.f32.mrf.mxu1  ;;  %v4796_v22 = vadd.f32 %v4795_v43, %v14919_v21 }
 0x2be   : > { %v14991_v15 = vadd.f32 %v4906_v48, %v4794_v9  ;;  %v14994_v54 = vpop.f32.mrf.mxu0  ;;  %v12013_v9 = vcombine.low %v5392_v12, %v5396_v60 }
 0x2bf   : > { %8776 = vmatmul.mubr.bf16.gmra.mxu0 %v14679_v55  ;;  %v4908_v2 = vpop.f32.mrf.mxu1  ;;  %v5504_v55 = vld [vmem:[%s18545_s3 + $0x3c8] sm:$0xff] }
 0x2c0   : > { %8785 = vmatprep.mubr.bf16.mxu0 %v14750_v40  ;;  %8958 = vmatpush1.bf16.msra.mxu0 %v12029_v19  ;;  %v5388_v40 = vld [vmem:[%s18545_s3 + $0x28] sm:$0xff]  ;;  %v15002_v19 = vadd.f32 %v4908_v2, %v4796_v22  ;;  %v15006_v37 = vpop.f32.mrf.mxu0 }
 0x2c1   : > { %8959 = vmatprep.subr.bf16.mxu0 %v12022_v29  ;;  %v15004_v1 = vpop.f32.mrf.mxu1  ;;  %v12006_v48 = vcombine.high %v5384_v42, %v5388_v40  ;;  %v5508_v2 = vld [vmem:[%s18545_s3 + $0x3e8] sm:$0xff] }
 0x2c2   : > { %v4803_v43 = vpop.f32.mrf.mxu0  ;;  %v12126_v0 = vcombine.high %v5504_v55, %v5508_v2 }
 0x2c3   : > { %v15008_v29 = vpop.f32.mrf.mxu1  ;;  %v4804_v22 = vadd.f32 %v4803_v43, %v14915_v56  ;;  %v5496_v43 = vld [vmem:[%s18545_s3 + $0x388] sm:$0xff] }
 0x2c4   : > { %8960 = vmatpush1.bf16.msra.mxu0 %v12021_v4  ;;  %v4805_v12 = vpop.f32.mrf.mxu0 }
 0x2c5   : > { %8961 = vmatprep.subr.bf16.mxu0 %v12014_v44  ;;  %v4916_v53 = vpop.f32.mrf.mxu1  ;;  %v12005_v44 = vcombine.low %v5384_v42, %v5388_v40  ;;  %v4806_v4 = vadd.f32 %v4805_v12, %v14919_v21  ;;  %v12125_v42 = vcombine.low %v5504_v55, %v5508_v2 }
 0x2c6   : > { %v15019_v60 = vadd.f32 %v4916_v53, %v4804_v22  ;;  %v15022_v35 = vpop.f32.mrf.mxu0 }
 0x2c7   : > { %8786 = vmatmul.mubr.bf16.gmra.mxu0 %v14739_v5  ;;  %v4918_v38 = vpop.f32.mrf.mxu1  ;;  %v5488_v5 = vld [vmem:[%s18545_s3 + $0x348] sm:$0xff] }
 0x2c8   : > { %8795 = vmatprep.mubr.bf16.mxu0 %v14810_v28  ;;  %8962 = vmatpush1.bf16.msra.mxu0 %v12013_v9  ;;  %v5500_v28 = vld [vmem:[%s18545_s3 + $0x3a8] sm:$0xff]  ;;  %v15030_v9 = vadd.f32 %v4918_v38, %v4806_v4  ;;  %v15034_v53 = vpop.f32.mrf.mxu0 }
 0x2c9   : > { %8963 = vmatprep.subr.bf16.mxu0 %v12006_v48  ;;  %v15032_v40 = vpop.f32.mrf.mxu1  ;;  %v12118_v22 = vcombine.high %v5496_v43, %v5500_v28  ;;  %v5492_v38 = vld [vmem:[%s18545_s3 + $0x368] sm:$0xff] }
 0x2ca   : > { %v4813_v12 = vpop.f32.mrf.mxu0  ;;  %v12110_v62 = vcombine.high %v5488_v5, %v5492_v38 }
 0x2cb   : > { %v15036_v48 = vpop.f32.mrf.mxu1  ;;  %v4814_v4 = vadd.f32 %v4813_v12, %v14915_v56  ;;  %v5480_v12 = vld [vmem:[%s18545_s3 + $0x308] sm:$0xff] }
 0x2cc   : > { %8964 = vmatpush1.bf16.msra.mxu0 %v12005_v44  ;;  %v4815_v55 = vpop.f32.mrf.mxu0 }
 0x2cd   : > { %8965 = vmatprep.subr.bf16.mxu0 %v12126_v0  ;;  %v4926_v31 = vpop.f32.mrf.mxu1  ;;  %v12117_v0 = vcombine.low %v5496_v43, %v5500_v28  ;;  %v4816_v44 = vadd.f32 %v4815_v55, %v14919_v21  ;;  %v12109_v43 = vcombine.low %v5488_v5, %v5492_v38 }
 0x2ce   : > { %v15047_v2 = vadd.f32 %v4926_v31, %v4814_v4  ;;  %v15050_v30 = vpop.f32.mrf.mxu0 }
 0x2cf   : > { %8796 = vmatmul.mubr.bf16.gmra.mxu0 %v14799_v3  ;;  %v4928_v6 = vpop.f32.mrf.mxu1  ;;  %v5472_v3 = vld [vmem:[%s18545_s3 + $0x2c8] sm:$0xff] }
 0x2d0   : > { %8805 = vmatprep.mubr.bf16.mxu0 %v14867_v47  ;;  %8966 = vmatpush2.bf16.msra.mxu0 %v12125_v42  ;;  %18762 = vst [vmem:[#allocation52_spill] sm:$0xff] %v15047_v2  ;;  %v5484_v47 = vld [vmem:[%s18545_s3 + $0x328] sm:$0xff]  ;;  %v15058_v42 = vadd.f32 %v4928_v6, %v4816_v44  ;;  %v15062_v31 = vpop.f32.mrf.mxu0 }
 0x2d1   : > { %8967 = vmatprep.subr.bf16.mxu0 %v12118_v22  ;;  %v15060_v28 = vpop.f32.mrf.mxu1  ;;  %v12102_v4 = vcombine.high %v5480_v12, %v5484_v47  ;;  %v5476_v6 = vld [vmem:[%s18545_s3 + $0x2e8] sm:$0xff] }
 0x2d2   : > { %v4823_v55 = vpop.f32.mrf.mxu0 }
 0x2d3   : > { %v15064_v22 = vpop.f32.mrf.mxu1  ;;  %v4824_v44 = vadd.f32 %v4823_v55, %v14915_v56  ;;  %v5464_v55 = vld [vmem:[%s18545_s3 + $0x288] sm:$0xff] }
 0x2d4   : > { %8968 = vmatpush2.bf16.msra.mxu0 %v12117_v0  ;;  %18763 = vst [vmem:[#allocation53_spill] sm:$0xff] %v15064_v22  ;;  %v4825_v5 = vpop.f32.mrf.mxu0  ;;  %v12094_v22 = vcombine.high %v5472_v3, %v5476_v6 }
 0x2d5   : > { %8969 = vmatprep.subr.bf16.mxu0 %v12110_v62  ;;  %v4936_v16 = vpop.f32.mrf.mxu1  ;;  %v12101_v62 = vcombine.low %v5480_v12, %v5484_v47  ;;  %v4826_v0 = vadd.f32 %v4825_v5, %v14919_v21  ;;  %v12093_v12 = vcombine.low %v5472_v3, %v5476_v6 }
 0x2d6   : > { %v15075_v38 = vadd.f32 %v4936_v16, %v4824_v44  ;;  %v15078_v2 = vpop.f32.mrf.mxu0 }
 0x2d7   : > { %8806 = vmatmul.mubr.bf16.gmra.mxu0 %v14857_v39  ;;  %v4938_v23 = vpop.f32.mrf.mxu1  ;;  %v5456_v39 = vld [vmem:[%s18545_s3 + $0x248] sm:$0xff] }
 0x2d8   : > { %8815 = vmatprep.mubr.bf16.mxu0 %v14907_v36  ;;  %8970 = vmatpush2.bf16.msra.mxu0 %v12109_v43  ;;  %18764 = vst [vmem:[#allocation54_spill] sm:$0xff] %v15075_v38  ;;  %v5468_v36 = vld [vmem:[%s18545_s3 + $0x2a8] sm:$0xff]  ;;  %v15086_v43 = vadd.f32 %v4938_v23, %v4826_v0  ;;  %v15090_v16 = vpop.f32.mrf.mxu0 }
 0x2d9   : > { %8971 = vmatprep.subr.bf16.mxu0 %v12102_v4  ;;  %v15088_v47 = vpop.f32.mrf.mxu1  ;;  %v12086_v44 = vcombine.high %v5464_v55, %v5468_v36  ;;  %v5460_v23 = vld [vmem:[%s18545_s3 + $0x268] sm:$0xff] }
 0x2da   : > { %18765 = vst [vmem:[#allocation55_spill] sm:$0xff] %v15086_v43  ;;  %18766 = vst [vmem:[#allocation56_spill] sm:$0xff] %v15088_v47  ;;  %v4833_v5 = vpop.f32.mrf.mxu0  ;;  %v12078_v43 = vcombine.high %v5456_v39, %v5460_v23 }
 0x2db   : > { %v15092_v4 = vpop.f32.mrf.mxu1  ;;  %v4834_v0 = vadd.f32 %v4833_v5, %v14915_v56  ;;  %v5448_v5 = vld [vmem:[%s18545_s3 + $0x208] sm:$0xff] }
 0x2dc   : > { %8972 = vmatpush2.bf16.msra.mxu0 %v12101_v62  ;;  %18767 = vst [vmem:[#allocation57_spill] sm:$0xff] %v15092_v4  ;;  %v4835_v3 = vpop.f32.mrf.mxu0 }
 0x2dd   : > { %8973 = vmatprep.subr.bf16.mxu0 %v12094_v22  ;;  %v4946_v38 = vpop.f32.mrf.mxu1  ;;  %v12085_v22 = vcombine.low %v5464_v55, %v5468_v36  ;;  %v4836_v62 = vadd.f32 %v4835_v3, %v14919_v21  ;;  %v12077_v55 = vcombine.low %v5456_v39, %v5460_v23 }
 0x2de   : > { %v15103_v6 = vadd.f32 %v4946_v38, %v4834_v0  ;;  %v15106_v47 = vpop.f32.mrf.mxu0 }
 0x2df   : > { %8816 = vmatmul.mubr.bf16.gmra.mxu0 %v14896_v25  ;;  %v4948_v4 = vpop.f32.mrf.mxu1  ;;  %v5696_v25 = vld [vmem:[%s18545_s3 + $0x9c8] sm:$0xff] }
 0x2e0   : > { %8825 = vmatprep.mubr.bf16.mxu0 %v14944_v27  ;;  %8974 = vmatpush2.bf16.msra.mxu0 %v12093_v12  ;;  %18768 = vst [vmem:[#allocation58_spill] sm:$0xff] %v15103_v6  ;;  %v5452_v27 = vld [vmem:[%s18545_s3 + $0x228] sm:$0xff]  ;;  %v15114_v12 = vadd.f32 %v4948_v4, %v4836_v62  ;;  %v15118_v38 = vpop.f32.mrf.mxu0 }
 0x2e1   : > { %8975 = vmatprep.subr.bf16.mxu0 %v12086_v44  ;;  %v15116_v36 = vpop.f32.mrf.mxu1  ;;  %18771 = vst [vmem:[#allocation61_spill] sm:$0xff] %v15118_v38  ;;  %v12070_v0 = vcombine.high %v5448_v5, %v5452_v27  ;;  %v5700_v4 = vld [vmem:[%s18545_s3 + $0x9e8] sm:$0xff] }
 0x2e2   : > { %18769 = vst [vmem:[#allocation59_spill] sm:$0xff] %v15114_v12  ;;  %18770 = vst [vmem:[#allocation60_spill] sm:$0xff] %v15116_v36  ;;  %v4843_v3 = vpop.f32.mrf.mxu0  ;;  %v12318_v12 = vcombine.high %v5696_v25, %v5700_v4 }
 0x2e3   : > { %v15120_v44 = vpop.f32.mrf.mxu1  ;;  %v4844_v62 = vadd.f32 %v4843_v3, %v14915_v56  ;;  %v5688_v3 = vld [vmem:[%s18545_s3 + $0x988] sm:$0xff] }
 0x2e4   : > { %8976 = vmatpush2.bf16.msra.mxu0 %v12085_v22  ;;  %18772 = vst [vmem:[#allocation62_spill] sm:$0xff] %v15120_v44  ;;  %v4845_v39 = vpop.f32.mrf.mxu0 }
 0x2e5   : > { %8977 = vmatprep.subr.bf16.mxu0 %v12078_v43  ;;  %v4956_v6 = vpop.f32.mrf.mxu1  ;;  %v12069_v43 = vcombine.low %v5448_v5, %v5452_v27  ;;  %v4846_v22 = vadd.f32 %v4845_v39, %v14919_v21  ;;  %v12317_v5 = vcombine.low %v5696_v25, %v5700_v4 }
 0x2e6   : > { %v15131_v23 = vadd.f32 %v4956_v6, %v4844_v62  ;;  %v15134_v36 = vpop.f32.mrf.mxu0 }
 0x2e7   : > { %8826 = vmatmul.mubr.bf16.gmra.mxu0 %v14931_v13  ;;  %v4958_v44 = vpop.f32.mrf.mxu1  ;;  %18774 = vst [vmem:[#allocation64_spill] sm:$0xff] %v15134_v36 }
 0x2e8   : > { %8978 = vmatpush2.bf16.msra.mxu0 %v12077_v55  ;;  %8981 = vmatprep.mubr.bf16.mxu0 %v13604_v7  ;;  %18773 = vst [vmem:[#allocation63_spill] sm:$0xff] %v15131_v23  ;;  %v5692_v55 = vld [vmem:[%s18545_s3 + $0x9a8] sm:$0xff]  ;;  %v15142_v7 = vadd.f32 %v4958_v44, %v4846_v22  ;;  %v15146_v6 = vpop.f32.mrf.mxu0 }
 0x2e9   : > { %8979 = vmatprep.subr.bf16.mxu0 %v12070_v0  ;;  %v15144_v27 = vpop.f32.mrf.mxu1  ;;  %18777 = vst [vmem:[#allocation67_spill] sm:$0xff] %v15146_v6  ;;  %v4778_v0 = vadd.f32 %v14936_v18, %v14915_v56  ;;  %v12310_v39 = vcombine.high %v5688_v3, %v5692_v55  ;;  %v5680_v23 = vld [vmem:[%s18545_s3 + $0x948] sm:$0xff] }
 0x2ea   : > { %18775 = vst [vmem:[#allocation65_spill] sm:$0xff] %v15142_v7  ;;  %18776 = vst [vmem:[#allocation66_spill] sm:$0xff] %v15144_v27  ;;  %v4999_v13 = vpop.f32.mrf.mxu0  ;;  %v5684_v44 = vld [vmem:[%s18545_s3 + $0x968] sm:$0xff] }
 0x2eb   : > { %v15150_v62 = vpop.f32.mrf.mxu1  ;;  %v4891_v4 = vadd.f32 %v14948_v51, %v4778_v0  ;;  %v12302_v7 = vcombine.high %v5680_v23, %v5684_v44  ;;  %v5672_v27 = vld [vmem:[%s18545_s3 + $0x908] sm:$0xff]  ;;  %v12301_v0 = vcombine.low %v5680_v23, %v5684_v44  ;;  %v4790_v23 = vadd.f32 %v14978_v59, %v14919_v21 }
 0x2ec   : > { %8980 = vmatpush2.bf16.msra.mxu0 %v12069_v43  ;;  %18778 = vst [vmem:[#allocation68_spill] sm:$0xff] %v15150_v62  ;;  %v4780_v43 = vadd.f32 %v14950_v33, %v14919_v21  ;;  %v5001_v18 = vpop.f32.mrf.mxu0  ;;  %v5676_v33 = vld [vmem:[%s18545_s3 + $0x928] sm:$0xff] }
 0x2ed   : > { %9175 = vmatprep.subr.bf16.mxu0 %v12318_v12  ;;  %v5112_v25 = vpop.f32.mrf.mxu1  ;;  %v12309_v12 = vcombine.low %v5688_v3, %v5692_v55  ;;  %v5002_v22 = vadd.f32 %v5001_v18, %v14946_v61  ;;  %v4788_v18 = vadd.f32 %v14966_v58, %v14915_v56 }
 0x2ee   : > { %v4893_v3 = vadd.f32 %v14952_v34, %v4780_v43 }
 0x2ef   : > { %8982 = vmatmul.mubr.bf16.vlgmr.msra.gmra.mxu0 %v13596_v14  ;;  %v5114_v62 = vpop.f32.mrf.mxu1 }
 0x2f0   : > { %8991 = vmatprep.mubr.bf16.mxu0 %v13646_v24  ;;  %9176 = vmatpush1.bf16.msra.mxu0 %v12317_v5  ;;  %v5000_v24 = vadd.f32 %v4999_v13, %v14933_v26  ;;  %v5003_v5 = vpop.f32.mrf.mxu0  ;;  %v5115_v14 = vadd.f32 %v5114_v62, %v5002_v22  ;;  %v5664_v13 = vld [vmem:[%s18545_s3 + $0x8c8] sm:$0xff] }
 0x2f1   : > { %9177 = vmatprep.subr.bf16.mxu0 %v12310_v39  ;;  %v5004_v55 = vadd.f32 %v5003_v5, %v4891_v4  ;;  %v5116_v51 = vpop.f32.mrf.mxu1  ;;  %v12294_v39 = vcombine.high %v5672_v27, %v5676_v33  ;;  %v5668_v26 = vld [vmem:[%s18545_s3 + $0x8e8] sm:$0xff]  ;;  %v4903_v5 = vadd.f32 %v14980_v10, %v4790_v23 }
 0x2f2   : > { %v5005_v61 = vpop.f32.mrf.mxu0  ;;  %v5113_v34 = vadd.f32 %v5112_v25, %v5000_v24  ;;  %v12286_v4 = vcombine.high %v5664_v13, %v5668_v26  ;;  %v15187_v22 = vld [vmem:[%s18545_s3 + $0x588] sm:$0xff]  ;;  %v4901_v24 = vadd.f32 %v14976_v57, %v4788_v18  ;;  %v5198_v25 = vmax.f32 %v5115_v14, 0.0 }
 0x2f3   : > { %v5117_v6 = vadd.f32 %v5116_v51, %v5004_v55  ;;  %v5006_v36 = vadd.f32 %v5005_v61, %v4893_v3  ;;  %v5118_v38 = vpop.f32.mrf.mxu1  ;;  %v15204_v57 = vld [vmem:[%s18545_s3 + $0x8a8] sm:$0xff]  ;;  %v12285_v61 = vcombine.low %v5664_v13, %v5668_v26 }
 0x2f4   : > { %9178 = vmatpush1.bf16.msra.mxu0 %v12309_v12  ;;  %v5009_v43 = vpop.f32.mrf.mxu0  ;;  %v12293_v12 = vcombine.low %v5672_v27, %v5676_v33  ;;  %v15199_v27 = vld [vmem:[%s18545_s3 + $0x888] sm:$0xff]  ;;  %v5197_v14 = vmax.f32 %v5113_v34, 0.0 }
 0x2f5   : > { %9179 = vmatprep.subr.bf16.mxu0 %v12302_v7  ;;  %v5119_v44 = vadd.f32 %v5118_v38, %v5006_v36  ;;  %v5122_v58 = vpop.f32.mrf.mxu1  ;;  %v5205_v62 = vmax.f32 %v5117_v6, 0.0  ;;  %v15194_v6 = vld [vmem:[%s18545_s3 + $0x5a8] sm:$0xff] }
 0x2f6   : > { %v5011_v7 = vpop.f32.mrf.mxu0  ;;  %v12182_v34 = vcombine.high %v15187_v22, %v15194_v6  ;;  %v15221_v10 = vld [vmem:[%s18545_s3 + $0x548] sm:$0xff] }
 0x2f7   : > { %8992 = vmatmul.mubr.bf16.gmra.mxu0 %v13636_v50  ;;  %v5206_v59 = vmax.f32 %v5119_v44, 0.0  ;;  %v5012_v36 = vadd.f32 %v5011_v7, %v14974_v11  ;;  %v5124_v38 = vpop.f32.mrf.mxu1  ;;  %v5010_v11 = vadd.f32 %v5009_v43, %v14963_v41  ;;  %v12278_v41 = vcombine.high %v15199_v27, %v15204_v57  ;;  %v15232_v44 = vld [vmem:[%s18545_s3 + $0x848] sm:$0xff] }
 0x2f8   : > { %9001 = vmatprep.mubr.bf16.mxu0 %v18722_v8  ;;  %9180 = vmatpush1.bf16.msra.mxu0 %v12301_v0  ;;  %v5013_v33 = vpop.f32.mrf.mxu0  ;;  %v4798_v0 = vadd.f32 %v14994_v54, %v14915_v56  ;;  %v15227_v54 = vld [vmem:[%s18545_s3 + $0x568] sm:$0xff] }
 0x2f9   : > { %9181 = vmatprep.subr.bf16.mxu0 %v12294_v39  ;;  %v15208_v3 = vpack.c.bf16 %v5206_v59, %v5198_v25  ;;  %v5014_v55 = vadd.f32 %v5013_v33, %v4901_v24  ;;  %v5126_v51 = vpop.f32.mrf.mxu1  ;;  %v15212_v39 = vpack.c.bf16 %v5205_v62, %v5197_v14  ;;  %v5125_v43 = vadd.f32 %v5124_v38, %v5012_v36  ;;  %v15237_v62 = vld [vmem:[%s18545_s3 + $0x868] sm:$0xff] }
 0x2fa   : > { %v5015_v18 = vpop.f32.mrf.mxu0  ;;  %v5123_v7 = vadd.f32 %v5122_v58, %v5010_v11  ;;  %v18781_v59 = vcombine.low %v14587_v32, %v14592_v52  ;;  %v12181_v36 = vcombine.low %v15187_v22, %v15194_v6  ;;  %v12277_v14 = vcombine.low %v15199_v27, %v15204_v57  ;;  %v15258_v32 = vld [vmem:[%s18545_s3 + $0x508] sm:$0xff] }
 0x2fb   : > { %18779 = vst [vmem:[#allocation69_spill] sm:$0xff] %v15208_v3  ;;  %18780 = vst [vmem:[#allocation70_spill] sm:$0xff] %v15212_v39  ;;  %v5127_v13 = vadd.f32 %v5126_v51, %v5014_v55  ;;  %v5016_v26 = vadd.f32 %v5015_v18, %v4903_v5  ;;  %v5128_v23 = vpop.f32.mrf.mxu1  ;;  %8868 = vmatprep.mubr.bf16.mxu1 %v15208_v3  ;;  %v12270_v11 = vcombine.high %v15232_v44, %v15237_v62  ;;  %v15263_v52 = vld [vmem:[%s18545_s3 + $0x528] sm:$0xff] }
 0x2fc   : > { %9182 = vmatpush1.bf16.msra.mxu0 %v12293_v12  ;;  %v5019_v12 = vpop.f32.mrf.mxu0  ;;  %8869 = vmatmul.mubr.bf16.vlgmr.msra.gmra.mxu1 %v15212_v39  ;;  %v4911_v22 = vadd.f32 %v15004_v1, %v4798_v0  ;;  %v5214_v6 = vmax.f32 %v5125_v43, 0.0  ;;  %v15270_v5 = vld [vmem:[%s18545_s3 + $0x808] sm:$0xff]  ;;  %v5213_v51 = vmax.f32 %v5123_v7, 0.0  ;;  %v12269_v0 = vcombine.low %v15232_v44, %v15237_v62 }
 0x2fd   : > { %9183 = vmatprep.subr.bf16.mxu0 %v12286_v4  ;;  %v4800_v4 = vadd.f32 %v15006_v37, %v14919_v21  ;;  %v5129_v24 = vadd.f32 %v5128_v23, %v5016_v26  ;;  %v5132_v25 = vpop.f32.mrf.mxu1  ;;  %9063 = vmatpush1.bf16.msra.mxu1 %v18781_v59  ;;  %v5221_v38 = vmax.f32 %v5127_v13, 0.0  ;;  %v12174_v37 = vcombine.high %v15221_v10, %v15227_v54  ;;  %v15275_v55 = vld [vmem:[%s18545_s3 + $0x828] sm:$0xff] }
 0x2fe   : > { %v5021_v58 = vpop.f32.mrf.mxu0  ;;  %9064 = vmatprep.subr.bf16.mxu1 %v12182_v34  ;;  %v5020_v1 = vadd.f32 %v5019_v12, %v14991_v15  ;;  %v12166_v13 = vcombine.high %v15258_v32, %v15263_v52  ;;  %v4808_v15 = vadd.f32 %v15022_v35, %v14915_v56  ;;  %v12262_v23 = vcombine.high %v15270_v5, %v15275_v55  ;;  %v15302_v35 = vld [vmem:[%s18545_s3 + $0x4e8] sm:$0xff] }
 0x2ff   : > { %9002 = vmatmul.mubr.bf16.gmra.mxu0 %v18725_v20  ;;  %v5222_v27 = vmax.f32 %v5129_v24, 0.0  ;;  %v5022_v57 = vadd.f32 %v5021_v58, %v15002_v19  ;;  %v5134_v33 = vpop.f32.mrf.mxu1  ;;  %v12173_v19 = vcombine.low %v15221_v10, %v15227_v54  ;;  %v4913_v18 = vadd.f32 %v15008_v29, %v4800_v4  ;;  %v15296_v29 = vld [vmem:[%s18545_s3 + $0x4c8] sm:$0xff] }
 0x300   : > { %9011 = vmatprep.mubr.bf16.mxu0 %v18726_v46  ;;  %9184 = vmatpush1.bf16.msra.mxu0 %v12285_v61  ;;  %v5023_v61 = vpop.f32.mrf.mxu0  ;;  %v15289_v26 = vpack.c.bf16 %v5221_v38, %v5213_v51  ;;  %v15307_v12 = vld [vmem:[%s18545_s3 + $0xbc8] sm:$0xff]  ;;  %v5133_v24 = vadd.f32 %v5132_v25, %v5020_v1  ;;  %v12261_v25 = vcombine.low %v15270_v5, %v15275_v55 }
 0x301   : > { %9185 = vmatprep.subr.bf16.mxu0 %v12278_v41  ;;  %v15283_v34 = vpack.c.bf16 %v5222_v27, %v5214_v6  ;;  %v5024_v41 = vadd.f32 %v5023_v61, %v4911_v22  ;;  %v5136_v43 = vpop.f32.mrf.mxu1  ;;  %9065 = vmatpush1.bf16.msra.mxu1 %v12181_v36  ;;  %v5135_v54 = vadd.f32 %v5134_v33, %v5022_v57  ;;  %v15312_v4 = vld [vmem:[%s18545_s3 + $0xbe8] sm:$0xff] }
 0x302   : > { %18783 = vst [vmem:[#allocation72_spill] sm:$0xff] %v15289_v26  ;;  %v5025_v10 = vpop.f32.mrf.mxu0  ;;  %9066 = vmatprep.subr.bf16.mxu1 %v12174_v37  ;;  %v4810_v36 = vadd.f32 %v15034_v53, %v14919_v21  ;;  %v12158_v22 = vcombine.high %v15296_v29, %v15302_v35  ;;  %v12382_v53 = vcombine.high %v15307_v12, %v15312_v4  ;;  %v15330_v6 = vld [vmem:[%s18545_s3 + $0x488] sm:$0xff]  ;;  %v5229_v1 = vmax.f32 %v5133_v24, 0.0 }
 0x303   : > { %18782 = vst [vmem:[#allocation71_spill] sm:$0xff] %v15283_v34  ;;  %v5137_v44 = vadd.f32 %v5136_v43, %v5024_v41  ;;  %v5026_v62 = vadd.f32 %v5025_v10, %v4913_v18  ;;  %v5138_v7 = vpop.f32.mrf.mxu1  ;;  %8878 = vmatprep.mubr.bf16.mxu1 %v15283_v34  ;;  %v5230_v27 = vmax.f32 %v5135_v54, 0.0  ;;  %v15342_v55 = vld [vmem:[%s18545_s3 + $0xb88] sm:$0xff]  ;;  %v4820_v24 = vadd.f32 %v15062_v31, %v14919_v21 }
 0x304   : > { %9186 = vmatpush1.bf16.msra.mxu0 %v12277_v14  ;;  %v5029_v59 = vpop.f32.mrf.mxu0  ;;  %8879 = vmatmul.mubr.bf16.gmra.mxu1 %v15289_v26  ;;  %v12165_v14 = vcombine.low %v15258_v32, %v15263_v52  ;;  %v15335_v32 = vld [vmem:[%s18545_s3 + $0x4a8] sm:$0xff]  ;;  %v4921_v52 = vadd.f32 %v15032_v40, %v4808_v15 }
 0x305   : > { %9187 = vmatprep.subr.bf16.mxu0 %v12270_v11  ;;  %v5139_v38 = vadd.f32 %v5138_v7, %v5026_v62  ;;  %v5142_v58 = vpop.f32.mrf.mxu1  ;;  %9067 = vmatpush1.bf16.msra.mxu1 %v12173_v19  ;;  %v5237_v37 = vmax.f32 %v5137_v44, 0.0  ;;  %v15347_v51 = vld [vmem:[%s18545_s3 + $0xba8] sm:$0xff]  ;;  %v5030_v40 = vadd.f32 %v5029_v59, %v15019_v60  ;;  %v12381_v19 = vcombine.low %v15307_v12, %v15312_v4 }
 0x306   : > { %v5031_v11 = vpop.f32.mrf.mxu0  ;;  %9068 = vmatprep.subr.bf16.mxu1 %v12166_v13  ;;  %v12150_v13 = vcombine.high %v15330_v6, %v15335_v32  ;;  %v4818_v60 = vadd.f32 %v15050_v30, %v14915_v56  ;;  %v15374_v30 = vld [vmem:[%s18545_s3 + $0x468] sm:$0xff] }
 0x307   : > { %9012 = vmatmul.mubr.bf16.gmra.mxu0 %v18729_v45  ;;  %v5238_v57 = vmax.f32 %v5139_v38, 0.0  ;;  %v5032_v33 = vadd.f32 %v5031_v11, %v15030_v9  ;;  %v5144_v5 = vpop.f32.mrf.mxu1  ;;  %v12157_v9 = vcombine.low %v15296_v29, %v15302_v35  ;;  %v15361_v15 = vpack.c.bf16 %v5237_v37, %v5229_v1  ;;  %v15379_v7 = vld [vmem:[%s18545_s3 + $0xb48] sm:$0xff] }
 0x308   : > { %9021 = vmatprep.mubr.bf16.mxu0 %v18730_v49  ;;  %9188 = vmatpush1.bf16.msra.mxu0 %v12269_v0  ;;  %v5033_v61 = vpop.f32.mrf.mxu0  ;;  %v4923_v0 = vadd.f32 %v15036_v48, %v4810_v36  ;;  %v15368_v48 = vld [vmem:[%s18545_s3 + $0x448] sm:$0xff]  ;;  %v5143_v12 = vadd.f32 %v5142_v58, %v5030_v40  ;;  %v12149_v38 = vcombine.low %v15330_v6, %v15335_v32  ;;  %v18787_v40 = vld [vmem:[#allocation53_spill] sm:$0xff] }
 0x309   : > { %9189 = vmatprep.subr.bf16.mxu0 %v12262_v23  ;;  %v15355_v18 = vpack.c.bf16 %v5238_v57, %v5230_v27  ;;  %v5034_v41 = vadd.f32 %v5033_v61, %v4921_v52  ;;  %v5146_v43 = vpop.f32.mrf.mxu1  ;;  %9069 = vmatpush1.bf16.msra.mxu1 %v12165_v14  ;;  %18785 = vst [vmem:[#allocation74_spill] sm:$0xff] %v15361_v15  ;;  %v15384_v35 = vld [vmem:[%s18545_s3 + $0xb68] sm:$0xff] }
 0x30a   : > { %v5035_v10 = vpop.f32.mrf.mxu0  ;;  %9070 = vmatprep.subr.bf16.mxu1 %v12158_v22  ;;  %v12374_v23 = vcombine.high %v15342_v55, %v15347_v51  ;;  %v5145_v29 = vadd.f32 %v5144_v5, %v5032_v33  ;;  %v12373_v58 = vcombine.low %v15342_v55, %v15347_v51  ;;  %v12142_v11 = vcombine.high %v15368_v48, %v15374_v30  ;;  %v15407_v22 = vld [vmem:[%s18545_s3 + $0x428] sm:$0xff]  ;;  %v18786_v55 = vld [vmem:[#allocation52_spill] sm:$0xff] }
 0x30b   : > { %18784 = vst [vmem:[#allocation73_spill] sm:$0xff] %v15355_v18  ;;  %v5147_v54 = vadd.f32 %v5146_v43, %v5034_v41  ;;  %v5036_v44 = vadd.f32 %v5035_v10, %v4923_v0  ;;  %v5148_v62 = vpop.f32.mrf.mxu1  ;;  %8888 = vmatprep.mubr.bf16.mxu1 %v15355_v18  ;;  %v12366_v31 = vcombine.high %v15379_v7, %v15384_v35  ;;  %v15414_v57 = vld [vmem:[%s18545_s3 + $0xb08] sm:$0xff]  ;;  %v5245_v5 = vmax.f32 %v5143_v12, 0.0 }
 0x30c   : > { %9190 = vmatpush1.bf16.msra.mxu0 %v12261_v25  ;;  %v5039_v4 = vpop.f32.mrf.mxu0  ;;  %8889 = vmatmul.mubr.bf16.gmra.mxu1 %v15361_v15  ;;  %v15402_v25 = vld [vmem:[%s18545_s3 + $0x408] sm:$0xff]  ;;  %v5246_v6 = vmax.f32 %v5145_v29, 0.0  ;;  %v12365_v1 = vcombine.low %v15379_v7, %v15384_v35  ;;  %v4933_v61 = vadd.f32 %v18787_v40, %v4820_v24  ;;  %v4828_v43 = vadd.f32 %v15078_v2, %v14915_v56 }
 0x30d   : > { %9191 = vmatprep.subr.bf16.mxu0 %v12382_v53  ;;  %v5149_v59 = vadd.f32 %v5148_v62, %v5036_v44  ;;  %v5152_v36 = vpop.f32.mrf.mxu1  ;;  %9071 = vmatpush1.bf16.msra.mxu1 %v12157_v9  ;;  %v5253_v14 = vmax.f32 %v5147_v54, 0.0  ;;  %v4931_v53 = vadd.f32 %v15060_v28, %v4818_v60  ;;  %v15419_v33 = vld [vmem:[%s18545_s3 + $0xb28] sm:$0xff]  ;;  %v5040_v28 = vadd.f32 %v5039_v4, %v18786_v55 }
 0x30e   : > { %v5041_v37 = vpop.f32.mrf.mxu0  ;;  %9072 = vmatprep.subr.bf16.mxu1 %v12150_v13  ;;  %v12134_v41 = vcombine.high %v15402_v25, %v15407_v22  ;;  %v12358_v10 = vcombine.high %v15414_v57, %v15419_v33  ;;  %v15446_v2 = vld [vmem:[%s18545_s3 + $0x7e8] sm:$0xff]  ;;  %v4830_v12 = vadd.f32 %v15090_v16, %v14919_v21 }
 0x30f   : > { %9022 = vmatmul.mubr.bf16.gmra.mxu0 %v18733_v17  ;;  %v5254_v32 = vmax.f32 %v5149_v59, 0.0  ;;  %v5042_v52 = vadd.f32 %v5041_v37, %v15058_v42  ;;  %v5154_v27 = vpop.f32.mrf.mxu1  ;;  %v12141_v42 = vcombine.low %v15368_v48, %v15374_v30  ;;  %v15433_v13 = vpack.c.bf16 %v5253_v14, %v5245_v5  ;;  %v15451_v62 = vld [vmem:[%s18545_s3 + $0xac8] sm:$0xff]  ;;  %v18790_v59 = vld [vmem:[#allocation15_spill] sm:$0xff] }
 0x310   : > { %9031 = vmatprep.mubr.bf16.mxu0 %v18734_v63  ;;  %9192 = vmatpush2.bf16.msra.mxu0 %v12381_v19  ;;  %v5043_v51 = vpop.f32.mrf.mxu0  ;;  %v15456_v30 = vld [vmem:[%s18545_s3 + $0xae8] sm:$0xff]  ;;  %v5153_v7 = vadd.f32 %v5152_v36, %v5040_v28  ;;  %v12357_v36 = vcombine.low %v15414_v57, %v15419_v33 }
 0x311   : > { %9193 = vmatprep.subr.bf16.mxu0 %v12374_v23  ;;  %v15427_v9 = vpack.c.bf16 %v5254_v32, %v5246_v6  ;;  %v5044_v19 = vadd.f32 %v5043_v51, %v4931_v53  ;;  %v5156_v0 = vpop.f32.mrf.mxu1  ;;  %9073 = vmatpush1.bf16.msra.mxu1 %v12149_v38  ;;  %18789 = vst [vmem:[#allocation53_spill] sm:$0xff] %v15433_v13  ;;  %v15440_v23 = vld [vmem:[%s18545_s3 + $0x7c8] sm:$0xff] }
 0x312   : > { %v5045_v60 = vpop.f32.mrf.mxu0  ;;  %9074 = vmatprep.subr.bf16.mxu1 %v12142_v11  ;;  %v5155_v48 = vadd.f32 %v5154_v27, %v5042_v52  ;;  %v12133_v38 = vcombine.low %v15402_v25, %v15407_v22  ;;  %v18791_v37 = vld [vmem:[#allocation18_spill] sm:$0xff]  ;;  %v12254_v11 = vcombine.high %v15440_v23, %v15446_v2  ;;  %v12350_v16 = vcombine.high %v15451_v62, %v15456_v30  ;;  %v18792_v22 = vld [vmem:[#allocation56_spill] sm:$0xff]  ;;  %v18793_v52 = vld [vmem:[#allocation55_spill] sm:$0xff] }
 0x313   : > { %18788 = vst [vmem:[#allocation52_spill] sm:$0xff] %v15427_v9  ;;  %v5157_v29 = vadd.f32 %v5156_v0, %v5044_v19  ;;  %v5046_v54 = vadd.f32 %v5045_v60, %v4933_v61  ;;  %v5158_v44 = vpop.f32.mrf.mxu1  ;;  %8898 = vmatprep.mubr.bf16.mxu1 %v15427_v9  ;;  %v15479_v25 = vld [vmem:[%s18545_s3 + $0x7a8] sm:$0xff]  ;;  %v4941_v53 = vadd.f32 %v18792_v22, %v4828_v43  ;;  %v5261_v55 = vmax.f32 %v5153_v7, 0.0  ;;  %v18795_v61 = vld [vmem:[#allocation57_spill] sm:$0xff] }
 0x314   : > { %9194 = vmatpush2.bf16.msra.mxu0 %v12373_v58  ;;  %v5049_v35 = vpop.f32.mrf.mxu0  ;;  %8899 = vmatmul.mubr.bf16.gmra.mxu1 %v15433_v13  ;;  %v5262_v6 = vmax.f32 %v5155_v48, 0.0  ;;  %v15486_v33 = vld [vmem:[%s18545_s3 + $0xa88] sm:$0xff]  ;;  %v12349_v40 = vcombine.low %v15451_v62, %v15456_v30  ;;  %v4943_v19 = vadd.f32 %v18795_v61, %v4830_v12 }
 0x315   : > { %9195 = vmatprep.subr.bf16.mxu0 %v12366_v31  ;;  %v5159_v4 = vadd.f32 %v5158_v44, %v5046_v54  ;;  %v5162_v24 = vpop.f32.mrf.mxu1  ;;  %9075 = vmatpush1.bf16.msra.mxu1 %v12141_v42  ;;  %v5269_v14 = vmax.f32 %v5157_v29, 0.0  ;;  %v15474_v31 = vld [vmem:[%s18545_s3 + $0x788] sm:$0xff] }
 0x316   : > { %v5051_v58 = vpop.f32.mrf.mxu0  ;;  %9076 = vmatprep.subr.bf16.mxu1 %v12134_v41  ;;  %v15491_v5 = vld [vmem:[%s18545_s3 + $0xaa8] sm:$0xff]  ;;  %v12246_v60 = vcombine.high %v15474_v31, %v15479_v25 }
 0x317   : > { %9032 = vmatmul.mubr.bf16.gmra.mxu0 %v18790_v59  ;;  %v5270_v32 = vmax.f32 %v5159_v4, 0.0  ;;  %v5052_v27 = vadd.f32 %v5051_v58, %v18793_v52  ;;  %v5164_v57 = vpop.f32.mrf.mxu1  ;;  %v18794_v28 = vld [vmem:[#allocation54_spill] sm:$0xff]  ;;  %v15505_v48 = vpack.c.bf16 %v5269_v14, %v5261_v55  ;;  %v12342_v29 = vcombine.high %v15486_v33, %v15491_v5 }
 0x318   : > { %9041 = vmatprep.mubr.bf16.mxu0 %v18791_v37  ;;  %9196 = vmatpush2.bf16.msra.mxu0 %v12365_v1  ;;  %v5050_v51 = vadd.f32 %v5049_v35, %v18794_v28  ;;  %v5053_v42 = vpop.f32.mrf.mxu0  ;;  %v12253_v1 = vcombine.low %v15440_v23, %v15446_v2  ;;  %v15512_v54 = vld [vmem:[%s18545_s3 + $0x748] sm:$0xff] }
 0x319   : > { %9197 = vmatprep.subr.bf16.mxu0 %v12358_v10  ;;  %v15499_v0 = vpack.c.bf16 %v5270_v32, %v5262_v6  ;;  %v5054_v41 = vadd.f32 %v5053_v42, %v4941_v53  ;;  %v5166_v43 = vpop.f32.mrf.mxu1  ;;  %9077 = vmatpush1.bf16.msra.mxu1 %v12133_v38  ;;  %v4838_v10 = vadd.f32 %v15106_v47, %v14915_v56  ;;  %v15518_v47 = vld [vmem:[%s18545_s3 + $0x768] sm:$0xff]  ;;  %v18798_v38 = vld [vmem:[#allocation61_spill] sm:$0xff]  ;;  %v18800_v53 = vld [vmem:[#allocation20_spill] sm:$0xff] }
 0x31a   : > { %18797 = vst [vmem:[#allocation55_spill] sm:$0xff] %v15505_v48  ;;  %v5055_v23 = vpop.f32.mrf.mxu0  ;;  %9078 = vmatprep.subr.bf16.mxu1 %v12254_v11  ;;  %v5165_v44 = vadd.f32 %v5164_v57, %v5052_v27  ;;  %v15523_v7 = vld [vmem:[%s18545_s3 + $0xa48] sm:$0xff]  ;;  %v5163_v12 = vadd.f32 %v5162_v24, %v5050_v51  ;;  %v4840_v14 = vadd.f32 %v18798_v38, %v14919_v21  ;;  %v18799_v11 = vld [vmem:[#allocation17_spill] sm:$0xff] }
 0x31b   : > { %18796 = vst [vmem:[#allocation56_spill] sm:$0xff] %v15499_v0  ;;  %v5167_v2 = vadd.f32 %v5166_v43, %v5054_v41  ;;  %v5056_v62 = vadd.f32 %v5055_v23, %v4943_v19  ;;  %v5168_v30 = vpop.f32.mrf.mxu1  ;;  %8908 = vmatprep.mubr.bf16.mxu1 %v15499_v0  ;;  %v15528_v35 = vld [vmem:[%s18545_s3 + $0xa68] sm:$0xff]  ;;  %v12341_v24 = vcombine.low %v15486_v33, %v15491_v5  ;;  %v18802_v5 = vld [vmem:[#allocation59_spill] sm:$0xff] }
 0x31c   : > { %9198 = vmatpush2.bf16.msra.mxu0 %v12357_v36  ;;  %v5059_v4 = vpop.f32.mrf.mxu0  ;;  %8909 = vmatmul.mubr.bf16.gmra.mxu1 %v15505_v48  ;;  %v12238_v32 = vcombine.high %v15512_v54, %v15518_v47  ;;  %v12334_v52 = vcombine.high %v15523_v7, %v15528_v35  ;;  %v15546_v27 = vld [vmem:[%s18545_s3 + $0x708] sm:$0xff]  ;;  %v5278_v55 = vmax.f32 %v5165_v44, 0.0  ;;  %v12237_v43 = vcombine.low %v15512_v54, %v15518_v47 }
 0x31d   : > { %9199 = vmatprep.subr.bf16.mxu0 %v12350_v16  ;;  %v5169_v58 = vadd.f32 %v5168_v30, %v5056_v62  ;;  %v5172_v36 = vpop.f32.mrf.mxu1  ;;  %9079 = vmatpush2.bf16.msra.mxu1 %v12253_v1  ;;  %v12245_v16 = vcombine.low %v15474_v31, %v15479_v25  ;;  %v5285_v22 = vmax.f32 %v5167_v2, 0.0  ;;  %v15551_v31 = vld [vmem:[%s18545_s3 + $0x728] sm:$0xff]  ;;  %v18801_v25 = vld [vmem:[#allocation60_spill] sm:$0xff] }
 0x31e   : > { %v5061_v6 = vpop.f32.mrf.mxu0  ;;  %v4951_v57 = vadd.f32 %v18801_v25, %v4838_v10  ;;  %9080 = vmatprep.subr.bf16.mxu1 %v12246_v60  ;;  %v15558_v42 = vld [vmem:[%s18545_s3 + $0xa08] sm:$0xff]  ;;  %v12333_v60 = vcombine.low %v15523_v7, %v15528_v35  ;;  %v12230_v62 = vcombine.high %v15546_v27, %v15551_v31  ;;  %v18806_v30 = vld [vmem:[#allocation64_spill] sm:$0xff]  ;;  %v18808_v25 = vld [vmem:[#allocation67_spill] sm:$0xff] }
 0x31f   : > { %9042 = vmatmul.mubr.bf16.gmra.mxu0 %v18799_v11  ;;  %v5286_v33 = vmax.f32 %v5169_v58, 0.0  ;;  %v5062_v28 = vadd.f32 %v5061_v6, %v18802_v5  ;;  %v5174_v51 = vpop.f32.mrf.mxu1  ;;  %v15563_v1 = vld [vmem:[%s18545_s3 + $0xa28] sm:$0xff]  ;;  %v15603_v6 = vld [vmem:[%s18545_s3 + $0x1f0] sm:$0xff] }
 0x320   : > { %9051 = vmatprep.mubr.bf16.mxu0 %v18800_v53  ;;  %9200 = vmatpush2.bf16.msra.mxu0 %v12349_v40  ;;  %v5277_v40 = vmax.f32 %v5163_v12, 0.0  ;;  %v18803_v61 = vld [vmem:[#allocation58_spill] sm:$0xff]  ;;  %v5063_v41 = vpop.f32.mrf.mxu0  ;;  %v4848_v12 = vadd.f32 %v18806_v30, %v14915_v56  ;;  %v12326_v47 = vcombine.high %v15558_v42, %v15563_v1  ;;  %v18809_v5 = vld [vmem:[#allocation19_spill] sm:$0xff] }
 0x321   : > { %9201 = vmatprep.subr.bf16.mxu0 %v12342_v29  ;;  %v5060_v19 = vadd.f32 %v5059_v4, %v18803_v61  ;;  %v18804_v10 = vld [vmem:[#allocation62_spill] sm:$0xff]  ;;  %v15571_v29 = vpack.c.bf16 %v5286_v33, %v5278_v55  ;;  %v5064_v44 = vadd.f32 %v5063_v41, %v4951_v57  ;;  %v5176_v2 = vpop.f32.mrf.mxu1  ;;  %9081 = vmatpush2.bf16.msra.mxu1 %v12245_v16  ;;  %v5895_v16 = vld [vmem:[%s18546_s4] sm:$0xff]  ;;  %v15635_v30 = vld [vmem:[%s18545_s3 + $0x190] sm:$0xff] }
 0x322   : > { %v4953_v23 = vadd.f32 %v18804_v10, %v4840_v14  ;;  %v15577_v4 = vpack.c.bf16 %v5285_v22, %v5277_v40  ;;  %v5065_v54 = vpop.f32.mrf.mxu0  ;;  %9082 = vmatprep.subr.bf16.mxu1 %v12238_v32  ;;  %v15584_v7 = vld [vmem:[%s18545_s3 + $0x6c8] sm:$0xff]  ;;  %v5175_v38 = vadd.f32 %v5174_v51, %v5062_v28  ;;  %v15598_v22 = vld [vmem:[%s18545_s3 + $0x1d0] sm:$0xff]  ;;  %v4850_v57 = vadd.f32 %v18808_v25, %v14919_v21  ;;  %v18811_v61 = vld [vmem:[#allocation5_spill] sm:$0xff] }
 0x323   : > { %18805 = vst [vmem:[#allocation54_spill] sm:$0xff] %v15571_v29  ;;  %v15589_v35 = vld [vmem:[%s18545_s3 + $0x6e8] sm:$0xff]  ;;  %v5177_v56 = vadd.f32 %v5176_v2, %v5064_v44  ;;  %v5178_v58 = vpop.f32.mrf.mxu1  ;;  %8918 = vmatprep.mubr.bf16.mxu1 %v15571_v29  ;;  %v12325_v28 = vcombine.low %v15558_v42, %v15563_v1  ;;  %v18814_v10 = vld [vmem:[#allocation65_spill] sm:$0xff] }
 0x324   : > { %18807 = vst [vmem:[#allocation57_spill] sm:$0xff] %v15577_v4  ;;  %9202 = vmatpush2.bf16.msra.mxu0 %v12341_v24  ;;  %v5066_v14 = vadd.f32 %v5065_v54, %v4953_v23  ;;  %v5173_v24 = vadd.f32 %v5172_v36, %v5060_v19  ;;  %v5069_v32 = vpop.f32.mrf.mxu0  ;;  %8919 = vmatmul.mubr.bf16.gmra.mxu1 %v15577_v4  ;;  %v18810_v36 = vld [vmem:[#allocation42_spill] sm:$0xff]  ;;  %v18812_v19 = vsub.s32 0, %v18811_v61 }
 0x325   : > { %9203 = vmatprep.subr.bf16.mxu0 %v12334_v52  ;;  %v12229_v52 = vcombine.low %v15546_v27, %v15551_v31  ;;  %v5182_v33 = vpop.f32.mrf.mxu1  ;;  %9083 = vmatpush2.bf16.msra.mxu1 %v12237_v43  ;;  %v5301_v51 = vmax.f32 %v5177_v56, 0.0  ;;  %v12222_v21 = vcombine.high %v15584_v7, %v15589_v35  ;;  %v12064_v27 = vcombine.high %v15598_v22, %v15603_v6  ;;  %v15625_v31 = vld [vmem:[%s18545_s3 + $0x688] sm:$0xff] }
 0x326   : > { %v5179_v55 = vadd.f32 %v5178_v58, %v5066_v14  ;;  %v5071_v40 = vpop.f32.mrf.mxu0  ;;  %v15616_v41 = vrot.slane %v5895_v16, %v18812_v19  ;;  %v18813_v42 = vld [vmem:[#allocation66_spill] sm:$0xff]  ;;  %v5294_v43 = vmax.f32 %v5175_v38, 0.0  ;;  %9084 = vmatprep.subr.bf16.mxu1 %v12230_v62  ;;  %v5293_v54 = vmax.f32 %v5173_v24, 0.0  ;;  %v18815_v38 = vld [vmem:[#allocation63_spill] sm:$0xff]  ;;  %v18816_v58 = vld [vmem:[#allocation68_spill] sm:$0xff] }
 0x327   : > { %9052 = vmatmul.mubr.bf16.gmra.mxu0 %v18809_v5  ;;  %v4961_v1 = vadd.f32 %v18813_v42, %v4848_v12  ;;  %v5072_v23 = vadd.f32 %v5071_v40, %v18814_v10  ;;  %v5184_v44 = vpop.f32.mrf.mxu1  ;;  %v5596_v2 = vld [vmem:[%s18545_s3 + $0x6a8] sm:$0xff]  ;;  %v15640_v12 = vld [vmem:[%s18545_s3 + $0x1b0] sm:$0xff]  ;;  %v5070_v56 = vadd.f32 %v5069_v32, %v18815_v38  ;;  %v12221_v62 = vcombine.low %v15584_v7, %v15589_v35 }
 0x328   : > { %9204 = vmatpush2.bf16.msra.mxu0 %v12333_v60  ;;  %9207 = vmatprep.mubr.bf16.mxu0 %v18810_v36  ;;  %v5302_v60 = vmax.f32 %v5179_v55, 0.0  ;;  %v5073_v14 = vpop.f32.mrf.mxu0  ;;  %v4963_v25 = vadd.f32 %v18816_v58, %v4850_v57  ;;  %v18818_v42 = vsub.s32 1, %v18811_v61  ;;  %v15654_v24 = vpack.c.bf16 %v5301_v51, %v5293_v54  ;;  %v15671_v51 = vld [vmem:[%s18545_s3 + $0x150] sm:$0xff]  ;;  %v5820_v61 = vld [vmem:[%s18545_s3 + $0xda8] sm:$0xff] }
 0x329   : > { %9205 = vmatprep.subr.bf16.mxu0 %v12326_v47  ;;  %v12063_v47 = vcombine.low %v15598_v22, %v15603_v6  ;;  %v5074_v40 = vadd.f32 %v5073_v14, %v4961_v1  ;;  %v5186_v19 = vpop.f32.mrf.mxu1  ;;  %9085 = vmatpush2.bf16.msra.mxu1 %v12229_v52  ;;  %v12214_v7 = vcombine.high %v15625_v31, %v5596_v2  ;;  %v15662_v22 = vld [vmem:[%s18545_s3 + $0x648] sm:$0xff]  ;;  %v18821_v14 = vld [vmem:[#allocation44_spill] sm:$0xff] }
 0x32a   : > { %v15648_v55 = vpack.c.bf16 %v5302_v60, %v5294_v43  ;;  %v15652_v10 = vrot.slane %v5895_v16, %v18818_v42  ;;  %18819 = vst [vmem:[#allocation60_spill] sm:$0xff] %v15654_v24  ;;  %v5075_v32 = vpop.f32.mrf.mxu0  ;;  %9086 = vmatprep.subr.bf16.mxu1 %v12222_v21  ;;  %v12056_v35 = vcombine.high %v15635_v30, %v15640_v12  ;;  %v15676_v21 = vld [vmem:[%s18545_s3 + $0x170] sm:$0xff]  ;;  %v5784_v53 = vld [vmem:[%s18545_s3 + $0xc88] sm:$0xff] }
 0x32b   : > { %v5185_v6 = vadd.f32 %v5184_v44, %v5072_v23  ;;  %v5187_v52 = vadd.f32 %v5186_v19, %v5074_v40  ;;  %v5076_v57 = vadd.f32 %v5075_v32, %v4963_v25  ;;  %v5188_v16 = vpop.f32.mrf.mxu1  ;;  %v5183_v1 = vadd.f32 %v5182_v33, %v5070_v56  ;;  %v18820_v44 = vld [vmem:[#allocation10_spill] sm:$0xff] }
 0x32c   : > { %18817 = vst [vmem:[#allocation61_spill] sm:$0xff] %v15648_v55  ;;  %9206 = vmatpush2.bf16.msra.mxu0 %v12325_v28  ;;  %8928 = vmatprep.mubr.bf16.mxu1 %v15648_v55  ;;  %v5588_v28 = vld [vmem:[%s18545_s3 + $0x668] sm:$0xff]  ;;  %v8531_v43 = vpop.f32.mrf.mxu0  ;;  %v12213_v54 = vcombine.low %v15625_v31, %v5596_v2  ;;  %v12055_v33 = vcombine.low %v15635_v30, %v15640_v12 }
 0x32d   : > { %9401 = vmatprep.subr.bf16.mxu0 %v12064_v27  ;;  %8929 = vmatmul.mubr.bf16.gmra.mxu1 %v15654_v24  ;;  %v5189_v60 = vadd.f32 %v5188_v16, %v5076_v57  ;;  %v8532_v27 = vadd.f32 %v8531_v43, %v15616_v41  ;;  %v8644_v23 = vpop.f32.mrf.mxu1  ;;  %v5317_v38 = vmax.f32 %v5187_v52, 0.0  ;;  %v12206_v56 = vcombine.high %v15662_v22, %v5588_v28  ;;  %v5576_v30 = vld [vmem:[%s18545_s3 + $0x608] sm:$0xff]  ;;  %v5421_v16 = vld [vmem:[%s18545_s3 + $0x130] sm:$0xff] }
 0x32e   : > { %9087 = vmatpush2.bf16.msra.mxu1 %v12221_v62  ;;  %v8533_v58 = vpop.f32.mrf.mxu0  ;;  %v12048_v25 = vcombine.high %v15671_v51, %v15676_v21  ;;  %v5310_v40 = vmax.f32 %v5185_v6, 0.0  ;;  %v5309_v2 = vmax.f32 %v5183_v1, 0.0  ;;  %v5580_v12 = vld [vmem:[%s18545_s3 + $0x628] sm:$0xff] }
 0x32f   : > { %9208 = vmatmul.mubr.bf16.vlgmr.msra.gmra.mxu0 %v18820_v44  ;;  %v5318_v19 = vmax.f32 %v5189_v60, 0.0  ;;  %v15688_v42 = vadd.f32 %v8644_v23, %v8532_v27  ;;  %v8534_v62 = vadd.f32 %v8533_v58, %v15652_v10  ;;  %v8646_v31 = vpop.f32.mrf.mxu1  ;;  %9088 = vmatprep.subr.bf16.mxu1 %v12214_v7  ;;  %v12205_v7 = vcombine.low %v15662_v22, %v5588_v28  ;;  %v5824_v23 = vld [vmem:[%s18545_s3 + $0xdc8] sm:$0xff] }
 0x330   : > { %9217 = vmatprep.mubr.bf16.mxu0 %v18821_v14  ;;  %9402 = vmatpush1.bf16.msra.mxu0 %v12063_v47  ;;  %v8535_v47 = vpop.f32.mrf.mxu0  ;;  %v15709_v1 = vpack.c.bf16 %v5317_v38, %v5309_v2  ;;  %v12047_v22 = vcombine.low %v15671_v51, %v15676_v21  ;;  %v12198_v28 = vcombine.high %v5576_v30, %v5580_v12  ;;  %v5409_v21 = vld [vmem:[%s18545_s3 + $0xd0] sm:$0xff]  ;;  %v5800_v24 = vld [vmem:[%s18545_s3 + $0xd08] sm:$0xff] }
 0x331   : > { %9403 = vmatprep.subr.bf16.mxu0 %v12056_v35  ;;  %v15697_v32 = vpack.c.bf16 %v5318_v19, %v5310_v40  ;;  %v15699_v6 = vadd.f32 %v8646_v31, %v8534_v62  ;;  %v8536_v52 = vadd.f32 %v8535_v47, %v15616_v41  ;;  %v8648_v57 = vpop.f32.mrf.mxu1  ;;  %v5417_v35 = vld [vmem:[%s18545_s3 + $0x110] sm:$0xff]  ;;  %v12197_v51 = vcombine.low %v5576_v30, %v5580_v12  ;;  %v18825_v19 = vld [vmem:[#allocation22_spill] sm:$0xff] }
 0x332   : > { %9089 = vmatpush2.bf16.msra.mxu1 %v12213_v54  ;;  %18823 = vst [vmem:[#allocation58_spill] sm:$0xff] %v15709_v1  ;;  %v15711_v43 = vpop.f32.mrf.mxu0  ;;  %v5828_v54 = vld [vmem:[%s18545_s3 + $0xde8] sm:$0xff]  ;;  %v12040_v58 = vcombine.high %v5417_v35, %v5421_v16  ;;  %v18824_v40 = vld [vmem:[#allocation43_spill] sm:$0xff]  ;;  %v12039_v12 = vcombine.low %v5417_v35, %v5421_v16 }
 0x333   : > { %18822 = vst [vmem:[#allocation59_spill] sm:$0xff] %v15697_v32  ;;  %9090 = vmatprep.subr.bf16.mxu1 %v12206_v56  ;;  %v15713_v60 = vadd.f32 %v8648_v57, %v8536_v52  ;;  %v15715_v27 = vpop.f32.mrf.mxu1  ;;  %8938 = vmatprep.mubr.bf16.mxu1 %v15697_v32  ;;  %v18826_v62 = vld [vmem:[#allocation46_spill] sm:$0xff]  ;;  %v12446_v2 = vcombine.high %v5824_v23, %v5828_v54  ;;  %v5401_v35 = vld [vmem:[%s18545_s3 + $0x90] sm:$0xff] }
 0x334   : > { %9404 = vmatpush1.bf16.msra.mxu0 %v12055_v33  ;;  %v8541_v38 = vpop.f32.mrf.mxu0  ;;  %v5405_v16 = vld [vmem:[%s18545_s3 + $0xb0] sm:$0xff]  ;;  %v5768_v0 = vld [vmem:[%s18545_s3 + $0xc08] sm:$0xff] }
 0x335   : > { %9405 = vmatprep.subr.bf16.mxu0 %v12048_v25  ;;  %8939 = vmatmul.mubr.bf16.gmra.mxu1 %v15709_v1  ;;  %v8542_v33 = vadd.f32 %v8541_v38, %v15616_v41  ;;  %v8654_v56 = vpop.f32.mrf.mxu1  ;;  %v5413_v25 = vld [vmem:[%s18545_s3 + $0xf0] sm:$0xff]  ;;  %v5816_v38 = vld [vmem:[%s18545_s3 + $0xd88] sm:$0xff]  ;;  %v12023_v1 = vcombine.low %v5401_v35, %v5405_v16 }
 0x336   : > { %9091 = vmatpush2.bf16.msra.mxu1 %v12205_v7  ;;  %9094 = vmatprep.mubr.bf16.mxu1 %v18825_v19  ;;  %v8543_v31 = vpop.f32.mrf.mxu0  ;;  %v12032_v7 = vcombine.high %v5409_v21, %v5413_v25  ;;  %v5808_v19 = vld [vmem:[%s18545_s3 + $0xd48] sm:$0xff] }
 0x337   : > { %9218 = vmatmul.mubr.bf16.gmra.mxu0 %v18824_v40  ;;  %v15737_v47 = vadd.f32 %v8654_v56, %v8542_v33  ;;  %v8544_v52 = vadd.f32 %v8543_v31, %v15652_v10  ;;  %v8656_v30 = vpop.f32.mrf.mxu1  ;;  %9092 = vmatprep.subr.bf16.mxu1 %v12198_v28  ;;  %v12024_v40 = vcombine.high %v5401_v35, %v5405_v16 }
 0x338   : > { %9227 = vmatprep.mubr.bf16.mxu0 %v18826_v62  ;;  %9406 = vmatpush1.bf16.msra.mxu0 %v12047_v22  ;;  %v8545_v57 = vpop.f32.mrf.mxu0 }
 0x339   : > { %9407 = vmatprep.subr.bf16.mxu0 %v12040_v58  ;;  %v15746_v62 = vadd.f32 %v8656_v30, %v8544_v52  ;;  %v8546_v22 = vadd.f32 %v8545_v57, %v15616_v41  ;;  %v8658_v33 = vpop.f32.mrf.mxu1  ;;  %v12445_v58 = vcombine.low %v5824_v23, %v5828_v54  ;;  %v12031_v52 = vcombine.low %v5409_v21, %v5413_v25  ;;  %v18827_v57 = vld [vmem:[#allocation21_spill] sm:$0xff]  ;;  %v5812_v23 = vld [vmem:[%s18545_s3 + $0xd68] sm:$0xff]  ;;  %v18829_v21 = vld [vmem:[#allocation24_spill] sm:$0xff] }
 0x33a   : > { %9093 = vmatpush2.bf16.msra.mxu1 %v12197_v51  ;;  %v15755_v28 = vpop.f32.mrf.mxu0  ;;  %v12438_v30 = vcombine.high %v5816_v38, %v5820_v61  ;;  %v5393_v25 = vld [vmem:[%s18545_s3 + $0x50] sm:$0xff]  ;;  %v12430_v14 = vcombine.high %v5808_v19, %v5812_v23 }
 0x33b   : > { %9288 = vmatprep.subr.bf16.mxu1 %v12446_v2  ;;  %v15757_v56 = vadd.f32 %v8658_v33, %v8546_v22  ;;  %v15759_v31 = vpop.f32.mrf.mxu1  ;;  %v18830_v22 = vld [vmem:[#allocation48_spill] sm:$0xff] }
 0x33c   : > { %9408 = vmatpush1.bf16.msra.mxu0 %v12039_v12  ;;  %v8551_v51 = vpop.f32.mrf.mxu0  ;;  %v18828_v12 = vld [vmem:[#allocation45_spill] sm:$0xff] }
 0x33d   : > { %9095 = vmatmul.mubr.bf16.vlgmr.msra.gmra.mxu1 %v18827_v57  ;;  %9409 = vmatprep.subr.bf16.mxu0 %v12032_v7  ;;  %v8552_v54 = vadd.f32 %v8551_v51, %v15616_v41  ;;  %v8664_v2 = vpop.f32.mrf.mxu1  ;;  %v5397_v7 = vld [vmem:[%s18545_s3 + $0x70] sm:$0xff]  ;;  %v12437_v57 = vcombine.low %v5816_v38, %v5820_v61  ;;  %v5804_v61 = vld [vmem:[%s18545_s3 + $0xd28] sm:$0xff] }
 0x33e   : > { %9104 = vmatprep.mubr.bf16.mxu1 %v18829_v21  ;;  %9289 = vmatpush1.bf16.msra.mxu1 %v12445_v58  ;;  %v8553_v33 = vpop.f32.mrf.mxu0  ;;  %v12016_v32 = vcombine.high %v5393_v25, %v5397_v7  ;;  %v5385_v58 = vld [vmem:[%s18545_s3 + $0x10] sm:$0xff] }
 0x33f   : > { %9228 = vmatmul.mubr.bf16.gmra.mxu0 %v18828_v12  ;;  %v15778_v51 = vadd.f32 %v8664_v2, %v8552_v54  ;;  %v8554_v12 = vadd.f32 %v8553_v33, %v15652_v10  ;;  %v8666_v21 = vpop.f32.mrf.mxu1  ;;  %9290 = vmatprep.subr.bf16.mxu1 %v12438_v30  ;;  %v12429_v30 = vcombine.low %v5808_v19, %v5812_v23  ;;  %v18831_v33 = vld [vmem:[#allocation23_spill] sm:$0xff]  ;;  %v5796_v19 = vld [vmem:[%s18545_s3 + $0xce8] sm:$0xff] }
 0x340   : > { %9237 = vmatprep.mubr.bf16.mxu0 %v18830_v22  ;;  %9410 = vmatpush1.bf16.msra.mxu0 %v12031_v52  ;;  %v8555_v44 = vpop.f32.mrf.mxu0 }
 0x341   : > { %9411 = vmatprep.subr.bf16.mxu0 %v12024_v40  ;;  %v15787_v38 = vadd.f32 %v8666_v21, %v8554_v12  ;;  %v8556_v35 = vadd.f32 %v8555_v44, %v15616_v41  ;;  %v8668_v16 = vpop.f32.mrf.mxu1  ;;  %v5389_v40 = vld [vmem:[%s18545_s3 + $0x30] sm:$0xff]  ;;  %v12015_v44 = vcombine.low %v5393_v25, %v5397_v7  ;;  %v12422_v12 = vcombine.high %v5800_v24, %v5804_v61  ;;  %v18834_v7 = vld [vmem:[#allocation38_spill] sm:$0xff] }
 0x342   : > { %9291 = vmatpush1.bf16.msra.mxu1 %v12437_v57  ;;  %v15796_v52 = vpop.f32.mrf.mxu0  ;;  %v12008_v22 = vcombine.high %v5385_v58, %v5389_v40  ;;  %v5792_v57 = vld [vmem:[%s18545_s3 + $0xcc8] sm:$0xff]  ;;  %v5509_v25 = vld [vmem:[%s18545_s3 + $0x3f0] sm:$0xff]  ;;  %v12007_v36 = vcombine.low %v5385_v58, %v5389_v40 }
 0x343   : > { %v15798_v54 = vadd.f32 %v8668_v16, %v8556_v35  ;;  %v15800_v2 = vpop.f32.mrf.mxu1  ;;  %9292 = vmatprep.subr.bf16.mxu1 %v12430_v14  ;;  %v18832_v35 = vld [vmem:[#allocation47_spill] sm:$0xff]  ;;  %v18833_v14 = vld [vmem:[#allocation26_spill] sm:$0xff]  ;;  %v12414_v55 = vcombine.high %v5792_v57, %v5796_v19 }
 0x344   : > { %9412 = vmatpush1.bf16.msra.mxu0 %v12023_v1  ;;  %v8561_v21 = vpop.f32.mrf.mxu0 }
 0x345   : > { %9105 = vmatmul.mubr.bf16.gmra.mxu1 %v18831_v33  ;;  %9413 = vmatprep.subr.bf16.mxu0 %v12016_v32  ;;  %v8562_v1 = vadd.f32 %v8561_v21, %v15616_v41  ;;  %v8674_v23 = vpop.f32.mrf.mxu1  ;;  %v5505_v32 = vld [vmem:[%s18545_s3 + $0x3d0] sm:$0xff]  ;;  %v12421_v33 = vcombine.low %v5800_v24, %v5804_v61  ;;  %v5788_v24 = vld [vmem:[%s18545_s3 + $0xca8] sm:$0xff] }
 0x346   : > { %9114 = vmatprep.mubr.bf16.mxu1 %v18833_v14  ;;  %9293 = vmatpush1.bf16.msra.mxu1 %v12429_v30  ;;  %v8563_v16 = vpop.f32.mrf.mxu0  ;;  %v12128_v4 = vcombine.high %v5505_v32, %v5509_v25  ;;  %v5497_v30 = vld [vmem:[%s18545_s3 + $0x390] sm:$0xff] }
 0x347   : > { %9238 = vmatmul.mubr.bf16.gmra.mxu0 %v18832_v35  ;;  %v15819_v21 = vadd.f32 %v8674_v23, %v8562_v1  ;;  %v8564_v35 = vadd.f32 %v8563_v16, %v15652_v10  ;;  %v8676_v14 = vpop.f32.mrf.mxu1  ;;  %9294 = vmatprep.subr.bf16.mxu1 %v12422_v12  ;;  %v12413_v12 = vcombine.low %v5792_v57, %v5796_v19  ;;  %v18835_v16 = vld [vmem:[#allocation25_spill] sm:$0xff]  ;;  %v5780_v57 = vld [vmem:[%s18545_s3 + $0xc68] sm:$0xff] }
 0x348   : > { %9247 = vmatprep.mubr.bf16.mxu0 %v18834_v7  ;;  %9414 = vmatpush1.bf16.msra.mxu0 %v12015_v44  ;;  %v8565_v5 = vpop.f32.mrf.mxu0 }
 0x349   : > { %9415 = vmatprep.subr.bf16.mxu0 %v12008_v22  ;;  %v15828_v61 = vadd.f32 %v8676_v14, %v8564_v35  ;;  %v8566_v58 = vadd.f32 %v8565_v5, %v15616_v41  ;;  %v8678_v40 = vpop.f32.mrf.mxu1  ;;  %v5501_v22 = vld [vmem:[%s18545_s3 + $0x3b0] sm:$0xff]  ;;  %v12127_v5 = vcombine.low %v5505_v32, %v5509_v25  ;;  %v12406_v35 = vcombine.high %v5784_v53, %v5788_v24  ;;  %v18838_v25 = vld [vmem:[#allocation49_spill] sm:$0xff] }
 0x34a   : > { %9295 = vmatpush1.bf16.msra.mxu1 %v12421_v33  ;;  %v15837_v44 = vpop.f32.mrf.mxu0  ;;  %v12120_v7 = vcombine.high %v5497_v30, %v5501_v22  ;;  %v5776_v33 = vld [vmem:[%s18545_s3 + $0xc48] sm:$0xff]  ;;  %v5493_v32 = vld [vmem:[%s18545_s3 + $0x370] sm:$0xff]  ;;  %v12119_v29 = vcombine.low %v5497_v30, %v5501_v22 }
 0x34b   : > { %v15839_v1 = vadd.f32 %v8678_v40, %v8566_v58  ;;  %v15841_v23 = vpop.f32.mrf.mxu1  ;;  %9296 = vmatprep.subr.bf16.mxu1 %v12414_v55  ;;  %v18836_v58 = vld [vmem:[#allocation37_spill] sm:$0xff]  ;;  %v18837_v55 = vld [vmem:[#allocation28_spill] sm:$0xff]  ;;  %v12398_v11 = vcombine.high %v5776_v33, %v5780_v57 }
 0x34c   : > { %9416 = vmatpush1.bf16.msra.mxu0 %v12007_v36  ;;  %v8571_v14 = vpop.f32.mrf.mxu0 }
 0x34d   : > { %9115 = vmatmul.mubr.bf16.gmra.mxu1 %v18835_v16  ;;  %9417 = vmatprep.subr.bf16.mxu0 %v12128_v4  ;;  %v8572_v36 = vadd.f32 %v8571_v14, %v15616_v41  ;;  %v8684_v19 = vpop.f32.mrf.mxu1  ;;  %v5489_v4 = vld [vmem:[%s18545_s3 + $0x350] sm:$0xff]  ;;  %v12405_v16 = vcombine.low %v5784_v53, %v5788_v24  ;;  %v5772_v53 = vld [vmem:[%s18545_s3 + $0xc28] sm:$0xff] }
 0x34e   : > { %9124 = vmatprep.mubr.bf16.mxu1 %v18837_v55  ;;  %9297 = vmatpush1.bf16.msra.mxu1 %v12413_v12  ;;  %v8573_v40 = vpop.f32.mrf.mxu0  ;;  %v12112_v37 = vcombine.high %v5489_v4, %v5493_v32  ;;  %v5481_v12 = vld [vmem:[%s18545_s3 + $0x310] sm:$0xff] }
 0x34f   : > { %9248 = vmatmul.mubr.bf16.gmra.mxu0 %v18836_v58  ;;  %v15860_v14 = vadd.f32 %v8684_v19, %v8572_v36  ;;  %v8574_v58 = vadd.f32 %v8573_v40, %v15652_v10  ;;  %v8686_v55 = vpop.f32.mrf.mxu1  ;;  %9298 = vmatprep.subr.bf16.mxu1 %v12406_v35  ;;  %v12397_v35 = vcombine.low %v5776_v33, %v5780_v57  ;;  %v18842_v40 = vld [vmem:[#allocation27_spill] sm:$0xff]  ;;  %v5892_v33 = vld [vmem:[%s18545_s3 + $0xfe8] sm:$0xff] }
 0x350   : > { %9257 = vmatprep.mubr.bf16.mxu0 %v18838_v25  ;;  %9418 = vmatpush2.bf16.msra.mxu0 %v12127_v5  ;;  %v8575_v48 = vpop.f32.mrf.mxu0 }
 0x351   : > { %9419 = vmatprep.subr.bf16.mxu0 %v12120_v7  ;;  %v15869_v24 = vadd.f32 %v8686_v55, %v8574_v58  ;;  %v8576_v30 = vadd.f32 %v8575_v48, %v15616_v41  ;;  %v8688_v22 = vpop.f32.mrf.mxu1  ;;  %v5485_v7 = vld [vmem:[%s18545_s3 + $0x330] sm:$0xff]  ;;  %v12111_v48 = vcombine.low %v5489_v4, %v5493_v32  ;;  %v12390_v58 = vcombine.high %v5768_v0, %v5772_v53  ;;  %v18845_v32 = vld [vmem:[#allocation41_spill] sm:$0xff] }
 0x352   : > { %9299 = vmatpush1.bf16.msra.mxu1 %v12405_v16  ;;  %v15878_v5 = vpop.f32.mrf.mxu0  ;;  %v12104_v25 = vcombine.high %v5481_v12, %v5485_v7  ;;  %v5888_v16 = vld [vmem:[%s18545_s3 + $0xfc8] sm:$0xff]  ;;  %v5477_v4 = vld [vmem:[%s18545_s3 + $0x2f0] sm:$0xff]  ;;  %v12103_v59 = vcombine.low %v5481_v12, %v5485_v7 }
 0x353   : > { %18839 = vst [vmem:[#allocation62_spill] sm:$0xff] %v15869_v24  ;;  %v15880_v36 = vadd.f32 %v8688_v22, %v8576_v30  ;;  %v15882_v19 = vpop.f32.mrf.mxu1  ;;  %9300 = vmatprep.subr.bf16.mxu1 %v12398_v11  ;;  %v18843_v30 = vld [vmem:[#allocation39_spill] sm:$0xff]  ;;  %v18844_v11 = vld [vmem:[#allocation30_spill] sm:$0xff]  ;;  %v12510_v13 = vcombine.high %v5888_v16, %v5892_v33 }
 0x354   : > { %9420 = vmatpush2.bf16.msra.mxu0 %v12119_v29  ;;  %18841 = vst [vmem:[#allocation67_spill] sm:$0xff] %v15882_v19  ;;  %v8581_v55 = vpop.f32.mrf.mxu0  ;;  %v5880_v24 = vld [vmem:[%s18545_s3 + $0xf88] sm:$0xff] }
 0x355   : > { %18840 = vst [vmem:[#allocation64_spill] sm:$0xff] %v15880_v36  ;;  %9125 = vmatmul.mubr.bf16.gmra.mxu1 %v18842_v40  ;;  %9421 = vmatprep.subr.bf16.mxu0 %v12112_v37  ;;  %v8582_v29 = vadd.f32 %v8581_v55, %v15616_v41  ;;  %v8694_v57 = vpop.f32.mrf.mxu1  ;;  %v5473_v37 = vld [vmem:[%s18545_s3 + $0x2d0] sm:$0xff]  ;;  %v12389_v40 = vcombine.low %v5768_v0, %v5772_v53  ;;  %v5884_v0 = vld [vmem:[%s18545_s3 + $0xfa8] sm:$0xff] }
 0x356   : > { %9134 = vmatprep.mubr.bf16.mxu1 %v18844_v11  ;;  %9301 = vmatpush1.bf16.msra.mxu1 %v12397_v35  ;;  %v8583_v22 = vpop.f32.mrf.mxu0  ;;  %v12096_v19 = vcombine.high %v5473_v37, %v5477_v4  ;;  %v5465_v35 = vld [vmem:[%s18545_s3 + $0x290] sm:$0xff] }
 0x357   : > { %9258 = vmatmul.mubr.bf16.gmra.mxu0 %v18843_v30  ;;  %v15901_v55 = vadd.f32 %v8694_v57, %v8582_v29  ;;  %v8584_v30 = vadd.f32 %v8583_v22, %v15652_v10  ;;  %v8696_v11 = vpop.f32.mrf.mxu1  ;;  %9302 = vmatprep.subr.bf16.mxu1 %v12390_v58  ;;  %v12509_v58 = vcombine.low %v5888_v16, %v5892_v33  ;;  %v18851_v22 = vld [vmem:[#allocation29_spill] sm:$0xff]  ;;  %v5876_v16 = vld [vmem:[%s18545_s3 + $0xf68] sm:$0xff] }
 0x358   : > { %9267 = vmatprep.mubr.bf16.mxu0 %v18845_v32  ;;  %9422 = vmatpush2.bf16.msra.mxu0 %v12111_v48  ;;  %v8585_v36 = vpop.f32.mrf.mxu0 }
 0x359   : > { %18846 = vst [vmem:[#allocation66_spill] sm:$0xff] %v15901_v55  ;;  %9423 = vmatprep.subr.bf16.mxu0 %v12104_v25  ;;  %v15910_v53 = vadd.f32 %v8696_v11, %v8584_v30  ;;  %v8586_v12 = vadd.f32 %v8585_v36, %v15616_v41  ;;  %v8698_v7 = vpop.f32.mrf.mxu1  ;;  %v5469_v25 = vld [vmem:[%s18545_s3 + $0x2b0] sm:$0xff]  ;;  %v12095_v36 = vcombine.low %v5473_v37, %v5477_v4 }
 0x35a   : > { %9303 = vmatpush1.bf16.msra.mxu1 %v12389_v40  ;;  %v15919_v48 = vpop.f32.mrf.mxu0  ;;  %v12502_v30 = vcombine.high %v5880_v24, %v5884_v0  ;;  %v12088_v32 = vcombine.high %v5465_v35, %v5469_v25  ;;  %v5872_v40 = vld [vmem:[%s18545_s3 + $0xf48] sm:$0xff]  ;;  %v5461_v37 = vld [vmem:[%s18545_s3 + $0x270] sm:$0xff] }
 0x35b   : > { %18847 = vst [vmem:[#allocation65_spill] sm:$0xff] %v15910_v53  ;;  %18848 = vst [vmem:[#allocation63_spill] sm:$0xff] %v15919_v48  ;;  %v15921_v29 = vadd.f32 %v8698_v7, %v8586_v12  ;;  %v15923_v57 = vpop.f32.mrf.mxu1  ;;  %9304 = vmatprep.subr.bf16.mxu1 %v12510_v13  ;;  %v18852_v12 = vld [vmem:[#allocation40_spill] sm:$0xff]  ;;  %v18854_v4 = vld [vmem:[#allocation51_spill] sm:$0xff] }
 0x35c   : > { %9424 = vmatpush2.bf16.msra.mxu0 %v12103_v59  ;;  %18850 = vst [vmem:[#allocation75_spill] sm:$0xff] %v15923_v57  ;;  %v18853_v13 = vld [vmem:[#allocation32_spill] sm:$0xff]  ;;  %v12494_v57 = vcombine.high %v5872_v40, %v5876_v16  ;;  %v5864_v48 = vld [vmem:[%s18545_s3 + $0xf08] sm:$0xff] }
 0x35d   : > { %18849 = vst [vmem:[#allocation68_spill] sm:$0xff] %v15921_v29  ;;  %9135 = vmatmul.mubr.bf16.gmra.mxu1 %v18851_v22  ;;  %9425 = vmatprep.subr.bf16.mxu0 %v12096_v19  ;;  %v5457_v19 = vld [vmem:[%s18545_s3 + $0x250] sm:$0xff]  ;;  %v12501_v22 = vcombine.low %v5880_v24, %v5884_v0  ;;  %v12087_v29 = vcombine.low %v5465_v35, %v5469_v25  ;;  %v5868_v24 = vld [vmem:[%s18545_s3 + $0xf28] sm:$0xff] }
 0x35e   : > { %v8591_v11 = vpop.f32.mrf.mxu0  ;;  %9144 = vmatprep.mubr.bf16.mxu1 %v18853_v13  ;;  %9305 = vmatpush2.bf16.msra.mxu1 %v12509_v58  ;;  %v12080_v55 = vcombine.high %v5457_v19, %v5461_v37  ;;  %v5449_v58 = vld [vmem:[%s18545_s3 + $0x210] sm:$0xff] }
 0x35f   : > { %v8592_v59 = vadd.f32 %v8591_v11, %v15616_v41  ;;  %v8704_v33 = vpop.f32.mrf.mxu1  ;;  %9268 = vmatmul.mubr.bf16.gmra.mxu0 %v18852_v12  ;;  %9306 = vmatprep.subr.bf16.mxu1 %v12502_v30  ;;  %v12493_v30 = vcombine.low %v5872_v40, %v5876_v16  ;;  %v5860_v40 = vld [vmem:[%s18545_s3 + $0xee8] sm:$0xff] }
 0x360   : > { %9277 = vmatprep.mubr.bf16.mxu0 %v18854_v4  ;;  %v8593_v7 = vpop.f32.mrf.mxu0  ;;  %9426 = vmatpush2.bf16.msra.mxu0 %v12095_v36 }
 0x361   : > { %v15942_v11 = vadd.f32 %v8704_v33, %v8592_v59  ;;  %v8594_v12 = vadd.f32 %v8593_v7, %v15652_v10  ;;  %v8706_v13 = vpop.f32.mrf.mxu1  ;;  %9427 = vmatprep.subr.bf16.mxu0 %v12088_v32  ;;  %v5453_v32 = vld [vmem:[%s18545_s3 + $0x230] sm:$0xff] }
 0x362   : > { %v8595_v53 = vpop.f32.mrf.mxu0  ;;  %9307 = vmatpush2.bf16.msra.mxu1 %v12501_v22  ;;  %v18860_v7 = vld [vmem:[#allocation31_spill] sm:$0xff]  ;;  %v12072_v4 = vcombine.high %v5449_v58, %v5453_v32  ;;  %v5856_v22 = vld [vmem:[%s18545_s3 + $0xec8] sm:$0xff] }
 0x363   : > { %18855 = vst [vmem:[#allocation76_spill] sm:$0xff] %v15942_v11  ;;  %v15951_v0 = vadd.f32 %v8706_v13, %v8594_v12  ;;  %v8596_v35 = vadd.f32 %v8595_v53, %v15616_v41  ;;  %v8708_v25 = vpop.f32.mrf.mxu1  ;;  %9308 = vmatprep.subr.bf16.mxu1 %v12494_v57  ;;  %v12079_v53 = vcombine.low %v5457_v19, %v5461_v37  ;;  %v18862_v57 = vld [vmem:[#allocation34_spill] sm:$0xff]  ;;  %v5701_v19 = vld [vmem:[%s18545_s3 + $0x9f0] sm:$0xff] }
 0x364   : > { %v15960_v36 = vpop.f32.mrf.mxu0  ;;  %9428 = vmatpush2.bf16.msra.mxu0 %v12087_v29  ;;  %v12486_v12 = vcombine.high %v5864_v48, %v5868_v24  ;;  %v18863_v37 = vld [vmem:[#allocation7_spill] sm:$0xff] }
 0x365   : > { %18856 = vst [vmem:[#allocation77_spill] sm:$0xff] %v15951_v0  ;;  %18857 = vst [vmem:[#allocation78_spill] sm:$0xff] %v15960_v36  ;;  %v15962_v59 = vadd.f32 %v8708_v25, %v8596_v35  ;;  %v15964_v33 = vpop.f32.mrf.mxu1  ;;  %9145 = vmatmul.mubr.bf16.gmra.mxu1 %v18860_v7  ;;  %9429 = vmatprep.subr.bf16.mxu0 %v12080_v55  ;;  %v18861_v35 = vld [vmem:[#allocation50_spill] sm:$0xff]  ;;  %v5697_v55 = vld [vmem:[%s18545_s3 + $0x9d0] sm:$0xff]  ;;  %v12485_v7 = vcombine.low %v5864_v48, %v5868_v24 }
 0x366   : > { %18859 = vst [vmem:[#allocation80_spill] sm:$0xff] %v15964_v33  ;;  %v8601_v13 = vpop.f32.mrf.mxu0  ;;  %9154 = vmatprep.mubr.bf16.mxu1 %v18862_v57  ;;  %9309 = vmatpush2.bf16.msra.mxu1 %v12493_v30  ;;  %v12478_v33 = vcombine.high %v5856_v22, %v5860_v40  ;;  %v12320_v11 = vcombine.high %v5697_v55, %v5701_v19  ;;  %v5848_v30 = vld [vmem:[%s18545_s3 + $0xe88] sm:$0xff] }
 0x367   : > { %18858 = vst [vmem:[#allocation79_spill] sm:$0xff] %v15962_v59  ;;  %v8602_v29 = vadd.f32 %v8601_v13, %v15616_v41  ;;  %v8714_v16 = vpop.f32.mrf.mxu1  ;;  %9278 = vmatmul.mubr.bf16.gmra.mxu0 %v18861_v35  ;;  %v12071_v59 = vcombine.low %v5449_v58, %v5453_v32  ;;  %9310 = vmatprep.subr.bf16.mxu1 %v12486_v12  ;;  %v5852_v24 = vld [vmem:[%s18545_s3 + $0xea8] sm:$0xff]  ;;  %v5689_v58 = vld [vmem:[%s18545_s3 + $0x990] sm:$0xff] }
 0x368   : > { %9433 = vmatprep.mubr.bf16.mxu0 %v18863_v37  ;;  %v8603_v25 = vpop.f32.mrf.mxu0  ;;  %9430 = vmatpush2.bf16.msra.mxu0 %v12079_v53  ;;  %v12477_v12 = vcombine.low %v5856_v22, %v5860_v40  ;;  %v18866_v22 = vld [vmem:[#allocation36_spill] sm:$0xff] }
 0x369   : > { %v15983_v13 = vadd.f32 %v8714_v16, %v8602_v29  ;;  %v8604_v35 = vadd.f32 %v8603_v25, %v15652_v10  ;;  %v8716_v57 = vpop.f32.mrf.mxu1  ;;  %9431 = vmatprep.subr.bf16.mxu0 %v12072_v4  ;;  %v5693_v4 = vld [vmem:[%s18545_s3 + $0x9b0] sm:$0xff]  ;;  %v12470_v16 = vcombine.high %v5848_v30, %v5852_v24 }
 0x36a   : > { %v8605_v0 = vpop.f32.mrf.mxu0  ;;  %9311 = vmatpush2.bf16.msra.mxu1 %v12485_v7  ;;  %v5844_v7 = vld [vmem:[%s18545_s3 + $0xe68] sm:$0xff] }
 0x36b   : > { %v15989_v36 = vadd.f32 %v8716_v57, %v8604_v35  ;;  %v8606_v48 = vadd.f32 %v8605_v0, %v15616_v41  ;;  %v8718_v32 = vpop.f32.mrf.mxu1  ;;  %9312 = vmatprep.subr.bf16.mxu1 %v12478_v33  ;;  %v12319_v41 = vcombine.low %v5697_v55, %v5701_v19  ;;  %v18865_v0 = vld [vmem:[#allocation33_spill] sm:$0xff]  ;;  %v12312_v35 = vcombine.high %v5689_v58, %v5693_v4  ;;  %v5840_v57 = vld [vmem:[%s18545_s3 + $0xe48] sm:$0xff] }
 0x36c   : > { %v16001_v53 = vpop.f32.mrf.mxu0  ;;  %9432 = vmatpush2.bf16.msra.mxu0 %v12071_v59  ;;  %v5681_v59 = vld [vmem:[%s18545_s3 + $0x950] sm:$0xff]  ;;  %v8538_v33 = vadd.f32 %v15711_v43, %v15652_v10  ;;  %v18867_v55 = vld [vmem:[#allocation6_spill] sm:$0xff]  ;;  %v12469_v19 = vcombine.low %v5848_v30, %v5852_v24 }
 0x36d   : > { %v16003_v29 = vadd.f32 %v8718_v32, %v8606_v48  ;;  %9155 = vmatmul.mubr.bf16.gmra.mxu1 %v18865_v0  ;;  %9627 = vmatprep.subr.bf16.mxu0 %v12320_v11  ;;  %v5685_v11 = vld [vmem:[%s18545_s3 + $0x970] sm:$0xff]  ;;  %v18868_v48 = vld [vmem:[#allocation8_spill] sm:$0xff]  ;;  %v12462_v0 = vcombine.high %v5840_v57, %v5844_v7  ;;  %v5836_v30 = vld [vmem:[%s18545_s3 + $0xe28] sm:$0xff] }
 0x36e   : > { %9164 = vmatprep.mubr.bf16.mxu1 %v18866_v22  ;;  %9313 = vmatpush2.bf16.msra.mxu1 %v12477_v12  ;;  %v12311_v22 = vcombine.low %v5689_v58, %v5693_v4  ;;  %v5673_v24 = vld [vmem:[%s18545_s3 + $0x910] sm:$0xff]  ;;  %v8651_v58 = vadd.f32 %v15715_v27, %v8538_v33  ;;  %v12461_v12 = vcombine.low %v5840_v57, %v5844_v7 }
 0x36f   : > { %18864 = vst [vmem:[#allocation81_spill] sm:$0xff] %v16003_v29  ;;  %v8757_v25 = vpop.f32.mrf.mxu0  ;;  %9434 = vmatmul.mubr.bf16.vlgmr.msra.gmra.mxu0 %v18867_v55  ;;  %9314 = vmatprep.subr.bf16.mxu1 %v12470_v16  ;;  %v12304_v29 = vcombine.high %v5681_v59, %v5685_v11  ;;  %v12303_v16 = vcombine.low %v5681_v59, %v5685_v11  ;;  %v5569_v27 = vld [vmem:[%s18545_s3 + $0x5d0] sm:$0xff] }
 0x370   : > { %v16022_v40 = vadd.f32 %v8757_v25, %v15688_v42  ;;  %9443 = vmatprep.mubr.bf16.mxu0 %v18868_v48  ;;  %9628 = vmatpush1.bf16.msra.mxu0 %v12319_v41  ;;  %v5832_v42 = vld [vmem:[%s18545_s3 + $0xe08] sm:$0xff]  ;;  %v18869_v25 = vld [vmem:[#allocation35_spill] sm:$0xff]  ;;  %v8548_v7 = vadd.f32 %v15755_v28, %v15652_v10 }
 0x371   : > { %v8759_v32 = vpop.f32.mrf.mxu0  ;;  %9629 = vmatprep.subr.bf16.mxu0 %v12312_v35  ;;  %v12453_v59 = vcombine.low %v5832_v42, %v5836_v30 }
 0x372   : > { %v16027_v37 = vadd.f32 %v8759_v32, %v15699_v6  ;;  %v5677_v6 = vld [vmem:[%s18545_s3 + $0x930] sm:$0xff]  ;;  %9315 = vmatpush2.bf16.msra.mxu1 %v12469_v19  ;;  %v12454_v32 = vcombine.high %v5832_v42, %v5836_v30  ;;  %v8661_v30 = vadd.f32 %v15759_v31, %v8548_v7 }
 0x373   : > { %v8761_v43 = vpop.f32.mrf.mxu0  ;;  %9316 = vmatprep.subr.bf16.mxu1 %v12462_v0  ;;  %v12296_v48 = vcombine.high %v5673_v24, %v5677_v6  ;;  %v5665_v0 = vld [vmem:[%s18545_s3 + $0x8d0] sm:$0xff]  ;;  %v12295_v33 = vcombine.low %v5673_v24, %v5677_v6 }
 0x374   : > { %v16043_v4 = vadd.f32 %v8761_v43, %v15713_v60  ;;  %9630 = vmatpush1.bf16.msra.mxu0 %v12311_v22  ;;  %v5573_v60 = vld [vmem:[%s18545_s3 + $0x5f0] sm:$0xff] }
 0x375   : > { %v8763_v41 = vpop.f32.mrf.mxu0  ;;  %9165 = vmatmul.mubr.bf16.gmra.mxu1 %v18869_v25  ;;  %9631 = vmatprep.subr.bf16.mxu0 %v12304_v29  ;;  %v5669_v29 = vld [vmem:[%s18545_s3 + $0x8f0] sm:$0xff]  ;;  %v12192_v19 = vcombine.high %v5569_v27, %v5573_v60 }
 0x376   : > { %v16045_v35 = vadd.f32 %v8763_v41, %v8651_v58  ;;  %9320 = vmatprep.mubr.bf16.mxu1 %v15208_v3  ;;  %9317 = vmatpush2.bf16.msra.mxu1 %v12461_v12  ;;  %v12288_v58 = vcombine.high %v5665_v0, %v5669_v29  ;;  %v5565_v42 = vld [vmem:[%s18545_s3 + $0x5b0] sm:$0xff]  ;;  %v12191_v12 = vcombine.low %v5569_v27, %v5573_v60 }
 0x377   : > { %v8767_v57 = vpop.f32.mrf.mxu0  ;;  %9444 = vmatmul.mubr.bf16.gmra.mxu0 %v13636_v50  ;;  %9318 = vmatprep.subr.bf16.mxu1 %v12454_v32  ;;  %v5557_v7 = vld [vmem:[%s18545_s3 + $0x570] sm:$0xff]  ;;  %v8558_v27 = vadd.f32 %v15796_v52, %v15652_v10 }
 0x378   : > { %v16064_v22 = vadd.f32 %v8767_v57, %v15737_v47  ;;  %9453 = vmatprep.mubr.bf16.mxu0 %v18722_v8  ;;  %9632 = vmatpush1.bf16.msra.mxu0 %v12303_v16  ;;  %v5561_v47 = vld [vmem:[%s18545_s3 + $0x590] sm:$0xff]  ;;  %v12287_v16 = vcombine.low %v5665_v0, %v5669_v29 }
 0x379   : > { %v8769_v11 = vpop.f32.mrf.mxu0  ;;  %9633 = vmatprep.subr.bf16.mxu0 %v12296_v48  ;;  %v5661_v48 = vld [vmem:[%s18545_s3 + $0x8b0] sm:$0xff]  ;;  %v12184_v31 = vcombine.high %v5561_v47, %v5565_v42  ;;  %v12183_v52 = vcombine.low %v5561_v47, %v5565_v42  ;;  %v8671_v47 = vadd.f32 %v15800_v2, %v8558_v27 }
 0x37a   : > { %v16069_v43 = vadd.f32 %v8769_v11, %v15746_v62  ;;  %9319 = vmatpush2.bf16.msra.mxu1 %v12453_v59  ;;  %v5657_v62 = vld [vmem:[%s18545_s3 + $0x890] sm:$0xff] }
 0x37b   : > { %v8771_v28 = vpop.f32.mrf.mxu0  ;;  %9514 = vmatprep.subr.bf16.mxu1 %v12192_v19  ;;  %v12280_v32 = vcombine.high %v5657_v62, %v5661_v48  ;;  %v5553_v57 = vld [vmem:[%s18545_s3 + $0x550] sm:$0xff]  ;;  %v12279_v11 = vcombine.low %v5657_v62, %v5661_v48 }
 0x37c   : > { %v16079_v24 = vadd.f32 %v8771_v28, %v15757_v56  ;;  %9634 = vmatpush1.bf16.msra.mxu0 %v12295_v33  ;;  %v5649_v0 = vld [vmem:[%s18545_s3 + $0x850] sm:$0xff]  ;;  %v12176_v33 = vcombine.high %v5553_v57, %v5557_v7 }
 0x37d   : > { %v8773_v6 = vpop.f32.mrf.mxu0  ;;  %9635 = vmatprep.subr.bf16.mxu0 %v12288_v58  ;;  %9321 = vmatmul.mubr.bf16.vlgmr.msra.gmra.mxu1 %v15212_v39  ;;  %v5653_v29 = vld [vmem:[%s18545_s3 + $0x870] sm:$0xff] }
 0x37e   : > { %v16087_v41 = vadd.f32 %v8773_v6, %v8661_v30  ;;  %9330 = vmatprep.mubr.bf16.mxu1 %v15283_v34  ;;  %9515 = vmatpush1.bf16.msra.mxu1 %v12191_v12  ;;  %v12272_v58 = vcombine.high %v5649_v0, %v5653_v29  ;;  %v5545_v28 = vld [vmem:[%s18545_s3 + $0x510] sm:$0xff]  ;;  %v12175_v6 = vcombine.low %v5553_v57, %v5557_v7 }
 0x37f   : > { %v8777_v56 = vpop.f32.mrf.mxu0  ;;  %9454 = vmatmul.mubr.bf16.gmra.mxu0 %v18725_v20  ;;  %9516 = vmatprep.subr.bf16.mxu1 %v12184_v31  ;;  %v5549_v30 = vld [vmem:[%s18545_s3 + $0x530] sm:$0xff]  ;;  %v8568_v57 = vadd.f32 %v15837_v44, %v15652_v10 }
 0x380   : > { %v16099_v60 = vadd.f32 %v8777_v56, %v15778_v51  ;;  %9463 = vmatprep.mubr.bf16.mxu0 %v18726_v46  ;;  %9636 = vmatpush1.bf16.msra.mxu0 %v12287_v16  ;;  %v5645_v62 = vld [vmem:[%s18545_s3 + $0x830] sm:$0xff]  ;;  %v12271_v16 = vcombine.low %v5649_v0, %v5653_v29  ;;  %v12168_v2 = vcombine.high %v5545_v28, %v5549_v30  ;;  %v18903_v46 = vld [vmem:[#allocation22_spill] sm:$0xff] }
 0x381   : > { %v8779_v59 = vpop.f32.mrf.mxu0  ;;  %9637 = vmatprep.subr.bf16.mxu0 %v12280_v32  ;;  %v5537_v56 = vld [vmem:[%s18545_s3 + $0x4d0] sm:$0xff]  ;;  %v12167_v44 = vcombine.low %v5545_v28, %v5549_v30  ;;  %v8681_v28 = vadd.f32 %v15841_v23, %v8568_v57 }
 0x382   : > { %v16111_v51 = vadd.f32 %v8779_v59, %v15787_v38  ;;  %v5641_v38 = vld [vmem:[%s18545_s3 + $0x810] sm:$0xff]  ;;  %9517 = vmatpush1.bf16.msra.mxu1 %v12183_v52 }
 0x383   : > { %v8781_v19 = vpop.f32.mrf.mxu0  ;;  %9518 = vmatprep.subr.bf16.mxu1 %v12176_v33  ;;  %v5541_v32 = vld [vmem:[%s18545_s3 + $0x4f0] sm:$0xff]  ;;  %v12263_v59 = vcombine.low %v5641_v38, %v5645_v62 }
 0x384   : > { %v16121_v42 = vadd.f32 %v8781_v19, %v15798_v54  ;;  %9638 = vmatpush1.bf16.msra.mxu0 %v12279_v11  ;;  %v12264_v54 = vcombine.high %v5641_v38, %v5645_v62  ;;  %v5761_v27 = vld [vmem:[%s18545_s3 + $0xbd0] sm:$0xff]  ;;  %v12160_v52 = vcombine.high %v5537_v56, %v5541_v32  ;;  %v12159_v62 = vcombine.low %v5537_v56, %v5541_v32 }
 0x385   : > { %v8783_v48 = vpop.f32.mrf.mxu0  ;;  %9331 = vmatmul.mubr.bf16.gmra.mxu1 %v15289_v26  ;;  %9639 = vmatprep.subr.bf16.mxu0 %v12272_v58  ;;  %v5765_v0 = vld [vmem:[%s18545_s3 + $0xbf0] sm:$0xff] }
 0x386   : > { %v16129_v12 = vadd.f32 %v8783_v48, %v8671_v47  ;;  %9340 = vmatprep.mubr.bf16.mxu1 %v15355_v18  ;;  %9519 = vmatpush1.bf16.msra.mxu1 %v12175_v6  ;;  %v12384_v33 = vcombine.high %v5761_v27, %v5765_v0  ;;  %v5529_v19 = vld [vmem:[%s18545_s3 + $0x490] sm:$0xff]  ;;  %v12383_v6 = vcombine.low %v5761_v27, %v5765_v0 }
 0x387   : > { %v8787_v31 = vpop.f32.mrf.mxu0  ;;  %9464 = vmatmul.mubr.bf16.gmra.mxu0 %v18729_v45  ;;  %9520 = vmatprep.subr.bf16.mxu1 %v12168_v2  ;;  %v5533_v58 = vld [vmem:[%s18545_s3 + $0x4b0] sm:$0xff]  ;;  %v18895_v45 = vld [vmem:[#allocation81_spill] sm:$0xff] }
 0x388   : > { %v16141_v7 = vadd.f32 %v8787_v31, %v15819_v21  ;;  %9473 = vmatprep.mubr.bf16.mxu0 %v18730_v49  ;;  %9640 = vmatpush1.bf16.msra.mxu0 %v12271_v16  ;;  %v5757_v47 = vld [vmem:[%s18545_s3 + $0xbb0] sm:$0xff]  ;;  %v12152_v23 = vcombine.high %v5529_v19, %v5533_v58 }
 0x389   : > { %v8789_v29 = vpop.f32.mrf.mxu0  ;;  %9641 = vmatprep.subr.bf16.mxu0 %v12264_v54  ;;  %v5521_v2 = vld [vmem:[%s18545_s3 + $0x450] sm:$0xff]  ;;  %v8578_v54 = vadd.f32 %v15878_v5, %v15652_v10  ;;  %v12151_v5 = vcombine.low %v5529_v19, %v5533_v58  ;;  %v18872_v58 = vld [vmem:[#allocation64_spill] sm:$0xff] }
 0x38a   : > { %v16153_v21 = vadd.f32 %v8789_v29, %v15828_v61  ;;  %v5753_v61 = vld [vmem:[%s18545_s3 + $0xb90] sm:$0xff]  ;;  %9521 = vmatpush1.bf16.msra.mxu1 %v12167_v44 }
 0x38b   : > { %v8791_v11 = vpop.f32.mrf.mxu0  ;;  %9522 = vmatprep.subr.bf16.mxu1 %v12160_v52  ;;  %v5525_v31 = vld [vmem:[%s18545_s3 + $0x470] sm:$0xff]  ;;  %v12375_v29 = vcombine.low %v5753_v61, %v5757_v47 }
 0x38c   : > { %v16163_v30 = vadd.f32 %v8791_v11, %v15839_v1  ;;  %9642 = vmatpush1.bf16.msra.mxu0 %v12263_v59  ;;  %v12376_v1 = vcombine.high %v5753_v61, %v5757_v47  ;;  %v5745_v32 = vld [vmem:[%s18545_s3 + $0xb50] sm:$0xff]  ;;  %v12144_v44 = vcombine.high %v5521_v2, %v5525_v31 }
 0x38d   : > { %v8793_v38 = vpop.f32.mrf.mxu0  ;;  %9341 = vmatmul.mubr.bf16.gmra.mxu1 %v15361_v15  ;;  %9643 = vmatprep.subr.bf16.mxu0 %v12384_v33  ;;  %v5749_v57 = vld [vmem:[%s18545_s3 + $0xb70] sm:$0xff] }
 0x38e   : > { %v16171_v48 = vadd.f32 %v8793_v38, %v8681_v28  ;;  %9350 = vmatprep.mubr.bf16.mxu1 %v15427_v9  ;;  %9523 = vmatpush1.bf16.msra.mxu1 %v12159_v62  ;;  %v12368_v52 = vcombine.high %v5745_v32, %v5749_v57  ;;  %v5513_v11 = vld [vmem:[%s18545_s3 + $0x410] sm:$0xff] }
 0x38f   : > { %v8797_v16 = vpop.f32.mrf.mxu0  ;;  %9474 = vmatmul.mubr.bf16.gmra.mxu0 %v18733_v17  ;;  %9524 = vmatprep.subr.bf16.mxu1 %v12152_v23  ;;  %v5517_v33 = vld [vmem:[%s18545_s3 + $0x430] sm:$0xff] }
 0x390   : > { %v16183_v56 = vadd.f32 %v8797_v16, %v15860_v14  ;;  %9483 = vmatprep.mubr.bf16.mxu0 %v18734_v63  ;;  %9644 = vmatpush2.bf16.msra.mxu0 %v12383_v6  ;;  %v18870_v14 = vld [vmem:[#allocation62_spill] sm:$0xff]  ;;  %v18871_v28 = vld [vmem:[#allocation67_spill] sm:$0xff]  ;;  %v12143_v6 = vcombine.low %v5521_v2, %v5525_v31  ;;  %v12367_v16 = vcombine.low %v5745_v32, %v5749_v57  ;;  %v18877_v57 = vld [vmem:[#allocation56_spill] sm:$0xff] }
 0x391   : > { %v8799_v27 = vpop.f32.mrf.mxu0  ;;  %9645 = vmatprep.subr.bf16.mxu0 %v12376_v1  ;;  %v8691_v19 = vadd.f32 %v18871_v28, %v8578_v54  ;;  %v5737_v61 = vld [vmem:[%s18545_s3 + $0xb10] sm:$0xff]  ;;  %v12136_v1 = vcombine.high %v5513_v11, %v5517_v33 }
 0x392   : > { %v16195_v0 = vadd.f32 %v8799_v27, %v18870_v14  ;;  %v5741_v47 = vld [vmem:[%s18545_s3 + $0xb30] sm:$0xff]  ;;  %9525 = vmatpush1.bf16.msra.mxu1 %v12151_v5  ;;  %v18873_v27 = vld [vmem:[#allocation53_spill] sm:$0xff] }
 0x393   : > { %v8801_v59 = vpop.f32.mrf.mxu0  ;;  %9526 = vmatprep.subr.bf16.mxu1 %v12144_v44  ;;  %v12360_v14 = vcombine.high %v5737_v61, %v5741_v47  ;;  %v5637_v5 = vld [vmem:[%s18545_s3 + $0x7f0] sm:$0xff] }
 0x394   : > { %v16205_v38 = vadd.f32 %v8801_v59, %v18872_v58  ;;  %9646 = vmatpush2.bf16.msra.mxu0 %v12375_v29  ;;  %v5633_v59 = vld [vmem:[%s18545_s3 + $0x7d0] sm:$0xff]  ;;  %v18875_v29 = vld [vmem:[#allocation66_spill] sm:$0xff] }
 0x395   : > { %v8803_v62 = vpop.f32.mrf.mxu0  ;;  %9351 = vmatmul.mubr.bf16.gmra.mxu1 %v18873_v27  ;;  %9647 = vmatprep.subr.bf16.mxu0 %v12368_v52  ;;  %v18874_v2 = vld [vmem:[#allocation63_spill] sm:$0xff] }
 0x396   : > { %v16213_v23 = vadd.f32 %v8803_v62, %v8691_v19  ;;  %v8588_v31 = vadd.f32 %v18874_v2, %v15652_v10  ;;  %v18876_v32 = vld [vmem:[#allocation15_spill] sm:$0xff]  ;;  %9360 = vmatprep.mubr.bf16.mxu1 %v18877_v57  ;;  %v18878_v19 = vld [vmem:[#allocation18_spill] sm:$0xff]  ;;  %9527 = vmatpush1.bf16.msra.mxu1 %v12143_v6  ;;  %v12135_v62 = vcombine.low %v5513_v11, %v5517_v33  ;;  %v18881_v33 = vld [vmem:[#allocation68_spill] sm:$0xff] }
 0x397   : > { %v8807_v54 = vpop.f32.mrf.mxu0  ;;  %9484 = vmatmul.mubr.bf16.gmra.mxu0 %v18876_v32  ;;  %v5729_v52 = vld [vmem:[%s18545_s3 + $0xad0] sm:$0xff]  ;;  %9528 = vmatprep.subr.bf16.mxu1 %v12136_v1  ;;  %v12256_v57 = vcombine.high %v5633_v59, %v5637_v5 }
 0x398   : > { %v16225_v44 = vadd.f32 %v8807_v54, %v18875_v29  ;;  %v5733_v28 = vld [vmem:[%s18545_s3 + $0xaf0] sm:$0xff]  ;;  %9493 = vmatprep.mubr.bf16.mxu0 %v18878_v19  ;;  %9648 = vmatpush2.bf16.msra.mxu0 %v12367_v16  ;;  %v18879_v54 = vld [vmem:[#allocation65_spill] sm:$0xff]  ;;  %v12359_v29 = vcombine.low %v5737_v61, %v5741_v47 }
 0x399   : > { %v8809_v58 = vpop.f32.mrf.mxu0  ;;  %9649 = vmatprep.subr.bf16.mxu0 %v12360_v14  ;;  %v12352_v27 = vcombine.high %v5729_v52, %v5733_v28  ;;  %v5625_v63 = vld [vmem:[%s18545_s3 + $0x790] sm:$0xff]  ;;  %v12255_v14 = vcombine.low %v5633_v59, %v5637_v5  ;;  %v18883_v59 = vld [vmem:[#allocation78_spill] sm:$0xff] }
 0x39a   : > { %v16237_v2 = vadd.f32 %v8809_v58, %v18879_v54  ;;  %v5629_v6 = vld [vmem:[%s18545_s3 + $0x7b0] sm:$0xff]  ;;  %9529 = vmatpush1.bf16.msra.mxu1 %v12135_v62  ;;  %v12351_v54 = vcombine.low %v5729_v52, %v5733_v28  ;;  %v8598_v5 = vadd.f32 %v18883_v59, %v15652_v10  ;;  %v18885_v52 = vld [vmem:[#allocation17_spill] sm:$0xff]  ;;  %v18886_v28 = vld [vmem:[#allocation54_spill] sm:$0xff] }
 0x39b   : > { %v8811_v32 = vpop.f32.mrf.mxu0  ;;  %v18880_v19 = vld [vmem:[#allocation75_spill] sm:$0xff]  ;;  %9530 = vmatprep.subr.bf16.mxu1 %v12256_v57  ;;  %v12247_v59 = vcombine.low %v5625_v63, %v5629_v6 }
 0x39c   : > { %v8701_v11 = vadd.f32 %v18880_v19, %v8588_v31  ;;  %v16247_v16 = vadd.f32 %v8811_v32, %v18881_v33  ;;  %v5721_v61 = vld [vmem:[%s18545_s3 + $0xa90] sm:$0xff]  ;;  %9650 = vmatpush2.bf16.msra.mxu0 %v12359_v29  ;;  %v12248_v31 = vcombine.high %v5625_v63, %v5629_v6  ;;  %v18884_v29 = vld [vmem:[#allocation76_spill] sm:$0xff] }
 0x39d   : > { %v5725_v47 = vld [vmem:[%s18545_s3 + $0xab0] sm:$0xff]  ;;  %v8813_v1 = vpop.f32.mrf.mxu0  ;;  %9651 = vmatprep.subr.bf16.mxu0 %v12352_v27 }
 0x39e   : > { %v16255_v58 = vadd.f32 %v8813_v1, %v8701_v11  ;;  %v18882_v32 = vld [vmem:[#allocation55_spill] sm:$0xff]  ;;  %v12344_v33 = vcombine.high %v5721_v61, %v5725_v47  ;;  %v18887_v1 = vld [vmem:[#allocation20_spill] sm:$0xff]  ;;  %9531 = vmatpush2.bf16.msra.mxu1 %v12255_v14 }
 0x39f   : > { %v8817_v19 = vpop.f32.mrf.mxu0  ;;  %9361 = vmatmul.mubr.bf16.gmra.mxu1 %v18882_v32  ;;  %v5617_v9 = vld [vmem:[%s18545_s3 + $0x750] sm:$0xff]  ;;  %9494 = vmatmul.mubr.bf16.gmra.mxu0 %v18885_v52  ;;  %v12343_v52 = vcombine.low %v5721_v61, %v5725_v47 }
 0x3a0   : > { %v5621_v62 = vld [vmem:[%s18545_s3 + $0x770] sm:$0xff]  ;;  %v16267_v57 = vadd.f32 %v8817_v19, %v18884_v29  ;;  %9370 = vmatprep.mubr.bf16.mxu1 %v18886_v28  ;;  %9503 = vmatprep.mubr.bf16.mxu0 %v18887_v1  ;;  %v18888_v19 = vld [vmem:[#allocation77_spill] sm:$0xff]  ;;  %v18889_v1 = vld [vmem:[#allocation80_spill] sm:$0xff] }
 0x3a1   : > { %v5713_v27 = vld [vmem:[%s18545_s3 + $0xa50] sm:$0xff]  ;;  %v8819_v32 = vpop.f32.mrf.mxu0  ;;  %9652 = vmatpush2.bf16.msra.mxu0 %v12351_v54  ;;  %9532 = vmatprep.subr.bf16.mxu1 %v12248_v31  ;;  %v12240_v28 = vcombine.high %v5617_v9, %v5621_v62  ;;  %v8711_v63 = vadd.f32 %v18889_v1, %v8598_v5 }
 0x3a2   : > { %v5717_v11 = vld [vmem:[%s18545_s3 + $0xa70] sm:$0xff]  ;;  %v16279_v29 = vadd.f32 %v8819_v32, %v18888_v19  ;;  %9653 = vmatprep.subr.bf16.mxu0 %v12344_v33  ;;  %9533 = vmatpush2.bf16.msra.mxu1 %v12247_v59  ;;  %v12239_v32 = vcombine.low %v5617_v9, %v5621_v62  ;;  %v8608_v9 = vadd.f32 %v16001_v53, %v15652_v10 }
 0x3a3   : > { %v8821_v17 = vpop.f32.mrf.mxu0  ;;  %v12336_v15 = vcombine.high %v5713_v27, %v5717_v11  ;;  %v5609_v49 = vld [vmem:[%s18545_s3 + $0x710] sm:$0xff]  ;;  %9534 = vmatprep.subr.bf16.mxu1 %v12240_v28  ;;  %v12335_v19 = vcombine.low %v5713_v27, %v5717_v11  ;;  %v18893_v28 = vld [vmem:[#allocation61_spill] sm:$0xff]  ;;  %v5446_v27 = vld [vmem:[%s18545_s3 + $0x1f8] sm:$0xff] }
 0x3a4   : > { %v5613_v14 = vld [vmem:[%s18545_s3 + $0x730] sm:$0xff]  ;;  %v18894_v11 = vld [vmem:[#allocation42_spill] sm:$0xff] }
 0x3a5   : > { %v18890_v6 = vld [vmem:[#allocation79_spill] sm:$0xff]  ;;  %v8823_v31 = vpop.f32.mrf.mxu0  ;;  %9654 = vmatpush2.bf16.msra.mxu0 %v12343_v52  ;;  %v12232_v5 = vcombine.high %v5609_v49, %v5613_v14  ;;  %v12231_v10 = vcombine.low %v5609_v49, %v5613_v14  ;;  %v5438_v14 = vld [vmem:[%s18545_s3 + $0x1b8] sm:$0xff] }
 0x3a6   : > { %v16289_v54 = vadd.f32 %v8821_v17, %v18890_v6  ;;  %v5705_v61 = vld [vmem:[%s18545_s3 + $0xa10] sm:$0xff]  ;;  %v16297_v33 = vadd.f32 %v8823_v31, %v8711_v63  ;;  %v18891_v17 = vld [vmem:[#allocation57_spill] sm:$0xff]  ;;  %9655 = vmatprep.subr.bf16.mxu0 %v12336_v15  ;;  %v5442_v15 = vld [vmem:[%s18545_s3 + $0x1d8] sm:$0xff]  ;;  %9535 = vmatpush2.bf16.msra.mxu1 %v12239_v32 }
 0x3a7   : > { %v5709_v47 = vld [vmem:[%s18545_s3 + $0xa30] sm:$0xff]  ;;  %v8827_v1 = vpop.f32.mrf.mxu0  ;;  %9371 = vmatmul.mubr.bf16.gmra.mxu1 %v18891_v17  ;;  %9536 = vmatprep.subr.bf16.mxu1 %v12232_v5 }
 0x3a8   : > { %v12328_v6 = vcombine.high %v5705_v61, %v5709_v47  ;;  %v5601_v18 = vld [vmem:[%s18545_s3 + $0x6d0] sm:$0xff]  ;;  %v16309_v62 = vadd.f32 %v8827_v1, %v15983_v13  ;;  %9380 = vmatprep.mubr.bf16.mxu1 %v18893_v28  ;;  %v12327_v53 = vcombine.low %v5705_v61, %v5709_v47  ;;  %v8720_v1 = vpop.f32.mrf.mxu1 }
 0x3a9   : > { %v5605_v59 = vld [vmem:[%s18545_s3 + $0x6f0] sm:$0xff]  ;;  %v8829_v63 = vpop.f32.mrf.mxu0  ;;  %9656 = vmatpush2.bf16.msra.mxu0 %v12335_v19  ;;  %v8721_v32 = vadd.f32 %v8720_v1, %v8608_v9 }
 0x3aa   : > { %v18892_v52 = vld [vmem:[#allocation19_spill] sm:$0xff]  ;;  %v16321_v13 = vadd.f32 %v8829_v63, %v15989_v36  ;;  %v12224_v31 = vcombine.high %v5601_v18, %v5605_v59  ;;  %9657 = vmatprep.subr.bf16.mxu0 %v12328_v6  ;;  %v5434_v36 = vld [vmem:[%s18545_s3 + $0x198] sm:$0xff]  ;;  %9537 = vmatpush2.bf16.msra.mxu1 %v12231_v10  ;;  %v12223_v47 = vcombine.low %v5601_v18, %v5605_v59 }
 0x3ab   : > { %9504 = vmatmul.mubr.bf16.gmra.mxu0 %v18892_v52  ;;  %v8831_v28 = vpop.f32.mrf.mxu0  ;;  %v12066_v52 = vcombine.high %v5442_v15, %v5446_v27  ;;  %v5593_v17 = vld [vmem:[%s18545_s3 + $0x690] sm:$0xff]  ;;  %v18896_v6 = vld [vmem:[#allocation60_spill] sm:$0xff]  ;;  %v12057_v1 = vcombine.low %v5434_v36, %v5438_v14 }
 0x3ac   : > { %9659 = vmatprep.mubr.bf16.mxu0 %v18894_v11  ;;  %v16327_v11 = vadd.f32 %v8831_v28, %v18895_v45  ;;  %v5597_v49 = vld [vmem:[%s18545_s3 + $0x6b0] sm:$0xff]  ;;  %9538 = vmatprep.subr.bf16.mxu1 %v12224_v31  ;;  %v12065_v45 = vcombine.low %v5442_v15, %v5446_v27  ;;  %v12058_v28 = vcombine.high %v5434_v36, %v5438_v14  ;;  %v5426_v15 = vld [vmem:[%s18545_s3 + $0x158] sm:$0xff]  ;;  %v18898_v27 = vld [vmem:[#allocation10_spill] sm:$0xff] }
 0x3ad   : > { %v8833_v61 = vpop.f32.mrf.mxu0  ;;  %9658 = vmatpush2.bf16.msra.mxu0 %v12327_v53  ;;  %v12216_v9 = vcombine.high %v5593_v17, %v5597_v49  ;;  %v5585_v63 = vld [vmem:[%s18545_s3 + $0x650] sm:$0xff]  ;;  %v12215_v53 = vcombine.low %v5593_v17, %v5597_v49  ;;  %v18899_v31 = vld [vmem:[#allocation44_spill] sm:$0xff] }
 0x3ae   : > { %v16338_v19 = vadd.f32 %v8833_v61, %v8721_v32  ;;  %9853 = vmatprep.subr.bf16.mxu0 %v12066_v52  ;;  %v5589_v18 = vld [vmem:[%s18545_s3 + $0x670] sm:$0xff]  ;;  %v5430_v52 = vld [vmem:[%s18545_s3 + $0x178] sm:$0xff]  ;;  %9539 = vmatpush2.bf16.msra.mxu1 %v12223_v47 }
 0x3af   : > { %v16340_v5 = vpop.f32.mrf.mxu0  ;;  %9381 = vmatmul.mubr.bf16.gmra.mxu1 %v18896_v6  ;;  %v18897_v59 = vld [vmem:[#allocation59_spill] sm:$0xff]  ;;  %v12208_v32 = vcombine.high %v5585_v63, %v5589_v18  ;;  %9540 = vmatprep.subr.bf16.mxu1 %v12216_v9  ;;  %v5418_v17 = vld [vmem:[%s18545_s3 + $0x118] sm:$0xff]  ;;  %v12207_v14 = vcombine.low %v5585_v63, %v5589_v18 }
 0x3b0   : > { %9390 = vmatprep.mubr.bf16.mxu1 %v18897_v59  ;;  %v12050_v59 = vcombine.high %v5426_v15, %v5430_v52  ;;  %v5577_v6 = vld [vmem:[%s18545_s3 + $0x610] sm:$0xff]  ;;  %v5422_v49 = vld [vmem:[%s18545_s3 + $0x138] sm:$0xff] }
 0x3b1   : > { %v16357_v10 = vpop.f32.mrf.mxu0  ;;  %v5581_v47 = vld [vmem:[%s18545_s3 + $0x630] sm:$0xff]  ;;  %v5410_v63 = vld [vmem:[%s18545_s3 + $0xd8] sm:$0xff] }
 0x3b2   : > { %9541 = vmatpush2.bf16.msra.mxu1 %v12215_v53  ;;  %v5825_v26 = vld [vmem:[%s18545_s3 + $0xdd0] sm:$0xff]  ;;  %v5414_v18 = vld [vmem:[%s18545_s3 + $0xf8] sm:$0xff] }
 0x3b3   : > { %9660 = vmatmul.mubr.bf16.vlgmr.msra.gmra.mxu0 %v18898_v27  ;;  %v16360_v61 = vpop.f32.mrf.mxu0  ;;  %9542 = vmatprep.subr.bf16.mxu1 %v12208_v32  ;;  %v12042_v27 = vcombine.high %v5418_v17, %v5422_v49  ;;  %v5829_v53 = vld [vmem:[%s18545_s3 + $0xdf0] sm:$0xff]  ;;  %v12041_v32 = vcombine.low %v5418_v17, %v5422_v49 }
 0x3b4   : > { %9669 = vmatprep.mubr.bf16.mxu0 %v18899_v31  ;;  %9854 = vmatpush1.bf16.msra.mxu0 %v12065_v45  ;;  %v12049_v45 = vcombine.low %v5426_v15, %v5430_v52  ;;  %v12200_v31 = vcombine.high %v5577_v6, %v5581_v47  ;;  %v12199_v52 = vcombine.low %v5577_v6, %v5581_v47  ;;  %v5402_v47 = vld [vmem:[%s18545_s3 + $0x98] sm:$0xff] }
 0x3b5   : > { %9855 = vmatprep.subr.bf16.mxu0 %v12058_v28  ;;  %v16374_v36 = vpop.f32.mrf.mxu0  ;;  %v18902_v28 = vld [vmem:[#allocation58_spill] sm:$0xff]  ;;  %v12447_v17 = vcombine.low %v5825_v26, %v5829_v53 }
 0x3b6   : > { %18900 = vst [vmem:[#allocation6_spill] sm:$0xff] %v16374_v36  ;;  %9543 = vmatpush2.bf16.msra.mxu1 %v12207_v14  ;;  %v5817_v36 = vld [vmem:[%s18545_s3 + $0xd90] sm:$0xff] }
 0x3b7   : > { %v16376_v9 = vpop.f32.mrf.mxu0  ;;  %9391 = vmatmul.mubr.bf16.gmra.mxu1 %v18902_v28  ;;  %v12448_v28 = vcombine.high %v5825_v26, %v5829_v53  ;;  %9544 = vmatprep.subr.bf16.mxu1 %v12200_v31  ;;  %v5821_v14 = vld [vmem:[%s18545_s3 + $0xdb0] sm:$0xff] }
 0x3b8   : > { %9856 = vmatpush1.bf16.msra.mxu0 %v12057_v1  ;;  %18901 = vst [vmem:[#allocation62_spill] sm:$0xff] %v16376_v9  ;;  %9546 = vmatprep.mubr.bf16.mxu1 %v18903_v46  ;;  %v18906_v1 = vld [vmem:[#allocation46_spill] sm:$0xff]  ;;  %v12034_v9 = vcombine.high %v5410_v63, %v5414_v18  ;;  %v5813_v26 = vld [vmem:[%s18545_s3 + $0xd70] sm:$0xff] }
 0x3b9   : > { %9857 = vmatprep.subr.bf16.mxu0 %v12050_v59  ;;  %v18904_v59 = vld [vmem:[#allocation43_spill] sm:$0xff]  ;;  %v16393_v15 = vpop.f32.mrf.mxu0 }
 0x3ba   : > { %18905 = vst [vmem:[#allocation67_spill] sm:$0xff] %v16393_v15  ;;  %9545 = vmatpush2.bf16.msra.mxu1 %v12199_v52  ;;  %v12440_v52 = vcombine.high %v5817_v36, %v5821_v14  ;;  %v5809_v15 = vld [vmem:[%s18545_s3 + $0xd50] sm:$0xff] }
 0x3bb   : > { %9670 = vmatmul.mubr.bf16.gmra.mxu0 %v18904_v59  ;;  %v16396_v46 = vpop.f32.mrf.mxu0  ;;  %9740 = vmatprep.subr.bf16.mxu1 %v12448_v28  ;;  %v18910_v59 = vld [vmem:[#allocation21_spill] sm:$0xff] }
 0x3bc   : > { %9679 = vmatprep.mubr.bf16.mxu0 %v18906_v1  ;;  %9858 = vmatpush1.bf16.msra.mxu0 %v12049_v45  ;;  %18907 = vst [vmem:[#allocation64_spill] sm:$0xff] %v16396_v46  ;;  %v8870_v31 = vpop.f32.mrf.mxu1  ;;  %v12033_v1 = vcombine.low %v5410_v63, %v5414_v18  ;;  %v18911_v28 = vld [vmem:[#allocation45_spill] sm:$0xff]  ;;  %v5394_v63 = vld [vmem:[%s18545_s3 + $0x58] sm:$0xff] }
 0x3bd   : > { %9859 = vmatprep.subr.bf16.mxu0 %v12042_v27  ;;  %v16404_v6 = vpop.f32.mrf.mxu0  ;;  %v5406_v27 = vld [vmem:[%s18545_s3 + $0xb8] sm:$0xff]  ;;  %v8871_v49 = vadd.f32 %v8870_v31, %v16022_v40 }
 0x3be   : > { %18908 = vst [vmem:[#allocation63_spill] sm:$0xff] %v16404_v6  ;;  %v8872_v6 = vpop.f32.mrf.mxu1  ;;  %v12026_v46 = vcombine.high %v5402_v47, %v5406_v27  ;;  %v18912_v40 = vld [vmem:[#allocation24_spill] sm:$0xff] }
 0x3bf   : > { %v16413_v45 = vpop.f32.mrf.mxu0  ;;  %9547 = vmatmul.mubr.bf16.vlgmr.msra.gmra.mxu1 %v18910_v59  ;;  %v8873_v53 = vadd.f32 %v8872_v6, %v16027_v37  ;;  %v5398_v18 = vld [vmem:[%s18545_s3 + $0x78] sm:$0xff]  ;;  %v12439_v59 = vcombine.low %v5817_v36, %v5821_v14  ;;  %v12025_v37 = vcombine.low %v5402_v47, %v5406_v27  ;;  %v12432_v6 = vcombine.high %v5809_v15, %v5813_v26 }
 0x3c0   : > { %9860 = vmatpush1.bf16.msra.mxu0 %v12041_v32  ;;  %18909 = vst [vmem:[#allocation66_spill] sm:$0xff] %v16413_v45  ;;  %9556 = vmatprep.mubr.bf16.mxu1 %v18912_v40  ;;  %v18914_v32 = vld [vmem:[#allocation48_spill] sm:$0xff]  ;;  %v8874_v31 = vpop.f32.mrf.mxu1  ;;  %v5805_v45 = vld [vmem:[%s18545_s3 + $0xd30] sm:$0xff]  ;;  %v10305_v36 = vmax.f32 %v8871_v49, 0.0 }
 0x3c1   : > { %9861 = vmatprep.subr.bf16.mxu0 %v12034_v9  ;;  %v16425_v9 = vpop.f32.mrf.mxu0  ;;  %9741 = vmatpush1.bf16.msra.mxu1 %v12447_v17  ;;  %v8875_v40 = vadd.f32 %v8874_v31, %v16043_v4  ;;  %v5386_v47 = vld [vmem:[%s18545_s3 + $0x18] sm:$0xff]  ;;  %v12431_v31 = vcombine.low %v5809_v15, %v5813_v26  ;;  %v10306_v34 = vmax.f32 %v8873_v53, 0.0  ;;  %v5797_v15 = vld [vmem:[%s18545_s3 + $0xcf0] sm:$0xff]  ;;  %v18920_v53 = vld [vmem:[#allocation26_spill] sm:$0xff] }
 0x3c2   : > { %18913 = vst [vmem:[#allocation65_spill] sm:$0xff] %v16425_v9  ;;  %9742 = vmatprep.subr.bf16.mxu1 %v12440_v52  ;;  %v5801_v9 = vld [vmem:[%s18545_s3 + $0xd10] sm:$0xff]  ;;  %v8876_v17 = vpop.f32.mrf.mxu1  ;;  %v5390_v27 = vld [vmem:[%s18545_s3 + $0x38] sm:$0xff] }
 0x3c3   : > { %9680 = vmatmul.mubr.bf16.gmra.mxu0 %v18911_v28  ;;  %v16435_v28 = vpop.f32.mrf.mxu0  ;;  %v8877_v4 = vadd.f32 %v8876_v17, %v16045_v35  ;;  %v12010_v39 = vcombine.high %v5386_v47, %v5390_v27  ;;  %v18919_v26 = vld [vmem:[#allocation47_spill] sm:$0xff] }
 0x3c4   : > { %9689 = vmatprep.mubr.bf16.mxu0 %v18914_v32  ;;  %9862 = vmatpush1.bf16.msra.mxu0 %v12033_v1  ;;  %18915 = vst [vmem:[#allocation75_spill] sm:$0xff] %v16435_v28  ;;  %v12018_v32 = vcombine.high %v5394_v63, %v5398_v18  ;;  %v10313_v1 = vmax.f32 %v8875_v40, 0.0  ;;  %v8880_v52 = vpop.f32.mrf.mxu1  ;;  %v12424_v28 = vcombine.high %v5801_v9, %v5805_v45 }
 0x3c5   : > { %9863 = vmatprep.subr.bf16.mxu0 %v12026_v46  ;;  %v16444_v14 = vpop.f32.mrf.mxu0  ;;  %9743 = vmatpush1.bf16.msra.mxu1 %v12439_v59  ;;  %v12017_v46 = vcombine.low %v5394_v63, %v5398_v18  ;;  %v10314_v35 = vmax.f32 %v8877_v4, 0.0  ;;  %v8881_v40 = vadd.f32 %v8880_v52, %v16064_v22  ;;  %v5793_v59 = vld [vmem:[%s18545_s3 + $0xcd0] sm:$0xff]  ;;  %v5506_v18 = vld [vmem:[%s18545_s3 + $0x3d8] sm:$0xff]  ;;  %v12009_v4 = vcombine.low %v5386_v47, %v5390_v27 }
 0x3c6   : > { %18916 = vst [vmem:[#allocation68_spill] sm:$0xff] %v16444_v14  ;;  %v16452_v49 = vpack.c.bf16 %v10313_v1, %v10305_v36  ;;  %9744 = vmatprep.subr.bf16.mxu1 %v12432_v6  ;;  %v18918_v14 = vld [vmem:[#allocation23_spill] sm:$0xff]  ;;  %v8882_v20 = vpop.f32.mrf.mxu1  ;;  %v18922_v6 = vld [vmem:[#allocation38_spill] sm:$0xff]  ;;  %v12423_v1 = vcombine.low %v5801_v9, %v5805_v45  ;;  %v12416_v52 = vcombine.high %v5793_v59, %v5797_v15  ;;  %v5502_v47 = vld [vmem:[%s18545_s3 + $0x3b8] sm:$0xff] }
 0x3c7   : > { %v16455_v17 = vpop.f32.mrf.mxu0  ;;  %9557 = vmatmul.mubr.bf16.gmra.mxu1 %v18918_v14  ;;  %v8883_v22 = vadd.f32 %v8882_v20, %v16069_v43  ;;  %v10321_v45 = vmax.f32 %v8881_v40, 0.0 }
 0x3c8   : > { %18917 = vst [vmem:[#allocation78_spill] sm:$0xff] %v16452_v49  ;;  %9864 = vmatpush1.bf16.msra.mxu0 %v12025_v37  ;;  %9566 = vmatprep.mubr.bf16.mxu1 %v18920_v53  ;;  %v16475_v37 = vpack.c.bf16 %v10314_v35, %v10306_v34  ;;  %v8884_v36 = vpop.f32.mrf.mxu1  ;;  %v5785_v49 = vld [vmem:[%s18545_s3 + $0xc90] sm:$0xff]  ;;  %v18924_v53 = vld [vmem:[#allocation25_spill] sm:$0xff] }
 0x3c9   : > { %9865 = vmatprep.subr.bf16.mxu0 %v12018_v32  ;;  %v16467_v63 = vpop.f32.mrf.mxu0  ;;  %v5510_v32 = vld [vmem:[%s18545_s3 + $0x3f8] sm:$0xff]  ;;  %9745 = vmatpush1.bf16.msra.mxu1 %v12431_v31  ;;  %v8885_v20 = vadd.f32 %v8884_v36, %v16079_v24  ;;  %v5789_v34 = vld [vmem:[%s18545_s3 + $0xcb0] sm:$0xff]  ;;  %v12415_v36 = vcombine.low %v5793_v59, %v5797_v15 }
 0x3ca   : > { %18921 = vst [vmem:[#allocation76_spill] sm:$0xff] %v16475_v37  ;;  %9746 = vmatprep.subr.bf16.mxu1 %v12424_v28  ;;  %v8886_v31 = vpop.f32.mrf.mxu1  ;;  %v12130_v35 = vcombine.high %v5506_v18, %v5510_v32  ;;  %v5498_v28 = vld [vmem:[%s18545_s3 + $0x398] sm:$0xff]  ;;  %v12408_v37 = vcombine.high %v5785_v49, %v5789_v34  ;;  %v5777_v59 = vld [vmem:[%s18545_s3 + $0xc50] sm:$0xff] }
 0x3cb   : > { %9690 = vmatmul.mubr.bf16.gmra.mxu0 %v18919_v26  ;;  %v16479_v43 = vpop.f32.mrf.mxu0  ;;  %v10329_v9 = vmax.f32 %v8885_v20, 0.0  ;;  %v8887_v24 = vadd.f32 %v8886_v31, %v16087_v41  ;;  %v12122_v14 = vcombine.high %v5498_v28, %v5502_v47  ;;  %v5781_v15 = vld [vmem:[%s18545_s3 + $0xc70] sm:$0xff] }
 0x3cc   : > { %9699 = vmatprep.mubr.bf16.mxu0 %v18922_v6  ;;  %9866 = vmatpush1.bf16.msra.mxu0 %v12017_v46  ;;  %v8890_v27 = vpop.f32.mrf.mxu1  ;;  %v10322_v6 = vmax.f32 %v8883_v22, 0.0  ;;  %v18925_v22 = vld [vmem:[#allocation37_spill] sm:$0xff] }
 0x3cd   : > { %9867 = vmatprep.subr.bf16.mxu0 %v12010_v39  ;;  %v16488_v46 = vpop.f32.mrf.mxu0  ;;  %9747 = vmatpush1.bf16.msra.mxu1 %v12423_v1  ;;  %v12129_v39 = vcombine.low %v5506_v18, %v5510_v32  ;;  %v16496_v40 = vpack.c.bf16 %v10329_v9, %v10321_v45  ;;  %v10330_v41 = vmax.f32 %v8887_v24, 0.0  ;;  %v8891_v20 = vadd.f32 %v8890_v27, %v16099_v60  ;;  %v18926_v18 = vld [vmem:[#allocation28_spill] sm:$0xff] }
 0x3ce   : > { %9748 = vmatprep.subr.bf16.mxu1 %v12416_v52  ;;  %v8892_v26 = vpop.f32.mrf.mxu1  ;;  %v5490_v1 = vld [vmem:[%s18545_s3 + $0x358] sm:$0xff]  ;;  %v12407_v9 = vcombine.low %v5785_v49, %v5789_v34  ;;  %v12121_v24 = vcombine.low %v5498_v28, %v5502_v47  ;;  %v12400_v27 = vcombine.high %v5777_v59, %v5781_v15 }
 0x3cf   : > { %18923 = vst [vmem:[#allocation77_spill] sm:$0xff] %v16496_v40  ;;  %v16499_v31 = vpop.f32.mrf.mxu0  ;;  %9567 = vmatmul.mubr.bf16.gmra.mxu1 %v18924_v53  ;;  %v8893_v60 = vadd.f32 %v8892_v26, %v16111_v51  ;;  %v16519_v52 = vpack.c.bf16 %v10330_v41, %v10322_v6  ;;  %v5769_v40 = vld [vmem:[%s18545_s3 + $0xc10] sm:$0xff]  ;;  %v10337_v49 = vmax.f32 %v8891_v20, 0.0  ;;  %v5486_v28 = vld [vmem:[%s18545_s3 + $0x338] sm:$0xff] }
 0x3d0   : > { %9868 = vmatpush1.bf16.msra.mxu0 %v12009_v4  ;;  %9576 = vmatprep.mubr.bf16.mxu1 %v18926_v18  ;;  %v5494_v4 = vld [vmem:[%s18545_s3 + $0x378] sm:$0xff]  ;;  %v8894_v45 = vpop.f32.mrf.mxu1  ;;  %v5773_v6 = vld [vmem:[%s18545_s3 + $0xc30] sm:$0xff] }
 0x3d1   : > { %9869 = vmatprep.subr.bf16.mxu0 %v12130_v35  ;;  %v16511_v32 = vpop.f32.mrf.mxu0  ;;  %18927 = vst [vmem:[#allocation80_spill] sm:$0xff] %v16519_v52  ;;  %v18928_v35 = vld [vmem:[#allocation49_spill] sm:$0xff]  ;;  %9749 = vmatpush1.bf16.msra.mxu1 %v12415_v36  ;;  %v8895_v51 = vadd.f32 %v8894_v45, %v16121_v42  ;;  %v12114_v41 = vcombine.high %v5490_v1, %v5494_v4  ;;  %v18930_v18 = vld [vmem:[#allocation27_spill] sm:$0xff] }
 0x3d2   : > { %9750 = vmatprep.subr.bf16.mxu1 %v12408_v37  ;;  %v8896_v36 = vpop.f32.mrf.mxu1  ;;  %v5482_v37 = vld [vmem:[%s18545_s3 + $0x318] sm:$0xff]  ;;  %v12399_v45 = vcombine.low %v5777_v59, %v5781_v15  ;;  %v12392_v52 = vcombine.high %v5769_v40, %v5773_v6  ;;  %v5889_v59 = vld [vmem:[%s18545_s3 + $0xfd0] sm:$0xff] }
 0x3d3   : > { %9700 = vmatmul.mubr.bf16.gmra.mxu0 %v18925_v22  ;;  %v16523_v26 = vpop.f32.mrf.mxu0  ;;  %v10345_v34 = vmax.f32 %v8895_v51, 0.0  ;;  %v8897_v42 = vadd.f32 %v8896_v36, %v16129_v12  ;;  %v12106_v53 = vcombine.high %v5482_v37, %v5486_v28  ;;  %v5893_v15 = vld [vmem:[%s18545_s3 + $0xff0] sm:$0xff] }
 0x3d4   : > { %9709 = vmatprep.mubr.bf16.mxu0 %v18928_v35  ;;  %9870 = vmatpush2.bf16.msra.mxu0 %v12129_v39  ;;  %v8900_v47 = vpop.f32.mrf.mxu1  ;;  %v10338_v35 = vmax.f32 %v8893_v60, 0.0  ;;  %v18931_v60 = vld [vmem:[#allocation39_spill] sm:$0xff] }
 0x3d5   : > { %9871 = vmatprep.subr.bf16.mxu0 %v12122_v14  ;;  %v16532_v39 = vpop.f32.mrf.mxu0  ;;  %9751 = vmatpush1.bf16.msra.mxu1 %v12407_v9  ;;  %v12113_v14 = vcombine.low %v5490_v1, %v5494_v4  ;;  %v16540_v20 = vpack.c.bf16 %v10345_v34, %v10337_v49  ;;  %v10346_v12 = vmax.f32 %v8897_v42, 0.0  ;;  %v8901_v51 = vadd.f32 %v8900_v47, %v16141_v7  ;;  %v18932_v1 = vld [vmem:[#allocation30_spill] sm:$0xff]  ;;  %v5474_v9 = vld [vmem:[%s18545_s3 + $0x2d8] sm:$0xff] }
 0x3d6   : > { %9752 = vmatprep.subr.bf16.mxu1 %v12400_v27  ;;  %v8902_v22 = vpop.f32.mrf.mxu1  ;;  %v12391_v34 = vcombine.low %v5769_v40, %v5773_v6  ;;  %v12105_v42 = vcombine.low %v5482_v37, %v5486_v28  ;;  %v12512_v47 = vcombine.high %v5889_v59, %v5893_v15  ;;  %v5470_v37 = vld [vmem:[%s18545_s3 + $0x2b8] sm:$0xff] }
 0x3d7   : > { %18929 = vst [vmem:[#allocation79_spill] sm:$0xff] %v16540_v20  ;;  %v16543_v36 = vpop.f32.mrf.mxu0  ;;  %9577 = vmatmul.mubr.bf16.gmra.mxu1 %v18930_v18  ;;  %v8903_v7 = vadd.f32 %v8902_v22, %v16153_v21  ;;  %v16563_v27 = vpack.c.bf16 %v10346_v12, %v10338_v35  ;;  %v5881_v20 = vld [vmem:[%s18545_s3 + $0xf90] sm:$0xff]  ;;  %v10353_v40 = vmax.f32 %v8901_v51, 0.0 }
 0x3d8   : > { %9872 = vmatpush2.bf16.msra.mxu0 %v12121_v24  ;;  %9586 = vmatprep.mubr.bf16.mxu1 %v18932_v1  ;;  %v5478_v24 = vld [vmem:[%s18545_s3 + $0x2f8] sm:$0xff]  ;;  %v8904_v49 = vpop.f32.mrf.mxu1  ;;  %v5885_v35 = vld [vmem:[%s18545_s3 + $0xfb0] sm:$0xff]  ;;  %v18936_v1 = vld [vmem:[#allocation29_spill] sm:$0xff] }
 0x3d9   : > { %9873 = vmatprep.subr.bf16.mxu0 %v12114_v41  ;;  %v16555_v4 = vpop.f32.mrf.mxu0  ;;  %18933 = vst [vmem:[#allocation81_spill] sm:$0xff] %v16563_v27  ;;  %v18934_v41 = vld [vmem:[#allocation41_spill] sm:$0xff]  ;;  %9753 = vmatpush1.bf16.msra.mxu1 %v12399_v45  ;;  %v8905_v21 = vadd.f32 %v8904_v49, %v16163_v30  ;;  %v12098_v12 = vcombine.high %v5474_v9, %v5478_v24 }
 0x3da   : > { %9754 = vmatprep.subr.bf16.mxu1 %v12392_v52  ;;  %v8906_v45 = vpop.f32.mrf.mxu1  ;;  %v5466_v52 = vld [vmem:[%s18545_s3 + $0x298] sm:$0xff]  ;;  %v12511_v49 = vcombine.low %v5889_v59, %v5893_v15  ;;  %v12504_v27 = vcombine.high %v5881_v20, %v5885_v35  ;;  %v5873_v59 = vld [vmem:[%s18545_s3 + $0xf50] sm:$0xff] }
 0x3db   : > { %9710 = vmatmul.mubr.bf16.gmra.mxu0 %v18931_v60  ;;  %v16567_v22 = vpop.f32.mrf.mxu0  ;;  %v10361_v6 = vmax.f32 %v8905_v21, 0.0  ;;  %v8907_v30 = vadd.f32 %v8906_v45, %v16171_v48  ;;  %v12090_v18 = vcombine.high %v5466_v52, %v5470_v37  ;;  %v5877_v15 = vld [vmem:[%s18545_s3 + $0xf70] sm:$0xff] }
 0x3dc   : > { %9719 = vmatprep.mubr.bf16.mxu0 %v18934_v41  ;;  %9874 = vmatpush2.bf16.msra.mxu0 %v12113_v14  ;;  %v8910_v28 = vpop.f32.mrf.mxu1  ;;  %v10354_v41 = vmax.f32 %v8903_v7, 0.0  ;;  %v18937_v7 = vld [vmem:[#allocation40_spill] sm:$0xff] }
 0x3dd   : > { %9875 = vmatprep.subr.bf16.mxu0 %v12106_v53  ;;  %v16576_v14 = vpop.f32.mrf.mxu0  ;;  %9755 = vmatpush1.bf16.msra.mxu1 %v12391_v34  ;;  %v12097_v53 = vcombine.low %v5474_v9, %v5478_v24  ;;  %v16584_v51 = vpack.c.bf16 %v10361_v6, %v10353_v40  ;;  %v10362_v48 = vmax.f32 %v8907_v30, 0.0  ;;  %v8911_v21 = vadd.f32 %v8910_v28, %v16183_v56  ;;  %v18938_v9 = vld [vmem:[#allocation32_spill] sm:$0xff] }
 0x3de   : > { %9756 = vmatprep.subr.bf16.mxu1 %v12512_v47  ;;  %v8912_v60 = vpop.f32.mrf.mxu1  ;;  %v5458_v34 = vld [vmem:[%s18545_s3 + $0x258] sm:$0xff]  ;;  %v12503_v6 = vcombine.low %v5881_v20, %v5885_v35  ;;  %v12089_v30 = vcombine.low %v5466_v52, %v5470_v37  ;;  %v12496_v28 = vcombine.high %v5873_v59, %v5877_v15 }
 0x3df   : > { %18935 = vst [vmem:[#allocation82_spill] sm:$0xff] %v16584_v51  ;;  %v16587_v45 = vpop.f32.mrf.mxu0  ;;  %9587 = vmatmul.mubr.bf16.gmra.mxu1 %v18936_v1  ;;  %v8913_v56 = vadd.f32 %v8912_v60, %v16195_v0  ;;  %v16607_v47 = vpack.c.bf16 %v10362_v48, %v10354_v41  ;;  %v5865_v51 = vld [vmem:[%s18545_s3 + $0xf10] sm:$0xff]  ;;  %v10369_v20 = vmax.f32 %v8911_v21, 0.0  ;;  %v5454_v52 = vld [vmem:[%s18545_s3 + $0x238] sm:$0xff] }
 0x3e0   : > { %9876 = vmatpush2.bf16.msra.mxu0 %v12105_v42  ;;  %9596 = vmatprep.mubr.bf16.mxu1 %v18938_v9  ;;  %v5462_v42 = vld [vmem:[%s18545_s3 + $0x278] sm:$0xff]  ;;  %v8914_v40 = vpop.f32.mrf.mxu1  ;;  %v5869_v41 = vld [vmem:[%s18545_s3 + $0xf30] sm:$0xff] }
 0x3e1   : > { %9877 = vmatprep.subr.bf16.mxu0 %v12098_v12  ;;  %v16599_v24 = vpop.f32.mrf.mxu0  ;;  %18939 = vst [vmem:[#allocation83_spill] sm:$0xff] %v16607_v47  ;;  %v18940_v12 = vld [vmem:[#allocation51_spill] sm:$0xff]  ;;  %9757 = vmatpush2.bf16.msra.mxu1 %v12511_v49  ;;  %v8915_v0 = vadd.f32 %v8914_v40, %v16205_v38  ;;  %v12082_v48 = vcombine.high %v5458_v34, %v5462_v42 }
 0x3e2   : > { %9758 = vmatprep.subr.bf16.mxu1 %v12504_v27  ;;  %v8916_v49 = vpop.f32.mrf.mxu1  ;;  %v5450_v27 = vld [vmem:[%s18545_s3 + $0x218] sm:$0xff]  ;;  %v12495_v40 = vcombine.low %v5873_v59, %v5877_v15  ;;  %v12488_v47 = vcombine.high %v5865_v51, %v5869_v41  ;;  %v18942_v9 = vld [vmem:[#allocation31_spill] sm:$0xff] }
 0x3e3   : > { %9720 = vmatmul.mubr.bf16.gmra.mxu0 %v18937_v7  ;;  %v16611_v60 = vpop.f32.mrf.mxu0  ;;  %v10377_v35 = vmax.f32 %v8915_v0, 0.0  ;;  %v8917_v38 = vadd.f32 %v8916_v49, %v16213_v23  ;;  %v12074_v1 = vcombine.high %v5450_v27, %v5454_v52  ;;  %v5857_v59 = vld [vmem:[%s18545_s3 + $0xed0] sm:$0xff] }
 0x3e4   : > { %9729 = vmatprep.mubr.bf16.mxu0 %v18940_v12  ;;  %9878 = vmatpush2.bf16.msra.mxu0 %v12097_v53  ;;  %v8920_v37 = vpop.f32.mrf.mxu1  ;;  %v10370_v12 = vmax.f32 %v8913_v56, 0.0  ;;  %v5861_v15 = vld [vmem:[%s18545_s3 + $0xef0] sm:$0xff]  ;;  %v18943_v56 = vld [vmem:[#allocation50_spill] sm:$0xff] }
 0x3e5   : > { %9879 = vmatprep.subr.bf16.mxu0 %v12090_v18  ;;  %v16620_v53 = vpop.f32.mrf.mxu0  ;;  %9759 = vmatpush2.bf16.msra.mxu1 %v12503_v6  ;;  %v12081_v18 = vcombine.low %v5458_v34, %v5462_v42  ;;  %v16628_v21 = vpack.c.bf16 %v10377_v35, %v10369_v20  ;;  %v10378_v23 = vmax.f32 %v8917_v38, 0.0  ;;  %v8921_v0 = vadd.f32 %v8920_v37, %v16225_v44  ;;  %v18944_v34 = vld [vmem:[#allocation34_spill] sm:$0xff]  ;;  %v5698_v6 = vld [vmem:[%s18545_s3 + $0x9d8] sm:$0xff] }
 0x3e6   : > { %9760 = vmatprep.subr.bf16.mxu1 %v12496_v28  ;;  %v8922_v7 = vpop.f32.mrf.mxu1  ;;  %v12487_v35 = vcombine.low %v5865_v51, %v5869_v41  ;;  %v12073_v38 = vcombine.low %v5450_v27, %v5454_v52  ;;  %v12480_v37 = vcombine.high %v5857_v59, %v5861_v15  ;;  %v12479_v27 = vcombine.low %v5857_v59, %v5861_v15  ;;  %v5841_v59 = vld [vmem:[%s18545_s3 + $0xe50] sm:$0xff] }
 0x3e7   : > { %18941 = vst [vmem:[#allocation84_spill] sm:$0xff] %v16628_v21  ;;  %v16631_v49 = vpop.f32.mrf.mxu0  ;;  %9597 = vmatmul.mubr.bf16.gmra.mxu1 %v18942_v9  ;;  %v8923_v44 = vadd.f32 %v8922_v7, %v16237_v2  ;;  %v16651_v28 = vpack.c.bf16 %v10378_v23, %v10370_v12  ;;  %v5849_v12 = vld [vmem:[%s18545_s3 + $0xe90] sm:$0xff] }
 0x3e8   : > { %9880 = vmatpush2.bf16.msra.mxu0 %v12089_v30  ;;  %9606 = vmatprep.mubr.bf16.mxu1 %v18944_v34  ;;  %v5702_v30 = vld [vmem:[%s18545_s3 + $0x9f8] sm:$0xff]  ;;  %v8924_v20 = vpop.f32.mrf.mxu1  ;;  %v5845_v15 = vld [vmem:[%s18545_s3 + $0xe70] sm:$0xff] }
 0x3e9   : > { %9881 = vmatprep.subr.bf16.mxu0 %v12082_v48  ;;  %v16643_v42 = vpop.f32.mrf.mxu0  ;;  %18945 = vst [vmem:[#allocation85_spill] sm:$0xff] %v16651_v28  ;;  %9761 = vmatpush2.bf16.msra.mxu1 %v12495_v40  ;;  %v18946_v48 = vld [vmem:[#allocation7_spill] sm:$0xff]  ;;  %v8925_v2 = vadd.f32 %v8924_v20, %v16247_v16  ;;  %v12322_v34 = vcombine.high %v5698_v6, %v5702_v30  ;;  %v10385_v40 = vmax.f32 %v8921_v0, 0.0 }
 0x3ea   : > { %9762 = vmatprep.subr.bf16.mxu1 %v12488_v47  ;;  %v8926_v21 = vpop.f32.mrf.mxu1  ;;  %v5853_v16 = vld [vmem:[%s18545_s3 + $0xeb0] sm:$0xff]  ;;  %v5694_v47 = vld [vmem:[%s18545_s3 + $0x9b8] sm:$0xff]  ;;  %v12321_v52 = vcombine.low %v5698_v6, %v5702_v30 }
 0x3eb   : > { %9730 = vmatmul.mubr.bf16.gmra.mxu0 %v18943_v56  ;;  %v16655_v7 = vpop.f32.mrf.mxu0  ;;  %v10393_v23 = vmax.f32 %v8925_v2, 0.0  ;;  %v18948_v2 = vld [vmem:[#allocation33_spill] sm:$0xff]  ;;  %v12472_v56 = vcombine.high %v5849_v12, %v5853_v16  ;;  %v5686_v30 = vld [vmem:[%s18545_s3 + $0x978] sm:$0xff] }
 0x3ec   : > { %9885 = vmatprep.mubr.bf16.mxu0 %v18946_v48  ;;  %9882 = vmatpush2.bf16.msra.mxu0 %v12081_v18  ;;  %v8927_v48 = vadd.f32 %v8926_v21, %v16255_v58  ;;  %v10386_v18 = vmax.f32 %v8923_v44, 0.0  ;;  %v18949_v44 = vld [vmem:[#allocation36_spill] sm:$0xff] }
 0x3ed   : > { %9883 = vmatprep.subr.bf16.mxu0 %v12074_v1  ;;  %v16661_v51 = vpop.f32.mrf.mxu0  ;;  %v5690_v1 = vld [vmem:[%s18545_s3 + $0x998] sm:$0xff]  ;;  %9763 = vmatpush2.bf16.msra.mxu1 %v12487_v35  ;;  %v8930_v41 = vpop.f32.mrf.mxu1  ;;  %v16672_v58 = vpack.c.bf16 %v10393_v23, %v10385_v40 }
 0x3ee   : > { %v10394_v21 = vmax.f32 %v8927_v48, 0.0  ;;  %v8931_v0 = vadd.f32 %v8930_v41, %v16267_v57  ;;  %9764 = vmatprep.subr.bf16.mxu1 %v12480_v37  ;;  %v12314_v9 = vcombine.high %v5690_v1, %v5694_v47  ;;  %v12471_v37 = vcombine.low %v5849_v12, %v5853_v16  ;;  %v18951_v40 = vld [vmem:[#allocation8_spill] sm:$0xff] }
 0x3ef   : > { %18947 = vst [vmem:[#allocation7_spill] sm:$0xff] %v16672_v58  ;;  %v16675_v20 = vpop.f32.mrf.mxu0  ;;  %9607 = vmatmul.mubr.bf16.gmra.mxu1 %v18948_v2  ;;  %v8932_v28 = vpop.f32.mrf.mxu1  ;;  %v12313_v23 = vcombine.low %v5690_v1, %v5694_v47  ;;  %v12464_v48 = vcombine.high %v5841_v59, %v5845_v15  ;;  %v12463_v47 = vcombine.low %v5841_v59, %v5845_v15  ;;  %v16725_v59 = vld [vmem:[%s18545_s3 + $0x5d8] sm:$0xff] }
 0x3f0   : > { %9884 = vmatpush2.bf16.msra.mxu0 %v12073_v38  ;;  %9616 = vmatprep.mubr.bf16.mxu1 %v18949_v44  ;;  %v8933_v57 = vadd.f32 %v8932_v28, %v16279_v29  ;;  %v16694_v35 = vpack.c.bf16 %v10394_v21, %v10386_v18  ;;  %v16730_v15 = vld [vmem:[%s18545_s3 + $0x5f8] sm:$0xff] }
 0x3f1   : > { %10079 = vmatprep.subr.bf16.mxu0 %v12322_v34  ;;  %v16686_v6 = vpop.f32.mrf.mxu0  ;;  %v5682_v34 = vld [vmem:[%s18545_s3 + $0x958] sm:$0xff]  ;;  %9765 = vmatpush2.bf16.msra.mxu1 %v12479_v27  ;;  %v8934_v38 = vpop.f32.mrf.mxu1  ;;  %v10401_v27 = vmax.f32 %v8931_v0, 0.0 }
 0x3f2   : > { %18950 = vst [vmem:[#allocation86_spill] sm:$0xff] %v16694_v35  ;;  %v8935_v29 = vadd.f32 %v8934_v38, %v16289_v54  ;;  %9766 = vmatprep.subr.bf16.mxu1 %v12472_v56  ;;  %v12306_v58 = vcombine.high %v5682_v34, %v5686_v30  ;;  %v5837_v54 = vld [vmem:[%s18545_s3 + $0xe30] sm:$0xff]  ;;  %v5678_v56 = vld [vmem:[%s18545_s3 + $0x938] sm:$0xff]  ;;  %v10402_v21 = vmax.f32 %v8933_v57, 0.0  ;;  %v18953_v57 = vld [vmem:[#allocation5_spill] sm:$0xff] }
 0x3f3   : > { %9886 = vmatmul.mubr.bf16.vlgmr.msra.gmra.mxu0 %v18867_v55  ;;  %v16699_v28 = vpop.f32.mrf.mxu0  ;;  %v8936_v41 = vpop.f32.mrf.mxu1  ;;  %v5833_v55 = vld [vmem:[%s18545_s3 + $0xe10] sm:$0xff] }
 0x3f4   : > { %9895 = vmatprep.mubr.bf16.mxu0 %v18951_v40  ;;  %10080 = vmatpush1.bf16.msra.mxu0 %v12321_v52  ;;  %v10409_v18 = vmax.f32 %v8935_v29, 0.0  ;;  %v8937_v12 = vadd.f32 %v8936_v41, %v16297_v33  ;;  %v12305_v52 = vcombine.low %v5682_v34, %v5686_v30  ;;  %v12456_v41 = vcombine.high %v5833_v55, %v5837_v54 }
 0x3f5   : > { %10081 = vmatprep.subr.bf16.mxu0 %v12314_v9  ;;  %v16705_v16 = vpop.f32.mrf.mxu0  ;;  %v5674_v9 = vld [vmem:[%s18545_s3 + $0x918] sm:$0xff]  ;;  %9767 = vmatpush2.bf16.msra.mxu1 %v12471_v37  ;;  %v8940_v1 = vpop.f32.mrf.mxu1  ;;  %v18954_v34 = vsub.s32 2, %v18953_v57 }
 0x3f6   : > { %v16716_v33 = vpack.c.bf16 %v10409_v18, %v10401_v27  ;;  %v10410_v0 = vmax.f32 %v8937_v12, 0.0  ;;  %v8941_v38 = vadd.f32 %v8940_v1, %v16309_v62  ;;  %9768 = vmatprep.subr.bf16.mxu1 %v12464_v48  ;;  %v12298_v35 = vcombine.high %v5674_v9, %v5678_v56  ;;  %v13176_v62 = vld [vmem:[%s18546_s4] sm:$0xff]  ;;  %v5670_v48 = vld [vmem:[%s18545_s3 + $0x8f8] sm:$0xff] }
 0x3f7   : > { %v16719_v40 = vpop.f32.mrf.mxu0  ;;  %9617 = vmatmul.mubr.bf16.gmra.mxu1 %v18869_v25  ;;  %v8942_v29 = vpop.f32.mrf.mxu1  ;;  %v18956_v18 = vsub.s32 3, %v18953_v57  ;;  %v12455_v1 = vcombine.low %v5833_v55, %v5837_v54  ;;  %v18958_v57 = vld [vmem:[#allocation70_spill] sm:$0xff]  ;;  %v18967_v25 = vld [vmem:[#allocation72_spill] sm:$0xff] }
 0x3f8   : > { %18952 = vst [vmem:[#allocation8_spill] sm:$0xff] %v16716_v33  ;;  %10082 = vmatpush1.bf16.msra.mxu0 %v12313_v23  ;;  %9772 = vmatprep.mubr.bf16.mxu1 %v15208_v3  ;;  %v8943_v30 = vadd.f32 %v8942_v29, %v16321_v13  ;;  %v16746_v23 = vld [vmem:[%s18545_s3 + $0x8d8] sm:$0xff]  ;;  %v16751_v27 = vpack.c.bf16 %v10410_v0, %v10402_v21  ;;  %v10417_v55 = vmax.f32 %v8941_v38, 0.0 }
 0x3f9   : > { %10083 = vmatprep.subr.bf16.mxu0 %v12306_v58  ;;  %v16737_v58 = vrot.slane %v13176_v62, %v18954_v34  ;;  %v16741_v37 = vpop.f32.mrf.mxu0  ;;  %v16755_v12 = vrot.slane %v13176_v62, %v18956_v18  ;;  %9769 = vmatpush2.bf16.msra.mxu1 %v12463_v47  ;;  %v8944_v13 = vpop.f32.mrf.mxu1  ;;  %v12297_v33 = vcombine.low %v5674_v9, %v5678_v56  ;;  %v5658_v56 = vld [vmem:[%s18545_s3 + $0x898] sm:$0xff] }
 0x3fa   : > { %18955 = vst [vmem:[#allocation87_spill] sm:$0xff] %v16751_v27  ;;  %v8945_v29 = vadd.f32 %v8944_v13, %v16327_v11  ;;  %v12194_v21 = vcombine.high %v16725_v59, %v16730_v15  ;;  %9770 = vmatprep.subr.bf16.mxu1 %v12456_v41  ;;  %v12290_v62 = vcombine.high %v16746_v23, %v5670_v48  ;;  %v5662_v47 = vld [vmem:[%s18545_s3 + $0x8b8] sm:$0xff]  ;;  %v10418_v38 = vmax.f32 %v8943_v30, 0.0 }
 0x3fb   : > { %9896 = vmatmul.mubr.bf16.gmra.mxu0 %v13636_v50  ;;  %v16760_v34 = vpop.f32.mrf.mxu0  ;;  %v8946_v0 = vpop.f32.mrf.mxu1  ;;  %v5562_v50 = vld [vmem:[%s18545_s3 + $0x598] sm:$0xff] }
 0x3fc   : > { %9905 = vmatprep.mubr.bf16.mxu0 %v18722_v8  ;;  %10084 = vmatpush1.bf16.msra.mxu0 %v12305_v52  ;;  %v8984_v8 = vadd.f32 %v16340_v5, %v16737_v58  ;;  %v10425_v11 = vmax.f32 %v8945_v29, 0.0  ;;  %v8947_v54 = vadd.f32 %v8946_v0, %v16338_v19  ;;  %v8986_v5 = vadd.f32 %v16357_v10, %v16755_v12  ;;  %v5558_v30 = vld [vmem:[%s18545_s3 + $0x578] sm:$0xff] }
 0x3fd   : > { %10085 = vmatprep.subr.bf16.mxu0 %v12298_v35  ;;  %v16771_v9 = vpop.f32.mrf.mxu0  ;;  %v5566_v35 = vld [vmem:[%s18545_s3 + $0x5b8] sm:$0xff]  ;;  %9771 = vmatpush2.bf16.msra.mxu1 %v12455_v1  ;;  %v9096_v52 = vpop.f32.mrf.mxu1  ;;  %v12193_v19 = vcombine.low %v16725_v59, %v16730_v15  ;;  %v12289_v0 = vcombine.low %v16746_v23, %v5670_v48  ;;  %v12282_v10 = vcombine.high %v5658_v56, %v5662_v47 }
 0x3fe   : > { %v16786_v41 = vpack.c.bf16 %v10425_v11, %v10417_v55  ;;  %v10426_v18 = vmax.f32 %v8947_v54, 0.0  ;;  %v9097_v13 = vadd.f32 %v9096_v52, %v8984_v8  ;;  %9966 = vmatprep.subr.bf16.mxu1 %v12194_v21  ;;  %v12186_v3 = vcombine.high %v5562_v50, %v5566_v35  ;;  %v18960_v21 = vld [vmem:[#allocation9_spill] sm:$0xff]  ;;  %v5650_v8 = vld [vmem:[%s18545_s3 + $0x858] sm:$0xff]  ;;  %v18962_v11 = vld [vmem:[#allocation6_spill] sm:$0xff] }
 0x3ff   : > { %v16788_v29 = vpop.f32.mrf.mxu0  ;;  %v9098_v27 = vpop.f32.mrf.mxu1  ;;  %v8988_v1 = vadd.f32 %v16360_v61, %v16737_v58  ;;  %v18961_v61 = vld [vmem:[#allocation71_spill] sm:$0xff]  ;;  %v5654_v55 = vld [vmem:[%s18545_s3 + $0x878] sm:$0xff] }
 0x400   : > { %18957 = vst [vmem:[#allocation88_spill] sm:$0xff] %v16786_v41  ;;  %10086 = vmatpush1.bf16.msra.mxu0 %v12297_v33  ;;  %9773 = vmatmul.mubr.bf16.vlgmr.msra.gmra.mxu1 %v18958_v57  ;;  %v9099_v59 = vadd.f32 %v9098_v27, %v8986_v5  ;;  %v5554_v33 = vld [vmem:[%s18545_s3 + $0x558] sm:$0xff]  ;;  %v16803_v23 = vadd.f32 %v16675_v20, %v9097_v13 }
 0x401   : > { %10087 = vmatprep.subr.bf16.mxu0 %v12290_v62  ;;  %v16794_v15 = vpop.f32.mrf.mxu0  ;;  %v16805_v48 = vpack.c.bf16 %v10426_v18, %v10418_v38  ;;  %9782 = vmatprep.mubr.bf16.mxu1 %v18961_v61  ;;  %v9100_v27 = vpop.f32.mrf.mxu1  ;;  %v12185_v62 = vcombine.low %v5562_v50, %v5566_v35  ;;  %v8990_v20 = vadd.f32 %v18962_v11, %v16755_v12  ;;  %v18963_v54 = vld [vmem:[#allocation12_spill] sm:$0xff] }
 0x402   : > { %9967 = vmatpush1.bf16.msra.mxu1 %v12193_v19  ;;  %v9101_v5 = vadd.f32 %v9100_v27, %v8988_v1  ;;  %v16821_v38 = vadd.f32 %v16686_v6, %v9099_v59  ;;  %v12281_v50 = vcombine.low %v5658_v56, %v5662_v47  ;;  %v12178_v18 = vcombine.high %v5554_v33, %v5558_v30  ;;  %v5546_v13 = vld [vmem:[%s18545_s3 + $0x518] sm:$0xff] }
 0x403   : > { %18959 = vst [vmem:[#allocation89_spill] sm:$0xff] %v16805_v48  ;;  %9906 = vmatmul.mubr.bf16.gmra.mxu0 %v18960_v21  ;;  %v16818_v52 = vpop.f32.mrf.mxu0  ;;  %9968 = vmatprep.subr.bf16.mxu1 %v12186_v3  ;;  %v9102_v35 = vpop.f32.mrf.mxu1  ;;  %v18964_v21 = vld [vmem:[#allocation62_spill] sm:$0xff]  ;;  %v12274_v27 = vcombine.high %v5650_v8, %v5654_v55  ;;  %v5550_v6 = vld [vmem:[%s18545_s3 + $0x538] sm:$0xff]  ;;  %v12273_v41 = vcombine.low %v5650_v8, %v5654_v55  ;;  %v18968_v8 = vld [vmem:[#allocation11_spill] sm:$0xff] }
 0x404   : > { %9915 = vmatprep.mubr.bf16.mxu0 %v18963_v54  ;;  %10088 = vmatpush1.bf16.msra.mxu0 %v12289_v0  ;;  %v8994_v11 = vadd.f32 %v18964_v21, %v16737_v58  ;;  %v9103_v19 = vadd.f32 %v9102_v35, %v8990_v20  ;;  %v5642_v3 = vld [vmem:[%s18545_s3 + $0x818] sm:$0xff]  ;;  %v16840_v47 = vadd.f32 %v16699_v28, %v9101_v5  ;;  %v18969_v55 = vld [vmem:[#allocation73_spill] sm:$0xff] }
 0x405   : > { %10089 = vmatprep.subr.bf16.mxu0 %v12282_v10  ;;  %v16828_v1 = vpop.f32.mrf.mxu0  ;;  %v5646_v56 = vld [vmem:[%s18545_s3 + $0x838] sm:$0xff]  ;;  %v9106_v0 = vpop.f32.mrf.mxu1  ;;  %v18965_v10 = vld [vmem:[#allocation67_spill] sm:$0xff]  ;;  %v12177_v35 = vcombine.low %v5554_v33, %v5558_v30  ;;  %v12170_v61 = vcombine.high %v5546_v13, %v5550_v6 }
 0x406   : > { %v8996_v59 = vadd.f32 %v18965_v10, %v16755_v12  ;;  %9969 = vmatpush1.bf16.msra.mxu1 %v12185_v62  ;;  %v9107_v20 = vadd.f32 %v9106_v0, %v8994_v11  ;;  %v16847_v21 = vadd.f32 %v16705_v16, %v9103_v19  ;;  %v12266_v57 = vcombine.high %v5642_v3, %v5646_v56  ;;  %v18966_v28 = vld [vmem:[#allocation64_spill] sm:$0xff]  ;;  %v18971_v10 = vld [vmem:[#allocation14_spill] sm:$0xff] }
 0x407   : > { %v16844_v54 = vpop.f32.mrf.mxu0  ;;  %9970 = vmatprep.subr.bf16.mxu1 %v12178_v18  ;;  %v9108_v48 = vpop.f32.mrf.mxu1  ;;  %v8998_v5 = vadd.f32 %v18966_v28, %v16737_v58  ;;  %v5538_v16 = vld [vmem:[%s18545_s3 + $0x4d8] sm:$0xff]  ;;  %v12169_v18 = vcombine.low %v5546_v13, %v5550_v6  ;;  %v12265_v13 = vcombine.low %v5642_v3, %v5646_v56  ;;  %v18975_v56 = vld [vmem:[#allocation65_spill] sm:$0xff] }
 0x408   : > { %10090 = vmatpush1.bf16.msra.mxu0 %v12281_v50  ;;  %9783 = vmatmul.mubr.bf16.gmra.mxu1 %v18967_v25  ;;  %v9109_v62 = vadd.f32 %v9108_v48, %v8996_v59  ;;  %v5542_v33 = vld [vmem:[%s18545_s3 + $0x4f8] sm:$0xff]  ;;  %v16861_v30 = vadd.f32 %v16719_v40, %v9107_v20 }
 0x409   : > { %10091 = vmatprep.subr.bf16.mxu0 %v12274_v27  ;;  %v16852_v11 = vpop.f32.mrf.mxu0  ;;  %9792 = vmatprep.mubr.bf16.mxu1 %v18969_v55  ;;  %v9110_v50 = vpop.f32.mrf.mxu1  ;;  %v5762_v48 = vld [vmem:[%s18545_s3 + $0xbd8] sm:$0xff]  ;;  %v18970_v27 = vld [vmem:[#allocation63_spill] sm:$0xff]  ;;  %v12162_v28 = vcombine.high %v5538_v16, %v5542_v33 }
 0x40a   : > { %v5766_v19 = vld [vmem:[%s18545_s3 + $0xbf8] sm:$0xff]  ;;  %v9000_v0 = vadd.f32 %v18970_v27, %v16755_v12  ;;  %9971 = vmatpush1.bf16.msra.mxu1 %v12177_v35  ;;  %v9111_v40 = vadd.f32 %v9110_v50, %v8998_v5  ;;  %v16877_v20 = vadd.f32 %v16741_v37, %v9109_v62  ;;  %v18973_v27 = vld [vmem:[#allocation66_spill] sm:$0xff]  ;;  %v9006_v62 = vadd.f32 %v18975_v56, %v16755_v12 }
 0x40b   : > { %9916 = vmatmul.mubr.bf16.gmra.mxu0 %v18968_v8  ;;  %v16874_v59 = vpop.f32.mrf.mxu0  ;;  %9972 = vmatprep.subr.bf16.mxu1 %v12170_v61  ;;  %v9112_v6 = vpop.f32.mrf.mxu1  ;;  %v5530_v8 = vld [vmem:[%s18545_s3 + $0x498] sm:$0xff]  ;;  %v9004_v55 = vadd.f32 %v18973_v27, %v16737_v58  ;;  %v12386_v50 = vcombine.high %v5762_v48, %v5766_v19  ;;  %v12385_v25 = vcombine.low %v5762_v48, %v5766_v19  ;;  %v18978_v48 = vld [vmem:[#allocation13_spill] sm:$0xff] }
 0x40c   : > { %9925 = vmatprep.mubr.bf16.mxu0 %v18971_v10  ;;  %18972 = vst [vmem:[#allocation9_spill] sm:$0xff] %v16877_v20  ;;  %10092 = vmatpush1.bf16.msra.mxu0 %v12273_v41  ;;  %v9113_v35 = vadd.f32 %v9112_v6, %v9000_v0  ;;  %v5534_v37 = vld [vmem:[%s18545_s3 + $0x4b8] sm:$0xff]  ;;  %v16896_v3 = vadd.f32 %v16760_v34, %v9111_v40  ;;  %v18976_v34 = vld [vmem:[#allocation75_spill] sm:$0xff] }
 0x40d   : > { %10093 = vmatprep.subr.bf16.mxu0 %v12266_v57  ;;  %v16884_v5 = vpop.f32.mrf.mxu0  ;;  %v5754_v41 = vld [vmem:[%s18545_s3 + $0xb98] sm:$0xff]  ;;  %v9116_v57 = vpop.f32.mrf.mxu1  ;;  %v12161_v6 = vcombine.low %v5538_v16, %v5542_v33  ;;  %v12154_v2 = vcombine.high %v5530_v8, %v5534_v37  ;;  %v9008_v40 = vadd.f32 %v18976_v34, %v16737_v58 }
 0x40e   : > { %v5758_v61 = vld [vmem:[%s18545_s3 + $0xbb8] sm:$0xff]  ;;  %18974 = vst [vmem:[#allocation6_spill] sm:$0xff] %v16896_v3  ;;  %9973 = vmatpush1.bf16.msra.mxu1 %v12169_v18  ;;  %v9117_v0 = vadd.f32 %v9116_v57, %v9004_v55  ;;  %v16903_v27 = vadd.f32 %v16771_v9, %v9113_v35  ;;  %v18977_v3 = vld [vmem:[#allocation74_spill] sm:$0xff] }
 0x40f   : > { %v16900_v10 = vpop.f32.mrf.mxu0  ;;  %9974 = vmatprep.subr.bf16.mxu1 %v12162_v28  ;;  %v9118_v44 = vpop.f32.mrf.mxu1  ;;  %v12378_v20 = vcombine.high %v5754_v41, %v5758_v61  ;;  %v5522_v9 = vld [vmem:[%s18545_s3 + $0x458] sm:$0xff]  ;;  %v12153_v28 = vcombine.low %v5530_v8, %v5534_v37  ;;  %v12377_v8 = vcombine.low %v5754_v41, %v5758_v61 }
 0x410   : > { %10094 = vmatpush1.bf16.msra.mxu0 %v12265_v13  ;;  %9793 = vmatmul.mubr.bf16.gmra.mxu1 %v18977_v3  ;;  %v9119_v18 = vadd.f32 %v9118_v44, %v9006_v62  ;;  %v5526_v16 = vld [vmem:[%s18545_s3 + $0x478] sm:$0xff]  ;;  %v16917_v33 = vadd.f32 %v16788_v29, %v9117_v0 }
 0x411   : > { %10095 = vmatprep.subr.bf16.mxu0 %v12386_v50  ;;  %v16908_v55 = vpop.f32.mrf.mxu0  ;;  %v18979_v19 = vld [vmem:[#allocation52_spill] sm:$0xff]  ;;  %v9120_v13 = vpop.f32.mrf.mxu1  ;;  %v12146_v34 = vcombine.high %v5522_v9, %v5526_v16 }
 0x412   : > { %9802 = vmatprep.mubr.bf16.mxu1 %v18979_v19  ;;  %v5746_v44 = vld [vmem:[%s18545_s3 + $0xb58] sm:$0xff]  ;;  %9975 = vmatpush1.bf16.msra.mxu1 %v12161_v6  ;;  %v9121_v29 = vadd.f32 %v9120_v13, %v9008_v40  ;;  %v16933_v0 = vadd.f32 %v16794_v15, %v9119_v18 }
 0x413   : > { %9926 = vmatmul.mubr.bf16.gmra.mxu0 %v18978_v48  ;;  %v5750_v35 = vld [vmem:[%s18545_s3 + $0xb78] sm:$0xff]  ;;  %v16930_v62 = vpop.f32.mrf.mxu0  ;;  %9976 = vmatprep.subr.bf16.mxu1 %v12154_v2  ;;  %v9122_v37 = vpop.f32.mrf.mxu1 }
 0x414   : > { %v18980_v50 = vld [vmem:[#allocation68_spill] sm:$0xff]  ;;  %18982 = vst [vmem:[#allocation12_spill] sm:$0xff] %v16933_v0  ;;  %10096 = vmatpush2.bf16.msra.mxu0 %v12385_v25  ;;  %v12370_v13 = vcombine.high %v5746_v44, %v5750_v35  ;;  %v16952_v41 = vadd.f32 %v16818_v52, %v9121_v29  ;;  %v9018_v52 = vadd.f32 %v16479_v43, %v16737_v58  ;;  %v18983_v29 = vld [vmem:[#allocation53_spill] sm:$0xff] }
 0x415   : > { %v9010_v57 = vadd.f32 %v18980_v50, %v16755_v12  ;;  %v18981_v56 = vld [vmem:[#allocation16_spill] sm:$0xff]  ;;  %v9014_v50 = vadd.f32 %v16455_v17, %v16737_v58  ;;  %10097 = vmatprep.subr.bf16.mxu0 %v12378_v20  ;;  %v16940_v40 = vpop.f32.mrf.mxu0  ;;  %v9126_v17 = vpop.f32.mrf.mxu1  ;;  %v9016_v20 = vadd.f32 %v16467_v63, %v16755_v12 }
 0x416   : > { %9935 = vmatprep.mubr.bf16.mxu0 %v18981_v56  ;;  %v5514_v48 = vld [vmem:[%s18545_s3 + $0x418] sm:$0xff]  ;;  %9977 = vmatpush1.bf16.msra.mxu1 %v12153_v28 }
 0x417   : > { %v9123_v6 = vadd.f32 %v9122_v37, %v9010_v57  ;;  %v5518_v25 = vld [vmem:[%s18545_s3 + $0x438] sm:$0xff]  ;;  %v9127_v61 = vadd.f32 %v9126_v17, %v9014_v50  ;;  %v16956_v18 = vpop.f32.mrf.mxu0  ;;  %v12145_v57 = vcombine.low %v5522_v9, %v5526_v16  ;;  %9978 = vmatprep.subr.bf16.mxu1 %v12146_v34  ;;  %v12369_v37 = vcombine.low %v5746_v44, %v5750_v35  ;;  %v9128_v19 = vpop.f32.mrf.mxu1  ;;  %v18984_v44 = vld [vmem:[#allocation15_spill] sm:$0xff] }
 0x418   : > { %v5738_v2 = vld [vmem:[%s18545_s3 + $0xb18] sm:$0xff]  ;;  %10098 = vmatpush2.bf16.msra.mxu0 %v12377_v8  ;;  %v12138_v3 = vcombine.high %v5514_v48, %v5518_v25  ;;  %9803 = vmatmul.mubr.bf16.gmra.mxu1 %v18983_v29  ;;  %v9129_v63 = vadd.f32 %v9128_v19, %v9016_v20  ;;  %v12137_v8 = vcombine.low %v5514_v48, %v5518_v25 }
 0x419   : > { %v5742_v15 = vld [vmem:[%s18545_s3 + $0xb38] sm:$0xff]  ;;  %v16959_v56 = vadd.f32 %v16828_v1, %v9123_v6  ;;  %10099 = vmatprep.subr.bf16.mxu0 %v12370_v13  ;;  %v16964_v28 = vpop.f32.mrf.mxu0  ;;  %v16973_v16 = vadd.f32 %v16844_v54, %v9127_v61  ;;  %v9130_v35 = vpop.f32.mrf.mxu1  ;;  %v9020_v50 = vadd.f32 %v16488_v46, %v16755_v12  ;;  %v18986_v6 = vld [vmem:[#allocation18_spill] sm:$0xff]  ;;  %v9024_v46 = vadd.f32 %v16499_v31, %v16737_v58 }
 0x41a   : > { %v12362_v0 = vcombine.high %v5738_v2, %v5742_v15  ;;  %v5634_v1 = vld [vmem:[%s18545_s3 + $0x7d8] sm:$0xff]  ;;  %9979 = vmatpush1.bf16.msra.mxu1 %v12145_v57  ;;  %v9131_v54 = vadd.f32 %v9130_v35, %v9018_v52  ;;  %v16989_v17 = vadd.f32 %v16852_v11, %v9129_v63  ;;  %v12361_v48 = vcombine.low %v5738_v2, %v5742_v15 }
 0x41b   : > { %v5638_v9 = vld [vmem:[%s18545_s3 + $0x7f8] sm:$0xff]  ;;  %9936 = vmatmul.mubr.bf16.gmra.mxu0 %v18984_v44  ;;  %v16986_v13 = vpop.f32.mrf.mxu0  ;;  %9980 = vmatprep.subr.bf16.mxu1 %v12138_v3  ;;  %v9132_v25 = vpop.f32.mrf.mxu1 }
 0x41c   : > { %v18985_v43 = vld [vmem:[#allocation56_spill] sm:$0xff]  ;;  %9945 = vmatprep.mubr.bf16.mxu0 %v18986_v6  ;;  %10100 = vmatpush2.bf16.msra.mxu0 %v12369_v37  ;;  %v12258_v20 = vcombine.high %v5634_v1, %v5638_v9  ;;  %v9133_v57 = vadd.f32 %v9132_v25, %v9020_v50  ;;  %v17008_v15 = vadd.f32 %v16874_v59, %v9131_v54  ;;  %v18987_v54 = vld [vmem:[#allocation55_spill] sm:$0xff] }
 0x41d   : > { %9812 = vmatprep.mubr.bf16.mxu1 %v18985_v43  ;;  %v5730_v19 = vld [vmem:[%s18545_s3 + $0xad8] sm:$0xff]  ;;  %10101 = vmatprep.subr.bf16.mxu0 %v12362_v0  ;;  %v16996_v52 = vpop.f32.mrf.mxu0  ;;  %v9136_v31 = vpop.f32.mrf.mxu1  ;;  %v9026_v0 = vadd.f32 %v16511_v32, %v16755_v12  ;;  %v12257_v35 = vcombine.low %v5634_v1, %v5638_v9  ;;  %v9028_v59 = vadd.f32 %v16523_v26, %v16737_v58  ;;  %v18989_v26 = vld [vmem:[#allocation54_spill] sm:$0xff] }
 0x41e   : > { %v5734_v34 = vld [vmem:[%s18545_s3 + $0xaf8] sm:$0xff]  ;;  %9981 = vmatpush1.bf16.msra.mxu1 %v12137_v8  ;;  %v9137_v37 = vadd.f32 %v9136_v31, %v9024_v46  ;;  %v17015_v50 = vadd.f32 %v16884_v5, %v9133_v57  ;;  %v9030_v57 = vadd.f32 %v16532_v39, %v16755_v12  ;;  %v9034_v39 = vadd.f32 %v16543_v36, %v16737_v58 }
 0x41f   : > { %v5626_v61 = vld [vmem:[%s18545_s3 + $0x798] sm:$0xff]  ;;  %v12354_v44 = vcombine.high %v5730_v19, %v5734_v34  ;;  %v17012_v63 = vpop.f32.mrf.mxu0  ;;  %9982 = vmatprep.subr.bf16.mxu1 %v12258_v20  ;;  %v12353_v6 = vcombine.low %v5730_v19, %v5734_v34  ;;  %v9138_v25 = vpop.f32.mrf.mxu1  ;;  %v18988_v19 = vld [vmem:[#allocation17_spill] sm:$0xff] }
 0x420   : > { %v5630_v11 = vld [vmem:[%s18545_s3 + $0x7b8] sm:$0xff]  ;;  %10102 = vmatpush2.bf16.msra.mxu0 %v12361_v48  ;;  %9813 = vmatmul.mubr.bf16.gmra.mxu1 %v18987_v54  ;;  %v9139_v32 = vadd.f32 %v9138_v25, %v9026_v0  ;;  %v17029_v9 = vadd.f32 %v16900_v10, %v9137_v37 }
 0x421   : > { %v5722_v3 = vld [vmem:[%s18545_s3 + $0xa98] sm:$0xff]  ;;  %v12250_v43 = vcombine.high %v5626_v61, %v5630_v11  ;;  %10103 = vmatprep.subr.bf16.mxu0 %v12354_v44  ;;  %v17020_v8 = vpop.f32.mrf.mxu0  ;;  %9822 = vmatprep.mubr.bf16.mxu1 %v18989_v26  ;;  %v9140_v34 = vpop.f32.mrf.mxu1  ;;  %v12249_v48 = vcombine.low %v5626_v61, %v5630_v11 }
 0x422   : > { %v5726_v2 = vld [vmem:[%s18545_s3 + $0xab8] sm:$0xff]  ;;  %9983 = vmatpush2.bf16.msra.mxu1 %v12257_v35  ;;  %v9141_v10 = vadd.f32 %v9140_v34, %v9028_v59  ;;  %v17045_v0 = vadd.f32 %v16908_v55, %v9139_v32 }
 0x423   : > { %v12346_v29 = vcombine.high %v5722_v3, %v5726_v2  ;;  %v5618_v5 = vld [vmem:[%s18545_s3 + $0x758] sm:$0xff]  ;;  %9946 = vmatmul.mubr.bf16.gmra.mxu0 %v18988_v19  ;;  %v17042_v31 = vpop.f32.mrf.mxu0  ;;  %9984 = vmatprep.subr.bf16.mxu1 %v12250_v43  ;;  %v12345_v61 = vcombine.low %v5722_v3, %v5726_v2  ;;  %v9142_v11 = vpop.f32.mrf.mxu1 }
 0x424   : > { %v5622_v1 = vld [vmem:[%s18545_s3 + $0x778] sm:$0xff]  ;;  %10104 = vmatpush2.bf16.msra.mxu0 %v12353_v6  ;;  %v9143_v35 = vadd.f32 %v9142_v11, %v9030_v57  ;;  %v17064_v2 = vadd.f32 %v16930_v62, %v9141_v10  ;;  %v9038_v62 = vadd.f32 %v16567_v22, %v16737_v58  ;;  %v18991_v10 = vld [vmem:[#allocation57_spill] sm:$0xff] }
 0x425   : > { %v5714_v20 = vld [vmem:[%s18545_s3 + $0xa58] sm:$0xff]  ;;  %v12242_v37 = vcombine.high %v5618_v5, %v5622_v1  ;;  %10105 = vmatprep.subr.bf16.mxu0 %v12346_v29  ;;  %v17052_v59 = vpop.f32.mrf.mxu0  ;;  %v9146_v36 = vpop.f32.mrf.mxu1  ;;  %v9036_v29 = vadd.f32 %v16555_v4, %v16755_v12  ;;  %v12241_v34 = vcombine.low %v5618_v5, %v5622_v1  ;;  %v18993_v22 = vld [vmem:[#allocation61_spill] sm:$0xff] }
 0x426   : > { %v5718_v46 = vld [vmem:[%s18545_s3 + $0xa78] sm:$0xff]  ;;  %9985 = vmatpush2.bf16.msra.mxu1 %v12249_v48  ;;  %v9147_v6 = vadd.f32 %v9146_v36, %v9034_v39  ;;  %v17071_v57 = vadd.f32 %v16940_v40, %v9143_v35  ;;  %v18994_v39 = vld [vmem:[#allocation42_spill] sm:$0xff] }
 0x427   : > { %v18990_v44 = vld [vmem:[#allocation20_spill] sm:$0xff]  ;;  %v12338_v19 = vcombine.high %v5714_v20, %v5718_v46  ;;  %v17068_v32 = vpop.f32.mrf.mxu0  ;;  %9986 = vmatprep.subr.bf16.mxu1 %v12242_v37  ;;  %v9148_v11 = vpop.f32.mrf.mxu1  ;;  %v9040_v37 = vadd.f32 %v16576_v14, %v16755_v12 }
 0x428   : > { %9955 = vmatprep.mubr.bf16.mxu0 %v18990_v44  ;;  %v5610_v25 = vld [vmem:[%s18545_s3 + $0x718] sm:$0xff]  ;;  %10106 = vmatpush2.bf16.msra.mxu0 %v12345_v61  ;;  %v12337_v44 = vcombine.low %v5714_v20, %v5718_v46  ;;  %v9149_v4 = vadd.f32 %v9148_v11, %v9036_v29  ;;  %v17085_v1 = vadd.f32 %v16956_v18, %v9147_v6  ;;  %v18992_v20 = vld [vmem:[#allocation19_spill] sm:$0xff] }
 0x429   : > { %v5614_v55 = vld [vmem:[%s18545_s3 + $0x738] sm:$0xff]  ;;  %9823 = vmatmul.mubr.bf16.gmra.mxu1 %v18991_v10  ;;  %10107 = vmatprep.subr.bf16.mxu0 %v12338_v19  ;;  %v17076_v48 = vpop.f32.mrf.mxu0  ;;  %v9150_v46 = vpop.f32.mrf.mxu1 }
 0x42a   : > { %v5706_v43 = vld [vmem:[%s18545_s3 + $0xa18] sm:$0xff]  ;;  %v12234_v26 = vcombine.high %v5610_v25, %v5614_v55  ;;  %9832 = vmatprep.mubr.bf16.mxu1 %v18993_v22  ;;  %v12233_v61 = vcombine.low %v5610_v25, %v5614_v55  ;;  %9987 = vmatpush2.bf16.msra.mxu1 %v12241_v34  ;;  %v9151_v35 = vadd.f32 %v9150_v46, %v9038_v62 }
 0x42b   : > { %v5710_v3 = vld [vmem:[%s18545_s3 + $0xa38] sm:$0xff]  ;;  %9956 = vmatmul.mubr.bf16.gmra.mxu0 %v18992_v20  ;;  %v17092_v19 = vpop.f32.mrf.mxu0  ;;  %v17095_v36 = vadd.f32 %v16964_v28, %v9149_v4  ;;  %v9152_v29 = vpop.f32.mrf.mxu1  ;;  %v9044_v25 = vadd.f32 %v16587_v45, %v16737_v58 }
 0x42c   : > { %v12330_v54 = vcombine.high %v5706_v43, %v5710_v3  ;;  %v5602_v40 = vld [vmem:[%s18545_s3 + $0x6d8] sm:$0xff]  ;;  %10111 = vmatprep.mubr.bf16.mxu0 %v18994_v39  ;;  %10108 = vmatpush2.bf16.msra.mxu0 %v12337_v44  ;;  %v12329_v18 = vcombine.low %v5706_v43, %v5710_v3  ;;  %v9153_v55 = vadd.f32 %v9152_v29, %v9040_v37 }
 0x42d   : > { %v5606_v5 = vld [vmem:[%s18545_s3 + $0x6f8] sm:$0xff]  ;;  %9988 = vmatprep.subr.bf16.mxu1 %v12234_v26  ;;  %v17099_v14 = vpop.f32.mrf.mxu0  ;;  %v17111_v43 = vadd.f32 %v16986_v13, %v9151_v35  ;;  %v9156_v45 = vpop.f32.mrf.mxu1  ;;  %v9048_v13 = vadd.f32 %v16611_v60, %v16737_v58  ;;  %v18996_v60 = vld [vmem:[#allocation59_spill] sm:$0xff]  ;;  %v9050_v29 = vadd.f32 %v16620_v53, %v16755_v12 }
 0x42e   : > { %v12226_v6 = vcombine.high %v5602_v40, %v5606_v5  ;;  %10109 = vmatprep.subr.bf16.mxu0 %v12330_v54  ;;  %v5594_v34 = vld [vmem:[%s18545_s3 + $0x698] sm:$0xff]  ;;  %v9046_v54 = vadd.f32 %v16599_v24, %v16755_v12  ;;  %9989 = vmatpush2.bf16.msra.mxu1 %v12233_v61  ;;  %v9157_v3 = vadd.f32 %v9156_v45, %v9044_v25 }
 0x42f   : > { %v5598_v28 = vld [vmem:[%s18545_s3 + $0x6b8] sm:$0xff]  ;;  %v12225_v44 = vcombine.low %v5602_v40, %v5606_v5  ;;  %v17116_v11 = vadd.f32 %v16996_v52, %v9153_v55  ;;  %v17118_v62 = vpop.f32.mrf.mxu0  ;;  %v9158_v4 = vpop.f32.mrf.mxu1  ;;  %v9054_v45 = vadd.f32 %v16631_v49, %v16737_v58 }
 0x430   : > { %v12941_v26 = vld [vmem:[%s18547_s5 + $0x78] sm:$0xff]   ;;  %10110 = vmatpush2.bf16.msra.mxu0 %v12329_v18  ;;  %9990 = vmatprep.subr.bf16.mxu1 %v12226_v6  ;;  %v12218_v20 = vcombine.high %v5594_v34, %v5598_v28  ;;  %v9159_v37 = vadd.f32 %v9158_v4, %v9046_v54  ;;  %v17133_v5 = vadd.f32 %v17012_v63, %v9157_v3  ;;  %v12943_v18 = vld [vmem:[%s18547_s5 + $0x70] sm:$0xff]   ;;  %v18997_v6 = vld [vmem:[#allocation10_spill] sm:$0xff] }
 0x431   : > { %v18995_v46 = vld [vmem:[#allocation60_spill] sm:$0xff]  ;;  %12582 = vmatprep.subr.bf16.mxu0 %v12941_v26  ;;  %v17136_v61 = vpop.f32.mrf.mxu0  ;;  %v9160_v39 = vpop.f32.mrf.mxu1  ;;  %v12217_v35 = vcombine.low %v5594_v34, %v5598_v28  ;;  %v12944_v3 = vld [vmem:[%s18547_s5 + $0x30] sm:$0xff]  }
 0x432   : > { %9833 = vmatmul.mubr.bf16.gmra.mxu1 %v18995_v46  ;;  %v5586_v24 = vld [vmem:[%s18545_s3 + $0x658] sm:$0xff]  ;;  %v9161_v25 = vadd.f32 %v9160_v39, %v9048_v13  ;;  %v17145_v63 = vadd.f32 %v17020_v8, %v9159_v37  ;;  %v9056_v13 = vadd.f32 %v16643_v42, %v16755_v12 }
 0x433   : > { %v5590_v52 = vld [vmem:[%s18545_s3 + $0x678] sm:$0xff]  ;;  %9842 = vmatprep.mubr.bf16.mxu1 %v18996_v60  ;;  %10112 = vmatmul.mubr.bf16.vlgmr.msra.gmra.mxu0 %v18997_v6  ;;  %v17148_v26 = vpop.f32.mrf.mxu0  ;;  %v9162_v34 = vpop.f32.mrf.mxu1 }
 0x434   : > { %v12942_v40 = vld [vmem:[%s18547_s5 + $0x38] sm:$0xff]   ;;  %9991 = vmatpush2.bf16.msra.mxu1 %v12225_v44  ;;  %v12210_v28 = vcombine.high %v5586_v24, %v5590_v52  ;;  %v9163_v54 = vadd.f32 %v9162_v34, %v9050_v29  ;;  %v17162_v44 = vadd.f32 %v17042_v31, %v9161_v25  ;;  %v18999_v25 = vld [vmem:[#allocation58_spill] sm:$0xff] }
 0x435   : > { %v18998_v55 = vld [vmem:[#allocation44_spill] sm:$0xff]  ;;  %9992 = vmatprep.subr.bf16.mxu1 %v12218_v20  ;;  %12583 = vmatpush3.bf16.msra.mxu0 %v12942_v40  ;;  %v17164_v4 = vpop.f32.mrf.mxu0  ;;  %v9166_v49 = vpop.f32.mrf.mxu1  ;;  %v12945_v20 = vld [vmem:[%s18547_s5 + $0x68] sm:$0xff]   ;;  %v12209_v40 = vcombine.low %v5586_v24, %v5590_v52 }
 0x436   : > { %10121 = vmatprep.mubr.bf16.mxu0 %v18998_v55  ;;  %v5578_v53 = vld [vmem:[%s18545_s3 + $0x618] sm:$0xff]  ;;  %12584 = vmatprep.subr.bf16.mxu0 %v12943_v18  ;;  %v9167_v37 = vadd.f32 %v9166_v49, %v9054_v45  ;;  %v17172_v39 = vadd.f32 %v17052_v59, %v9163_v54  ;;  %v9058_v18 = vadd.f32 %v16655_v7, %v16737_v58  ;;  %v12946_v24 = vld [vmem:[%s18547_s5 + $0x28] sm:$0xff]   ;;  %v19001_v54 = vld [vmem:[#allocation43_spill] sm:$0xff] }
 0x437   : > { %v5582_v8 = vld [vmem:[%s18545_s3 + $0x638] sm:$0xff]  ;;  %v17174_v29 = vpop.f32.mrf.mxu0  ;;  %v9168_v31 = vpop.f32.mrf.mxu1  ;;  %v19000_v7 = vld [vmem:[#allocation22_spill] sm:$0xff]  ;;  %v9060_v45 = vadd.f32 %v16661_v51, %v16755_v12  ;;  %v12948_v51 = vld [vmem:[%s18547_s5 + $0x20] sm:$0xff]  }
 0x438   : > { %9993 = vmatpush2.bf16.msra.mxu1 %v12217_v35  ;;  %v12202_v6 = vcombine.high %v5578_v53, %v5582_v8  ;;  %v9169_v55 = vadd.f32 %v9168_v31, %v9056_v13  ;;  %v5826_v42 = vld [vmem:[%s18545_s3 + $0xdd8] sm:$0xff]  ;;  %v17189_v52 = vadd.f32 %v17068_v32, %v9167_v37  ;;  %v12201_v34 = vcombine.low %v5578_v53, %v5582_v8  ;;  %v19002_v49 = vld [vmem:[#allocation46_spill] sm:$0xff] }
 0x439   : > { %9994 = vmatprep.subr.bf16.mxu1 %v12210_v28  ;;  %v5830_v59 = vld [vmem:[%s18545_s3 + $0xdf8] sm:$0xff]  ;;  %12585 = vmatpush3.bf16.msra.mxu0 %v12944_v3  ;;  %v17192_v58 = vpop.f32.mrf.mxu0  ;;  %v9170_v35 = vpop.f32.mrf.mxu1  ;;  %v12947_v28 = vld [vmem:[%s18547_s5 + $0x60] sm:$0xff]  }
 0x43a   : > { %9843 = vmatmul.mubr.bf16.gmra.mxu1 %v18999_v25  ;;  %12586 = vmatprep.subr.bf16.mxu0 %v12945_v20  ;;  %v9171_v3 = vadd.f32 %v9170_v35, %v9058_v18  ;;  %v17201_v32 = vadd.f32 %v17076_v48, %v9169_v55  ;;  %v12450_v8 = vcombine.high %v5826_v42, %v5830_v59  ;;  %v5818_v48 = vld [vmem:[%s18545_s3 + $0xd98] sm:$0xff] }
 0x43b   : > { %9998 = vmatprep.mubr.bf16.mxu1 %v19000_v7  ;;  %10122 = vmatmul.mubr.bf16.gmra.mxu0 %v19001_v54  ;;  %v17204_v13 = vpop.f32.mrf.mxu0  ;;  %v9172_v53 = vpop.f32.mrf.mxu1  ;;  %v12949_v31 = vld [vmem:[%s18547_s5 + $0x58] sm:$0xff]  }
 0x43c   : > { %9995 = vmatpush2.bf16.msra.mxu1 %v12209_v40  ;;  %10131 = vmatprep.mubr.bf16.mxu0 %v19002_v49  ;;  %19003 = vst [vmem:[#allocation62_spill] sm:$0xff] %v17204_v13  ;;  %v9173_v20 = vadd.f32 %v9172_v53, %v9060_v45  ;;  %v17210_v12 = vadd.f32 %v17092_v19, %v9171_v3  ;;  %v5822_v40 = vld [vmem:[%s18545_s3 + $0xdb8] sm:$0xff]  ;;  %v19005_v45 = vld [vmem:[#allocation21_spill] sm:$0xff] }
 0x43d   : > { %9996 = vmatprep.subr.bf16.mxu1 %v12202_v6  ;;  %12587 = vmatpush3.bf16.msra.mxu0 %v12946_v24  ;;  %v17212_v37 = vpop.f32.mrf.mxu0  ;;  %v9322_v6 = vpop.f32.mrf.mxu1  ;;  %v12449_v24 = vcombine.low %v5826_v42, %v5830_v59  ;;  %v12442_v35 = vcombine.high %v5818_v48, %v5822_v40  ;;  %v12951_v42 = vld [vmem:[%s18547_s5 + $0x50] sm:$0xff]   ;;  %v19006_v59 = vld [vmem:[#allocation45_spill] sm:$0xff]  ;;  %v19007_v3 = vld [vmem:[#allocation24_spill] sm:$0xff] }
 0x43e   : > { %19004 = vst [vmem:[#allocation67_spill] sm:$0xff] %v17212_v37  ;;  %12588 = vmatprep.subr.bf16.mxu0 %v12947_v28  ;;  %v17224_v19 = vadd.f32 %v17099_v14, %v9173_v20  ;;  %v9323_v18 = vadd.f32 %v9322_v6, %v16803_v23  ;;  %v12950_v28 = vld [vmem:[%s18547_s5 + $0x18] sm:$0xff]   ;;  %v12441_v20 = vcombine.low %v5818_v48, %v5822_v40  ;;  %v12952_v6 = vld [vmem:[%s18547_s5 + $0x10] sm:$0xff]   ;;  %v12953_v40 = vld [vmem:[%s18547_s5 + $0x48] sm:$0xff]  }
 0x43f   : > { %v17227_v55 = vpop.f32.mrf.mxu0  ;;  %v9324_v7 = vpop.f32.mrf.mxu1  ;;  %v5810_v23 = vld [vmem:[%s18545_s3 + $0xd58] sm:$0xff] }
 0x440   : > { %9997 = vmatpush2.bf16.msra.mxu1 %v12201_v34  ;;  %v9325_v34 = vadd.f32 %v9324_v7, %v16821_v38  ;;  %v5814_v14 = vld [vmem:[%s18545_s3 + $0xd78] sm:$0xff]  ;;  %v10307_v7 = vmax.f32 %v9323_v18, 0.0 }
 0x441   : > { %10192 = vmatprep.subr.bf16.mxu1 %v12450_v8  ;;  %12589 = vmatpush3.bf16.msra.mxu0 %v12948_v51  ;;  %v17234_v54 = vpop.f32.mrf.mxu0  ;;  %v9326_v38 = vpop.f32.mrf.mxu1  ;;  %v19008_v49 = vld [vmem:[#allocation48_spill] sm:$0xff]  ;;  %v12433_v18 = vcombine.low %v5810_v23, %v5814_v14 }
 0x442   : > { %12590 = vmatprep.subr.bf16.mxu0 %v12949_v31  ;;  %v9327_v53 = vadd.f32 %v9326_v38, %v16840_v47  ;;  %v12434_v31 = vcombine.high %v5810_v23, %v5814_v14  ;;  %v5802_v47 = vld [vmem:[%s18545_s3 + $0xd18] sm:$0xff]  ;;  %v19013_v23 = vld [vmem:[#allocation9_spill] sm:$0xff] }
 0x443   : > { %9999 = vmatmul.mubr.bf16.vlgmr.msra.gmra.mxu1 %v19005_v45  ;;  %10132 = vmatmul.mubr.bf16.gmra.mxu0 %v19006_v59  ;;  %v17249_v8 = vpop.f32.mrf.mxu0  ;;  %v9328_v51 = vpop.f32.mrf.mxu1  ;;  %v5806_v48 = vld [vmem:[%s18545_s3 + $0xd38] sm:$0xff] }
 0x444   : > { %10008 = vmatprep.mubr.bf16.mxu1 %v19007_v3  ;;  %10141 = vmatprep.mubr.bf16.mxu0 %v19008_v49  ;;  %19009 = vst [vmem:[#allocation64_spill] sm:$0xff] %v17249_v8  ;;  %v10315_v45 = vmax.f32 %v9327_v53, 0.0  ;;  %v9329_v59 = vadd.f32 %v9328_v51, %v16847_v21  ;;  %v12426_v51 = vcombine.high %v5802_v47, %v5806_v48 }
 0x445   : > { %10193 = vmatpush1.bf16.msra.mxu1 %v12449_v24  ;;  %12591 = vmatpush3.bf16.msra.mxu0 %v12950_v28  ;;  %v17255_v3 = vpop.f32.mrf.mxu0  ;;  %v9332_v24 = vpop.f32.mrf.mxu1  ;;  %v12425_v8 = vcombine.low %v5802_v47, %v5806_v48  ;;  %v5790_v47 = vld [vmem:[%s18545_s3 + $0xcb8] sm:$0xff] }
 0x446   : > { %10194 = vmatprep.subr.bf16.mxu1 %v12442_v35  ;;  %19010 = vst [vmem:[#allocation11_spill] sm:$0xff] %v17255_v3  ;;  %12592 = vmatprep.subr.bf16.mxu0 %v12951_v42  ;;  %v10308_v35 = vmax.f32 %v9325_v34, 0.0  ;;  %v17266_v28 = vpack.c.bf16 %v10315_v45, %v10307_v7  ;;  %v10316_v21 = vmax.f32 %v9329_v59, 0.0  ;;  %v9333_v38 = vadd.f32 %v9332_v24, %v16861_v30  ;;  %v12954_v42 = vld [vmem:[%s18547_s5 + $0x8] sm:$0xff]   ;;  %v19012_v3 = vld [vmem:[#allocation23_spill] sm:$0xff]  ;;  %v5794_v30 = vld [vmem:[%s18545_s3 + $0xcd8] sm:$0xff] }
 0x447   : > { %v17269_v49 = vpop.f32.mrf.mxu0  ;;  %v9334_v53 = vpop.f32.mrf.mxu1  ;;  %v19014_v7 = vld [vmem:[#allocation47_spill] sm:$0xff]  ;;  %v19015_v45 = vld [vmem:[#allocation26_spill] sm:$0xff]  ;;  %v12965_v48 = vld [vmem:[%s18547_s5 + $0x178] sm:$0xff]  }
 0x448   : > { %19011 = vst [vmem:[#allocation63_spill] sm:$0xff] %v17266_v28  ;;  %v9335_v34 = vadd.f32 %v9334_v53, %v19013_v23  ;;  %v19017_v24 = vld [vmem:[#allocation6_spill] sm:$0xff] }
 0x449   : > { %10195 = vmatpush1.bf16.msra.mxu1 %v12441_v20  ;;  %12593 = vmatpush3.bf16.msra.mxu0 %v12952_v6  ;;  %v17276_v14 = vpop.f32.mrf.mxu0  ;;  %v5798_v20 = vld [vmem:[%s18545_s3 + $0xcf8] sm:$0xff]  ;;  %v17287_v6 = vpack.c.bf16 %v10316_v21, %v10308_v35  ;;  %v9336_v59 = vpop.f32.mrf.mxu1  ;;  %v12956_v35 = vld [vmem:[%s18547_s5] sm:$0xff]   ;;  %v10323_v21 = vmax.f32 %v9333_v38, 0.0 }
 0x44a   : > { %10196 = vmatprep.subr.bf16.mxu1 %v12434_v31  ;;  %12594 = vmatprep.subr.bf16.mxu0 %v12953_v40  ;;  %v12955_v31 = vld [vmem:[%s18547_s5 + $0x40] sm:$0xff]   ;;  %v9337_v53 = vadd.f32 %v9336_v59, %v19017_v24  ;;  %v12418_v37 = vcombine.high %v5794_v30, %v5798_v20  ;;  %v12417_v38 = vcombine.low %v5794_v30, %v5798_v20  ;;  %v19023_v30 = vld [vmem:[#allocation28_spill] sm:$0xff] }
 0x44b   : > { %10009 = vmatmul.mubr.bf16.gmra.mxu1 %v19012_v3  ;;  %10142 = vmatmul.mubr.bf16.gmra.mxu0 %v19014_v7  ;;  %v19016_v3 = vld [vmem:[#allocation38_spill] sm:$0xff]  ;;  %v17293_v23 = vpop.f32.mrf.mxu0  ;;  %v9338_v40 = vpop.f32.mrf.mxu1 }
 0x44c   : > { %10018 = vmatprep.mubr.bf16.mxu1 %v19015_v45  ;;  %10151 = vmatprep.mubr.bf16.mxu0 %v19016_v3  ;;  %19018 = vst [vmem:[#allocation14_spill] sm:$0xff] %v17293_v23  ;;  %v10331_v7 = vmax.f32 %v9337_v53, 0.0  ;;  %v9339_v45 = vadd.f32 %v9338_v40, %v16903_v27 }
 0x44d   : > { %10197 = vmatpush1.bf16.msra.mxu1 %v12433_v18  ;;  %12595 = vmatpush3.bf16.msra.mxu0 %v12954_v42  ;;  %v17299_v13 = vpop.f32.mrf.mxu0  ;;  %v5786_v18 = vld [vmem:[%s18545_s3 + $0xc98] sm:$0xff]  ;;  %v10324_v42 = vmax.f32 %v9335_v34, 0.0 }
 0x44e   : > { %10198 = vmatprep.subr.bf16.mxu1 %v12426_v51  ;;  %19019 = vst [vmem:[#allocation66_spill] sm:$0xff] %v17299_v13  ;;  %12596 = vmatprep.subr.bf16.mxu0 %v12955_v31  ;;  %v9342_v51 = vpop.f32.mrf.mxu1  ;;  %v17310_v59 = vpack.c.bf16 %v10331_v7, %v10323_v21  ;;  %v10332_v27 = vmax.f32 %v9339_v45, 0.0  ;;  %v12410_v40 = vcombine.high %v5786_v18, %v5790_v47  ;;  %v19020_v31 = vld [vmem:[#allocation25_spill] sm:$0xff]  ;;  %v19021_v13 = vld [vmem:[#allocation12_spill] sm:$0xff] }
 0x44f   : > { %v9343_v3 = vadd.f32 %v9342_v51, %v16917_v33  ;;  %v17313_v24 = vpop.f32.mrf.mxu0  ;;  %v5778_v34 = vld [vmem:[%s18545_s3 + $0xc58] sm:$0xff]  ;;  %v12409_v7 = vcombine.low %v5786_v18, %v5790_v47 }
 0x450   : > { %v9344_v53 = vpop.f32.mrf.mxu1  ;;  %v5782_v33 = vld [vmem:[%s18545_s3 + $0xc78] sm:$0xff] }
 0x451   : > { %10199 = vmatpush1.bf16.msra.mxu1 %v12425_v8  ;;  %12597 = vmatpush3.bf16.msra.mxu0 %v12956_v35  ;;  %v9345_v23 = vadd.f32 %v9344_v53, %v19021_v13  ;;  %v17317_v28 = vpop.f32.mrf.mxu0  ;;  %v17325_v8 = vpack.c.bf16 %v10332_v27, %v10324_v42  ;;  %v19024_v35 = vld [vmem:[#allocation49_spill] sm:$0xff]  ;;  %v12402_v51 = vcombine.high %v5778_v34, %v5782_v33  ;;  %v10339_v53 = vmax.f32 %v9343_v3, 0.0 }
 0x452   : > { %10200 = vmatprep.subr.bf16.mxu1 %v12418_v37  ;;  %12710 = vmatprep.subr.bf16.mxu0 %v12965_v48  ;;  %v19022_v37 = vld [vmem:[#allocation37_spill] sm:$0xff]  ;;  %v9346_v20 = vpop.f32.mrf.mxu1 }
 0x453   : > { %10019 = vmatmul.mubr.bf16.gmra.mxu1 %v19020_v31  ;;  %10152 = vmatmul.mubr.bf16.gmra.mxu0 %v19022_v37  ;;  %v9347_v13 = vadd.f32 %v9346_v20, %v16952_v41  ;;  %v17331_v21 = vpop.f32.mrf.mxu0  ;;  %v5770_v31 = vld [vmem:[%s18545_s3 + $0xc18] sm:$0xff]  ;;  %v12401_v37 = vcombine.low %v5778_v34, %v5782_v33  ;;  %v10340_v18 = vmax.f32 %v9345_v23, 0.0  ;;  %v19028_v33 = vld [vmem:[#allocation39_spill] sm:$0xff] }
 0x454   : > { %10028 = vmatprep.mubr.bf16.mxu1 %v19023_v30  ;;  %10161 = vmatprep.mubr.bf16.mxu0 %v19024_v35  ;;  %19025 = vst [vmem:[#allocation65_spill] sm:$0xff] %v17331_v21  ;;  %v9348_v45 = vpop.f32.mrf.mxu1  ;;  %v5774_v41 = vld [vmem:[%s18545_s3 + $0xc38] sm:$0xff]  ;;  %v19027_v35 = vld [vmem:[#allocation27_spill] sm:$0xff] }
 0x455   : > { %10201 = vmatpush1.bf16.msra.mxu1 %v12417_v38  ;;  %v10347_v48 = vmax.f32 %v9347_v13, 0.0  ;;  %v9349_v42 = vadd.f32 %v9348_v45, %v16959_v56  ;;  %v17334_v27 = vpop.f32.mrf.mxu0  ;;  %v12394_v20 = vcombine.high %v5770_v31, %v5774_v41  ;;  %v5890_v23 = vld [vmem:[%s18545_s3 + $0xfd8] sm:$0xff] }
 0x456   : > { %10202 = vmatprep.subr.bf16.mxu1 %v12410_v40  ;;  %19026 = vst [vmem:[#allocation75_spill] sm:$0xff] %v17334_v27  ;;  %v9352_v38 = vpop.f32.mrf.mxu1  ;;  %v5894_v34 = vld [vmem:[%s18545_s3 + $0xff8] sm:$0xff] }
 0x457   : > { %v17342_v47 = vpack.c.bf16 %v10347_v48, %v10339_v53  ;;  %v10348_v3 = vmax.f32 %v9349_v42, 0.0  ;;  %v9353_v40 = vadd.f32 %v9352_v38, %v16973_v16  ;;  %v17345_v56 = vpop.f32.mrf.mxu0  ;;  %v19030_v53 = vld [vmem:[#allocation41_spill] sm:$0xff]  ;;  %v12393_v42 = vcombine.low %v5770_v31, %v5774_v41  ;;  %v19079_v21 = vld [vmem:[#allocation84_spill] sm:$0xff] }
 0x458   : > { %v9354_v30 = vpop.f32.mrf.mxu1 }
 0x459   : > { %10203 = vmatpush1.bf16.msra.mxu1 %v12409_v7  ;;  %v9355_v13 = vadd.f32 %v9354_v30, %v16989_v17  ;;  %v17349_v45 = vpop.f32.mrf.mxu0  ;;  %v17357_v16 = vpack.c.bf16 %v10348_v3, %v10340_v18  ;;  %v19029_v7 = vld [vmem:[#allocation30_spill] sm:$0xff]  ;;  %v12514_v30 = vcombine.high %v5890_v23, %v5894_v34 }
 0x45a   : > { %10204 = vmatprep.subr.bf16.mxu1 %v12402_v51  ;;  %v9356_v51 = vpop.f32.mrf.mxu1 }
 0x45b   : > { %10029 = vmatmul.mubr.bf16.gmra.mxu1 %v19027_v35  ;;  %10162 = vmatmul.mubr.bf16.gmra.mxu0 %v19028_v33  ;;  %v9357_v17 = vadd.f32 %v9356_v51, %v17008_v15  ;;  %v17363_v48 = vpop.f32.mrf.mxu0  ;;  %v10355_v35 = vmax.f32 %v9353_v40, 0.0  ;;  %v5882_v33 = vld [vmem:[%s18545_s3 + $0xf98] sm:$0xff]  ;;  %v10356_v31 = vmax.f32 %v9355_v13, 0.0 }
 0x45c   : > { %10038 = vmatprep.mubr.bf16.mxu1 %v19029_v7  ;;  %10171 = vmatprep.mubr.bf16.mxu0 %v19030_v53  ;;  %19031 = vst [vmem:[#allocation13_spill] sm:$0xff] %v17363_v48  ;;  %v9358_v38 = vpop.f32.mrf.mxu1  ;;  %v5886_v15 = vld [vmem:[%s18545_s3 + $0xfb8] sm:$0xff]  ;;  %v12513_v7 = vcombine.low %v5890_v23, %v5894_v34 }
 0x45d   : > { %10205 = vmatpush1.bf16.msra.mxu1 %v12401_v37  ;;  %v10363_v27 = vmax.f32 %v9357_v17, 0.0  ;;  %v9359_v18 = vadd.f32 %v9358_v38, %v17015_v50  ;;  %v17366_v3 = vpop.f32.mrf.mxu0  ;;  %v12506_v53 = vcombine.high %v5882_v33, %v5886_v15  ;;  %v19034_v17 = vld [vmem:[#allocation29_spill] sm:$0xff]  ;;  %v5878_v13 = vld [vmem:[%s18545_s3 + $0xf78] sm:$0xff] }
 0x45e   : > { %10206 = vmatprep.subr.bf16.mxu1 %v12394_v20  ;;  %19032 = vst [vmem:[#allocation68_spill] sm:$0xff] %v17366_v3  ;;  %v19035_v23 = vld [vmem:[#allocation40_spill] sm:$0xff] }
 0x45f   : > { %v9362_v37 = vpop.f32.mrf.mxu1  ;;  %v17374_v41 = vpack.c.bf16 %v10363_v27, %v10355_v35  ;;  %v10364_v40 = vmax.f32 %v9359_v18, 0.0  ;;  %v17377_v50 = vpop.f32.mrf.mxu0  ;;  %v5874_v27 = vld [vmem:[%s18545_s3 + $0xf58] sm:$0xff]  ;;  %v12505_v18 = vcombine.low %v5882_v33, %v5886_v15 }
 0x460   : > { %v9363_v20 = vadd.f32 %v9362_v37, %v17029_v9  ;;  %v19036_v34 = vld [vmem:[#allocation32_spill] sm:$0xff] }
 0x461   : > { %19033 = vst [vmem:[#allocation16_spill] sm:$0xff] %v17374_v41  ;;  %10207 = vmatpush1.bf16.msra.mxu1 %v12393_v42  ;;  %v9364_v51 = vpop.f32.mrf.mxu1  ;;  %v17381_v3 = vpop.f32.mrf.mxu0  ;;  %v17389_v9 = vpack.c.bf16 %v10364_v40, %v10356_v31  ;;  %v19098_v41 = vld [vmem:[#allocation89_spill] sm:$0xff] }
 0x462   : > { %10208 = vmatprep.subr.bf16.mxu1 %v12514_v30  ;;  %v9365_v38 = vadd.f32 %v9364_v51, %v17045_v0  ;;  %v19037_v30 = vld [vmem:[#allocation51_spill] sm:$0xff]  ;;  %v12498_v51 = vcombine.high %v5874_v27, %v5878_v13 }
 0x463   : > { %10039 = vmatmul.mubr.bf16.gmra.mxu1 %v19034_v17  ;;  %10172 = vmatmul.mubr.bf16.gmra.mxu0 %v19035_v23  ;;  %v9366_v42 = vpop.f32.mrf.mxu1  ;;  %v17395_v35 = vpop.f32.mrf.mxu0  ;;  %v10371_v17 = vmax.f32 %v9363_v20, 0.0  ;;  %v5866_v23 = vld [vmem:[%s18545_s3 + $0xf18] sm:$0xff] }
 0x464   : > { %10048 = vmatprep.mubr.bf16.mxu1 %v19036_v34  ;;  %10181 = vmatprep.mubr.bf16.mxu0 %v19037_v30  ;;  %v9367_v0 = vadd.f32 %v9366_v42, %v17064_v2  ;;  %19038 = vst [vmem:[#allocation15_spill] sm:$0xff] %v17395_v35  ;;  %v5870_v2 = vld [vmem:[%s18545_s3 + $0xf38] sm:$0xff]  ;;  %v12497_v34 = vcombine.low %v5874_v27, %v5878_v13  ;;  %v10372_v33 = vmax.f32 %v9365_v38, 0.0  ;;  %v19043_v27 = vld [vmem:[#allocation50_spill] sm:$0xff] }
 0x465   : > { %10209 = vmatpush2.bf16.msra.mxu1 %v12513_v7  ;;  %v9368_v37 = vpop.f32.mrf.mxu1  ;;  %v17398_v40 = vpop.f32.mrf.mxu0  ;;  %v12490_v30 = vcombine.high %v5866_v23, %v5870_v2  ;;  %v5862_v38 = vld [vmem:[%s18545_s3 + $0xef8] sm:$0xff]  ;;  %v19044_v13 = vld [vmem:[#allocation34_spill] sm:$0xff] }
 0x466   : > { %10210 = vmatprep.subr.bf16.mxu1 %v12506_v53  ;;  %v10379_v48 = vmax.f32 %v9367_v0, 0.0  ;;  %v9369_v31 = vadd.f32 %v9368_v37, %v17071_v57  ;;  %19039 = vst [vmem:[#allocation18_spill] sm:$0xff] %v17398_v40  ;;  %v19041_v0 = vld [vmem:[#allocation31_spill] sm:$0xff] }
 0x467   : > { %v9372_v7 = vpop.f32.mrf.mxu1 }
 0x468   : > { %v17406_v15 = vpack.c.bf16 %v10379_v48, %v10371_v17  ;;  %v10380_v20 = vmax.f32 %v9369_v31, 0.0  ;;  %v9373_v53 = vadd.f32 %v9372_v7, %v17085_v1  ;;  %v5858_v48 = vld [vmem:[%s18545_s3 + $0xed8] sm:$0xff]  ;;  %v12489_v31 = vcombine.low %v5866_v23, %v5870_v2 }
 0x469   : > { %10211 = vmatpush2.bf16.msra.mxu1 %v12505_v18  ;;  %v9374_v42 = vpop.f32.mrf.mxu1 }
 0x46a   : > { %19040 = vst [vmem:[#allocation17_spill] sm:$0xff] %v17406_v15  ;;  %10212 = vmatprep.subr.bf16.mxu1 %v12498_v51  ;;  %v9375_v37 = vadd.f32 %v9374_v42, %v17095_v36  ;;  %v17421_v1 = vpack.c.bf16 %v10380_v20, %v10372_v33  ;;  %v19045_v51 = vld [vmem:[#allocation76_spill] sm:$0xff]  ;;  %v12482_v42 = vcombine.high %v5858_v48, %v5862_v38 }
 0x46b   : > { %v17409_v57 = vpop.f32.mrf.mxu0  ;;  %10049 = vmatmul.mubr.bf16.gmra.mxu1 %v19041_v0  ;;  %10182 = vmatmul.mubr.bf16.gmra.mxu0 %v19043_v27  ;;  %v9376_v18 = vpop.f32.mrf.mxu1  ;;  %v10387_v0 = vmax.f32 %v9373_v53, 0.0 }
 0x46c   : > { %19042 = vst [vmem:[#allocation20_spill] sm:$0xff] %v17421_v1  ;;  %10058 = vmatprep.mubr.bf16.mxu1 %v19044_v13  ;;  %11048 = vmatprep.mubr.bf16.mxu0 %v19045_v51  ;;  %v9377_v36 = vadd.f32 %v9376_v18, %v17111_v43  ;;  %v5854_v43 = vld [vmem:[%s18545_s3 + $0xeb8] sm:$0xff]  ;;  %v12481_v13 = vcombine.low %v5858_v48, %v5862_v38  ;;  %v10388_v23 = vmax.f32 %v9375_v37, 0.0  ;;  %v12969_v37 = vld [vmem:[%s18547_s5 + $0x170] sm:$0xff]  }
 0x46d   : > { %v17413_v40 = vpop.f32.mrf.mxu0  ;;  %10213 = vmatpush2.bf16.msra.mxu1 %v12497_v34  ;;  %v9378_v7 = vpop.f32.mrf.mxu1  ;;  %v5850_v34 = vld [vmem:[%s18545_s3 + $0xe98] sm:$0xff] }
 0x46e   : > { %10214 = vmatprep.subr.bf16.mxu1 %v12490_v30  ;;  %v10395_v35 = vmax.f32 %v9377_v36, 0.0  ;;  %v9379_v33 = vadd.f32 %v9378_v7, %v17116_v11  ;;  %v12474_v51 = vcombine.high %v5850_v34, %v5854_v43  ;;  %v12966_v36 = vld [vmem:[%s18547_s5 + $0x138] sm:$0xff]   ;;  %v19049_v7 = vld [vmem:[#allocation33_spill] sm:$0xff] }
 0x46f   : > { %v17427_v17 = vpop.f32.mrf.mxu0  ;;  %v9382_v27 = vpop.f32.mrf.mxu1 }
 0x470   : > { %19046 = vst [vmem:[#allocation57_spill] sm:$0xff] %v17427_v17  ;;  %v17438_v2 = vpack.c.bf16 %v10395_v35, %v10387_v0  ;;  %v10396_v53 = vmax.f32 %v9379_v33, 0.0  ;;  %v9383_v30 = vadd.f32 %v9382_v27, %v17133_v5  ;;  %v5842_v35 = vld [vmem:[%s18545_s3 + $0xe58] sm:$0xff] }
 0x471   : > { %v17430_v20 = vpop.f32.mrf.mxu0  ;;  %10215 = vmatpush2.bf16.msra.mxu1 %v12489_v31  ;;  %v9384_v18 = vpop.f32.mrf.mxu1  ;;  %v5846_v5 = vld [vmem:[%s18545_s3 + $0xe78] sm:$0xff]  ;;  %v19051_v31 = vld [vmem:[#allocation78_spill] sm:$0xff] }
 0x472   : > { %19047 = vst [vmem:[#allocation19_spill] sm:$0xff] %v17430_v20  ;;  %19048 = vst [vmem:[#allocation61_spill] sm:$0xff] %v17438_v2  ;;  %10216 = vmatprep.subr.bf16.mxu1 %v12482_v42  ;;  %v9385_v48 = vadd.f32 %v9384_v18, %v17145_v63  ;;  %v17457_v38 = vpack.c.bf16 %v10396_v53, %v10388_v23  ;;  %v19052_v42 = vld [vmem:[#allocation36_spill] sm:$0xff]  ;;  %v12473_v18 = vcombine.low %v5850_v34, %v5854_v43  ;;  %v12970_v23 = vld [vmem:[%s18547_s5 + $0x130] sm:$0xff]  }
 0x473   : > { %v17441_v11 = vpop.f32.mrf.mxu0  ;;  %10059 = vmatmul.mubr.bf16.gmra.mxu1 %v19049_v7  ;;  %11049 = vmatmul.mubr.bf16.vlgmr.msra.gmra.mxu0 %v19051_v31  ;;  %v9386_v63 = vpop.f32.mrf.mxu1  ;;  %v19053_v33 = vld [vmem:[#allocation80_spill] sm:$0xff]  ;;  %v12466_v17 = vcombine.high %v5842_v35, %v5846_v5  ;;  %v10403_v53 = vmax.f32 %v9383_v30, 0.0  ;;  %v12973_v34 = vld [vmem:[%s18547_s5 + $0x168] sm:$0xff]   ;;  %v12465_v30 = vcombine.low %v5842_v35, %v5846_v5  ;;  %v12977_v35 = vld [vmem:[%s18547_s5 + $0x160] sm:$0xff]  }
 0x474   : > { %19050 = vst [vmem:[#allocation42_spill] sm:$0xff] %v17457_v38  ;;  %10068 = vmatprep.mubr.bf16.mxu1 %v19052_v42  ;;  %11056 = vmatprep.mubr.bf16.mxu0 %v19053_v33  ;;  %v9387_v27 = vadd.f32 %v9386_v63, %v17162_v44  ;;  %v5838_v44 = vld [vmem:[%s18545_s3 + $0xe38] sm:$0xff]  ;;  %v12974_v2 = vld [vmem:[%s18547_s5 + $0x128] sm:$0xff]   ;;  %v19055_v38 = vld [vmem:[#allocation35_spill] sm:$0xff] }
 0x475   : > { %v17461_v0 = vpop.f32.mrf.mxu0  ;;  %10217 = vmatpush2.bf16.msra.mxu1 %v12481_v13  ;;  %v9388_v20 = vpop.f32.mrf.mxu1  ;;  %12711 = vmatpush3.bf16.msra.mxu0 %v12966_v36  ;;  %v5834_v13 = vld [vmem:[%s18545_s3 + $0xe18] sm:$0xff]  ;;  %v10404_v36 = vmax.f32 %v9385_v48, 0.0  ;;  %v19058_v5 = vld [vmem:[#allocation5_spill] sm:$0xff] }
 0x476   : > { %10218 = vmatprep.subr.bf16.mxu1 %v12474_v51  ;;  %v10411_v31 = vmax.f32 %v9387_v27, 0.0  ;;  %v9389_v42 = vadd.f32 %v9388_v20, %v17172_v39  ;;  %12712 = vmatprep.subr.bf16.mxu0 %v12969_v37  ;;  %v12458_v37 = vcombine.high %v5834_v13, %v5838_v44 }
 0x477   : > { %v17465_v7 = vpop.f32.mrf.mxu0  ;;  %v9392_v51 = vpop.f32.mrf.mxu1 }
 0x478   : > { %v17482_v63 = vpack.c.bf16 %v10411_v31, %v10403_v53  ;;  %v10412_v39 = vmax.f32 %v9389_v42, 0.0  ;;  %v9393_v20 = vadd.f32 %v9392_v51, %v17189_v52  ;;  %v19062_v42 = vld [vmem:[#allocation81_spill] sm:$0xff]  ;;  %v12457_v51 = vcombine.low %v5834_v13, %v5838_v44 }
 0x479   : > { %v17480_v43 = vpop.f32.mrf.mxu0  ;;  %10219 = vmatpush2.bf16.msra.mxu1 %v12473_v18  ;;  %v9394_v27 = vpop.f32.mrf.mxu1  ;;  %12713 = vmatpush3.bf16.msra.mxu0 %v12970_v23  ;;  %v19059_v18 = vsub.s32 4, %v19058_v5 }
 0x47a   : > { %19054 = vst [vmem:[#allocation60_spill] sm:$0xff] %v17482_v63  ;;  %10220 = vmatprep.subr.bf16.mxu1 %v12466_v17  ;;  %v9395_v48 = vadd.f32 %v9394_v27, %v17201_v32  ;;  %12714 = vmatprep.subr.bf16.mxu0 %v12973_v34  ;;  %v17495_v52 = vpack.c.bf16 %v10412_v39, %v10404_v36  ;;  %v17500_v17 = vld [vmem:[%s18546_s4] sm:$0xff]  ;;  %v19063_v36 = vsub.s32 5, %v19058_v5 }
 0x47b   : > { %v17485_v33 = vpop.f32.mrf.mxu0  ;;  %10069 = vmatmul.mubr.bf16.gmra.mxu1 %v19055_v38  ;;  %19057 = vst [vmem:[#allocation10_spill] sm:$0xff] %v17500_v17  ;;  %v17505_v23 = vrot.slane %v17500_v17, %v19059_v18  ;;  %v19060_v38 = vld [vmem:[#allocation77_spill] sm:$0xff]  ;;  %v9396_v31 = vpop.f32.mrf.mxu1 }
 0x47c   : > { %19056 = vst [vmem:[#allocation59_spill] sm:$0xff] %v17495_v52  ;;  %11057 = vmatmul.mubr.bf16.gmra.mxu0 %v19060_v38  ;;  %v19061_v32 = vld [vmem:[#allocation69_spill] sm:$0xff]  ;;  %v9397_v34 = vadd.f32 %v9396_v31, %v17210_v12  ;;  %v17516_v39 = vrot.slane %v17500_v17, %v19063_v36  ;;  %v12957_v38 = vld [vmem:[%s18547_s5 + $0xf8] sm:$0xff]   ;;  %v10419_v12 = vmax.f32 %v9393_v20, 0.0 }
 0x47d   : > { %10224 = vmatprep.mubr.bf16.mxu1 %v19061_v32  ;;  %v17509_v53 = vpop.f32.mrf.mxu0  ;;  %10221 = vmatpush2.bf16.msra.mxu1 %v12465_v30  ;;  %v9398_v18 = vpop.f32.mrf.mxu1  ;;  %v12978_v30 = vld [vmem:[%s18547_s5 + $0x120] sm:$0xff]   ;;  %v12981_v32 = vld [vmem:[%s18547_s5 + $0x158] sm:$0xff]  }
 0x47e   : > { %11064 = vmatprep.mubr.bf16.mxu0 %v19062_v42  ;;  %10222 = vmatprep.subr.bf16.mxu1 %v12458_v37  ;;  %v10427_v13 = vmax.f32 %v9397_v34, 0.0  ;;  %v9399_v44 = vadd.f32 %v9398_v18, %v17224_v19  ;;  %v9436_v37 = vadd.f32 %v17118_v62, %v17505_v23  ;;  %v10420_v42 = vmax.f32 %v9395_v48, 0.0  ;;  %v12958_v62 = vld [vmem:[%s18547_s5 + $0xb8] sm:$0xff]   ;;  %v19066_v18 = vld [vmem:[#allocation70_spill] sm:$0xff] }
 0x47f   : > { %v17518_v27 = vpop.f32.mrf.mxu0  ;;  %12715 = vmatpush3.bf16.msra.mxu0 %v12974_v2  ;;  %v9548_v17 = vpop.f32.mrf.mxu1  ;;  %v9438_v20 = vadd.f32 %v17136_v61, %v17516_v39  ;;  %v12982_v48 = vld [vmem:[%s18547_s5 + $0x118] sm:$0xff]   ;;  %v12983_v61 = vld [vmem:[%s18547_s5 + $0x150] sm:$0xff]  }
 0x480   : > { %12716 = vmatprep.subr.bf16.mxu0 %v12977_v35  ;;  %v17534_v2 = vpack.c.bf16 %v10427_v13, %v10419_v12  ;;  %v10428_v36 = vmax.f32 %v9399_v44, 0.0  ;;  %v17538_v19 = vadd.f32 %v9548_v17, %v9436_v37  ;;  %v19068_v13 = vld [vmem:[#allocation71_spill] sm:$0xff] }
 0x481   : > { %v17532_v31 = vpop.f32.mrf.mxu0  ;;  %10223 = vmatpush2.bf16.msra.mxu1 %v12457_v51  ;;  %v9550_v34 = vpop.f32.mrf.mxu1  ;;  %v12959_v51 = vld [vmem:[%s18547_s5 + $0xf0] sm:$0xff]  }
 0x482   : > { %19064 = vst [vmem:[#allocation44_spill] sm:$0xff] %v17534_v2  ;;  %12646 = vmatprep.subr.bf16.mxu1 %v12957_v38  ;;  %v17554_v17 = vpack.c.bf16 %v10428_v36, %v10420_v42  ;;  %v19067_v38 = vld [vmem:[#allocation79_spill] sm:$0xff] }
 0x483   : > { %v17540_v35 = vpop.f32.mrf.mxu0  ;;  %12717 = vmatpush3.bf16.msra.mxu0 %v12978_v30  ;;  %v17558_v30 = vadd.f32 %v9550_v34, %v9438_v20  ;;  %v19069_v44 = vld [vmem:[#allocation83_spill] sm:$0xff]  ;;  %v17564_v37 = vpop.f32.mrf.mxu1  ;;  %v12961_v34 = vld [vmem:[%s18547_s5 + $0xe8] sm:$0xff]  }
 0x484   : > { %12718 = vmatprep.subr.bf16.mxu0 %v12981_v32  ;;  %19065 = vst [vmem:[#allocation58_spill] sm:$0xff] %v17554_v17  ;;  %10225 = vmatmul.mubr.bf16.vlgmr.msra.gmra.mxu1 %v19066_v18  ;;  %v12960_v42 = vld [vmem:[%s18547_s5 + $0xb0] sm:$0xff]   ;;  %v9446_v18 = vadd.f32 %v17174_v29, %v17505_v23  ;;  %v12986_v29 = vld [vmem:[%s18547_s5 + $0x108] sm:$0xff]   ;;  %v19073_v17 = vld [vmem:[#allocation73_spill] sm:$0xff] }
 0x485   : > { %11065 = vmatmul.mubr.bf16.gmra.mxu0 %v19067_v38  ;;  %v17560_v12 = vpop.f32.mrf.mxu0  ;;  %10234 = vmatprep.mubr.bf16.mxu1 %v19068_v13  ;;  %v12984_v36 = vld [vmem:[%s18547_s5 + $0x110] sm:$0xff]   ;;  %v17574_v20 = vpop.f32.mrf.mxu1  ;;  %v9448_v13 = vadd.f32 %v17192_v58, %v17516_v39  ;;  %v12963_v58 = vld [vmem:[%s18547_s5 + $0xe0] sm:$0xff]  }
 0x486   : > { %11072 = vmatprep.mubr.bf16.mxu0 %v19069_v44  ;;  %12647 = vmatpush3.bf16.msra.mxu1 %v12958_v62  ;;  %v12985_v62 = vld [vmem:[%s18547_s5 + $0x148] sm:$0xff]  }
 0x487   : > { %v17566_v32 = vpop.f32.mrf.mxu0  ;;  %12719 = vmatpush3.bf16.msra.mxu0 %v12982_v48  ;;  %12648 = vmatprep.subr.bf16.mxu1 %v12959_v51  ;;  %v9558_v38 = vpop.f32.mrf.mxu1 }
 0x488   : > { %12720 = vmatprep.subr.bf16.mxu0 %v12983_v61  ;;  %v17588_v44 = vadd.f32 %v9558_v38, %v9446_v18  ;;  %v12962_v61 = vld [vmem:[%s18547_s5 + $0xa8] sm:$0xff]   ;;  %v19070_v18 = vld [vmem:[#allocation72_spill] sm:$0xff] }
 0x489   : > { %v17584_v48 = vpop.f32.mrf.mxu0  ;;  %v9560_v5 = vpop.f32.mrf.mxu1  ;;  %v19071_v38 = vld [vmem:[#allocation82_spill] sm:$0xff] }
 0x48a   : > { %12649 = vmatpush3.bf16.msra.mxu1 %v12960_v42  ;;  %v12987_v42 = vld [vmem:[%s18547_s5 + $0x140] sm:$0xff]  }
 0x48b   : > { %v17590_v51 = vpop.f32.mrf.mxu0  ;;  %12721 = vmatpush3.bf16.msra.mxu0 %v12984_v36  ;;  %12650 = vmatprep.subr.bf16.mxu1 %v12961_v34  ;;  %v17606_v36 = vadd.f32 %v9560_v5, %v9448_v13  ;;  %v19074_v34 = vld [vmem:[#allocation85_spill] sm:$0xff]  ;;  %v17612_v63 = vpop.f32.mrf.mxu1 }
 0x48c   : > { %12722 = vmatprep.subr.bf16.mxu0 %v12985_v62  ;;  %10235 = vmatmul.mubr.bf16.gmra.mxu1 %v19070_v18  ;;  %v12964_v62 = vld [vmem:[%s18547_s5 + $0xa0] sm:$0xff]  }
 0x48d   : > { %11073 = vmatmul.mubr.bf16.gmra.mxu0 %v19071_v38  ;;  %v17608_v2 = vpop.f32.mrf.mxu0  ;;  %10244 = vmatprep.mubr.bf16.mxu1 %v19073_v17  ;;  %v12988_v5 = vld [vmem:[%s18547_s5 + $0x100] sm:$0xff]   ;;  %v17622_v13 = vpop.f32.mrf.mxu1  ;;  %v12967_v17 = vld [vmem:[%s18547_s5 + $0xd8] sm:$0xff]  }
 0x48e   : > { %19072 = vst [vmem:[#allocation22_spill] sm:$0xff] %v17608_v2  ;;  %11080 = vmatprep.mubr.bf16.mxu0 %v19074_v34  ;;  %12651 = vmatpush3.bf16.msra.mxu1 %v12962_v61  ;;  %v9456_v61 = vadd.f32 %v17227_v55, %v17505_v23  ;;  %v12971_v55 = vld [vmem:[%s18547_s5 + $0xd0] sm:$0xff]   ;;  %v19095_v2 = vld [vmem:[#allocation8_spill] sm:$0xff] }
 0x48f   : > { %v17614_v52 = vpop.f32.mrf.mxu0  ;;  %12723 = vmatpush3.bf16.msra.mxu0 %v12986_v29  ;;  %12652 = vmatprep.subr.bf16.mxu1 %v12963_v58  ;;  %v9568_v38 = vpop.f32.mrf.mxu1  ;;  %v9458_v29 = vadd.f32 %v17234_v54, %v17516_v39  ;;  %v12968_v58 = vld [vmem:[%s18547_s5 + $0x98] sm:$0xff]  }
 0x490   : > { %19075 = vst [vmem:[#allocation43_spill] sm:$0xff] %v17614_v52  ;;  %12724 = vmatprep.subr.bf16.mxu0 %v12987_v42  ;;  %v17633_v34 = vadd.f32 %v9568_v38, %v9456_v61  ;;  %v19082_v38 = vld [vmem:[#allocation86_spill] sm:$0xff]  ;;  %v19087_v52 = vld [vmem:[#allocation7_spill] sm:$0xff] }
 0x491   : > { %v17629_v18 = vpop.f32.mrf.mxu0  ;;  %v9570_v42 = vpop.f32.mrf.mxu1 }
 0x492   : > { %19076 = vst [vmem:[#allocation46_spill] sm:$0xff] %v17629_v18  ;;  %12653 = vmatpush3.bf16.msra.mxu1 %v12964_v62  ;;  %v19078_v18 = vld [vmem:[#allocation74_spill] sm:$0xff]  ;;  %v17645_v54 = vadd.f32 %v9570_v42, %v9458_v29  ;;  %v19081_v62 = vld [vmem:[#allocation52_spill] sm:$0xff]  ;;  %v9466_v29 = vadd.f32 %v17269_v49, %v17505_v23  ;;  %v12979_v49 = vld [vmem:[%s18547_s5 + $0xc0] sm:$0xff]  }
 0x493   : > { %v17635_v15 = vpop.f32.mrf.mxu0  ;;  %12725 = vmatpush3.bf16.msra.mxu0 %v12988_v5  ;;  %12654 = vmatprep.subr.bf16.mxu1 %v12967_v17  ;;  %v12972_v17 = vld [vmem:[%s18547_s5 + $0x90] sm:$0xff]  }
 0x494   : > { %19077 = vst [vmem:[#allocation21_spill] sm:$0xff] %v17635_v15  ;;  %10245 = vmatmul.mubr.bf16.gmra.mxu1 %v19078_v18  ;;  %v17651_v15 = vpop.f32.mrf.mxu1 }
 0x495   : > { %11081 = vmatmul.mubr.bf16.gmra.mxu0 %v19079_v21  ;;  %v17647_v61 = vpop.f32.mrf.mxu0  ;;  %10254 = vmatprep.mubr.bf16.mxu1 %v19081_v62  ;;  %v12975_v21 = vld [vmem:[%s18547_s5 + $0xc8] sm:$0xff]  }
 0x496   : > { %19080 = vst [vmem:[#allocation45_spill] sm:$0xff] %v17647_v61  ;;  %11088 = vmatprep.mubr.bf16.mxu0 %v19082_v38  ;;  %12655 = vmatpush3.bf16.msra.mxu1 %v12968_v58  ;;  %v17658_v18 = vpop.f32.mrf.mxu1  ;;  %v9468_v58 = vadd.f32 %v17276_v14, %v17516_v39 }
 0x497   : > { %v17653_v5 = vpop.f32.mrf.mxu0  ;;  %12656 = vmatprep.subr.bf16.mxu1 %v12971_v55  ;;  %v12976_v55 = vld [vmem:[%s18547_s5 + $0x88] sm:$0xff]  }
 0x498   : > { %19083 = vst [vmem:[#allocation24_spill] sm:$0xff] %v17653_v5  ;;  %v9578_v62 = vpop.f32.mrf.mxu1 }
 0x499   : > { %v17665_v42 = vpop.f32.mrf.mxu0  ;;  %v17669_v38 = vadd.f32 %v9578_v62, %v9466_v29  ;;  %v19090_v62 = vld [vmem:[#allocation56_spill] sm:$0xff] }
 0x49a   : > { %19084 = vst [vmem:[#allocation48_spill] sm:$0xff] %v17665_v42  ;;  %12657 = vmatpush3.bf16.msra.mxu1 %v12972_v17  ;;  %v9580_v61 = vpop.f32.mrf.mxu1  ;;  %v19086_v42 = vld [vmem:[#allocation53_spill] sm:$0xff]  ;;  %v19091_v17 = vld [vmem:[#allocation87_spill] sm:$0xff] }
 0x49b   : > { %v17671_v5 = vpop.f32.mrf.mxu0  ;;  %12658 = vmatprep.subr.bf16.mxu1 %v12975_v21  ;;  %v17681_v14 = vadd.f32 %v9580_v61, %v9468_v58  ;;  %v12980_v21 = vld [vmem:[%s18547_s5 + $0x80] sm:$0xff]   ;;  %v9476_v61 = vadd.f32 %v17313_v24, %v17505_v23 }
 0x49c   : > { %19085 = vst [vmem:[#allocation23_spill] sm:$0xff] %v17671_v5  ;;  %10255 = vmatmul.mubr.bf16.gmra.mxu1 %v19086_v42  ;;  %v17687_v5 = vpop.f32.mrf.mxu1 }
 0x49d   : > { %11089 = vmatmul.mubr.bf16.gmra.mxu0 %v19087_v52  ;;  %19088 = vst [vmem:[#allocation9_spill] sm:$0xff] %v17681_v14  ;;  %v17683_v29 = vpop.f32.mrf.mxu0  ;;  %10264 = vmatprep.mubr.bf16.mxu1 %v19090_v62  ;;  %v12989_v52 = vld [vmem:[%s18547_s5 + $0x1f8] sm:$0xff]  }
 0x49e   : > { %19089 = vst [vmem:[#allocation47_spill] sm:$0xff] %v17683_v29  ;;  %11096 = vmatprep.mubr.bf16.mxu0 %v19091_v17  ;;  %12659 = vmatpush3.bf16.msra.mxu1 %v12976_v55  ;;  %v17694_v42 = vpop.f32.mrf.mxu1  ;;  %v9478_v55 = vadd.f32 %v17317_v28, %v17516_v39 }
 0x49f   : > { %v17689_v1 = vpop.f32.mrf.mxu0  ;;  %12660 = vmatprep.subr.bf16.mxu1 %v12979_v49  ;;  %v19094_v49 = vld [vmem:[#allocation55_spill] sm:$0xff] }
 0x4a0   : > { %19092 = vst [vmem:[#allocation26_spill] sm:$0xff] %v17689_v1  ;;  %v9588_v62 = vpop.f32.mrf.mxu1 }
 0x4a1   : > { %v17701_v58 = vpop.f32.mrf.mxu0  ;;  %v17705_v17 = vadd.f32 %v9588_v62, %v9476_v61 }
 0x4a2   : > { %19093 = vst [vmem:[#allocation38_spill] sm:$0xff] %v17701_v58  ;;  %12661 = vmatpush3.bf16.msra.mxu1 %v12980_v21  ;;  %v9590_v29 = vpop.f32.mrf.mxu1  ;;  %v19097_v58 = vld [vmem:[#allocation54_spill] sm:$0xff]  ;;  %v9486_v21 = vadd.f32 %v17345_v56, %v17505_v23 }
 0x4a3   : > { %v17707_v1 = vpop.f32.mrf.mxu0  ;;  %12774 = vmatprep.subr.bf16.mxu1 %v12989_v52  ;;  %v17711_v14 = vadd.f32 %v9590_v29, %v9478_v55  ;;  %v9488_v29 = vadd.f32 %v17349_v45, %v17516_v39 }
 0x4a4   : > { %10265 = vmatmul.mubr.bf16.gmra.mxu1 %v19094_v49  ;;  %v17717_v28 = vpop.f32.mrf.mxu1  ;;  %v19102_v49 = vld [vmem:[#allocation88_spill] sm:$0xff] }
 0x4a5   : > { %11097 = vmatmul.mubr.bf16.gmra.mxu0 %v19095_v2  ;;  %v17713_v24 = vpop.f32.mrf.mxu0  ;;  %10274 = vmatprep.mubr.bf16.mxu1 %v19097_v58 }
 0x4a6   : > { %19096 = vst [vmem:[#allocation6_spill] sm:$0xff] %v17713_v24  ;;  %11104 = vmatprep.mubr.bf16.mxu0 %v19098_v41  ;;  %v17721_v62 = vpop.f32.mrf.mxu1 }
 0x4a7   : > { %v17719_v61 = vpop.f32.mrf.mxu0 }
 0x4a8   : > { %19099 = vst [vmem:[#allocation25_spill] sm:$0xff] %v17719_v61  ;;  %v9598_v2 = vpop.f32.mrf.mxu1 }
 0x4a9   : > { %v17725_v52 = vpop.f32.mrf.mxu0  ;;  %v17729_v55 = vadd.f32 %v9598_v2, %v9486_v21  ;;  %v9496_v21 = vadd.f32 %v17377_v50, %v17505_v23 }
 0x4aa   : > { %19100 = vst [vmem:[#allocation12_spill] sm:$0xff] %v17725_v52  ;;  %v9600_v41 = vpop.f32.mrf.mxu1 }
 0x4ab   : > { %v17731_v58 = vpop.f32.mrf.mxu0  ;;  %v17735_v61 = vadd.f32 %v9600_v41, %v9488_v29  ;;  %v9498_v29 = vadd.f32 %v17381_v3, %v17516_v39  ;;  %v9506_v3 = vadd.f32 %v17409_v57, %v17505_v23 }
 0x4ac   : > { %19101 = vst [vmem:[#allocation37_spill] sm:$0xff] %v17731_v58  ;;  %10275 = vmatmul.mubr.bf16.gmra.mxu1 %v18991_v10  ;;  %v17740_v56 = vpop.f32.mrf.mxu1 }
 0x4ad   : > { %11105 = vmatmul.mubr.bf16.gmra.mxu0 %v19102_v49  ;;  %v17737_v24 = vpop.f32.mrf.mxu0  ;;  %10284 = vmatprep.mubr.bf16.mxu1 %v18993_v22 }
 0x4ae   : > { %19103 = vst [vmem:[#allocation28_spill] sm:$0xff] %v17737_v24  ;;  %v17744_v45 = vpop.f32.mrf.mxu1 }
 0x4af   : > { %v17742_v52 = vpop.f32.mrf.mxu0 }
 0x4b0   : > { %19104 = vst [vmem:[#allocation49_spill] sm:$0xff] %v17742_v52  ;;  %v9608_v10 = vpop.f32.mrf.mxu1 }
 0x4b1   : > { %v17748_v2 = vpop.f32.mrf.mxu0  ;;  %v17752_v41 = vadd.f32 %v9608_v10, %v9496_v21 }
 0x4b2   : > { %19105 = vst [vmem:[#allocation27_spill] sm:$0xff] %v17748_v2  ;;  %v9610_v22 = vpop.f32.mrf.mxu1 }
 0x4b3   : > { %v17754_v49 = vpop.f32.mrf.mxu0  ;;  %v17757_v24 = vadd.f32 %v9610_v22, %v9498_v29 }
 0x4b4   : > { %19106 = vst [vmem:[#allocation39_spill] sm:$0xff] %v17754_v49  ;;  %10285 = vmatmul.mubr.bf16.gmra.mxu1 %v18995_v46  ;;  %v17762_v50 = vpop.f32.mrf.mxu1  ;;  %v9508_v46 = vadd.f32 %v17413_v40, %v17516_v39 }
 0x4b5   : > { %10294 = vmatprep.mubr.bf16.mxu1 %v18996_v60  ;;  %v17760_v52 = vpop.f32.mrf.mxu0 }
 0x4b6   : > { %19107 = vst [vmem:[#allocation30_spill] sm:$0xff] %v17760_v52  ;;  %v17766_v58 = vpop.f32.mrf.mxu1 }
 0x4b7   : > { %v17764_v2 = vpop.f32.mrf.mxu0 }
 0x4b8   : > { %19108 = vst [vmem:[#allocation41_spill] sm:$0xff] %v17764_v2  ;;  %v9618_v10 = vpop.f32.mrf.mxu1 }
 0x4b9   : > { %v17770_v21 = vpop.f32.mrf.mxu0  ;;  %v17774_v29 = vadd.f32 %v9618_v10, %v9506_v3  ;;  %v9442_v3 = vadd.f32 %v17164_v4, %v17516_v39  ;;  %v19117_v4 = vld [vmem:[#allocation63_spill] sm:$0xff] }
 0x4ba   : > { %19109 = vst [vmem:[#allocation29_spill] sm:$0xff] %v17770_v21  ;;  %v9620_v22 = vpop.f32.mrf.mxu1  ;;  %v9440_v21 = vadd.f32 %v17148_v26, %v17505_v23  ;;  %v12991_v26 = vld [vmem:[%s18547_s5 + $0x1f0] sm:$0xff]  }
 0x4bb   : > { %v17776_v60 = vpop.f32.mrf.mxu0  ;;  %v17779_v52 = vadd.f32 %v9620_v22, %v9508_v46  ;;  %v9555_v22 = vadd.f32 %v17574_v20, %v9442_v3  ;;  %v12993_v20 = vld [vmem:[%s18547_s5 + $0x1e8] sm:$0xff]  }
 0x4bc   : > { %19110 = vst [vmem:[#allocation40_spill] sm:$0xff] %v17776_v60  ;;  %10295 = vmatmul.mubr.bf16.gmra.mxu1 %v18999_v25  ;;  %v17784_v57 = vpop.f32.mrf.mxu1  ;;  %v9553_v25 = vadd.f32 %v17564_v37, %v9440_v21 }
 0x4bd   : > { %19111 = vst [vmem:[#allocation32_spill] sm:$0xff] %v17779_v52  ;;  %11145 = vmatprep.mubr.bf16.mxu1 %v17287_v6  ;;  %v17782_v2 = vpop.f32.mrf.mxu0  ;;  %v12990_v6 = vld [vmem:[%s18547_s5 + $0x1b8] sm:$0xff]  }
 0x4be   : > { %19112 = vst [vmem:[#allocation51_spill] sm:$0xff] %v17782_v2  ;;  %v17790_v40 = vpop.f32.mrf.mxu1  ;;  %v9666_v52 = vadd.f32 %v17465_v7, %v9553_v25  ;;  %v9668_v7 = vadd.f32 %v17480_v43, %v9555_v22  ;;  %v19120_v25 = vld [vmem:[#allocation67_spill] sm:$0xff]  ;;  %v12995_v22 = vld [vmem:[%s18547_s5 + $0x1e0] sm:$0xff]  }
 0x4bf   : > { %v17788_v49 = vpop.f32.mrf.mxu0  ;;  %19114 = vst [vmem:[#allocation50_spill] sm:$0xff] %v17790_v40 }
 0x4c0   : > { %19113 = vst [vmem:[#allocation31_spill] sm:$0xff] %v17788_v49  ;;  %v9774_v46 = vpop.f32.mrf.mxu1  ;;  %v9662_v49 = vadd.f32 %v17441_v11, %v17538_v19  ;;  %v12992_v11 = vld [vmem:[%s18547_s5 + $0x1b0] sm:$0xff]  }
 0x4c1   : > { %v17795_v10 = vpop.f32.mrf.mxu0 }
 0x4c2   : > { %19115 = vst [vmem:[#allocation34_spill] sm:$0xff] %v17795_v10  ;;  %v9776_v37 = vpop.f32.mrf.mxu1  ;;  %v9775_v21 = vadd.f32 %v9774_v46, %v9662_v49  ;;  %v9664_v10 = vadd.f32 %v17461_v0, %v17558_v30 }
 0x4c3   : > { %v17806_v2 = vpop.f32.mrf.mxu0 }
 0x4c4   : > { %19116 = vst [vmem:[#allocation76_spill] sm:$0xff] %v17806_v2  ;;  %11146 = vmatmul.mubr.bf16.vlgmr.msra.gmra.mxu1 %v19117_v4  ;;  %v9778_v19 = vpop.f32.mrf.mxu1  ;;  %v9777_v3 = vadd.f32 %v9776_v37, %v9664_v10  ;;  %v9672_v10 = vadd.f32 %v17485_v33, %v17588_v44 }
 0x4c5   : > { %11153 = vmatprep.mubr.bf16.mxu1 %v17325_v8  ;;  %v17812_v60 = vpop.f32.mrf.mxu0  ;;  %12775 = vmatpush3.bf16.msra.mxu1 %v12990_v6  ;;  %v19119_v8 = vld [vmem:[#allocation62_spill] sm:$0xff]  ;;  %v9779_v0 = vadd.f32 %v9778_v19, %v9666_v52  ;;  %v9452_v6 = vadd.f32 %v19120_v25, %v17516_v39 }
 0x4c6   : > { %19118 = vst [vmem:[#allocation33_spill] sm:$0xff] %v17812_v60  ;;  %12776 = vmatprep.subr.bf16.mxu1 %v12991_v26  ;;  %v9450_v49 = vadd.f32 %v19119_v8, %v17505_v23  ;;  %v9780_v46 = vpop.f32.mrf.mxu1  ;;  %v10309_v26 = vmax.f32 %v9775_v21, 0.0  ;;  %v12994_v52 = vld [vmem:[%s18547_s5 + $0x1a8] sm:$0xff]   ;;  %v10310_v37 = vmax.f32 %v9777_v3, 0.0 }
 0x4c7   : > { %v17823_v30 = vpop.f32.mrf.mxu0  ;;  %v10317_v60 = vmax.f32 %v9779_v0, 0.0  ;;  %v9781_v2 = vadd.f32 %v9780_v46, %v9668_v7  ;;  %v19122_v7 = vld [vmem:[#allocation11_spill] sm:$0xff] }
 0x4c8   : > { %v9563_v4 = vadd.f32 %v17612_v63, %v9450_v49  ;;  %v9784_v43 = vpop.f32.mrf.mxu1  ;;  %v9565_v63 = vadd.f32 %v17622_v13, %v9452_v6  ;;  %v12996_v13 = vld [vmem:[%s18547_s5 + $0x1a0] sm:$0xff]   ;;  %v9462_v25 = vadd.f32 %v19122_v7, %v17516_v39 }
 0x4c9   : > { %v17829_v40 = vpop.f32.mrf.mxu0  ;;  %12777 = vmatpush3.bf16.msra.mxu1 %v12992_v11  ;;  %v10437_v21 = vpack.c.bf16 %v10317_v60, %v10309_v26  ;;  %v10318_v19 = vmax.f32 %v9781_v2, 0.0  ;;  %v9674_v11 = vadd.f32 %v17509_v53, %v17606_v36  ;;  %v9785_v33 = vadd.f32 %v9784_v43, %v9672_v10  ;;  %v19121_v53 = vld [vmem:[#allocation64_spill] sm:$0xff] }
 0x4ca   : > { %12778 = vmatprep.subr.bf16.mxu1 %v12993_v20  ;;  %v9786_v49 = vpop.f32.mrf.mxu1  ;;  %v9676_v20 = vadd.f32 %v17518_v27, %v9563_v4  ;;  %v9460_v36 = vadd.f32 %v19121_v53, %v17505_v23  ;;  %v9678_v27 = vadd.f32 %v17532_v31, %v9565_v63  ;;  %v12998_v43 = vld [vmem:[%s18547_s5 + $0x198] sm:$0xff]   ;;  %v9682_v31 = vadd.f32 %v17540_v35, %v17633_v34  ;;  %v12999_v63 = vld [vmem:[%s18547_s5 + $0x1d0] sm:$0xff]   ;;  %v19124_v53 = vld [vmem:[#allocation66_spill] sm:$0xff] }
 0x4cb   : > { %v17840_v8 = vpop.f32.mrf.mxu0  ;;  %v10438_v0 = vpack.c.bf16 %v10318_v19, %v10310_v37  ;;  %v10325_v4 = vmax.f32 %v9785_v33, 0.0 }
 0x4cc   : > { %11154 = vmatmul.mubr.bf16.gmra.mxu1 %v17310_v59  ;;  %v9788_v2 = vpop.f32.mrf.mxu1  ;;  %v12997_v59 = vld [vmem:[%s18547_s5 + $0x1d8] sm:$0xff]   ;;  %v9573_v46 = vadd.f32 %v17651_v15, %v9460_v36  ;;  %v9575_v15 = vadd.f32 %v17658_v18, %v9462_v25  ;;  %v13000_v18 = vld [vmem:[%s18547_s5 + $0x190] sm:$0xff]   ;;  %v9472_v36 = vadd.f32 %v19124_v53, %v17516_v39 }
 0x4cd   : > { %11161 = vmatprep.mubr.bf16.mxu1 %v17357_v16  ;;  %v17846_v44 = vpop.f32.mrf.mxu0  ;;  %12779 = vmatpush3.bf16.msra.mxu1 %v12994_v52  ;;  %v9787_v16 = vadd.f32 %v9786_v49, %v9674_v11  ;;  %v9789_v60 = vadd.f32 %v9788_v2, %v9676_v20  ;;  %v9684_v49 = vadd.f32 %v17560_v12, %v17645_v54  ;;  %v19123_v12 = vld [vmem:[#allocation14_spill] sm:$0xff] }
 0x4ce   : > { %12780 = vmatprep.subr.bf16.mxu1 %v12995_v22  ;;  %11242 = vmatprep.mubr.bf16.mxu0 %v10438_v0  ;;  %v9790_v6 = vpop.f32.mrf.mxu1  ;;  %v9686_v20 = vadd.f32 %v17566_v32, %v9573_v46  ;;  %v9470_v54 = vadd.f32 %v19123_v12, %v17505_v23  ;;  %v9688_v32 = vadd.f32 %v17584_v48, %v9575_v15  ;;  %v13002_v46 = vld [vmem:[%s18547_s5 + $0x188] sm:$0xff]   ;;  %v19126_v15 = vld [vmem:[#allocation9_spill] sm:$0xff] }
 0x4cf   : > { %v17857_v3 = vpop.f32.mrf.mxu0  ;;  %11243 = vmatmul.mubr.bf16.vlgmr.msra.gmra.mxu0 %v10437_v21  ;;  %v10333_v26 = vmax.f32 %v9789_v60, 0.0  ;;  %v9791_v52 = vadd.f32 %v9790_v6, %v9678_v27  ;;  %v10326_v37 = vmax.f32 %v9787_v16, 0.0  ;;  %v9692_v48 = vadd.f32 %v17590_v51, %v17669_v38  ;;  %v19128_v38 = vld [vmem:[#allocation20_spill] sm:$0xff] }
 0x4d0   : > { %v9794_v22 = vpop.f32.mrf.mxu1  ;;  %v9583_v60 = vadd.f32 %v17687_v5, %v9470_v54  ;;  %v9585_v5 = vadd.f32 %v17694_v42, %v9472_v36  ;;  %v13004_v42 = vld [vmem:[%s18547_s5 + $0x180] sm:$0xff]  }
 0x4d1   : > { %v17863_v10 = vpop.f32.mrf.mxu0  ;;  %12781 = vmatpush3.bf16.msra.mxu1 %v12996_v13  ;;  %v10445_v21 = vpack.c.bf16 %v10333_v26, %v10325_v4  ;;  %v10334_v19 = vmax.f32 %v9791_v52, 0.0  ;;  %v9795_v35 = vadd.f32 %v9794_v22, %v9682_v31  ;;  %v13003_v26 = vld [vmem:[%s18547_s5 + $0x1c0] sm:$0xff]  }
 0x4d2   : > { %12782 = vmatprep.subr.bf16.mxu1 %v12997_v59  ;;  %v9796_v33 = vpop.f32.mrf.mxu1 }
 0x4d3   : > { %v17874_v11 = vpop.f32.mrf.mxu0  ;;  %v10446_v0 = vpack.c.bf16 %v10334_v19, %v10326_v37  ;;  %v10341_v27 = vmax.f32 %v9795_v35, 0.0  ;;  %v19127_v37 = vld [vmem:[#allocation22_spill] sm:$0xff] }
 0x4d4   : > { %11162 = vmatmul.mubr.bf16.gmra.mxu1 %v17342_v47  ;;  %v9798_v13 = vpop.f32.mrf.mxu1  ;;  %v13001_v47 = vld [vmem:[%s18547_s5 + $0x1c8] sm:$0xff]  }
 0x4d5   : > { %11169 = vmatprep.mubr.bf16.mxu1 %v17389_v9  ;;  %v17880_v34 = vpop.f32.mrf.mxu0  ;;  %12783 = vmatpush3.bf16.msra.mxu1 %v12998_v43  ;;  %v9797_v9 = vadd.f32 %v9796_v33, %v9684_v49  ;;  %v9799_v2 = vadd.f32 %v9798_v13, %v9686_v20  ;;  %v19129_v33 = vld [vmem:[#allocation43_spill] sm:$0xff] }
 0x4d6   : > { %12784 = vmatprep.subr.bf16.mxu1 %v12999_v63  ;;  %11250 = vmatprep.mubr.bf16.mxu0 %v10446_v0  ;;  %v9800_v16 = vpop.f32.mrf.mxu1  ;;  %v19125_v63 = vld [vmem:[#allocation16_spill] sm:$0xff]  ;;  %v9696_v35 = vadd.f32 %v19129_v33, %v9583_v60 }
 0x4d7   : > { %v17891_v59 = vpop.f32.mrf.mxu0  ;;  %11251 = vmatmul.mubr.bf16.gmra.mxu0 %v10445_v21  ;;  %v10349_v7 = vmax.f32 %v9799_v2, 0.0  ;;  %v9801_v25 = vadd.f32 %v9800_v16, %v9688_v32  ;;  %v10342_v52 = vmax.f32 %v9797_v9, 0.0  ;;  %v9694_v21 = vadd.f32 %v19127_v37, %v19126_v15  ;;  %v19132_v9 = vld [vmem:[#allocation46_spill] sm:$0xff]  ;;  %v19133_v32 = vld [vmem:[#allocation75_spill] sm:$0xff] }
 0x4d8   : > { %v9804_v4 = vpop.f32.mrf.mxu1  ;;  %v9698_v2 = vadd.f32 %v19132_v9, %v9585_v5  ;;  %v9482_v53 = vadd.f32 %v19133_v32, %v17516_v39  ;;  %v19137_v37 = vld [vmem:[#allocation42_spill] sm:$0xff] }
 0x4d9   : > { %v17897_v6 = vpop.f32.mrf.mxu0  ;;  %12785 = vmatpush3.bf16.msra.mxu1 %v13000_v18  ;;  %v10453_v43 = vpack.c.bf16 %v10349_v7, %v10341_v27  ;;  %v10350_v31 = vmax.f32 %v9801_v25, 0.0  ;;  %v9805_v51 = vadd.f32 %v9804_v4, %v9692_v48  ;;  %v19130_v18 = vld [vmem:[#allocation65_spill] sm:$0xff] }
 0x4da   : > { %12786 = vmatprep.subr.bf16.mxu1 %v13001_v47  ;;  %v9806_v19 = vpop.f32.mrf.mxu1  ;;  %v9480_v13 = vadd.f32 %v19130_v18, %v17505_v23 }
 0x4db   : > { %v17908_v22 = vpop.f32.mrf.mxu0  ;;  %v10454_v20 = vpack.c.bf16 %v10350_v31, %v10342_v52  ;;  %v9807_v47 = vadd.f32 %v9806_v19, %v9694_v21  ;;  %v10357_v60 = vmax.f32 %v9805_v51, 0.0  ;;  %v19138_v21 = vld [vmem:[#allocation45_spill] sm:$0xff] }
 0x4dc   : > { %11170 = vmatmul.mubr.bf16.gmra.mxu1 %v19125_v63  ;;  %v9808_v0 = vpop.f32.mrf.mxu1  ;;  %v9593_v16 = vadd.f32 %v17717_v28, %v9480_v13  ;;  %v9704_v19 = vadd.f32 %v19138_v21, %v17711_v14  ;;  %v19142_v13 = vld [vmem:[#allocation48_spill] sm:$0xff] }
 0x4dd   : > { %11177 = vmatprep.mubr.bf16.mxu1 %v19128_v38  ;;  %v17914_v49 = vpop.f32.mrf.mxu0  ;;  %12787 = vmatpush3.bf16.msra.mxu1 %v13002_v46  ;;  %v9809_v12 = vadd.f32 %v9808_v0, %v9696_v35  ;;  %v19135_v46 = vld [vmem:[#allocation21_spill] sm:$0xff]  ;;  %v10358_v5 = vmax.f32 %v9807_v47, 0.0 }
 0x4de   : > { %12788 = vmatprep.subr.bf16.mxu1 %v13003_v26  ;;  %11258 = vmatprep.mubr.bf16.mxu0 %v10454_v20  ;;  %v9810_v36 = vpop.f32.mrf.mxu1  ;;  %v9702_v48 = vadd.f32 %v19135_v46, %v17705_v17  ;;  %v9595_v26 = vadd.f32 %v17721_v62, %v9482_v53  ;;  %v19139_v17 = vld [vmem:[#allocation24_spill] sm:$0xff]  ;;  %v19140_v35 = vld [vmem:[#allocation13_spill] sm:$0xff] }
 0x4df   : > { %v17922_v54 = vpop.f32.mrf.mxu0  ;;  %11259 = vmatmul.mubr.bf16.gmra.mxu0 %v10453_v43  ;;  %v10365_v27 = vmax.f32 %v9809_v12, 0.0  ;;  %v9811_v7 = vadd.f32 %v9810_v36, %v9698_v2  ;;  %v19136_v43 = vld [vmem:[#allocation17_spill] sm:$0xff]  ;;  %v9706_v38 = vadd.f32 %v19139_v17, %v9593_v16  ;;  %v9490_v20 = vadd.f32 %v19140_v35, %v17505_v23  ;;  %v19143_v12 = vld [vmem:[#allocation68_spill] sm:$0xff]  ;;  %v19150_v17 = vld [vmem:[#allocation15_spill] sm:$0xff] }
 0x4e0   : > { %19131 = vst [vmem:[#allocation78_spill] sm:$0xff] %v17922_v54  ;;  %v9814_v4 = vpop.f32.mrf.mxu1  ;;  %v9708_v47 = vadd.f32 %v19142_v13, %v9595_v26  ;;  %v9492_v9 = vadd.f32 %v19143_v12, %v17516_v39 }
 0x4e1   : > { %v17928_v25 = vpop.f32.mrf.mxu0  ;;  %12789 = vmatpush3.bf16.msra.mxu1 %v13004_v42  ;;  %v10461_v52 = vpack.c.bf16 %v10365_v27, %v10357_v60  ;;  %v10366_v31 = vmax.f32 %v9811_v7, 0.0  ;;  %v9815_v15 = vadd.f32 %v9814_v4, %v9702_v48  ;;  %v9603_v2 = vadd.f32 %v17740_v56, %v9490_v20  ;;  %v19145_v60 = vld [vmem:[#allocation23_spill] sm:$0xff]  ;;  %v19152_v20 = vld [vmem:[#allocation38_spill] sm:$0xff] }
 0x4e2   : > { %19134 = vst [vmem:[#allocation36_spill] sm:$0xff] %v17928_v25  ;;  %v9816_v28 = vpop.f32.mrf.mxu1  ;;  %v9712_v27 = vadd.f32 %v19145_v60, %v17729_v55  ;;  %v9605_v46 = vadd.f32 %v17744_v45, %v9492_v9  ;;  %v19149_v55 = vld [vmem:[#allocation26_spill] sm:$0xff] }
 0x4e3   : > { %v17933_v63 = vpop.f32.mrf.mxu0  ;;  %v10462_v33 = vpack.c.bf16 %v10366_v31, %v10358_v5  ;;  %v9817_v42 = vadd.f32 %v9816_v28, %v9704_v19  ;;  %v10373_v32 = vmax.f32 %v9815_v15, 0.0  ;;  %v19146_v31 = vld [vmem:[#allocation61_spill] sm:$0xff]  ;;  %v19148_v28 = vld [vmem:[#allocation47_spill] sm:$0xff]  ;;  %v9716_v21 = vadd.f32 %v19149_v55, %v9603_v2 }
 0x4e4   : > { %11178 = vmatmul.mubr.bf16.gmra.mxu1 %v19136_v43  ;;  %v9818_v62 = vpop.f32.mrf.mxu1  ;;  %v19147_v43 = vld [vmem:[#allocation59_spill] sm:$0xff]  ;;  %v9714_v15 = vadd.f32 %v19148_v28, %v17735_v61  ;;  %v19159_v28 = vld [vmem:[#allocation57_spill] sm:$0xff] }
 0x4e5   : > { %11185 = vmatprep.mubr.bf16.mxu1 %v19137_v37  ;;  %v17939_v51 = vpop.f32.mrf.mxu0  ;;  %v9819_v0 = vadd.f32 %v9818_v62, %v9706_v38  ;;  %11266 = vmatprep.mubr.bf16.mxu0 %v10462_v33  ;;  %v10374_v48 = vmax.f32 %v9817_v42, 0.0  ;;  %v9500_v38 = vadd.f32 %v19150_v17, %v17505_v23  ;;  %v9718_v42 = vadd.f32 %v19152_v20, %v9605_v46  ;;  %v19161_v17 = vld [vmem:[#allocation19_spill] sm:$0xff] }
 0x4e6   : > { %v9820_v14 = vpop.f32.mrf.mxu1 }
 0x4e7   : > { %v17944_v18 = vpop.f32.mrf.mxu0  ;;  %11267 = vmatmul.mubr.bf16.gmra.mxu0 %v10461_v52  ;;  %v10381_v53 = vmax.f32 %v9819_v0, 0.0  ;;  %v9821_v36 = vadd.f32 %v9820_v14, %v9708_v47  ;;  %v19153_v0 = vld [vmem:[#allocation18_spill] sm:$0xff]  ;;  %v9613_v47 = vadd.f32 %v17762_v50, %v9500_v38  ;;  %v9512_v38 = vadd.f32 %v19161_v17, %v17516_v39 }
 0x4e8   : > { %19141 = vst [vmem:[#allocation80_spill] sm:$0xff] %v17944_v18  ;;  %v9502_v13 = vadd.f32 %v19153_v0, %v17516_v39 }
 0x4e9   : > { %v17950_v16 = vpop.f32.mrf.mxu0  ;;  %v9824_v7 = vpop.f32.mrf.mxu1  ;;  %v10469_v4 = vpack.c.bf16 %v10381_v53, %v10373_v32  ;;  %v10382_v26 = vmax.f32 %v9821_v36, 0.0  ;;  %v9722_v32 = vadd.f32 %v17707_v1, %v17752_v41 }
 0x4ea   : > { %19144 = vst [vmem:[#allocation35_spill] sm:$0xff] %v17950_v16  ;;  %v9825_v56 = vadd.f32 %v9824_v7, %v9712_v27  ;;  %v9615_v36 = vadd.f32 %v17766_v58, %v9502_v13 }
 0x4eb   : > { %v17955_v5 = vpop.f32.mrf.mxu0  ;;  %v9826_v52 = vpop.f32.mrf.mxu1  ;;  %v10470_v19 = vpack.c.bf16 %v10382_v26, %v10374_v48  ;;  %v19155_v48 = vld [vmem:[#allocation60_spill] sm:$0xff]  ;;  %v19156_v26 = vld [vmem:[#allocation58_spill] sm:$0xff] }
 0x4ec   : > { %11186 = vmatmul.mubr.bf16.gmra.mxu1 %v19146_v31  ;;  %v9827_v33 = vadd.f32 %v9826_v52, %v9714_v15  ;;  %v10389_v12 = vmax.f32 %v9825_v56, 0.0  ;;  %v19157_v31 = vld [vmem:[#allocation6_spill] sm:$0xff]  ;;  %v19158_v56 = vld [vmem:[#allocation25_spill] sm:$0xff]  ;;  %v9510_v15 = vadd.f32 %v19159_v28, %v17505_v23 }
 0x4ed   : > { %11193 = vmatprep.mubr.bf16.mxu1 %v19147_v43  ;;  %v17961_v37 = vpop.f32.mrf.mxu0  ;;  %v9828_v45 = vpop.f32.mrf.mxu1  ;;  %11274 = vmatprep.mubr.bf16.mxu0 %v10470_v19  ;;  %v9724_v52 = vadd.f32 %v19157_v31, %v17757_v24  ;;  %v9726_v43 = vadd.f32 %v19158_v56, %v9613_v47  ;;  %v19160_v19 = vld [vmem:[#allocation12_spill] sm:$0xff]  ;;  %v19162_v23 = vld [vmem:[#allocation37_spill] sm:$0xff] }
 0x4ee   : > { %v9829_v62 = vadd.f32 %v9828_v45, %v9716_v21  ;;  %v10390_v60 = vmax.f32 %v9827_v33, 0.0  ;;  %v9728_v45 = vadd.f32 %v19160_v19, %v9615_v36  ;;  %v19164_v36 = vld [vmem:[#allocation44_spill] sm:$0xff]  ;;  %v19168_v31 = vld [vmem:[#allocation5_spill] sm:$0xff] }
 0x4ef   : > { %v17966_v35 = vpop.f32.mrf.mxu0  ;;  %v9830_v61 = vpop.f32.mrf.mxu1  ;;  %11275 = vmatmul.mubr.bf16.gmra.mxu0 %v10469_v4 }
 0x4f0   : > { %19151 = vst [vmem:[#allocation77_spill] sm:$0xff] %v17966_v35  ;;  %v10397_v9 = vmax.f32 %v9829_v62, 0.0  ;;  %v9831_v14 = vadd.f32 %v9830_v61, %v9718_v42  ;;  %v9623_v62 = vadd.f32 %v17784_v57, %v9510_v15  ;;  %v9732_v61 = vadd.f32 %v19162_v23, %v17774_v29  ;;  %v19171_v15 = vld [vmem:[#allocation27_spill] sm:$0xff] }
 0x4f1   : > { %v17972_v2 = vpop.f32.mrf.mxu0  ;;  %v19169_v29 = vsub.s32 6, %v19168_v31 }
 0x4f2   : > { %19154 = vst [vmem:[#allocation69_spill] sm:$0xff] %v17972_v2  ;;  %v9834_v53 = vpop.f32.mrf.mxu1  ;;  %v10477_v27 = vpack.c.bf16 %v10397_v9, %v10389_v12  ;;  %v10398_v7 = vmax.f32 %v9831_v14, 0.0  ;;  %v19163_v12 = vld [vmem:[#allocation50_spill] sm:$0xff] }
 0x4f3   : > { %v17977_v46 = vpop.f32.mrf.mxu0  ;;  %v9835_v50 = vadd.f32 %v9834_v53, %v9722_v32  ;;  %v9625_v9 = vadd.f32 %v19163_v12, %v9512_v38 }
 0x4f4   : > { %11194 = vmatmul.mubr.bf16.gmra.mxu1 %v19155_v48  ;;  %v9836_v4 = vpop.f32.mrf.mxu1  ;;  %v10478_v1 = vpack.c.bf16 %v10398_v7, %v10390_v60  ;;  %v19166_v7 = vld [vmem:[#allocation28_spill] sm:$0xff] }
 0x4f5   : > { %11201 = vmatprep.mubr.bf16.mxu1 %v19156_v26  ;;  %v17984_v41 = vpop.f32.mrf.mxu0  ;;  %v9837_v55 = vadd.f32 %v9836_v4, %v9724_v52  ;;  %v10405_v20 = vmax.f32 %v9835_v50, 0.0  ;;  %v19167_v4 = vld [vmem:[#allocation49_spill] sm:$0xff]  ;;  %v19170_v52 = vld [vmem:[#allocation10_spill] sm:$0xff] }
 0x4f6   : > { %v9838_v58 = vpop.f32.mrf.mxu1  ;;  %11282 = vmatprep.mubr.bf16.mxu0 %v10478_v1  ;;  %v9736_v50 = vadd.f32 %v19167_v4, %v9623_v62  ;;  %v18008_v56 = vrot.slane %v19170_v52, %v19169_v29 }
 0x4f7   : > { %v9839_v21 = vadd.f32 %v9838_v58, %v9726_v43  ;;  %v17991_v33 = vpop.f32.mrf.mxu0  ;;  %11283 = vmatmul.mubr.bf16.gmra.mxu0 %v10477_v27  ;;  %v10406_v14 = vmax.f32 %v9837_v55, 0.0  ;;  %v19165_v27 = vld [vmem:[#allocation32_spill] sm:$0xff]  ;;  %v9738_v55 = vadd.f32 %v19171_v15, %v9625_v9  ;;  %v19174_v9 = vld [vmem:[#allocation30_spill] sm:$0xff] }
 0x4f8   : > { %v9840_v24 = vpop.f32.mrf.mxu1  ;;  %v9734_v48 = vadd.f32 %v19166_v7, %v19165_v27 }
 0x4f9   : > { %v10413_v42 = vmax.f32 %v9839_v21, 0.0  ;;  %v9841_v0 = vadd.f32 %v9840_v24, %v9728_v45  ;;  %v17994_v13 = vpop.f32.mrf.mxu0  ;;  %v19172_v21 = vsub.s32 7, %v19168_v31 }
 0x4fa   : > { %v9844_v47 = vpop.f32.mrf.mxu1 }
 0x4fb   : > { %v10485_v32 = vpack.c.bf16 %v10413_v42, %v10405_v20  ;;  %v10414_v39 = vmax.f32 %v9841_v0, 0.0  ;;  %v17999_v53 = vpop.f32.mrf.mxu0  ;;  %v9845_v57 = vadd.f32 %v9844_v47, %v9732_v61  ;;  %v18016_v19 = vrot.slane %v19170_v52, %v19172_v21  ;;  %v19173_v20 = vld [vmem:[#allocation39_spill] sm:$0xff] }
 0x4fc   : > { %11202 = vmatmul.mubr.bf16.gmra.mxu1 %v19164_v36  ;;  %v9846_v60 = vpop.f32.mrf.mxu1  ;;  %v9888_v42 = vadd.f32 %v19173_v20, %v18008_v56  ;;  %v19176_v52 = vld [vmem:[#allocation51_spill] sm:$0xff] }
 0x4fd   : > { %v10486_v26 = vpack.c.bf16 %v10414_v39, %v10406_v14  ;;  %v18010_v43 = vpop.f32.mrf.mxu0  ;;  %v9847_v58 = vadd.f32 %v9846_v60, %v9734_v48  ;;  %v10421_v38 = vmax.f32 %v9845_v57, 0.0  ;;  %v9890_v14 = vadd.f32 %v19174_v9, %v18016_v19 }
 0x4fe   : > { %v9848_v1 = vpop.f32.mrf.mxu1 }
 0x4ff   : > { %v9849_v28 = vadd.f32 %v9848_v1, %v9736_v50  ;;  %11290 = vmatprep.mubr.bf16.mxu0 %v10486_v26  ;;  %v18018_v45 = vpop.f32.mrf.mxu0  ;;  %v10422_v23 = vmax.f32 %v9847_v58, 0.0  ;;  %v19175_v50 = vld [vmem:[#allocation40_spill] sm:$0xff]  ;;  %v9900_v1 = vadd.f32 %v19176_v52, %v18016_v19  ;;  %v9918_v52 = vadd.f32 %v17840_v8, %v18008_v56 }
 0x500   : > { %v9850_v17 = vpop.f32.mrf.mxu1  ;;  %11291 = vmatmul.mubr.bf16.gmra.mxu0 %v10485_v32  ;;  %v9898_v26 = vadd.f32 %v19175_v50, %v18008_v56  ;;  %v9928_v8 = vadd.f32 %v17874_v11, %v18008_v56  ;;  %v9938_v11 = vadd.f32 %v17908_v22, %v18008_v56  ;;  %v9948_v22 = vadd.f32 %v17933_v63, %v18008_v56 }
 0x501   : > { %v10429_v24 = vmax.f32 %v9849_v28, 0.0  ;;  %v9851_v62 = vadd.f32 %v9850_v17, %v9738_v55  ;;  %v18022_v0 = vpop.f32.mrf.mxu0  ;;  %v9958_v63 = vadd.f32 %v17955_v5, %v18008_v56  ;;  %v19199_v5 = vld [vmem:[#allocation29_spill] sm:$0xff] }
 0x503   : > { %v10493_v61 = vpack.c.bf16 %v10429_v24, %v10421_v38  ;;  %v10430_v47 = vmax.f32 %v9851_v62, 0.0  ;;  %v10000_v12 = vpop.f32.mrf.mxu1  ;;  %v18028_v36 = vpop.f32.mrf.mxu0  ;;  %v19177_v62 = vld [vmem:[#allocation76_spill] sm:$0xff] }
 0x504   : > { %v18026_v39 = vadd.f32 %v10000_v12, %v9888_v42  ;;  %v9908_v20 = vadd.f32 %v19177_v62, %v18008_v56 }
 0x505   : > { %v10002_v32 = vpop.f32.mrf.mxu1  ;;  %v10494_v60 = vpack.c.bf16 %v10430_v47, %v10422_v23  ;;  %v18032_v27 = vpop.f32.mrf.mxu0 }
 0x506   : > { %v18030_v57 = vadd.f32 %v10002_v32, %v9890_v14 }
 0x507   : > { %v18034_v7 = vpop.f32.mrf.mxu1  ;;  %11298 = vmatprep.mubr.bf16.mxu0 %v10494_v60  ;;  %v18036_v48 = vpop.f32.mrf.mxu0 }
 0x508   : > { %11299 = vmatmul.mubr.bf16.gmra.mxu0 %v10493_v61  ;;  %v19178_v61 = vld [vmem:[#allocation33_spill] sm:$0xff] }
 0x509   : > { %v18038_v4 = vpop.f32.mrf.mxu1  ;;  %v18042_v31 = vpop.f32.mrf.mxu0  ;;  %v9910_v47 = vadd.f32 %v19178_v61, %v18016_v19 }
 0x50b   : > { %v10010_v29 = vpop.f32.mrf.mxu1  ;;  %v18048_v28 = vpop.f32.mrf.mxu0 }
 0x50c   : > { %v18046_v58 = vadd.f32 %v10010_v29, %v9898_v26 }
 0x50d   : > { %v10012_v15 = vpop.f32.mrf.mxu1  ;;  %v18052_v21 = vpop.f32.mrf.mxu0 }
 0x50e   : > { %v18050_v55 = vadd.f32 %v10012_v15, %v9900_v1  ;;  %v9920_v15 = vadd.f32 %v17846_v44, %v18016_v19  ;;  %v9930_v44 = vadd.f32 %v17880_v34, %v18016_v19  ;;  %v9940_v34 = vadd.f32 %v17914_v49, %v18016_v19 }
 0x50f   : > { %v18054_v17 = vpop.f32.mrf.mxu1  ;;  %v18056_v38 = vpop.f32.mrf.mxu0  ;;  %v9950_v49 = vadd.f32 %v17939_v51, %v18016_v19  ;;  %v9960_v51 = vadd.f32 %v17961_v37, %v18016_v19 }
 0x511   : > { %v18058_v24 = vpop.f32.mrf.mxu1  ;;  %v18062_v42 = vpop.f32.mrf.mxu0 }
 0x513   : > { %v10020_v23 = vpop.f32.mrf.mxu1  ;;  %v18068_v9 = vpop.f32.mrf.mxu0 }
 0x514   : > { %v18066_v12 = vadd.f32 %v10020_v23, %v9908_v20  ;;  %19179 = vst [vmem:[#allocation81_spill] sm:$0xff] %v18068_v9 }
 0x515   : > { %v10022_v14 = vpop.f32.mrf.mxu1  ;;  %v18072_v60 = vpop.f32.mrf.mxu0 }
 0x516   : > { %v18070_v32 = vadd.f32 %v10022_v14, %v9910_v47 }
 0x517   : > { %v18074_v50 = vpop.f32.mrf.mxu1  ;;  %v18076_v26 = vpop.f32.mrf.mxu0 }
 0x519   : > { %v18078_v29 = vpop.f32.mrf.mxu1  ;;  %v18084_v62 = vpop.f32.mrf.mxu0 }
 0x51a   : > { %19180 = vst [vmem:[#allocation70_spill] sm:$0xff] %v18084_v62 }
 0x51b   : > { %v10030_v1 = vpop.f32.mrf.mxu1  ;;  %v18092_v14 = vpop.f32.mrf.mxu0 }
 0x51c   : > { %v18086_v20 = vadd.f32 %v10030_v1, %v9918_v52  ;;  %19181 = vst [vmem:[#allocation79_spill] sm:$0xff] %v18092_v14 }
 0x51d   : > { %v10032_v23 = vpop.f32.mrf.mxu1  ;;  %v18100_v16 = vpop.f32.mrf.mxu0 }
 0x51e   : > { %v18088_v61 = vadd.f32 %v10032_v23, %v9920_v15  ;;  %19182 = vst [vmem:[#allocation71_spill] sm:$0xff] %v18100_v16 }
 0x51f   : > { %v18090_v47 = vpop.f32.mrf.mxu1  ;;  %v18108_v18 = vpop.f32.mrf.mxu0 }
 0x520   : > { %19183 = vst [vmem:[#allocation83_spill] sm:$0xff] %v18108_v18 }
 0x521   : > { %v18094_v2 = vpop.f32.mrf.mxu1  ;;  %v18116_v62 = vpop.f32.mrf.mxu0 }
 0x522   : > { %19184 = vst [vmem:[#allocation72_spill] sm:$0xff] %v18116_v62 }
 0x523   : > { %v10040_v35 = vpop.f32.mrf.mxu1  ;;  %v18124_v16 = vpop.f32.mrf.mxu0 }
 0x524   : > { %v18102_v52 = vadd.f32 %v10040_v35, %v9928_v8  ;;  %19187 = vst [vmem:[#allocation85_spill] sm:$0xff] %v18124_v16 }
 0x525   : > { %v10042_v1 = vpop.f32.mrf.mxu1  ;;  %v18132_v9 = vpop.f32.mrf.mxu0 }
 0x526   : > { %v18104_v15 = vadd.f32 %v10042_v1, %v9930_v44  ;;  %19188 = vst [vmem:[#allocation74_spill] sm:$0xff] %v18132_v9 }
 0x527   : > { %v18106_v23 = vpop.f32.mrf.mxu1  ;;  %v18140_v62 = vpop.f32.mrf.mxu0 }
 0x528   : > { %19191 = vst [vmem:[#allocation86_spill] sm:$0xff] %v18140_v62  ;;  %v19197_v62 = vld [vmem:[#allocation41_spill] sm:$0xff] }
 0x529   : > { %v18110_v14 = vpop.f32.mrf.mxu1  ;;  %v9892_v9 = vadd.f32 %v19197_v62, %v18008_v56  ;;  %v10116_v62 = vadd.f32 %v17984_v41, %v18030_v57 }
 0x52b   : > { %v10050_v25 = vpop.f32.mrf.mxu1  ;;  %v10005_v37 = vadd.f32 %v18034_v7, %v9892_v9  ;;  %v19202_v7 = vld [vmem:[#allocation31_spill] sm:$0xff] }
 0x52c   : > { %v18118_v35 = vadd.f32 %v10050_v25, %v9938_v11  ;;  %v9902_v9 = vadd.f32 %v19202_v7, %v18008_v56 }
 0x52d   : > { %v10052_v8 = vpop.f32.mrf.mxu1 }
 0x52e   : > { %19185 = vst [vmem:[#allocation82_spill] sm:$0xff] %v18118_v35  ;;  %v18120_v44 = vadd.f32 %v10052_v8, %v9940_v34 }
 0x52f   : > { %v18122_v1 = vpop.f32.mrf.mxu1 }
 0x530   : > { %19186 = vst [vmem:[#allocation73_spill] sm:$0xff] %v18120_v44  ;;  %v18148_v44 = vpop.f32.mrf.mxu0 }
 0x531   : > { %v18126_v18 = vpop.f32.mrf.mxu1  ;;  %19193 = vst [vmem:[#allocation7_spill] sm:$0xff] %v18148_v44 }
 0x533   : > { %v10060_v54 = vpop.f32.mrf.mxu1 }
 0x534   : > { %v18134_v25 = vadd.f32 %v10060_v54, %v9948_v22 }
 0x535   : > { %v10062_v11 = vpop.f32.mrf.mxu1 }
 0x536   : > { %19189 = vst [vmem:[#allocation84_spill] sm:$0xff] %v18134_v25  ;;  %v18136_v34 = vadd.f32 %v10062_v11, %v9950_v49  ;;  %v18156_v25 = vpop.f32.mrf.mxu0 }
 0x537   : > { %v18138_v8 = vpop.f32.mrf.mxu1  ;;  %19196 = vst [vmem:[#allocation55_spill] sm:$0xff] %v18156_v25 }
 0x538   : > { %19190 = vst [vmem:[#allocation52_spill] sm:$0xff] %v18136_v34  ;;  %v18165_v44 = vpop.f32.mrf.mxu0 }
 0x539   : > { %v18142_v16 = vpop.f32.mrf.mxu1  ;;  %19200 = vst [vmem:[#allocation54_spill] sm:$0xff] %v18165_v44 }
 0x53a   : > { %19192 = vst [vmem:[#allocation53_spill] sm:$0xff] %v18142_v16  ;;  %v9894_v16 = vadd.f32 %v19199_v5, %v18016_v19 }
 0x53b   : > { %v10070_v35 = vpop.f32.mrf.mxu1 }
 0x53c   : > { %v18150_v54 = vadd.f32 %v10070_v35, %v9958_v63  ;;  %v10007_v63 = vadd.f32 %v18038_v4, %v9894_v16  ;;  %v19203_v4 = vld [vmem:[#allocation34_spill] sm:$0xff] }
 0x53d   : > { %v10072_v22 = vpop.f32.mrf.mxu1 }
 0x53e   : > { %19194 = vst [vmem:[#allocation56_spill] sm:$0xff] %v18150_v54  ;;  %v18152_v49 = vadd.f32 %v10072_v22, %v9960_v51  ;;  %v10114_v51 = vadd.f32 %v17977_v46, %v18026_v39  ;;  %v10118_v54 = vadd.f32 %v17991_v33, %v10005_v37  ;;  %v10120_v16 = vadd.f32 %v17994_v13, %v10007_v63 }
 0x53f   : > { %v18154_v11 = vpop.f32.mrf.mxu1  ;;  %v9904_v46 = vadd.f32 %v19203_v4, %v18016_v19  ;;  %v10124_v37 = vadd.f32 %v17999_v53, %v18046_v58  ;;  %v9912_v53 = vadd.f32 %v17823_v30, %v18008_v56  ;;  %v10134_v30 = vadd.f32 %v18028_v36, %v18066_v12 }
 0x540   : > { %19195 = vst [vmem:[#allocation87_spill] sm:$0xff] %v18152_v49  ;;  %v18173_v49 = vpop.f32.mrf.mxu0  ;;  %v9922_v36 = vadd.f32 %v17857_v3, %v18008_v56  ;;  %v10144_v3 = vadd.f32 %v18048_v28, %v18086_v20  ;;  %v9932_v28 = vadd.f32 %v17891_v59, %v18008_v56 }
 0x541   : > { %v18160_v34 = vpop.f32.mrf.mxu1  ;;  %19201 = vst [vmem:[#allocation89_spill] sm:$0xff] %v18173_v49 }
 0x542   : > { %19198 = vst [vmem:[#allocation8_spill] sm:$0xff] %v18160_v34  ;;  %v18181_v33 = vpop.f32.mrf.mxu0 }
 0x544   : > { %v10226_v35 = vpop.f32.mrf.mxu1 }
 0x545   : > { %v10227_v25 = vadd.f32 %v10226_v35, %v10114_v51  ;;  %v10015_v35 = vadd.f32 %v18054_v17, %v9902_v9  ;;  %v10126_v17 = vadd.f32 %v18010_v43, %v18050_v55  ;;  %v10025_v43 = vadd.f32 %v18074_v50, %v9912_v53 }
 0x546   : > { %v10228_v22 = vpop.f32.mrf.mxu1  ;;  %v10136_v50 = vadd.f32 %v18032_v27, %v18070_v32  ;;  %v10035_v27 = vadd.f32 %v18090_v47, %v9922_v36  ;;  %v10146_v47 = vadd.f32 %v18052_v21, %v18088_v61  ;;  %v10045_v21 = vadd.f32 %v18106_v23, %v9932_v28  ;;  %v19204_v23 = vld [vmem:[#allocation81_spill] sm:$0xff]  ;;  %v19212_v28 = vld [vmem:[#allocation79_spill] sm:$0xff] }
 0x547   : > { %v10229_v44 = vadd.f32 %v10228_v22, %v10116_v62  ;;  %v10311_v51 = vmax.f32 %v10227_v25, 0.0  ;;  %v10017_v22 = vadd.f32 %v18058_v24, %v9904_v46  ;;  %v10128_v25 = vadd.f32 %v18018_v45, %v10015_v35 }
 0x548   : > { %v10230_v5 = vpop.f32.mrf.mxu1 }
 0x549   : > { %v10231_v34 = vadd.f32 %v10230_v5, %v10118_v54  ;;  %v10312_v54 = vmax.f32 %v10229_v44, 0.0  ;;  %v10130_v24 = vadd.f32 %v18022_v0, %v10017_v22  ;;  %v9914_v44 = vadd.f32 %v17829_v40, %v18016_v19 }
 0x54a   : > { %v10232_v39 = vpop.f32.mrf.mxu1  ;;  %v10138_v22 = vadd.f32 %v18036_v48, %v10025_v43 }
 0x54b   : > { %v10319_v41 = vmax.f32 %v10231_v34, 0.0  ;;  %v10233_v57 = vadd.f32 %v10232_v39, %v10120_v16  ;;  %v18189_v34 = vpop.f32.mrf.mxu0  ;;  %v10027_v35 = vadd.f32 %v18078_v29, %v9914_v44  ;;  %v10148_v44 = vadd.f32 %v18056_v38, %v10035_v27 }
 0x54c   : > { %v10236_v49 = vpop.f32.mrf.mxu1 }
 0x54d   : > { %v10439_v62 = vpack.c.bf16 %v10319_v41, %v10311_v51  ;;  %v10320_v13 = vmax.f32 %v10233_v57, 0.0  ;;  %v10237_v7 = vadd.f32 %v10236_v49, %v10124_v37  ;;  %v18197_v46 = vpop.f32.mrf.mxu0  ;;  %v10140_v29 = vadd.f32 %v18042_v31, %v10027_v35 }
 0x54e   : > { %v10238_v63 = vpop.f32.mrf.mxu1 }
 0x54f   : > { %v10440_v5 = vpack.c.bf16 %v10320_v13, %v10312_v54  ;;  %v10239_v58 = vadd.f32 %v10238_v63, %v10126_v17  ;;  %v10327_v55 = vmax.f32 %v10237_v7, 0.0  ;;  %v18205_v54 = vpop.f32.mrf.mxu0  ;;  %v9924_v63 = vadd.f32 %v17863_v10, %v18016_v19 }
 0x550   : > { %v10240_v9 = vpop.f32.mrf.mxu1 }
 0x551   : > { %v10241_v16 = vadd.f32 %v10240_v9, %v10128_v25  ;;  %11339 = vmatprep.mubr.bf16.mxu1 %v10440_v5  ;;  %v10328_v51 = vmax.f32 %v10239_v58, 0.0  ;;  %v18213_v17 = vpop.f32.mrf.mxu0  ;;  %v10037_v9 = vadd.f32 %v18094_v2, %v9924_v63 }
 0x552   : > { %v10242_v49 = vpop.f32.mrf.mxu1  ;;  %11340 = vmatmul.mubr.bf16.vlgmr.msra.gmra.mxu1 %v10439_v62 }
 0x553   : > { %v10335_v45 = vmax.f32 %v10241_v16, 0.0  ;;  %v10243_v4 = vadd.f32 %v10242_v49, %v10130_v24  ;;  %v18221_v49 = vpop.f32.mrf.mxu0  ;;  %v10150_v2 = vadd.f32 %v18062_v42, %v10037_v9 }
 0x554   : > { %v10246_v39 = vpop.f32.mrf.mxu1 }
 0x555   : > { %v10447_v0 = vpack.c.bf16 %v10335_v45, %v10327_v55  ;;  %v10336_v41 = vmax.f32 %v10243_v4, 0.0  ;;  %v10247_v37 = vadd.f32 %v10246_v39, %v10134_v30  ;;  %v9934_v45 = vadd.f32 %v17897_v6, %v18016_v19  ;;  %v18229_v39 = vpop.f32.mrf.mxu0 }
 0x556   : > { %v10248_v57 = vpop.f32.mrf.mxu1  ;;  %v10156_v6 = vadd.f32 %v18072_v60, %v18104_v15  ;;  %v19207_v60 = vld [vmem:[#allocation36_spill] sm:$0xff] }
 0x557   : > { %v10448_v40 = vpack.c.bf16 %v10336_v41, %v10328_v51  ;;  %v10249_v12 = vadd.f32 %v10248_v57, %v10136_v50  ;;  %v10343_v32 = vmax.f32 %v10247_v37, 0.0  ;;  %v10047_v59 = vadd.f32 %v18110_v14, %v9934_v45  ;;  %v18235_v37 = vpop.f32.mrf.mxu0 }
 0x558   : > { %v10250_v62 = vpop.f32.mrf.mxu1  ;;  %v10154_v50 = vadd.f32 %v19204_v23, %v18102_v52 }
 0x559   : > { %v10251_v13 = vadd.f32 %v10250_v62, %v10138_v22  ;;  %11347 = vmatprep.mubr.bf16.mxu1 %v10448_v40  ;;  %v10344_v53 = vmax.f32 %v10249_v12, 0.0  ;;  %v10158_v40 = vadd.f32 %v18076_v26, %v10045_v21  ;;  %v19205_v62 = vld [vmem:[#allocation78_spill] sm:$0xff]  ;;  %v9944_v26 = vadd.f32 %v19207_v60, %v18016_v19  ;;  %v19214_v21 = vld [vmem:[#allocation72_spill] sm:$0xff] }
 0x55a   : > { %v10252_v5 = vpop.f32.mrf.mxu1  ;;  %11348 = vmatmul.mubr.bf16.gmra.mxu1 %v10447_v0  ;;  %v9942_v36 = vadd.f32 %v19205_v62, %v18008_v56  ;;  %v19220_v60 = vld [vmem:[#allocation84_spill] sm:$0xff] }
 0x55b   : > { %v10351_v48 = vmax.f32 %v10251_v13, 0.0  ;;  %v10253_v7 = vadd.f32 %v10252_v5, %v10140_v29  ;;  %v19206_v13 = vld [vmem:[#allocation70_spill] sm:$0xff] }
 0x55c   : > { %v10256_v25 = vpop.f32.mrf.mxu1  ;;  %v10160_v29 = vadd.f32 %v19206_v13, %v10047_v59  ;;  %v10055_v15 = vadd.f32 %v18122_v1, %v9942_v36 }
 0x55d   : > { %v10455_v31 = vpack.c.bf16 %v10351_v48, %v10343_v32  ;;  %v10352_v58 = vmax.f32 %v10253_v7, 0.0  ;;  %v10257_v24 = vadd.f32 %v10256_v25, %v10144_v3  ;;  %v18245_v32 = vpop.f32.mrf.mxu0  ;;  %v10057_v7 = vadd.f32 %v18126_v18, %v9944_v26  ;;  %v19221_v26 = vld [vmem:[#allocation85_spill] sm:$0xff] }
 0x55e   : > { %v10258_v16 = vpop.f32.mrf.mxu1 }
 0x55f   : > { %v10456_v10 = vpack.c.bf16 %v10352_v58, %v10344_v53  ;;  %v10259_v20 = vadd.f32 %v10258_v16, %v10146_v47  ;;  %v10359_v61 = vmax.f32 %v10257_v24, 0.0  ;;  %v19208_v58 = vld [vmem:[#allocation73_spill] sm:$0xff]  ;;  %v19209_v16 = vld [vmem:[#allocation71_spill] sm:$0xff] }
 0x560   : > { %v10260_v43 = vpop.f32.mrf.mxu1  ;;  %v19210_v24 = vld [vmem:[#allocation83_spill] sm:$0xff] }
 0x561   : > { %v10261_v55 = vadd.f32 %v10260_v43, %v10148_v44  ;;  %11355 = vmatprep.mubr.bf16.mxu1 %v10456_v10  ;;  %v10360_v51 = vmax.f32 %v10259_v20, 0.0  ;;  %v10166_v10 = vadd.f32 %v19209_v16, %v19208_v58  ;;  %v10168_v47 = vadd.f32 %v19210_v24, %v10055_v15  ;;  %v18251_v44 = vpop.f32.mrf.mxu0  ;;  %v19211_v43 = vld [vmem:[#allocation82_spill] sm:$0xff]  ;;  %v19224_v58 = vld [vmem:[#allocation69_spill] sm:$0xff] }
 0x562   : > { %v10262_v4 = vpop.f32.mrf.mxu1  ;;  %11356 = vmatmul.mubr.bf16.gmra.mxu1 %v10455_v31  ;;  %v10164_v20 = vadd.f32 %v19212_v28, %v19211_v43  ;;  %v10174_v15 = vadd.f32 %v19221_v26, %v19220_v60  ;;  %v9964_v16 = vadd.f32 %v19224_v58, %v18016_v19  ;;  %v19225_v28 = vld [vmem:[#allocation8_spill] sm:$0xff] }
 0x563   : > { %v10367_v38 = vmax.f32 %v10261_v55, 0.0  ;;  %v10263_v30 = vadd.f32 %v10262_v4, %v10150_v2  ;;  %v19213_v2 = vld [vmem:[#allocation80_spill] sm:$0xff] }
 0x564   : > { %v10266_v35 = vpop.f32.mrf.mxu1  ;;  %v9952_v18 = vadd.f32 %v19213_v2, %v18008_v56 }
 0x565   : > { %v10463_v0 = vpack.c.bf16 %v10367_v38, %v10359_v61  ;;  %v10368_v41 = vmax.f32 %v10263_v30, 0.0  ;;  %v10267_v63 = vadd.f32 %v10266_v35, %v10154_v50  ;;  %v10170_v61 = vadd.f32 %v19214_v21, %v10057_v7  ;;  %v19215_v35 = vld [vmem:[#allocation35_spill] sm:$0xff]  ;;  %v19227_v21 = vld [vmem:[#allocation54_spill] sm:$0xff] }
 0x566   : > { %v10268_v57 = vpop.f32.mrf.mxu1  ;;  %v9954_v59 = vadd.f32 %v19215_v35, %v18016_v19  ;;  %v19229_v35 = vld [vmem:[#allocation56_spill] sm:$0xff] }
 0x567   : > { %v10464_v42 = vpack.c.bf16 %v10368_v41, %v10360_v51  ;;  %v10269_v14 = vadd.f32 %v10268_v57, %v10156_v6  ;;  %v10375_v9 = vmax.f32 %v10267_v63, 0.0  ;;  %v10065_v51 = vadd.f32 %v18138_v8, %v9952_v18  ;;  %v18261_v41 = vpop.f32.mrf.mxu0  ;;  %v19216_v6 = vld [vmem:[#allocation53_spill] sm:$0xff] }
 0x568   : > { %v10270_v22 = vpop.f32.mrf.mxu1 }
 0x569   : > { %v10271_v12 = vadd.f32 %v10270_v22, %v10158_v40  ;;  %11363 = vmatprep.mubr.bf16.mxu1 %v10464_v42  ;;  %v10376_v3 = vmax.f32 %v10269_v14, 0.0  ;;  %v10067_v40 = vadd.f32 %v19216_v6, %v9954_v59  ;;  %v19217_v14 = vld [vmem:[#allocation52_spill] sm:$0xff]  ;;  %v19230_v59 = vld [vmem:[#allocation55_spill] sm:$0xff] }
 0x56a   : > { %v10272_v5 = vpop.f32.mrf.mxu1  ;;  %11364 = vmatmul.mubr.bf16.gmra.mxu1 %v10463_v0 }
 0x56b   : > { %v10273_v27 = vadd.f32 %v10272_v5, %v10160_v29  ;;  %v10383_v52 = vmax.f32 %v10271_v12, 0.0  ;;  %v19218_v12 = vld [vmem:[#allocation74_spill] sm:$0xff]  ;;  %v18267_v5 = vpop.f32.mrf.mxu0 }
 0x56c   : > { %v10276_v48 = vpop.f32.mrf.mxu1  ;;  %v10176_v13 = vadd.f32 %v19218_v12, %v19217_v14  ;;  %v19219_v29 = vld [vmem:[#allocation86_spill] sm:$0xff] }
 0x56d   : > { %v10384_v25 = vmax.f32 %v10273_v27, 0.0  ;;  %v10471_v1 = vpack.c.bf16 %v10383_v52, %v10375_v9  ;;  %v10277_v38 = vadd.f32 %v10276_v48, %v10164_v20  ;;  %v10178_v63 = vadd.f32 %v19219_v29, %v10065_v51  ;;  %v19222_v52 = vld [vmem:[#allocation77_spill] sm:$0xff] }
 0x56e   : > { %v10278_v53 = vpop.f32.mrf.mxu1  ;;  %v9962_v48 = vadd.f32 %v19222_v52, %v18008_v56  ;;  %v10077_v56 = vadd.f32 %v19225_v28, %v9964_v16  ;;  %v10184_v51 = vadd.f32 %v19230_v59, %v19229_v35 }
 0x56f   : > { %v10472_v31 = vpack.c.bf16 %v10384_v25, %v10376_v3  ;;  %v10279_v45 = vadd.f32 %v10278_v53, %v10166_v10  ;;  %v10391_v22 = vmax.f32 %v10277_v38, 0.0  ;;  %v19223_v25 = vld [vmem:[#allocation7_spill] sm:$0xff]  ;;  %v19228_v38 = vld [vmem:[#allocation89_spill] sm:$0xff] }
 0x570   : > { %v10280_v55 = vpop.f32.mrf.mxu1  ;;  %v10180_v9 = vadd.f32 %v19223_v25, %v10067_v40  ;;  %v10075_v10 = vadd.f32 %v18154_v11, %v9962_v48  ;;  %v10190_v6 = vadd.f32 %v18181_v33, %v10077_v56 }
 0x571   : > { %v10281_v4 = vadd.f32 %v10280_v55, %v10168_v47  ;;  %11371 = vmatprep.mubr.bf16.mxu1 %v10472_v31  ;;  %v10392_v23 = vmax.f32 %v10279_v45, 0.0  ;;  %v18277_v47 = vpop.f32.mrf.mxu0 }
 0x572   : > { %v10282_v30 = vpop.f32.mrf.mxu1  ;;  %11372 = vmatmul.mubr.bf16.gmra.mxu1 %v10471_v1 }
 0x573   : > { %v10283_v0 = vadd.f32 %v10282_v30, %v10170_v61  ;;  %v10399_v57 = vmax.f32 %v10281_v4, 0.0  ;;  %v19226_v4 = vld [vmem:[#allocation87_spill] sm:$0xff]  ;;  %v10188_v30 = vadd.f32 %v19228_v38, %v10075_v10  ;;  %v18283_v19 = vpop.f32.mrf.mxu0 }
 0x574   : > { %v10286_v42 = vpop.f32.mrf.mxu1  ;;  %v10186_v61 = vadd.f32 %v19227_v21, %v19226_v4 }
 0x575   : > { %v10400_v50 = vmax.f32 %v10283_v0, 0.0  ;;  %v10479_v8 = vpack.c.bf16 %v10399_v57, %v10391_v22  ;;  %v10287_v53 = vadd.f32 %v10286_v42, %v10174_v15  ;;  %v18288_v22 = vpop.f32.mrf.mxu0 }
 0x576   : > { %v10288_v62 = vpop.f32.mrf.mxu1 }
 0x577   : > { %v10480_v36 = vpack.c.bf16 %v10400_v50, %v10392_v23  ;;  %v10289_v7 = vadd.f32 %v10288_v62, %v10176_v13  ;;  %v10407_v2 = vmax.f32 %v10287_v53, 0.0  ;;  %v18290_v29 = vpop.f32.mrf.mxu0 }
 0x578   : > { %v10290_v27 = vpop.f32.mrf.mxu1 }
 0x579   : > { %v10291_v3 = vadd.f32 %v10290_v27, %v10178_v63  ;;  %11379 = vmatprep.mubr.bf16.mxu1 %v10480_v36  ;;  %v10408_v20 = vmax.f32 %v10289_v7, 0.0 }
 0x57a   : > { %v10292_v31 = vpop.f32.mrf.mxu1  ;;  %11380 = vmatmul.mubr.bf16.gmra.mxu1 %v10479_v8  ;;  %v18292_v8 = vpop.f32.mrf.mxu0 }
 0x57b   : > { %v10293_v24 = vadd.f32 %v10292_v31, %v10180_v9  ;;  %v10415_v1 = vmax.f32 %v10291_v3, 0.0 }
 0x57c   : > { %v10296_v43 = vpop.f32.mrf.mxu1  ;;  %v18294_v60 = vpop.f32.mrf.mxu0 }
 0x57d   : > { %v10416_v55 = vmax.f32 %v10293_v24, 0.0  ;;  %v10487_v11 = vpack.c.bf16 %v10415_v1, %v10407_v2  ;;  %v10297_v40 = vadd.f32 %v10296_v43, %v10184_v51 }
 0x57e   : > { %v10298_v18 = vpop.f32.mrf.mxu1  ;;  %v18296_v33 = vpop.f32.mrf.mxu0 }
 0x57f   : > { %v10488_v45 = vpack.c.bf16 %v10416_v55, %v10408_v20  ;;  %v10299_v57 = vadd.f32 %v10298_v18, %v10186_v61  ;;  %v10423_v12 = vmax.f32 %v10297_v40, 0.0 }
 0x580   : > { %v10300_v0 = vpop.f32.mrf.mxu1  ;;  %v18300_v15 = vpop.f32.mrf.mxu0 }
 0x581   : > { %v10301_v42 = vadd.f32 %v10300_v0, %v10188_v30  ;;  %11387 = vmatprep.mubr.bf16.mxu1 %v10488_v45  ;;  %v10424_v36 = vmax.f32 %v10299_v57, 0.0  ;;  %19231 = vst [vmem:[#allocation88_spill] sm:$0xff] %v18300_v15 }
 0x582   : > { %v10302_v23 = vpop.f32.mrf.mxu1  ;;  %11388 = vmatmul.mubr.bf16.gmra.mxu1 %v10487_v11  ;;  %v18302_v52 = vpop.f32.mrf.mxu0 }
 0x583   : > { %v10303_v50 = vadd.f32 %v10302_v23, %v10190_v6  ;;  %v10431_v62 = vmax.f32 %v10301_v42, 0.0  ;;  %19232 = vst [vmem:[#allocation63_spill] sm:$0xff] %v18302_v52 }
 0x584   : > { %v18298_v26 = vpop.f32.mrf.mxu1  ;;  %v18306_v7 = vpop.f32.mrf.mxu0 }
 0x585   : > { %v10432_v14 = vmax.f32 %v10303_v50, 0.0  ;;  %v10495_v63 = vpack.c.bf16 %v10431_v62, %v10423_v12  ;;  %19233 = vst [vmem:[#allocation62_spill] sm:$0xff] %v18306_v7  ;;  %v12603_v7 = vadd.f32 %v18213_v17, %v18205_v54 }
 0x586   : > { %v12663_v27 = vpop.f32.mrf.mxu1  ;;  %v18310_v25 = vpop.f32.mrf.mxu0 }
 0x587   : > { %v10496_v13 = vpack.c.bf16 %v10432_v14, %v10424_v36  ;;  %19234 = vst [vmem:[#allocation67_spill] sm:$0xff] %v18310_v25 }
 0x588   : > { %v18304_v48 = vpop.f32.mrf.mxu1  ;;  %v18314_v53 = vpop.f32.mrf.mxu0 }
 0x589   : > { %11395 = vmatprep.mubr.bf16.mxu1 %v10496_v13  ;;  %19235 = vst [vmem:[#allocation64_spill] sm:$0xff] %v18314_v53 }
 0x58a   : > { %11396 = vmatmul.mubr.bf16.gmra.mxu1 %v10495_v63  ;;  %v18308_v3 = vpop.f32.mrf.mxu1  ;;  %v18318_v58 = vpop.f32.mrf.mxu0 }
 0x58b   : > { %19236 = vst [vmem:[#allocation11_spill] sm:$0xff] %v18318_v58 }
 0x58c   : > { %v18312_v9 = vpop.f32.mrf.mxu1  ;;  %v18322_v10 = vpop.f32.mrf.mxu0 }
 0x58d   : > { %19237 = vst [vmem:[#allocation14_spill] sm:$0xff] %v18322_v10 }
 0x58e   : > { %v18316_v31 = vpop.f32.mrf.mxu1  ;;  %v18326_v1 = vpop.f32.mrf.mxu0 }
 0x58f   : > { %19238 = vst [vmem:[#allocation66_spill] sm:$0xff] %v18326_v1 }
 0x590   : > { %v18320_v16 = vpop.f32.mrf.mxu1  ;;  %v18330_v28 = vpop.f32.mrf.mxu0 }
 0x591   : > { %19239 = vst [vmem:[#allocation16_spill] sm:$0xff] %v18330_v28 }
 0x592   : > { %v18324_v24 = vpop.f32.mrf.mxu1  ;;  %v18334_v20 = vpop.f32.mrf.mxu0 }
 0x593   : > { %19240 = vst [vmem:[#allocation9_spill] sm:$0xff] %v18334_v20 }
 0x594   : > { %v18328_v43 = vpop.f32.mrf.mxu1  ;;  %v18338_v2 = vpop.f32.mrf.mxu0 }
 0x595   : > { %19241 = vst [vmem:[#allocation22_spill] sm:$0xff] %v18338_v2 }
 0x596   : > { %v18332_v56 = vpop.f32.mrf.mxu1  ;;  %v18342_v45 = vpop.f32.mrf.mxu0 }
 0x597   : > { %19242 = vst [vmem:[#allocation20_spill] sm:$0xff] %v18342_v45 }
 0x598   : > { %v18336_v55 = vpop.f32.mrf.mxu1  ;;  %v18346_v21 = vpop.f32.mrf.mxu0 }
 0x599   : > { %19243 = vst [vmem:[#allocation43_spill] sm:$0xff] %v18346_v21 }
 0x59a   : > { %v18340_v18 = vpop.f32.mrf.mxu1  ;;  %v18350_v38 = vpop.f32.mrf.mxu0 }
 0x59b   : > { %19244 = vst [vmem:[#allocation65_spill] sm:$0xff] %v18350_v38 }
 0x59c   : > { %v18344_v4 = vpop.f32.mrf.mxu1  ;;  %v12726_v11 = vpop.f32.mrf.mxu0 }
 0x59e   : > { %v18348_v61 = vpop.f32.mrf.mxu1  ;;  %v12727_v59 = vpop.f32.mrf.mxu0 }
 0x5a0   : > { %v18352_v30 = vpop.f32.mrf.mxu1  ;;  %v12729_v0 = vpop.f32.mrf.mxu0 }
 0x5a2   : > { %v18354_v35 = vpop.f32.mrf.mxu1  ;;  %v12730_v42 = vpop.f32.mrf.mxu0 }
 0x5a4   : > { %v18356_v51 = vpop.f32.mrf.mxu1  ;;  %v12732_v40 = vpop.f32.mrf.mxu0 }
 0x5a6   : > { %v18358_v57 = vpop.f32.mrf.mxu1  ;;  %v12733_v50 = vpop.f32.mrf.mxu0 }
 0x5a8   : > { %v18360_v6 = vpop.f32.mrf.mxu1  ;;  %v12735_v36 = vpop.f32.mrf.mxu0 }
 0x5a9   : > { %19245 = vst [vmem:[#allocation46_spill] sm:$0xff] %v18360_v6  ;;  %v12667_v6 = vadd.f32 %v18308_v3, %v18304_v48  ;;  %v12670_v48 = vadd.f32 %v18316_v31, %v18312_v9  ;;  %v12609_v3 = vadd.f32 %v18245_v32, %v18235_v37 }
 0x5aa   : > { %v18362_v23 = vpop.f32.mrf.mxu1  ;;  %v12736_v12 = vpop.f32.mrf.mxu0 }
 0x5ab   : > { %19246 = vst [vmem:[#allocation75_spill] sm:$0xff] %v18362_v23  ;;  %v12737_v32 = vadd.f32 %v12736_v12, %v12735_v36 }
 0x5ac   : > { %v18364_v62 = vpop.f32.mrf.mxu1  ;;  %v18370_v63 = vpop.f32.mrf.mxu0 }
 0x5ad   : > { %19247 = vst [vmem:[#allocation21_spill] sm:$0xff] %v18364_v62 }
 0x5ae   : > { %v18366_v14 = vpop.f32.mrf.mxu1  ;;  %v18374_v21 = vpop.f32.mrf.mxu0 }
 0x5af   : > { %19248 = vst [vmem:[#allocation17_spill] sm:$0xff] %v18366_v14  ;;  %v12740_v36 = vadd.f32 %v18374_v21, %v18370_v63 }
 0x5b0   : > { %v18368_v13 = vpop.f32.mrf.mxu1  ;;  %v18378_v2 = vpop.f32.mrf.mxu0 }
 0x5b1   : > { %19249 = vst [vmem:[#allocation42_spill] sm:$0xff] %v18368_v13 }
 0x5b2   : > { %v18372_v38 = vpop.f32.mrf.mxu1  ;;  %v18382_v28 = vpop.f32.mrf.mxu0 }
 0x5b3   : > { %19250 = vst [vmem:[#allocation45_spill] sm:$0xff] %v18372_v38  ;;  %v12743_v21 = vadd.f32 %v18382_v28, %v18378_v2 }
 0x5b4   : > { %v18376_v45 = vpop.f32.mrf.mxu1  ;;  %v18386_v10 = vpop.f32.mrf.mxu0 }
 0x5b5   : > { %19251 = vst [vmem:[#allocation24_spill] sm:$0xff] %v18376_v45 }
 0x5b6   : > { %v18380_v20 = vpop.f32.mrf.mxu1  ;;  %v18390_v13 = vpop.f32.mrf.mxu0 }
 0x5b7   : > { %19252 = vst [vmem:[#allocation13_spill] sm:$0xff] %v18380_v20  ;;  %v12746_v28 = vadd.f32 %v18390_v13, %v18386_v10 }
 0x5b8   : > { %v18384_v1 = vpop.f32.mrf.mxu1  ;;  %v18394_v38 = vpop.f32.mrf.mxu0 }
 0x5b9   : > { %19253 = vst [vmem:[#allocation48_spill] sm:$0xff] %v18384_v1  ;;  %v12600_v1 = vadd.f32 %v18197_v46, %v18189_v34 }
 0x5ba   : > { %v18388_v58 = vpop.f32.mrf.mxu1  ;;  %v18398_v14 = vpop.f32.mrf.mxu0 }
 0x5bb   : > { %19254 = vst [vmem:[#allocation68_spill] sm:$0xff] %v18388_v58  ;;  %v18407_v58 = vld [vmem:[%s18548_s6] ss:$0 sm:$0xff]  ;;  %v12749_v10 = vadd.f32 %v18398_v14, %v18394_v38 }
 0x5bc   : > { %v18392_v53 = vpop.f32.mrf.mxu1  ;;  %v18409_v62 = vpop.f32.mrf.mxu0  ;;  %v11062_v31 = vadd.f32 %v12609_v3, %v18407_v58 }
 0x5bd   : > { %19255 = vst [vmem:[#allocation23_spill] sm:$0xff] %v18392_v53  ;;  %19258 = vst [vmem:[#allocation47_spill] sm:$0xff] %v18409_v62  ;;  %v12664_v53 = vadd.f32 %v12663_v27, %v18298_v26  ;;  %v12606_v62 = vadd.f32 %v18229_v39, %v18221_v49  ;;  %v11054_v27 = vadd.f32 %v12603_v7, %v18407_v58 }
 0x5be   : > { %v18396_v45 = vpop.f32.mrf.mxu1  ;;  %v18417_v23 = vpop.f32.mrf.mxu0 }
 0x5bf   : > { %19256 = vst [vmem:[#allocation61_spill] sm:$0xff] %v18396_v45  ;;  %v11051_v45 = vadd.f32 %v12600_v1, %v18407_v58  ;;  %v12731_v1 = vadd.f32 %v12730_v42, %v12729_v0  ;;  %v11151_v17 = vadd.f32 %v12667_v6, %v11054_v27  ;;  %v11059_v39 = vadd.f32 %v12606_v62, %v18407_v58 }
 0x5c0   : > { %v18400_v20 = vpop.f32.mrf.mxu1  ;;  %v18425_v15 = vpop.f32.mrf.mxu0  ;;  %v12673_v42 = vadd.f32 %v18324_v24, %v18320_v16 }
 0x5c1   : > { %19257 = vst [vmem:[#allocation59_spill] sm:$0xff] %v18400_v20  ;;  %v12728_v20 = vadd.f32 %v12727_v59, %v12726_v11  ;;  %v11148_v46 = vadd.f32 %v12664_v53, %v11051_v45  ;;  %v11248_v53 = vadd.f32 %v12731_v1, %v11151_v17  ;;  %v11156_v0 = vadd.f32 %v12670_v48, %v11059_v39 }
 0x5c2   : > { %v18412_v25 = vpop.f32.mrf.mxu1  ;;  %v18438_v11 = vpop.f32.mrf.mxu0  ;;  %v11159_v62 = vadd.f32 %v12673_v42, %v11062_v31  ;;  %v19261_v31 = vld [vmem:[#allocation63_spill] sm:$0xff] }
 0x5c3   : > { %19259 = vst [vmem:[#allocation26_spill] sm:$0xff] %v18412_v25  ;;  %v11245_v25 = vadd.f32 %v12728_v20, %v11148_v46  ;;  %v12734_v20 = vadd.f32 %v12733_v50, %v12732_v40 }
 0x5c4   : > { %v18446_v40 = vpop.f32.mrf.mxu0 }
 0x5c5   : > { %v11253_v37 = vadd.f32 %v12734_v20, %v11156_v0 }
 0x612   : > { %v12790_v34 = vpop.f32.mrf.mxu1 }
 0x614   : > { %v12791_v26 = vpop.f32.mrf.mxu1 }
 0x615   : > { %v12792_v52 = vadd.f32 %v12791_v26, %v12790_v34  ;;  %v12676_v34 = vadd.f32 %v18332_v56, %v18328_v43  ;;  %v18456_v26 = vpop.f32.mrf.mxu0  ;;  %v12679_v43 = vadd.f32 %v18340_v18, %v18336_v55  ;;  %v12682_v55 = vadd.f32 %v18348_v61, %v18344_v4 }
 0x616   : > { %v12793_v54 = vpop.f32.mrf.mxu1  ;;  %v12685_v4 = vadd.f32 %v18354_v35, %v18352_v30  ;;  %v12688_v30 = vadd.f32 %v18358_v57, %v18356_v51 }
 0x617   : > { %v11342_v49 = vadd.f32 %v12792_v52, %v11245_v25  ;;  %v12612_v52 = vadd.f32 %v18261_v41, %v18251_v44  ;;  %v12615_v44 = vadd.f32 %v18277_v47, %v18267_v5  ;;  %v11256_v41 = vadd.f32 %v12737_v32, %v11159_v62  ;;  %v18466_v48 = vpop.f32.mrf.mxu0 }
 0x618   : > { %v12794_v7 = vpop.f32.mrf.mxu1 }
 0x619   : > { %11404 = vst [vmem:[%s18430_s16] sm:$0xff] %v11342_v49  ;;  %v12795_v45 = vadd.f32 %v12794_v7, %v12793_v54  ;;  %v11067_v24 = vadd.f32 %v12612_v52, %v18407_v58  ;;  %v12618_v54 = vadd.f32 %v18288_v22, %v18283_v19  ;;  %v11070_v5 = vadd.f32 %v12615_v44, %v18407_v58  ;;  %v19266_v44 = vld [vmem:[#allocation67_spill] sm:$0xff] }
 0x61a   : > { %v12796_v59 = vpop.f32.mrf.mxu1  ;;  %v12621_v7 = vadd.f32 %v18292_v8, %v18290_v29 }
 0x61b   : > { %v11345_v9 = vadd.f32 %v12795_v45, %v11248_v53  ;;  %v11164_v1 = vadd.f32 %v12676_v34, %v11067_v24  ;;  %v11167_v39 = vadd.f32 %v12679_v43, %v11070_v5  ;;  %v11075_v19 = vadd.f32 %v12618_v54, %v18407_v58  ;;  %v12760_v53 = vpop.f32.mrf.mxu0  ;;  %v19264_v24 = vld [vmem:[#allocation75_spill] sm:$0xff]  ;;  %v19268_v5 = vld [vmem:[#allocation17_spill] sm:$0xff] }
 0x61c   : > { %v12797_v25 = vpop.f32.mrf.mxu1  ;;  %v11078_v29 = vadd.f32 %v12621_v7, %v18407_v58 }
 0x61d   : > { %11405 = vst [vmem:[%s18430_s16 + $0x8] sm:$0xff] %v11345_v9  ;;  %v12798_v6 = vadd.f32 %v12797_v25, %v12796_v59  ;;  %v11261_v47 = vadd.f32 %v12740_v36, %v11164_v1  ;;  %v11264_v3 = vadd.f32 %v12743_v21, %v11167_v39  ;;  %v11172_v45 = vadd.f32 %v12682_v55, %v11075_v19  ;;  %v12762_v42 = vpop.f32.mrf.mxu0  ;;  %v19269_v39 = vld [vmem:[#allocation64_spill] sm:$0xff]  ;;  %v19270_v55 = vld [vmem:[#allocation11_spill] sm:$0xff] }
 0x61e   : > { %v12799_v50 = vpop.f32.mrf.mxu1  ;;  %v12624_v59 = vadd.f32 %v18296_v33, %v18294_v60  ;;  %v11175_v52 = vadd.f32 %v12685_v4, %v11078_v29  ;;  %v19260_v33 = vld [vmem:[#allocation88_spill] sm:$0xff]  ;;  %v19273_v4 = vld [vmem:[#allocation14_spill] sm:$0xff] }
 0x61f   : > { %v11350_v16 = vadd.f32 %v12798_v6, %v11253_v37  ;;  %v11269_v8 = vadd.f32 %v12746_v28, %v11172_v45  ;;  %v12627_v37 = vadd.f32 %v19261_v31, %v19260_v33  ;;  %v19262_v6 = vld [vmem:[#allocation47_spill] sm:$0xff]  ;;  %v19271_v28 = vld [vmem:[#allocation42_spill] sm:$0xff]  ;;  %v19277_v31 = vld [vmem:[#allocation16_spill] sm:$0xff] }
 0x620   : > { %v12800_v46 = vpop.f32.mrf.mxu1  ;;  %v11083_v25 = vadd.f32 %v12624_v59, %v18407_v58  ;;  %v11272_v32 = vadd.f32 %v12749_v10, %v11175_v52  ;;  %v12752_v38 = vadd.f32 %v18417_v23, %v19262_v6  ;;  %v12755_v23 = vadd.f32 %v18438_v11, %v18425_v15  ;;  %v19275_v52 = vld [vmem:[#allocation24_spill] sm:$0xff] }
 0x621   : > { %11406 = vst [vmem:[%s18430_s16 + $0x10] sm:$0xff] %v11350_v16  ;;  %v12801_v12 = vadd.f32 %v12800_v46, %v12799_v50  ;;  %v12763_v50 = vpop.f32.mrf.mxu0  ;;  %v19263_v16 = vld [vmem:[#allocation46_spill] sm:$0xff]  ;;  %v12758_v15 = vadd.f32 %v18456_v26, %v18446_v40  ;;  %v12761_v10 = vadd.f32 %v12760_v53, %v18466_v48 }
 0x622   : > { %v12802_v27 = vpop.f32.mrf.mxu1  ;;  %v11180_v34 = vadd.f32 %v12688_v30, %v11083_v25  ;;  %v12691_v51 = vadd.f32 %v19264_v24, %v19263_v16  ;;  %v19265_v46 = vld [vmem:[#allocation62_spill] sm:$0xff]  ;;  %v19276_v30 = vld [vmem:[#allocation13_spill] sm:$0xff]  ;;  %v19280_v16 = vld [vmem:[#allocation68_spill] sm:$0xff] }
 0x623   : > { %v11353_v56 = vadd.f32 %v12801_v12, %v11256_v41  ;;  %v12630_v41 = vadd.f32 %v19266_v44, %v19265_v46  ;;  %v11086_v12 = vadd.f32 %v12627_v37, %v18407_v58  ;;  %v12765_v43 = vpop.f32.mrf.mxu0  ;;  %v19278_v37 = vld [vmem:[#allocation9_spill] sm:$0xff]  ;;  %v19282_v46 = vld [vmem:[#allocation20_spill] sm:$0xff] }
 0x624   : > { %v12803_v17 = vpop.f32.mrf.mxu1 }
 0x625   : > { %11407 = vst [vmem:[%s18430_s16 + $0x18] sm:$0xff] %v11353_v56  ;;  %v12804_v63 = vadd.f32 %v12803_v17, %v12802_v27  ;;  %v11277_v27 = vadd.f32 %v12752_v38, %v11180_v34  ;;  %v11183_v54 = vadd.f32 %v12691_v51, %v11086_v12  ;;  %v19267_v17 = vld [vmem:[#allocation21_spill] sm:$0xff]  ;;  %v12764_v38 = vadd.f32 %v12763_v50, %v12762_v42  ;;  %v19279_v34 = vld [vmem:[#allocation48_spill] sm:$0xff] }
 0x626   : > { %v12805_v49 = vpop.f32.mrf.mxu1  ;;  %v12703_v24 = vadd.f32 %v19280_v16, %v19279_v34 }
 0x627   : > { %v11358_v18 = vadd.f32 %v12804_v63, %v11261_v47  ;;  %v12694_v47 = vadd.f32 %v19268_v5, %v19267_v17  ;;  %v11091_v63 = vadd.f32 %v12630_v41, %v18407_v58  ;;  %v11280_v19 = vadd.f32 %v12755_v23, %v11183_v54  ;;  %v19284_v54 = vld [vmem:[#allocation61_spill] sm:$0xff] }
 0x628   : > { %v12806_v22 = vpop.f32.mrf.mxu1 }
 0x629   : > { %11408 = vst [vmem:[%s18430_s16 + $0x20] sm:$0xff] %v11358_v18  ;;  %v12807_v2 = vadd.f32 %v12806_v22, %v12805_v49  ;;  %v12633_v18 = vadd.f32 %v19270_v55, %v19269_v39  ;;  %v12766_v22 = vpop.f32.mrf.mxu0 }
 0x62a   : > { %v12808_v20 = vpop.f32.mrf.mxu1 }
 0x62b   : > { %v11361_v61 = vadd.f32 %v12807_v2, %v11264_v3  ;;  %v11188_v3 = vadd.f32 %v12694_v47, %v11091_v63  ;;  %v19272_v2 = vld [vmem:[#allocation45_spill] sm:$0xff]  ;;  %v11094_v29 = vadd.f32 %v12633_v18, %v18407_v58  ;;  %v12768_v26 = vpop.f32.mrf.mxu0  ;;  %v19285_v63 = vld [vmem:[#allocation43_spill] sm:$0xff] }
 0x62c   : > { %v12809_v0 = vpop.f32.mrf.mxu1 }
 0x62d   : > { %11409 = vst [vmem:[%s18430_s16 + $0x28] sm:$0xff] %v11361_v61  ;;  %v12810_v13 = vadd.f32 %v12809_v0, %v12808_v20  ;;  %v12697_v20 = vadd.f32 %v19272_v2, %v19271_v28  ;;  %v19274_v61 = vld [vmem:[#allocation66_spill] sm:$0xff]  ;;  %v12769_v53 = vpop.f32.mrf.mxu0 }
 0x62e   : > { %v12811_v9 = vpop.f32.mrf.mxu1  ;;  %v12636_v59 = vadd.f32 %v19274_v61, %v19273_v4  ;;  %v12770_v18 = vadd.f32 %v12769_v53, %v12768_v26 }
 0x62f   : > { %v11366_v35 = vadd.f32 %v12810_v13, %v11269_v8  ;;  %v11285_v8 = vadd.f32 %v12758_v15, %v11188_v3  ;;  %v12771_v50 = vpop.f32.mrf.mxu0 }
 0x630   : > { %v12812_v60 = vpop.f32.mrf.mxu1 }
 0x631   : > { %11410 = vst [vmem:[%s18430_s16 + $0x30] sm:$0xff] %v11366_v35  ;;  %v12813_v14 = vadd.f32 %v12812_v60, %v12811_v9  ;;  %v11191_v9 = vadd.f32 %v12697_v20, %v11094_v29  ;;  %v12700_v35 = vadd.f32 %v19276_v30, %v19275_v52  ;;  %v11099_v60 = vadd.f32 %v12636_v59, %v18407_v58 }
 0x632   : > { %v12814_v62 = vpop.f32.mrf.mxu1 }
 0x633   : > { %v11369_v57 = vadd.f32 %v12813_v14, %v11272_v32  ;;  %v12639_v32 = vadd.f32 %v19278_v37, %v19277_v31  ;;  %v11288_v6 = vadd.f32 %v12761_v10, %v11191_v9 }
 0x634   : > { %v12815_v36 = vpop.f32.mrf.mxu1 }
 0x635   : > { %11411 = vst [vmem:[%s18430_s16 + $0x38] sm:$0xff] %v11369_v57  ;;  %v12816_v1 = vadd.f32 %v12815_v36, %v12814_v62  ;;  %v11196_v62 = vadd.f32 %v12700_v35, %v11099_v60  ;;  %v19281_v57 = vld [vmem:[#allocation22_spill] sm:$0xff]  ;;  %v11102_v36 = vadd.f32 %v12639_v32, %v18407_v58 }
 0x636   : > { %v12817_v56 = vpop.f32.mrf.mxu1  ;;  %v12642_v44 = vadd.f32 %v19282_v46, %v19281_v57 }
 0x637   : > { %v11374_v21 = vadd.f32 %v12816_v1, %v11277_v27  ;;  %v11293_v12 = vadd.f32 %v12764_v38, %v11196_v62  ;;  %v12767_v27 = vadd.f32 %v12766_v22, %v12765_v43  ;;  %v11199_v1 = vadd.f32 %v12703_v24, %v11102_v36  ;;  %v19287_v22 = vld [vmem:[#allocation59_spill] sm:$0xff] }
 0x638   : > { %v12818_v49 = vpop.f32.mrf.mxu1  ;;  %v11107_v47 = vadd.f32 %v12642_v44, %v18407_v58 }
 0x639   : > { %11412 = vst [vmem:[%s18430_s16 + $0x40] sm:$0xff] %v11374_v21  ;;  %v12819_v11 = vadd.f32 %v12818_v49, %v12817_v56  ;;  %v19283_v56 = vld [vmem:[#allocation23_spill] sm:$0xff]  ;;  %v19286_v49 = vld [vmem:[#allocation65_spill] sm:$0xff]  ;;  %v11296_v55 = vadd.f32 %v12767_v27, %v11199_v1 }
 0x63a   : > { %v12820_v7 = vpop.f32.mrf.mxu1  ;;  %v12706_v17 = vadd.f32 %v19284_v54, %v19283_v56  ;;  %v12645_v39 = vadd.f32 %v19286_v49, %v19285_v63 }
 0x63b   : > { %v11377_v45 = vadd.f32 %v12819_v11, %v11280_v19  ;;  %v12772_v19 = vpop.f32.mrf.mxu0 }
 0x63c   : > { %v12821_v0 = vpop.f32.mrf.mxu1  ;;  %v11204_v11 = vadd.f32 %v12706_v17, %v11107_v47  ;;  %v11110_v20 = vadd.f32 %v12645_v39, %v18407_v58  ;;  %v12773_v4 = vadd.f32 %v12772_v19, %v12771_v50 }
 0x63d   : > { %11413 = vst [vmem:[%s18430_s16 + $0x48] sm:$0xff] %v11377_v45  ;;  %v12822_v40 = vadd.f32 %v12821_v0, %v12820_v7  ;;  %v19288_v7 = vld [vmem:[#allocation26_spill] sm:$0xff] }
 0x63e   : > { %v12823_v13 = vpop.f32.mrf.mxu1  ;;  %v12709_v3 = vadd.f32 %v19288_v7, %v19287_v22  ;;  %v11301_v45 = vadd.f32 %v12770_v18, %v11204_v11 }
 0x63f   : > { %v11382_v25 = vadd.f32 %v12822_v40, %v11285_v8 }
 0x640   : > { %v12824_v33 = vpop.f32.mrf.mxu1  ;;  %v11207_v0 = vadd.f32 %v12709_v3, %v11110_v20 }
 0x641   : > { %11414 = vst [vmem:[%s18430_s16 + $0x50] sm:$0xff] %v11382_v25  ;;  %v12825_v48 = vadd.f32 %v12824_v33, %v12823_v13 }
 0x642   : > { %v12826_v14 = vpop.f32.mrf.mxu1  ;;  %v11304_v10 = vadd.f32 %v12773_v4, %v11207_v0 }
 0x643   : > { %v11385_v51 = vadd.f32 %v12825_v48, %v11288_v6 }
 0x644   : > { %v12827_v41 = vpop.f32.mrf.mxu1 }
 0x645   : > { %11415 = vst [vmem:[%s18430_s16 + $0x58] sm:$0xff] %v11385_v51  ;;  %v12828_v42 = vadd.f32 %v12827_v41, %v12826_v14 }
 0x646   : > { %v12829_v23 = vpop.f32.mrf.mxu1 }
 0x647   : > { %v11390_v5 = vadd.f32 %v12828_v42, %v11293_v12 }
 0x648   : > { %v12830_v21 = vpop.f32.mrf.mxu1 }
 0x649   : > { %11416 = vst [vmem:[%s18430_s16 + $0x60] sm:$0xff] %v11390_v5  ;;  %v12831_v43 = vadd.f32 %v12830_v21, %v12829_v23 }
 0x64a   : > { %v12832_v15 = vpop.f32.mrf.mxu1 }
 0x64b   : > { %v11393_v28 = vadd.f32 %v12831_v43, %v11296_v55 }
 0x64c   : > { %v12833_v2 = vpop.f32.mrf.mxu1 }
 0x64d   : > { %11417 = vst [vmem:[%s18430_s16 + $0x68] sm:$0xff] %v11393_v28  ;;  %v12834_v61 = vadd.f32 %v12833_v2, %v12832_v15 }
 0x64e   : > { %v12835_v59 = vpop.f32.mrf.mxu1 }
 0x64f   : > { %v11398_v29 = vadd.f32 %v12834_v61, %v11301_v45 }
 0x650   : > { %v12836_v8 = vpop.f32.mrf.mxu1 }
 0x651   : > { %11418 = vst [vmem:[%s18430_s16 + $0x70] sm:$0xff] %v11398_v29  ;;  %v12837_v40 = vadd.f32 %v12836_v8, %v12835_v59 }
 0x653   : > { %v11401_v26 = vadd.f32 %v12837_v40, %v11304_v10 }
 0x655   : > { %11419 = vst [vmem:[%s18430_s16 + $0x78] sm:$0xff] %v11401_v26 }
 0x656 PF: > { %s18_s24 = sadd.s32 1, %s13214_s24  }
 0x657   : > { %p15_p1 = scmp.ge.s32.totalorder %s18_s24, 4  }
 0x659   :  { %17 = sbr.rel (!%p15_p1) target bundleno = 1 (0x1), region = 83 }
 0x65e   :  { %11442 = vsyncpa [#allocation3], 1 }
 0x65f   :  { %11444 = vsyncpa [#allocation3 + $0x1], 1 }

</bundles_post_ra>
